<compile_context>
chip_gen: v7x
topology: tpu7x:2x2x1
jax: 0.10.0
libtpu: 0.0.40
codegen_flags: <defaults>
</compile_context>

<pallas_src>
import jax
import jax.numpy as jnp
from jax.experimental import pallas as pl
from jax.experimental.pallas import tpu as pltpu

EPS = 1e-5
MM_DTYPE = jnp.bfloat16   # MXU operand dtype & intermediate-activation storage dtype
CPAD = 128                # channel dim carried padded to the lane width end-to-end


def _round_up(x, m):
    return (x + m - 1) // m * m


# ---------------- Pallas kernels (single K step, f32 epilogues) ----------------

def _mm_kernel(a_ref, b_ref, o_ref):
    o_ref[...] = jnp.dot(a_ref[...], b_ref[...],
                         preferred_element_type=jnp.float32).astype(o_ref.dtype)


def _mm_bn_relu_kernel(a_ref, b_ref, scale_ref, shift_ref, o_ref):
    # conv matmul with fused folded-BatchNorm + ReLU epilogue.
    acc = jnp.dot(a_ref[...], b_ref[...], preferred_element_type=jnp.float32)
    o_ref[...] = jnp.maximum(acc * scale_ref[...] + shift_ref[...],
                             0.0).astype(o_ref.dtype)


def _mm_add_kernel(a_ref, b_ref, r_ref, o_ref):
    # conv matmul with fused identity-shortcut residual add.
    acc = jnp.dot(a_ref[...], b_ref[...], preferred_element_type=jnp.float32)
    o_ref[...] = (acc + r_ref[...].astype(jnp.float32)).astype(o_ref.dtype)


def _mm_shortcut_kernel(a_ref, b_ref, xs_ref, ws_ref, o_ref):
    # conv matmul with the 1x1 strided shortcut conv fused in (second small dot).
    acc = jnp.dot(a_ref[...], b_ref[...], preferred_element_type=jnp.float32)
    acc = acc + jnp.dot(xs_ref[...], ws_ref[...],
                        preferred_element_type=jnp.float32)
    o_ref[...] = acc.astype(o_ref.dtype)


def _bn_relu_kernel(x_ref, scale_ref, shift_ref, o_ref):
    # y = relu(x * scale + shift), f32 compute, bf16 in/out.
    y = x_ref[...].astype(jnp.float32) * scale_ref[...] + shift_ref[...]
    o_ref[...] = jnp.maximum(y, 0.0).astype(o_ref.dtype)


def _bn_relu_pool_fc_kernel(x_ref, scale_ref, shift_ref, w_ref, b_ref,
                            lat_ref, log_ref):
    # relu(bn(x)) -> global average pool -> FC (+bias), all in one call.
    y = jnp.maximum(x_ref[...].astype(jnp.float32) * scale_ref[...]
                    + shift_ref[...], 0.0)                 # (N, HW, C)
    lat = jnp.mean(y, axis=1)                              # (N, C) f32
    lat_ref[...] = lat
    log_ref[...] = (jnp.dot(lat.astype(w_ref.dtype), w_ref[...],
                            preferred_element_type=jnp.float32) + b_ref[...])


# ---------------- Pallas call wrappers ----------------

def _pick_tm(M):
    # >=2 parallel grid steps where possible (v7x has 2 TensorCores); <=256 rows
    # per step; multiple of 16 (bf16 sublane packing).
    tm = min(256, max(16, M // 2))
    return _round_up(tm, 16)


def conv_matmul(a, b, *, scale=None, shift=None, resid=None, xs=None, wsc=None,
                out_dtype=MM_DTYPE):
    """(M,K)@(K,N) with K in a single tile; 1-D parallel grid over M.

    Fused epilogues (mutually exclusive):
      scale/shift : out = relu(acc * scale + shift)   (folded BN + ReLU)
      resid       : out = acc + resid                 (identity shortcut)
      xs, wsc     : out = acc + xs @ wsc              (1x1 conv shortcut)
    Operands are bf16; accumulation and epilogues are f32."""
    M, K = a.shape
    K2, N = b.shape
    assert K == K2 and K % 128 == 0 and N % 128 == 0 and K <= 9 * CPAD
    tm = _pick_tm(M)
    Mp = _round_up(M, tm)
    a_p = a if Mp == M else jnp.pad(a, ((0, Mp - M), (0, 0)))
    a_p = a_p.astype(MM_DTYPE)
    b = b.astype(MM_DTYPE)

    in_specs = [pl.BlockSpec((tm, K), lambda i: (i, 0)),
                pl.BlockSpec((K, N), lambda i: (0, 0))]
    args = [a_p, b]
    flops = 2 * Mp * N * K
    out_bytes = jnp.dtype(out_dtype).itemsize
    bytes_accessed = Mp * K * 2 + K * N * 2 + Mp * N * out_bytes

    if scale is not None:
        kernel = _mm_bn_relu_kernel
        in_specs += [pl.BlockSpec((1, N), lambda i: (0, 0)),
                     pl.BlockSpec((1, N), lambda i: (0, 0))]
        args += [scale.reshape(1, N).astype(jnp.float32),
                 shift.reshape(1, N).astype(jnp.float32)]
        bytes_accessed += 2 * N * 4
    elif resid is not None:
        kernel = _mm_add_kernel
        r = resid if Mp == M else jnp.pad(resid, ((0, Mp - M), (0, 0)))
        in_specs += [pl.BlockSpec((tm, N), lambda i: (i, 0))]
        args += [r.astype(MM_DTYPE)]
        bytes_accessed += Mp * N * 2
    elif xs is not None:
        kernel = _mm_shortcut_kernel
        Ks = xs.shape[1]
        xs_p = xs if Mp == M else jnp.pad(xs, ((0, Mp - M), (0, 0)))
        in_specs += [pl.BlockSpec((tm, Ks), lambda i: (i, 0)),
                     pl.BlockSpec((Ks, N), lambda i: (0, 0))]
        args += [xs_p.astype(MM_DTYPE), wsc.astype(MM_DTYPE)]
        flops += 2 * Mp * N * Ks
        bytes_accessed += Mp * Ks * 2 + Ks * N * 2
    else:
        kernel = _mm_kernel

    out = pl.pallas_call(
        kernel,
        grid=(Mp // tm,),
        in_specs=in_specs,
        out_specs=pl.BlockSpec((tm, N), lambda i: (i, 0)),
        out_shape=jax.ShapeDtypeStruct((Mp, N), out_dtype),
        compiler_params=pltpu.CompilerParams(
            dimension_semantics=("parallel",)),
        cost_estimate=pl.CostEstimate(flops=flops, transcendentals=0,
                                      bytes_accessed=bytes_accessed),
    )(*args)
    return out if Mp == M else out[:M]


def bn_relu(x2d, scale, shift):
    """Tiled elementwise relu(x*scale + shift) over (M, CPAD); bf16 in/out."""
    M, C = x2d.shape
    tm = _pick_tm(M)
    Mp = _round_up(M, tm)
    x_p = x2d if Mp == M else jnp.pad(x2d, ((0, Mp - M), (0, 0)))
    out = pl.pallas_call(
        _bn_relu_kernel,
        grid=(Mp // tm,),
        in_specs=[pl.BlockSpec((tm, C), lambda i: (i, 0)),
                  pl.BlockSpec((1, C), lambda i: (0, 0)),
                  pl.BlockSpec((1, C), lambda i: (0, 0))],
        out_specs=pl.BlockSpec((tm, C), lambda i: (i, 0)),
        out_shape=jax.ShapeDtypeStruct((Mp, C), MM_DTYPE),
        compiler_params=pltpu.CompilerParams(
            dimension_semantics=("parallel",)),
    )(x_p, scale.reshape(1, C).astype(jnp.float32),
      shift.reshape(1, C).astype(jnp.float32))
    return out if Mp == M else out[:M]


def bn_relu_pool_fc(x_nhwc, scale, shift, fc_w, fc_b):
    """Fused relu(bn(x)) + global avg pool + FC, one single-step Pallas call."""
    N, H, W, C = x_nhwc.shape
    NCp = fc_w.shape[1]
    x3 = x_nhwc.reshape(N, H * W, C)
    lat, log = pl.pallas_call(
        _bn_relu_pool_fc_kernel,
        grid=(1,),
        in_specs=[pl.BlockSpec((N, H * W, C), lambda i: (0, 0, 0)),
                  pl.BlockSpec((1, 1, C), lambda i: (0, 0, 0)),
                  pl.BlockSpec((1, 1, C), lambda i: (0, 0, 0)),
                  pl.BlockSpec((C, NCp), lambda i: (0, 0)),
                  pl.BlockSpec((1, NCp), lambda i: (0, 0))],
        out_specs=(pl.BlockSpec((N, C), lambda i: (0, 0)),
                   pl.BlockSpec((N, NCp), lambda i: (0, 0))),
        out_shape=(jax.ShapeDtypeStruct((N, C), jnp.float32),
                   jax.ShapeDtypeStruct((N, NCp), jnp.float32)),
    )(x3, scale.reshape(1, 1, C).astype(jnp.float32),
      shift.reshape(1, 1, C).astype(jnp.float32),
      fc_w.astype(MM_DTYPE), fc_b.reshape(1, NCp).astype(jnp.float32))
    return lat, log


# ---------------- JAX glue ----------------

def _im2col(x_nhwc, stride):
    """3x3 / pad-1 patches: (N,H,W,C) -> (N*Ho*Wo, 9*C), (ky,kx,c) order."""
    N, H, W, C = x_nhwc.shape
    Ho = (H + 2 - 3) // stride + 1
    Wo = (W + 2 - 3) // stride + 1
    xp = jnp.pad(x_nhwc, ((0, 0), (1, 1), (1, 1), (0, 0)))
    cols = []
    for ky in range(3):
        for kx in range(3):
            cols.append(
                xp[:, ky:ky + stride * Ho:stride, kx:kx + stride * Wo:stride, :])
    patches = jnp.concatenate(cols, axis=-1)
    return patches.reshape(N * Ho * Wo, 9 * C), Ho, Wo


def conv3x3(x_nhwc, wmat, stride, **epilogue):
    """3x3 conv (pad 1, no bias) = im2col + single-K-step Pallas matmul.
    `wmat` is the pre-padded (Kp, CPAD) bf16 weight matrix."""
    N = x_nhwc.shape[0]
    cols, Ho, Wo = _im2col(x_nhwc, stride)
    K = cols.shape[1]
    Kp = wmat.shape[0]
    if Kp != K:                        # stem only: 27 -> 128
        cols = jnp.pad(cols, ((0, 0), (0, Kp - K)))
    out = conv_matmul(cols, wmat, **epilogue)
    return out.reshape(N, Ho, Wo, wmat.shape[1])


# ---------------- parameter prep (fold BN, pad channels, reshape weights) -------

def _fold_bn(gamma, beta, mean, var):
    scale = gamma / jnp.sqrt(var + EPS)
    return scale, beta - mean * scale


def _fold_bn_pad(gamma, beta, mean, var, cpad=CPAD):
    scale, shift = _fold_bn(gamma, beta, mean, var)
    c = scale.shape[0]
    if c < cpad:
        scale = jnp.pad(scale, (0, cpad - c))   # zero pad -> relu(0)=0 keeps pad clean
        shift = jnp.pad(shift, (0, cpad - c))
    return scale, shift


def _prep_conv3x3_w(w_oihw, cpad=CPAD):
    # OIHW -> (ky,kx,ci,co); pad ci/co to cpad PER (ky,kx) group; -> (9*cpad, cpad).
    co, ci, kh, kw = w_oihw.shape
    w = jnp.transpose(w_oihw, (2, 3, 1, 0))
    w = jnp.pad(w, ((0, 0), (0, 0), (0, cpad - ci), (0, cpad - co)))
    return w.reshape(kh * kw * cpad, cpad).astype(MM_DTYPE)


def _prep_stem_w(w_oihw, cpad=CPAD):
    # Stem input keeps its 3 real channels; pad K only at the tail (27 -> 128).
    co, ci, kh, kw = w_oihw.shape
    w = jnp.transpose(w_oihw, (2, 3, 1, 0)).reshape(kh * kw * ci, co)
    kp = _round_up(kh * kw * ci, 128)
    w = jnp.pad(w, ((0, kp - kh * kw * ci), (0, cpad - co)))
    return w.astype(MM_DTYPE)


def _prep_conv1x1_w(w_oihw, cpad=CPAD):
    co, ci = w_oihw.shape[0], w_oihw.shape[1]
    w = w_oihw.reshape(co, ci).T
    w = jnp.pad(w, ((0, cpad - ci), (0, cpad - co)))
    return w.astype(MM_DTYPE)


def prepare_params(params, block_meta, cpad=CPAD):
    """One-time weight prep: fold BN, pad channels to cpad, matmul-layout weights."""
    pp = {"stem_w": _prep_stem_w(params["conv1_w"], cpad)}
    blocks = []
    for p, (stride, has_sc) in zip(params["blocks"], block_meta):
        b = {}
        b["sc1"], b["sh1"] = _fold_bn_pad(p["bn1_gamma"], p["bn1_beta"],
                                          p["bn1_mean"], p["bn1_var"], cpad)
        b["sc2"], b["sh2"] = _fold_bn_pad(p["bn2_gamma"], p["bn2_beta"],
                                          p["bn2_mean"], p["bn2_var"], cpad)
        b["w1"] = _prep_conv3x3_w(p["conv1_w"], cpad)
        b["w2"] = _prep_conv3x3_w(p["conv2_w"], cpad)
        if has_sc:
            b["wsc"] = _prep_conv1x1_w(p["short_w"], cpad)
        blocks.append(b)
    pp["blocks"] = blocks
    pp["sc"], pp["sh"] = _fold_bn_pad(params["bn_gamma"], params["bn_beta"],
                                      params["bn_mean"], params["bn_var"], cpad)
    nc = params["fc_w"].shape[0]
    cfin = params["fc_w"].shape[1]
    ncp = _round_up(nc, 128)
    fcw = jnp.pad(params["fc_w"].T, ((0, cpad - cfin), (0, ncp - nc)))
    pp["fc_w"] = fcw.astype(MM_DTYPE)
    pp["fc_b"] = jnp.pad(params["fc_b"], (0, ncp - nc)).astype(jnp.float32)
    return pp


# ---------------- forward ----------------

def basic_block(x_nhwc, bp, stride, has_shortcut):
    """Pre-activation WideResNet BasicBlock (inference), NHWC in/out (C padded)."""
    N, H, W, C = x_nhwc.shape
    # bn1 + relu (standalone: output feeds im2col, cannot be fused past spatial pad).
    y = bn_relu(x_nhwc.reshape(-1, C), bp["sc1"], bp["sh1"]).reshape(N, H, W, C)
    # conv1 with FUSED (dropout = eval identity) bn2 + relu epilogue.
    out = conv3x3(y, bp["w1"], stride, scale=bp["sc2"], shift=bp["sh2"])
    # conv2 with the shortcut FUSED into its epilogue.
    if has_shortcut:
        xs = x_nhwc[:, ::stride, ::stride, :].reshape(-1, C)
        res = conv3x3(out, bp["w2"], 1, xs=xs, wsc=bp["wsc"])
    else:
        res = conv3x3(out, bp["w2"], 1, resid=x_nhwc.reshape(-1, C))
    return res


def wideresnet_forward(x_nchw, pp, block_meta, c_final, num_classes):
    # Single NCHW->NHWC transpose at entry; channels stay padded to CPAD after the
    # stem, so no per-layer pad/slice copies and all stores are lane dense.
    x = jnp.transpose(x_nchw, (0, 2, 3, 1)).astype(jnp.float32)
    x = conv3x3(x, pp["stem_w"], 1)                       # stem conv, bf16 out
    for bp, (stride, has_sc) in zip(pp["blocks"], block_meta):
        x = basic_block(x, bp, stride, has_sc)
    latent, logits = bn_relu_pool_fc(x, pp["sc"], pp["sh"], pp["fc_w"], pp["fc_b"])
    return logits[:, :num_classes], latent[:, :c_final]


# ---------------- pure-JAX reference (same precision policy: bf16 activations,
# ---------------- bf16 MXU operands, f32 accumulation/epilogues) ----------------

def _ref_conv(x, w, stride, pad):
    return jax.lax.conv_general_dilated(
        x.astype(MM_DTYPE), w.astype(MM_DTYPE), (stride, stride),
        [(pad, pad), (pad, pad)],
        dimension_numbers=("NCHW", "OIHW", "NCHW"),
        preferred_element_type=jnp.float32)


def _ref_bn_relu(x_f32, g, b, m, v):
    sc, sh = _fold_bn(g, b, m, v)
    return jnp.maximum(x_f32 * sc[None, :, None, None]
                       + sh[None, :, None, None], 0.0)


def _ref_block(x, p, stride):
    Cin, Cout = x.shape[1], p["conv1_w"].shape[0]
    y = _ref_bn_relu(x.astype(jnp.float32), p["bn1_gamma"], p["bn1_beta"],
                     p["bn1_mean"], p["bn1_var"]).astype(MM_DTYPE)
    out = _ref_conv(y, p["conv1_w"], stride, 1)
    out = _ref_bn_relu(out, p["bn2_gamma"], p["bn2_beta"],
                       p["bn2_mean"], p["bn2_var"]).astype(MM_DTYPE)
    out2 = _ref_conv(out, p["conv2_w"], 1, 1)
    if stride != 1 or Cin != Cout:
        s = _ref_conv(x, p["short_w"], stride, 0)
    else:
        s = x.astype(jnp.float32)
    return (out2 + s).astype(MM_DTYPE)


def ref_forward(x_nchw, params, strides):
    x = _ref_conv(x_nchw.astype(jnp.float32),
                  params["conv1_w"], 1, 1).astype(MM_DTYPE)
    for p, s in zip(params["blocks"], strides):
        x = _ref_block(x, p, s)
    y = _ref_bn_relu(x.astype(jnp.float32), params["bn_gamma"], params["bn_beta"],
                     params["bn_mean"], params["bn_var"])
    latent = jnp.mean(y, axis=(2, 3))
    logits = jnp.dot(latent.astype(MM_DTYPE), params["fc_w"].T.astype(MM_DTYPE),
                     preferred_element_type=jnp.float32) + params["fc_b"][None, :]
    return logits, latent


# ---------------- parameter construction ----------------

def make_params(key, depth=16, widen_factor=2, num_classes=10):
    assert (depth - 4) % 6 == 0
    n = (depth - 4) // 6
    keys = iter(jax.random.split(key, 512))

    def nrm(shape, s=0.05):
        return s * jax.random.normal(next(keys), shape, dtype=jnp.float32)

    def bn_params(prefix, c):
        return {
            prefix + "_gamma": 1.0 + 0.1 * jax.random.normal(next(keys), (c,), dtype=jnp.float32),
            prefix + "_beta": 0.1 * jax.random.normal(next(keys), (c,), dtype=jnp.float32),
            prefix + "_mean": 0.1 * jax.random.normal(next(keys), (c,), dtype=jnp.float32),
            prefix + "_var": jax.random.uniform(next(keys), (c,), minval=0.5,
                                                maxval=1.5, dtype=jnp.float32),
        }

    params = {"conv1_w": nrm((16, 3, 3, 3))}
    blocks, block_meta = [], []
    in_planes = 16
    for width, stage_stride in zip([16 * widen_factor, 32 * widen_factor,
                                    64 * widen_factor], [1, 2, 2]):
        for i in range(n):
            s = stage_stride if i == 0 else 1
            has_sc = (s != 1) or (in_planes != width)
            p = {}
            p.update(bn_params("bn1", in_planes))
            p["conv1_w"] = nrm((width, in_planes, 3, 3))
            p.update(bn_params("bn2", width))
            p["conv2_w"] = nrm((width, width, 3, 3))
            if has_sc:
                p["short_w"] = nrm((width, in_planes, 1, 1))
            blocks.append(p)
            block_meta.append((s, has_sc))
            in_planes = width
    params["blocks"] = blocks
    params.update(bn_params("bn", in_planes))
    params["fc_w"] = nrm((num_classes, in_planes))
    params["fc_b"] = nrm((num_classes,))
    return params, tuple(block_meta), in_planes


# ---------------- test ----------------

if __name__ == "__main__":
    key = jax.random.PRNGKey(0)
    depth, widen, num_classes = 16, 2, 10     # WRN-16-2: exercises both shortcut kinds
    params, block_meta, c_final = make_params(key, depth, widen, num_classes)
    pp = prepare_params(params, block_meta)   # one-time weight prep (pads channels)

    x = jax.random.normal(jax.random.fold_in(key, 7), (2, 3, 16, 16),
                          dtype=jnp.float32)

    strides = tuple(s for s, _ in block_meta)
    fwd = jax.jit(lambda xx, prepped: wideresnet_forward(
        xx, prepped, block_meta, c_final, num_classes))
    ref = jax.jit(lambda xx, raw: ref_forward(xx, raw, strides))

    logits, latent = jax.block_until_ready(fwd(x, pp))
    rlogits, rlatent = jax.block_until_ready(ref(x, params))

    assert logits.shape == (2, num_classes), logits.shape
    assert latent.shape == (2, c_final), latent.shape

    def nerr(a, b):
        return float(jnp.max(jnp.abs(a - b) / (1.0 + jnp.abs(b))))

    err_logits = nerr(logits, rlogits)
    err_latent = nerr(latent, rlatent)
    assert err_logits < 2e-2 and err_latent < 2e-2, (err_logits, err_latent)
    print("KERNEL_OK")
</pallas_src>

<mosaic_0001>
module attributes {stable_mosaic.version = 11 : i64} {
  func.func @_mm_kernel(%arg0: i32, %arg1: memref<256x128xbf16, #tpu.memory_space<vmem>>, %arg2: memref<128x128xbf16, #tpu.memory_space<vmem>>, %arg3: memref<256x128xbf16, #tpu.memory_space<vmem>>) attributes {dimension_semantics = [#tpu.dimension_semantics<parallel>], iteration_bounds = array<i64: 2>, scalar_prefetch = 0 : i64, scratch_operands = 0 : i64, tpu.core_type = #tpu.core_type<tc>, window_params = [{transform_indices = @transform_0, window_bounds = array<i64: 256, 128>}, {pipeline_mode = #tpu.pipeline_mode<synchronous>, transform_indices = @transform_1, window_bounds = array<i64: 128, 128>}, {transform_indices = @transform_2, window_bounds = array<i64: 256, 128>}]} {
    %c0 = arith.constant 0 : index
    %c0_0 = arith.constant 0 : index
    %0 = vector.load %arg1[%c0, %c0_0] : memref<256x128xbf16, #tpu.memory_space<vmem>>, vector<256x128xbf16>
    %c0_1 = arith.constant 0 : index
    %c0_2 = arith.constant 0 : index
    %1 = vector.load %arg2[%c0_1, %c0_2] : memref<128x128xbf16, #tpu.memory_space<vmem>>, vector<128x128xbf16>
    %cst = arith.constant dense<0.000000e+00> : vector<256x128xf32>
    %2 = tpu.matmul %0, %1, %cst {dimension_numbers = #tpu.dot_dimension_numbers<[1], [0], [0], [1], [0, 0, 1, 1], [], []>} : vector<256x128xbf16>, vector<128x128xbf16>, vector<256x128xf32> -> vector<256x128xf32>
    %3 = arith.truncf %2 : vector<256x128xf32> to vector<256x128xbf16>
    %c0_3 = arith.constant 0 : index
    %c0_4 = arith.constant 0 : index
    %4 = vector.load %arg3[%c0_3, %c0_4] : memref<256x128xbf16, #tpu.memory_space<vmem>>, vector<256x128xbf16>
    tpu.vector_store %arg3[%c0_3, %c0_4], %3 {strides = array<i32>} : memref<256x128xbf16, #tpu.memory_space<vmem>>, vector<256x128xbf16>,
    return
  }
  func.func @transform_0(%arg0: i32) -> (i32, i32) {
    %c0_i32 = arith.constant 0 : i32
    %c0_i32_0 = arith.constant 0 : i32
    return %arg0, %c0_i32 : i32, i32
  }
  func.func @transform_1(%arg0: i32) -> (i32, i32) {
    %c0_i32 = arith.constant 0 : i32
    %c0_i32_0 = arith.constant 0 : i32
    %c0_i32_1 = arith.constant 0 : i32
    return %c0_i32, %c0_i32_0 : i32, i32
  }
  func.func @transform_2(%arg0: i32) -> (i32, i32) {
    %c0_i32 = arith.constant 0 : i32
    %c0_i32_0 = arith.constant 0 : i32
    return %arg0, %c0_i32 : i32, i32
  }
}

module attributes {stable_mosaic.version = 11 : i64} {
  func.func @_bn_relu_kernel(%arg0: i32, %arg1: memref<256x128xbf16, #tpu.memory_space<vmem>>, %arg2: memref<1x128xf32, #tpu.memory_space<vmem>>, %arg3: memref<1x128xf32, #tpu.memory_space<vmem>>, %arg4: memref<256x128xbf16, #tpu.memory_space<vmem>>) attributes {dimension_semantics = [#tpu.dimension_semantics<parallel>], iteration_bounds = array<i64: 2>, scalar_prefetch = 0 : i64, scratch_operands = 0 : i64, tpu.core_type = #tpu.core_type<tc>, window_params = [{transform_indices = @transform_0, window_bounds = array<i64: 256, 128>}, {pipeline_mode = #tpu.pipeline_mode<synchronous>, transform_indices = @transform_1, window_bounds = array<i64: 1, 128>}, {pipeline_mode = #tpu.pipeline_mode<synchronous>, transform_indices = @transform_2, window_bounds = array<i64: 1, 128>}, {transform_indices = @transform_3, window_bounds = array<i64: 256, 128>}]} {
    %c0 = arith.constant 0 : index
    %c0_0 = arith.constant 0 : index
    %0 = vector.load %arg1[%c0, %c0_0] : memref<256x128xbf16, #tpu.memory_space<vmem>>, vector<256x128xbf16>
    %1 = arith.extf %0 : vector<256x128xbf16> to vector<256x128xf32>
    %c0_1 = arith.constant 0 : index
    %c0_2 = arith.constant 0 : index
    %2 = vector.load %arg2[%c0_1, %c0_2] : memref<1x128xf32, #tpu.memory_space<vmem>>, vector<1x128xf32>
    %3 = vector.broadcast %2 : vector<1x128xf32> to vector<256x128xf32>
    %4 = arith.mulf %1, %3 : vector<256x128xf32>
    %c0_3 = arith.constant 0 : index
    %c0_4 = arith.constant 0 : index
    %5 = vector.load %arg3[%c0_3, %c0_4] : memref<1x128xf32, #tpu.memory_space<vmem>>, vector<1x128xf32>
    %6 = vector.broadcast %5 : vector<1x128xf32> to vector<256x128xf32>
    %7 = arith.addf %4, %6 : vector<256x128xf32>
    %cst = arith.constant 0.000000e+00 : f32
    %8 = vector.broadcast %cst : f32 to vector<256x128xf32>
    %9 = arith.maximumf %7, %8 : vector<256x128xf32>
    %10 = arith.truncf %9 : vector<256x128xf32> to vector<256x128xbf16>
    %c0_5 = arith.constant 0 : index
    %c0_6 = arith.constant 0 : index
    %11 = vector.load %arg4[%c0_5, %c0_6] : memref<256x128xbf16, #tpu.memory_space<vmem>>, vector<256x128xbf16>
    tpu.vector_store %arg4[%c0_5, %c0_6], %10 {strides = array<i32>} : memref<256x128xbf16, #tpu.memory_space<vmem>>, vector<256x128xbf16>,
    return
  }
  func.func @transform_0(%arg0: i32) -> (i32, i32) {
    %c0_i32 = arith.constant 0 : i32
    %c0_i32_0 = arith.constant 0 : i32
    return %arg0, %c0_i32 : i32, i32
  }
  func.func @transform_1(%arg0: i32) -> (i32, i32) {
    %c0_i32 = arith.constant 0 : i32
    %c0_i32_0 = arith.constant 0 : i32
    %c0_i32_1 = arith.constant 0 : i32
    return %c0_i32, %c0_i32_0 : i32, i32
  }
  func.func @transform_2(%arg0: i32) -> (i32, i32) {
    %c0_i32 = arith.constant 0 : i32
    %c0_i32_0 = arith.constant 0 : i32
    %c0_i32_1 = arith.constant 0 : i32
    return %c0_i32, %c0_i32_0 : i32, i32
  }
  func.func @transform_3(%arg0: i32) -> (i32, i32) {
    %c0_i32 = arith.constant 0 : i32
    %c0_i32_0 = arith.constant 0 : i32
    return %arg0, %c0_i32 : i32, i32
  }
}

module attributes {stable_mosaic.version = 11 : i64} {
  func.func @_mm_add_kernel(%arg0: i32, %arg1: memref<256x1152xbf16, #tpu.memory_space<vmem>>, %arg2: memref<1152x128xbf16, #tpu.memory_space<vmem>>, %arg3: memref<256x128xbf16, #tpu.memory_space<vmem>>, %arg4: memref<256x128xbf16, #tpu.memory_space<vmem>>) attributes {dimension_semantics = [#tpu.dimension_semantics<parallel>], iteration_bounds = array<i64: 2>, scalar_prefetch = 0 : i64, scratch_operands = 0 : i64, tpu.core_type = #tpu.core_type<tc>, window_params = [{transform_indices = @transform_0, window_bounds = array<i64: 256, 1152>}, {pipeline_mode = #tpu.pipeline_mode<synchronous>, transform_indices = @transform_1, window_bounds = array<i64: 1152, 128>}, {transform_indices = @transform_2, window_bounds = array<i64: 256, 128>}, {transform_indices = @transform_3, window_bounds = array<i64: 256, 128>}]} {
    %c0 = arith.constant 0 : index
    %c0_0 = arith.constant 0 : index
    %0 = vector.load %arg1[%c0, %c0_0] : memref<256x1152xbf16, #tpu.memory_space<vmem>>, vector<256x1152xbf16>
    %c0_1 = arith.constant 0 : index
    %c0_2 = arith.constant 0 : index
    %1 = vector.load %arg2[%c0_1, %c0_2] : memref<1152x128xbf16, #tpu.memory_space<vmem>>, vector<1152x128xbf16>
    %cst = arith.constant dense<0.000000e+00> : vector<256x128xf32>
    %2 = tpu.matmul %0, %1, %cst {dimension_numbers = #tpu.dot_dimension_numbers<[1], [0], [0], [1], [0, 0, 1, 1], [], []>} : vector<256x1152xbf16>, vector<1152x128xbf16>, vector<256x128xf32> -> vector<256x128xf32>
    %c0_3 = arith.constant 0 : index
    %c0_4 = arith.constant 0 : index
    %3 = vector.load %arg3[%c0_3, %c0_4] : memref<256x128xbf16, #tpu.memory_space<vmem>>, vector<256x128xbf16>
    %4 = arith.extf %3 : vector<256x128xbf16> to vector<256x128xf32>
    %5 = arith.addf %2, %4 : vector<256x128xf32>
    %6 = arith.truncf %5 : vector<256x128xf32> to vector<256x128xbf16>
    %c0_5 = arith.constant 0 : index
    %c0_6 = arith.constant 0 : index
    %7 = vector.load %arg4[%c0_5, %c0_6] : memref<256x128xbf16, #tpu.memory_space<vmem>>, vector<256x128xbf16>
    tpu.vector_store %arg4[%c0_5, %c0_6], %6 {strides = array<i32>} : memref<256x128xbf16, #tpu.memory_space<vmem>>, vector<256x128xbf16>,
    return
  }
  func.func @transform_0(%arg0: i32) -> (i32, i32) {
    %c0_i32 = arith.constant 0 : i32
    %c0_i32_0 = arith.constant 0 : i32
    return %arg0, %c0_i32 : i32, i32
  }
  func.func @transform_1(%arg0: i32) -> (i32, i32) {
    %c0_i32 = arith.constant 0 : i32
    %c0_i32_0 = arith.constant 0 : i32
    %c0_i32_1 = arith.constant 0 : i32
    return %c0_i32, %c0_i32_0 : i32, i32
  }
  func.func @transform_2(%arg0: i32) -> (i32, i32) {
    %c0_i32 = arith.constant 0 : i32
    %c0_i32_0 = arith.constant 0 : i32
    return %arg0, %c0_i32 : i32, i32
  }
  func.func @transform_3(%arg0: i32) -> (i32, i32) {
    %c0_i32 = arith.constant 0 : i32
    %c0_i32_0 = arith.constant 0 : i32
    return %arg0, %c0_i32 : i32, i32
  }
}

module attributes {stable_mosaic.version = 11 : i64} {
  func.func @_mm_bn_relu_kernel(%arg0: i32, %arg1: memref<256x1152xbf16, #tpu.memory_space<vmem>>, %arg2: memref<1152x128xbf16, #tpu.memory_space<vmem>>, %arg3: memref<1x128xf32, #tpu.memory_space<vmem>>, %arg4: memref<1x128xf32, #tpu.memory_space<vmem>>, %arg5: memref<256x128xbf16, #tpu.memory_space<vmem>>) attributes {dimension_semantics = [#tpu.dimension_semantics<parallel>], iteration_bounds = array<i64: 2>, scalar_prefetch = 0 : i64, scratch_operands = 0 : i64, tpu.core_type = #tpu.core_type<tc>, window_params = [{transform_indices = @transform_0, window_bounds = array<i64: 256, 1152>}, {pipeline_mode = #tpu.pipeline_mode<synchronous>, transform_indices = @transform_1, window_bounds = array<i64: 1152, 128>}, {pipeline_mode = #tpu.pipeline_mode<synchronous>, transform_indices = @transform_2, window_bounds = array<i64: 1, 128>}, {pipeline_mode = #tpu.pipeline_mode<synchronous>, transform_indices = @transform_3, window_bounds = array<i64: 1, 128>}, {transform_indices = @transform_4, window_bounds = array<i64: 256, 128>}]} {
    %c0 = arith.constant 0 : index
    %c0_0 = arith.constant 0 : index
    %0 = vector.load %arg1[%c0, %c0_0] : memref<256x1152xbf16, #tpu.memory_space<vmem>>, vector<256x1152xbf16>
    %c0_1 = arith.constant 0 : index
    %c0_2 = arith.constant 0 : index
    %1 = vector.load %arg2[%c0_1, %c0_2] : memref<1152x128xbf16, #tpu.memory_space<vmem>>, vector<1152x128xbf16>
    %cst = arith.constant dense<0.000000e+00> : vector<256x128xf32>
    %2 = tpu.matmul %0, %1, %cst {dimension_numbers = #tpu.dot_dimension_numbers<[1], [0], [0], [1], [0, 0, 1, 1], [], []>} : vector<256x1152xbf16>, vector<1152x128xbf16>, vector<256x128xf32> -> vector<256x128xf32>
    %c0_3 = arith.constant 0 : index
    %c0_4 = arith.constant 0 : index
    %3 = vector.load %arg3[%c0_3, %c0_4] : memref<1x128xf32, #tpu.memory_space<vmem>>, vector<1x128xf32>
    %4 = vector.broadcast %3 : vector<1x128xf32> to vector<256x128xf32>
    %5 = arith.mulf %2, %4 : vector<256x128xf32>
    %c0_5 = arith.constant 0 : index
    %c0_6 = arith.constant 0 : index
    %6 = vector.load %arg4[%c0_5, %c0_6] : memref<1x128xf32, #tpu.memory_space<vmem>>, vector<1x128xf32>
    %7 = vector.broadcast %6 : vector<1x128xf32> to vector<256x128xf32>
    %8 = arith.addf %5, %7 : vector<256x128xf32>
    %cst_7 = arith.constant 0.000000e+00 : f32
    %9 = vector.broadcast %cst_7 : f32 to vector<256x128xf32>
    %10 = arith.maximumf %8, %9 : vector<256x128xf32>
    %11 = arith.truncf %10 : vector<256x128xf32> to vector<256x128xbf16>
    %c0_8 = arith.constant 0 : index
    %c0_9 = arith.constant 0 : index
    %12 = vector.load %arg5[%c0_8, %c0_9] : memref<256x128xbf16, #tpu.memory_space<vmem>>, vector<256x128xbf16>
    tpu.vector_store %arg5[%c0_8, %c0_9], %11 {strides = array<i32>} : memref<256x128xbf16, #tpu.memory_space<vmem>>, vector<256x128xbf16>,
    return
  }
  func.func @transform_0(%arg0: i32) -> (i32, i32) {
    %c0_i32 = arith.constant 0 : i32
    %c0_i32_0 = arith.constant 0 : i32
    return %arg0, %c0_i32 : i32, i32
  }
  func.func @transform_1(%arg0: i32) -> (i32, i32) {
    %c0_i32 = arith.constant 0 : i32
    %c0_i32_0 = arith.constant 0 : i32
    %c0_i32_1 = arith.constant 0 : i32
    return %c0_i32, %c0_i32_0 : i32, i32
  }
  func.func @transform_2(%arg0: i32) -> (i32, i32) {
    %c0_i32 = arith.constant 0 : i32
    %c0_i32_0 = arith.constant 0 : i32
    %c0_i32_1 = arith.constant 0 : i32
    return %c0_i32, %c0_i32_0 : i32, i32
  }
  func.func @transform_3(%arg0: i32) -> (i32, i32) {
    %c0_i32 = arith.constant 0 : i32
    %c0_i32_0 = arith.constant 0 : i32
    %c0_i32_1 = arith.constant 0 : i32
    return %c0_i32, %c0_i32_0 : i32, i32
  }
  func.func @transform_4(%arg0: i32) -> (i32, i32) {
    %c0_i32 = arith.constant 0 : i32
    %c0_i32_0 = arith.constant 0 : i32
    return %arg0, %c0_i32 : i32, i32
  }
}

module attributes {stable_mosaic.version = 11 : i64} {
  func.func @_mm_shortcut_kernel(%arg0: i32, %arg1: memref<256x1152xbf16, #tpu.memory_space<vmem>>, %arg2: memref<1152x128xbf16, #tpu.memory_space<vmem>>, %arg3: memref<256x128xbf16, #tpu.memory_space<vmem>>, %arg4: memref<128x128xbf16, #tpu.memory_space<vmem>>, %arg5: memref<256x128xbf16, #tpu.memory_space<vmem>>) attributes {dimension_semantics = [#tpu.dimension_semantics<parallel>], iteration_bounds = array<i64: 2>, scalar_prefetch = 0 : i64, scratch_operands = 0 : i64, tpu.core_type = #tpu.core_type<tc>, window_params = [{transform_indices = @transform_0, window_bounds = array<i64: 256, 1152>}, {pipeline_mode = #tpu.pipeline_mode<synchronous>, transform_indices = @transform_1, window_bounds = array<i64: 1152, 128>}, {transform_indices = @transform_2, window_bounds = array<i64: 256, 128>}, {pipeline_mode = #tpu.pipeline_mode<synchronous>, transform_indices = @transform_3, window_bounds = array<i64: 128, 128>}, {transform_indices = @transform_4, window_bounds = array<i64: 256, 128>}]} {
    %c0 = arith.constant 0 : index
    %c0_0 = arith.constant 0 : index
    %0 = vector.load %arg1[%c0, %c0_0] : memref<256x1152xbf16, #tpu.memory_space<vmem>>, vector<256x1152xbf16>
    %c0_1 = arith.constant 0 : index
    %c0_2 = arith.constant 0 : index
    %1 = vector.load %arg2[%c0_1, %c0_2] : memref<1152x128xbf16, #tpu.memory_space<vmem>>, vector<1152x128xbf16>
    %cst = arith.constant dense<0.000000e+00> : vector<256x128xf32>
    %2 = tpu.matmul %0, %1, %cst {dimension_numbers = #tpu.dot_dimension_numbers<[1], [0], [0], [1], [0, 0, 1, 1], [], []>} : vector<256x1152xbf16>, vector<1152x128xbf16>, vector<256x128xf32> -> vector<256x128xf32>
    %c0_3 = arith.constant 0 : index
    %c0_4 = arith.constant 0 : index
    %3 = vector.load %arg3[%c0_3, %c0_4] : memref<256x128xbf16, #tpu.memory_space<vmem>>, vector<256x128xbf16>
    %c0_5 = arith.constant 0 : index
    %c0_6 = arith.constant 0 : index
    %4 = vector.load %arg4[%c0_5, %c0_6] : memref<128x128xbf16, #tpu.memory_space<vmem>>, vector<128x128xbf16>
    %cst_7 = arith.constant dense<0.000000e+00> : vector<256x128xf32>
    %5 = tpu.matmul %3, %4, %cst_7 {dimension_numbers = #tpu.dot_dimension_numbers<[1], [0], [0], [1], [0, 0, 1, 1], [], []>} : vector<256x128xbf16>, vector<128x128xbf16>, vector<256x128xf32> -> vector<256x128xf32>
    %6 = arith.addf %2, %5 : vector<256x128xf32>
    %7 = arith.truncf %6 : vector<256x128xf32> to vector<256x128xbf16>
    %c0_8 = arith.constant 0 : index
    %c0_9 = arith.constant 0 : index
    %8 = vector.load %arg5[%c0_8, %c0_9] : memref<256x128xbf16, #tpu.memory_space<vmem>>, vector<256x128xbf16>
    tpu.vector_store %arg5[%c0_8, %c0_9], %7 {strides = array<i32>} : memref<256x128xbf16, #tpu.memory_space<vmem>>, vector<256x128xbf16>,
    return
  }
  func.func @transform_0(%arg0: i32) -> (i32, i32) {
    %c0_i32 = arith.constant 0 : i32
    %c0_i32_0 = arith.constant 0 : i32
    return %arg0, %c0_i32 : i32, i32
  }
  func.func @transform_1(%arg0: i32) -> (i32, i32) {
    %c0_i32 = arith.constant 0 : i32
    %c0_i32_0 = arith.constant 0 : i32
    %c0_i32_1 = arith.constant 0 : i32
    return %c0_i32, %c0_i32_0 : i32, i32
  }
  func.func @transform_2(%arg0: i32) -> (i32, i32) {
    %c0_i32 = arith.constant 0 : i32
    %c0_i32_0 = arith.constant 0 : i32
    return %arg0, %c0_i32 : i32, i32
  }
  func.func @transform_3(%arg0: i32) -> (i32, i32) {
    %c0_i32 = arith.constant 0 : i32
    %c0_i32_0 = arith.constant 0 : i32
    %c0_i32_1 = arith.constant 0 : i32
    return %c0_i32, %c0_i32_0 : i32, i32
  }
  func.func @transform_4(%arg0: i32) -> (i32, i32) {
    %c0_i32 = arith.constant 0 : i32
    %c0_i32_0 = arith.constant 0 : i32
    return %arg0, %c0_i32 : i32, i32
  }
}

module attributes {stable_mosaic.version = 11 : i64} {
  func.func @_mm_bn_relu_kernel(%arg0: i32, %arg1: memref<64x1152xbf16, #tpu.memory_space<vmem>>, %arg2: memref<1152x128xbf16, #tpu.memory_space<vmem>>, %arg3: memref<1x128xf32, #tpu.memory_space<vmem>>, %arg4: memref<1x128xf32, #tpu.memory_space<vmem>>, %arg5: memref<64x128xbf16, #tpu.memory_space<vmem>>) attributes {dimension_semantics = [#tpu.dimension_semantics<parallel>], iteration_bounds = array<i64: 2>, scalar_prefetch = 0 : i64, scratch_operands = 0 : i64, tpu.core_type = #tpu.core_type<tc>, window_params = [{transform_indices = @transform_0, window_bounds = array<i64: 64, 1152>}, {pipeline_mode = #tpu.pipeline_mode<synchronous>, transform_indices = @transform_1, window_bounds = array<i64: 1152, 128>}, {pipeline_mode = #tpu.pipeline_mode<synchronous>, transform_indices = @transform_2, window_bounds = array<i64: 1, 128>}, {pipeline_mode = #tpu.pipeline_mode<synchronous>, transform_indices = @transform_3, window_bounds = array<i64: 1, 128>}, {transform_indices = @transform_4, window_bounds = array<i64: 64, 128>}]} {
    %c0 = arith.constant 0 : index
    %c0_0 = arith.constant 0 : index
    %0 = vector.load %arg1[%c0, %c0_0] : memref<64x1152xbf16, #tpu.memory_space<vmem>>, vector<64x1152xbf16>
    %c0_1 = arith.constant 0 : index
    %c0_2 = arith.constant 0 : index
    %1 = vector.load %arg2[%c0_1, %c0_2] : memref<1152x128xbf16, #tpu.memory_space<vmem>>, vector<1152x128xbf16>
    %cst = arith.constant dense<0.000000e+00> : vector<64x128xf32>
    %2 = tpu.matmul %0, %1, %cst {dimension_numbers = #tpu.dot_dimension_numbers<[1], [0], [0], [1], [0, 0, 1, 1], [], []>} : vector<64x1152xbf16>, vector<1152x128xbf16>, vector<64x128xf32> -> vector<64x128xf32>
    %c0_3 = arith.constant 0 : index
    %c0_4 = arith.constant 0 : index
    %3 = vector.load %arg3[%c0_3, %c0_4] : memref<1x128xf32, #tpu.memory_space<vmem>>, vector<1x128xf32>
    %4 = vector.broadcast %3 : vector<1x128xf32> to vector<64x128xf32>
    %5 = arith.mulf %2, %4 : vector<64x128xf32>
    %c0_5 = arith.constant 0 : index
    %c0_6 = arith.constant 0 : index
    %6 = vector.load %arg4[%c0_5, %c0_6] : memref<1x128xf32, #tpu.memory_space<vmem>>, vector<1x128xf32>
    %7 = vector.broadcast %6 : vector<1x128xf32> to vector<64x128xf32>
    %8 = arith.addf %5, %7 : vector<64x128xf32>
    %cst_7 = arith.constant 0.000000e+00 : f32
    %9 = vector.broadcast %cst_7 : f32 to vector<64x128xf32>
    %10 = arith.maximumf %8, %9 : vector<64x128xf32>
    %11 = arith.truncf %10 : vector<64x128xf32> to vector<64x128xbf16>
    %c0_8 = arith.constant 0 : index
    %c0_9 = arith.constant 0 : index
    %12 = vector.load %arg5[%c0_8, %c0_9] : memref<64x128xbf16, #tpu.memory_space<vmem>>, vector<64x128xbf16>
    tpu.vector_store %arg5[%c0_8, %c0_9], %11 {strides = array<i32>} : memref<64x128xbf16, #tpu.memory_space<vmem>>, vector<64x128xbf16>,
    return
  }
  func.func @transform_0(%arg0: i32) -> (i32, i32) {
    %c0_i32 = arith.constant 0 : i32
    %c0_i32_0 = arith.constant 0 : i32
    return %arg0, %c0_i32 : i32, i32
  }
  func.func @transform_1(%arg0: i32) -> (i32, i32) {
    %c0_i32 = arith.constant 0 : i32
    %c0_i32_0 = arith.constant 0 : i32
    %c0_i32_1 = arith.constant 0 : i32
    return %c0_i32, %c0_i32_0 : i32, i32
  }
  func.func @transform_2(%arg0: i32) -> (i32, i32) {
    %c0_i32 = arith.constant 0 : i32
    %c0_i32_0 = arith.constant 0 : i32
    %c0_i32_1 = arith.constant 0 : i32
    return %c0_i32, %c0_i32_0 : i32, i32
  }
  func.func @transform_3(%arg0: i32) -> (i32, i32) {
    %c0_i32 = arith.constant 0 : i32
    %c0_i32_0 = arith.constant 0 : i32
    %c0_i32_1 = arith.constant 0 : i32
    return %c0_i32, %c0_i32_0 : i32, i32
  }
  func.func @transform_4(%arg0: i32) -> (i32, i32) {
    %c0_i32 = arith.constant 0 : i32
    %c0_i32_0 = arith.constant 0 : i32
    return %arg0, %c0_i32 : i32, i32
  }
}

module attributes {stable_mosaic.version = 11 : i64} {
  func.func @_mm_shortcut_kernel(%arg0: i32, %arg1: memref<64x1152xbf16, #tpu.memory_space<vmem>>, %arg2: memref<1152x128xbf16, #tpu.memory_space<vmem>>, %arg3: memref<64x128xbf16, #tpu.memory_space<vmem>>, %arg4: memref<128x128xbf16, #tpu.memory_space<vmem>>, %arg5: memref<64x128xbf16, #tpu.memory_space<vmem>>) attributes {dimension_semantics = [#tpu.dimension_semantics<parallel>], iteration_bounds = array<i64: 2>, scalar_prefetch = 0 : i64, scratch_operands = 0 : i64, tpu.core_type = #tpu.core_type<tc>, window_params = [{transform_indices = @transform_0, window_bounds = array<i64: 64, 1152>}, {pipeline_mode = #tpu.pipeline_mode<synchronous>, transform_indices = @transform_1, window_bounds = array<i64: 1152, 128>}, {transform_indices = @transform_2, window_bounds = array<i64: 64, 128>}, {pipeline_mode = #tpu.pipeline_mode<synchronous>, transform_indices = @transform_3, window_bounds = array<i64: 128, 128>}, {transform_indices = @transform_4, window_bounds = array<i64: 64, 128>}]} {
    %c0 = arith.constant 0 : index
    %c0_0 = arith.constant 0 : index
    %0 = vector.load %arg1[%c0, %c0_0] : memref<64x1152xbf16, #tpu.memory_space<vmem>>, vector<64x1152xbf16>
    %c0_1 = arith.constant 0 : index
    %c0_2 = arith.constant 0 : index
    %1 = vector.load %arg2[%c0_1, %c0_2] : memref<1152x128xbf16, #tpu.memory_space<vmem>>, vector<1152x128xbf16>
    %cst = arith.constant dense<0.000000e+00> : vector<64x128xf32>
    %2 = tpu.matmul %0, %1, %cst {dimension_numbers = #tpu.dot_dimension_numbers<[1], [0], [0], [1], [0, 0, 1, 1], [], []>} : vector<64x1152xbf16>, vector<1152x128xbf16>, vector<64x128xf32> -> vector<64x128xf32>
    %c0_3 = arith.constant 0 : index
    %c0_4 = arith.constant 0 : index
    %3 = vector.load %arg3[%c0_3, %c0_4] : memref<64x128xbf16, #tpu.memory_space<vmem>>, vector<64x128xbf16>
    %c0_5 = arith.constant 0 : index
    %c0_6 = arith.constant 0 : index
    %4 = vector.load %arg4[%c0_5, %c0_6] : memref<128x128xbf16, #tpu.memory_space<vmem>>, vector<128x128xbf16>
    %cst_7 = arith.constant dense<0.000000e+00> : vector<64x128xf32>
    %5 = tpu.matmul %3, %4, %cst_7 {dimension_numbers = #tpu.dot_dimension_numbers<[1], [0], [0], [1], [0, 0, 1, 1], [], []>} : vector<64x128xbf16>, vector<128x128xbf16>, vector<64x128xf32> -> vector<64x128xf32>
    %6 = arith.addf %2, %5 : vector<64x128xf32>
    %7 = arith.truncf %6 : vector<64x128xf32> to vector<64x128xbf16>
    %c0_8 = arith.constant 0 : index
    %c0_9 = arith.constant 0 : index
    %8 = vector.load %arg5[%c0_8, %c0_9] : memref<64x128xbf16, #tpu.memory_space<vmem>>, vector<64x128xbf16>
    tpu.vector_store %arg5[%c0_8, %c0_9], %7 {strides = array<i32>} : memref<64x128xbf16, #tpu.memory_space<vmem>>, vector<64x128xbf16>,
    return
  }
  func.func @transform_0(%arg0: i32) -> (i32, i32) {
    %c0_i32 = arith.constant 0 : i32
    %c0_i32_0 = arith.constant 0 : i32
    return %arg0, %c0_i32 : i32, i32
  }
  func.func @transform_1(%arg0: i32) -> (i32, i32) {
    %c0_i32 = arith.constant 0 : i32
    %c0_i32_0 = arith.constant 0 : i32
    %c0_i32_1 = arith.constant 0 : i32
    return %c0_i32, %c0_i32_0 : i32, i32
  }
  func.func @transform_2(%arg0: i32) -> (i32, i32) {
    %c0_i32 = arith.constant 0 : i32
    %c0_i32_0 = arith.constant 0 : i32
    return %arg0, %c0_i32 : i32, i32
  }
  func.func @transform_3(%arg0: i32) -> (i32, i32) {
    %c0_i32 = arith.constant 0 : i32
    %c0_i32_0 = arith.constant 0 : i32
    %c0_i32_1 = arith.constant 0 : i32
    return %c0_i32, %c0_i32_0 : i32, i32
  }
  func.func @transform_4(%arg0: i32) -> (i32, i32) {
    %c0_i32 = arith.constant 0 : i32
    %c0_i32_0 = arith.constant 0 : i32
    return %arg0, %c0_i32 : i32, i32
  }
}

module attributes {stable_mosaic.version = 11 : i64} {
  func.func @_bn_relu_kernel(%arg0: i32, %arg1: memref<64x128xbf16, #tpu.memory_space<vmem>>, %arg2: memref<1x128xf32, #tpu.memory_space<vmem>>, %arg3: memref<1x128xf32, #tpu.memory_space<vmem>>, %arg4: memref<64x128xbf16, #tpu.memory_space<vmem>>) attributes {dimension_semantics = [#tpu.dimension_semantics<parallel>], iteration_bounds = array<i64: 2>, scalar_prefetch = 0 : i64, scratch_operands = 0 : i64, tpu.core_type = #tpu.core_type<tc>, window_params = [{transform_indices = @transform_0, window_bounds = array<i64: 64, 128>}, {pipeline_mode = #tpu.pipeline_mode<synchronous>, transform_indices = @transform_1, window_bounds = array<i64: 1, 128>}, {pipeline_mode = #tpu.pipeline_mode<synchronous>, transform_indices = @transform_2, window_bounds = array<i64: 1, 128>}, {transform_indices = @transform_3, window_bounds = array<i64: 64, 128>}]} {
    %c0 = arith.constant 0 : index
    %c0_0 = arith.constant 0 : index
    %0 = vector.load %arg1[%c0, %c0_0] : memref<64x128xbf16, #tpu.memory_space<vmem>>, vector<64x128xbf16>
    %1 = arith.extf %0 : vector<64x128xbf16> to vector<64x128xf32>
    %c0_1 = arith.constant 0 : index
    %c0_2 = arith.constant 0 : index
    %2 = vector.load %arg2[%c0_1, %c0_2] : memref<1x128xf32, #tpu.memory_space<vmem>>, vector<1x128xf32>
    %3 = vector.broadcast %2 : vector<1x128xf32> to vector<64x128xf32>
    %4 = arith.mulf %1, %3 : vector<64x128xf32>
    %c0_3 = arith.constant 0 : index
    %c0_4 = arith.constant 0 : index
    %5 = vector.load %arg3[%c0_3, %c0_4] : memref<1x128xf32, #tpu.memory_space<vmem>>, vector<1x128xf32>
    %6 = vector.broadcast %5 : vector<1x128xf32> to vector<64x128xf32>
    %7 = arith.addf %4, %6 : vector<64x128xf32>
    %cst = arith.constant 0.000000e+00 : f32
    %8 = vector.broadcast %cst : f32 to vector<64x128xf32>
    %9 = arith.maximumf %7, %8 : vector<64x128xf32>
    %10 = arith.truncf %9 : vector<64x128xf32> to vector<64x128xbf16>
    %c0_5 = arith.constant 0 : index
    %c0_6 = arith.constant 0 : index
    %11 = vector.load %arg4[%c0_5, %c0_6] : memref<64x128xbf16, #tpu.memory_space<vmem>>, vector<64x128xbf16>
    tpu.vector_store %arg4[%c0_5, %c0_6], %10 {strides = array<i32>} : memref<64x128xbf16, #tpu.memory_space<vmem>>, vector<64x128xbf16>,
    return
  }
  func.func @transform_0(%arg0: i32) -> (i32, i32) {
    %c0_i32 = arith.constant 0 : i32
    %c0_i32_0 = arith.constant 0 : i32
    return %arg0, %c0_i32 : i32, i32
  }
  func.func @transform_1(%arg0: i32) -> (i32, i32) {
    %c0_i32 = arith.constant 0 : i32
    %c0_i32_0 = arith.constant 0 : i32
    %c0_i32_1 = arith.constant 0 : i32
    return %c0_i32, %c0_i32_0 : i32, i32
  }
  func.func @transform_2(%arg0: i32) -> (i32, i32) {
    %c0_i32 = arith.constant 0 : i32
    %c0_i32_0 = arith.constant 0 : i32
    %c0_i32_1 = arith.constant 0 : i32
    return %c0_i32, %c0_i32_0 : i32, i32
  }
  func.func @transform_3(%arg0: i32) -> (i32, i32) {
    %c0_i32 = arith.constant 0 : i32
    %c0_i32_0 = arith.constant 0 : i32
    return %arg0, %c0_i32 : i32, i32
  }
}

module attributes {stable_mosaic.version = 11 : i64} {
  func.func @_mm_add_kernel(%arg0: i32, %arg1: memref<64x1152xbf16, #tpu.memory_space<vmem>>, %arg2: memref<1152x128xbf16, #tpu.memory_space<vmem>>, %arg3: memref<64x128xbf16, #tpu.memory_space<vmem>>, %arg4: memref<64x128xbf16, #tpu.memory_space<vmem>>) attributes {dimension_semantics = [#tpu.dimension_semantics<parallel>], iteration_bounds = array<i64: 2>, scalar_prefetch = 0 : i64, scratch_operands = 0 : i64, tpu.core_type = #tpu.core_type<tc>, window_params = [{transform_indices = @transform_0, window_bounds = array<i64: 64, 1152>}, {pipeline_mode = #tpu.pipeline_mode<synchronous>, transform_indices = @transform_1, window_bounds = array<i64: 1152, 128>}, {transform_indices = @transform_2, window_bounds = array<i64: 64, 128>}, {transform_indices = @transform_3, window_bounds = array<i64: 64, 128>}]} {
    %c0 = arith.constant 0 : index
    %c0_0 = arith.constant 0 : index
    %0 = vector.load %arg1[%c0, %c0_0] : memref<64x1152xbf16, #tpu.memory_space<vmem>>, vector<64x1152xbf16>
    %c0_1 = arith.constant 0 : index
    %c0_2 = arith.constant 0 : index
    %1 = vector.load %arg2[%c0_1, %c0_2] : memref<1152x128xbf16, #tpu.memory_space<vmem>>, vector<1152x128xbf16>
    %cst = arith.constant dense<0.000000e+00> : vector<64x128xf32>
    %2 = tpu.matmul %0, %1, %cst {dimension_numbers = #tpu.dot_dimension_numbers<[1], [0], [0], [1], [0, 0, 1, 1], [], []>} : vector<64x1152xbf16>, vector<1152x128xbf16>, vector<64x128xf32> -> vector<64x128xf32>
    %c0_3 = arith.constant 0 : index
    %c0_4 = arith.constant 0 : index
    %3 = vector.load %arg3[%c0_3, %c0_4] : memref<64x128xbf16, #tpu.memory_space<vmem>>, vector<64x128xbf16>
    %4 = arith.extf %3 : vector<64x128xbf16> to vector<64x128xf32>
    %5 = arith.addf %2, %4 : vector<64x128xf32>
    %6 = arith.truncf %5 : vector<64x128xf32> to vector<64x128xbf16>
    %c0_5 = arith.constant 0 : index
    %c0_6 = arith.constant 0 : index
    %7 = vector.load %arg4[%c0_5, %c0_6] : memref<64x128xbf16, #tpu.memory_space<vmem>>, vector<64x128xbf16>
    tpu.vector_store %arg4[%c0_5, %c0_6], %6 {strides = array<i32>} : memref<64x128xbf16, #tpu.memory_space<vmem>>, vector<64x128xbf16>,
    return
  }
  func.func @transform_0(%arg0: i32) -> (i32, i32) {
    %c0_i32 = arith.constant 0 : i32
    %c0_i32_0 = arith.constant 0 : i32
    return %arg0, %c0_i32 : i32, i32
  }
  func.func @transform_1(%arg0: i32) -> (i32, i32) {
    %c0_i32 = arith.constant 0 : i32
    %c0_i32_0 = arith.constant 0 : i32
    %c0_i32_1 = arith.constant 0 : i32
    return %c0_i32, %c0_i32_0 : i32, i32
  }
  func.func @transform_2(%arg0: i32) -> (i32, i32) {
    %c0_i32 = arith.constant 0 : i32
    %c0_i32_0 = arith.constant 0 : i32
    return %arg0, %c0_i32 : i32, i32
  }
  func.func @transform_3(%arg0: i32) -> (i32, i32) {
    %c0_i32 = arith.constant 0 : i32
    %c0_i32_0 = arith.constant 0 : i32
    return %arg0, %c0_i32 : i32, i32
  }
}

module attributes {stable_mosaic.version = 11 : i64} {
  func.func @_mm_bn_relu_kernel(%arg0: i32, %arg1: memref<16x1152xbf16, #tpu.memory_space<vmem>>, %arg2: memref<1152x128xbf16, #tpu.memory_space<vmem>>, %arg3: memref<1x128xf32, #tpu.memory_space<vmem>>, %arg4: memref<1x128xf32, #tpu.memory_space<vmem>>, %arg5: memref<16x128xbf16, #tpu.memory_space<vmem>>) attributes {dimension_semantics = [#tpu.dimension_semantics<parallel>], iteration_bounds = array<i64: 2>, scalar_prefetch = 0 : i64, scratch_operands = 0 : i64, tpu.core_type = #tpu.core_type<tc>, window_params = [{transform_indices = @transform_0, window_bounds = array<i64: 16, 1152>}, {pipeline_mode = #tpu.pipeline_mode<synchronous>, transform_indices = @transform_1, window_bounds = array<i64: 1152, 128>}, {pipeline_mode = #tpu.pipeline_mode<synchronous>, transform_indices = @transform_2, window_bounds = array<i64: 1, 128>}, {pipeline_mode = #tpu.pipeline_mode<synchronous>, transform_indices = @transform_3, window_bounds = array<i64: 1, 128>}, {transform_indices = @transform_4, window_bounds = array<i64: 16, 128>}]} {
    %c0 = arith.constant 0 : index
    %c0_0 = arith.constant 0 : index
    %0 = vector.load %arg1[%c0, %c0_0] : memref<16x1152xbf16, #tpu.memory_space<vmem>>, vector<16x1152xbf16>
    %c0_1 = arith.constant 0 : index
    %c0_2 = arith.constant 0 : index
    %1 = vector.load %arg2[%c0_1, %c0_2] : memref<1152x128xbf16, #tpu.memory_space<vmem>>, vector<1152x128xbf16>
    %cst = arith.constant dense<0.000000e+00> : vector<16x128xf32>
    %2 = tpu.matmul %0, %1, %cst {dimension_numbers = #tpu.dot_dimension_numbers<[1], [0], [0], [1], [0, 0, 1, 1], [], []>} : vector<16x1152xbf16>, vector<1152x128xbf16>, vector<16x128xf32> -> vector<16x128xf32>
    %c0_3 = arith.constant 0 : index
    %c0_4 = arith.constant 0 : index
    %3 = vector.load %arg3[%c0_3, %c0_4] : memref<1x128xf32, #tpu.memory_space<vmem>>, vector<1x128xf32>
    %4 = vector.broadcast %3 : vector<1x128xf32> to vector<16x128xf32>
    %5 = arith.mulf %2, %4 : vector<16x128xf32>
    %c0_5 = arith.constant 0 : index
    %c0_6 = arith.constant 0 : index
    %6 = vector.load %arg4[%c0_5, %c0_6] : memref<1x128xf32, #tpu.memory_space<vmem>>, vector<1x128xf32>
    %7 = vector.broadcast %6 : vector<1x128xf32> to vector<16x128xf32>
    %8 = arith.addf %5, %7 : vector<16x128xf32>
    %cst_7 = arith.constant 0.000000e+00 : f32
    %9 = vector.broadcast %cst_7 : f32 to vector<16x128xf32>
    %10 = arith.maximumf %8, %9 : vector<16x128xf32>
    %11 = arith.truncf %10 : vector<16x128xf32> to vector<16x128xbf16>
    %c0_8 = arith.constant 0 : index
    %c0_9 = arith.constant 0 : index
    %12 = vector.load %arg5[%c0_8, %c0_9] : memref<16x128xbf16, #tpu.memory_space<vmem>>, vector<16x128xbf16>
    tpu.vector_store %arg5[%c0_8, %c0_9], %11 {strides = array<i32>} : memref<16x128xbf16, #tpu.memory_space<vmem>>, vector<16x128xbf16>,
    return
  }
  func.func @transform_0(%arg0: i32) -> (i32, i32) {
    %c0_i32 = arith.constant 0 : i32
    %c0_i32_0 = arith.constant 0 : i32
    return %arg0, %c0_i32 : i32, i32
  }
  func.func @transform_1(%arg0: i32) -> (i32, i32) {
    %c0_i32 = arith.constant 0 : i32
    %c0_i32_0 = arith.constant 0 : i32
    %c0_i32_1 = arith.constant 0 : i32
    return %c0_i32, %c0_i32_0 : i32, i32
  }
  func.func @transform_2(%arg0: i32) -> (i32, i32) {
    %c0_i32 = arith.constant 0 : i32
    %c0_i32_0 = arith.constant 0 : i32
    %c0_i32_1 = arith.constant 0 : i32
    return %c0_i32, %c0_i32_0 : i32, i32
  }
  func.func @transform_3(%arg0: i32) -> (i32, i32) {
    %c0_i32 = arith.constant 0 : i32
    %c0_i32_0 = arith.constant 0 : i32
    %c0_i32_1 = arith.constant 0 : i32
    return %c0_i32, %c0_i32_0 : i32, i32
  }
  func.func @transform_4(%arg0: i32) -> (i32, i32) {
    %c0_i32 = arith.constant 0 : i32
    %c0_i32_0 = arith.constant 0 : i32
    return %arg0, %c0_i32 : i32, i32
  }
}

module attributes {stable_mosaic.version = 11 : i64} {
  func.func @_bn_relu_kernel(%arg0: i32, %arg1: memref<16x128xbf16, #tpu.memory_space<vmem>>, %arg2: memref<1x128xf32, #tpu.memory_space<vmem>>, %arg3: memref<1x128xf32, #tpu.memory_space<vmem>>, %arg4: memref<16x128xbf16, #tpu.memory_space<vmem>>) attributes {dimension_semantics = [#tpu.dimension_semantics<parallel>], iteration_bounds = array<i64: 2>, scalar_prefetch = 0 : i64, scratch_operands = 0 : i64, tpu.core_type = #tpu.core_type<tc>, window_params = [{transform_indices = @transform_0, window_bounds = array<i64: 16, 128>}, {pipeline_mode = #tpu.pipeline_mode<synchronous>, transform_indices = @transform_1, window_bounds = array<i64: 1, 128>}, {pipeline_mode = #tpu.pipeline_mode<synchronous>, transform_indices = @transform_2, window_bounds = array<i64: 1, 128>}, {transform_indices = @transform_3, window_bounds = array<i64: 16, 128>}]} {
    %c0 = arith.constant 0 : index
    %c0_0 = arith.constant 0 : index
    %0 = vector.load %arg1[%c0, %c0_0] : memref<16x128xbf16, #tpu.memory_space<vmem>>, vector<16x128xbf16>
    %1 = arith.extf %0 : vector<16x128xbf16> to vector<16x128xf32>
    %c0_1 = arith.constant 0 : index
    %c0_2 = arith.constant 0 : index
    %2 = vector.load %arg2[%c0_1, %c0_2] : memref<1x128xf32, #tpu.memory_space<vmem>>, vector<1x128xf32>
    %3 = vector.broadcast %2 : vector<1x128xf32> to vector<16x128xf32>
    %4 = arith.mulf %1, %3 : vector<16x128xf32>
    %c0_3 = arith.constant 0 : index
    %c0_4 = arith.constant 0 : index
    %5 = vector.load %arg3[%c0_3, %c0_4] : memref<1x128xf32, #tpu.memory_space<vmem>>, vector<1x128xf32>
    %6 = vector.broadcast %5 : vector<1x128xf32> to vector<16x128xf32>
    %7 = arith.addf %4, %6 : vector<16x128xf32>
    %cst = arith.constant 0.000000e+00 : f32
    %8 = vector.broadcast %cst : f32 to vector<16x128xf32>
    %9 = arith.maximumf %7, %8 : vector<16x128xf32>
    %10 = arith.truncf %9 : vector<16x128xf32> to vector<16x128xbf16>
    %c0_5 = arith.constant 0 : index
    %c0_6 = arith.constant 0 : index
    %11 = vector.load %arg4[%c0_5, %c0_6] : memref<16x128xbf16, #tpu.memory_space<vmem>>, vector<16x128xbf16>
    tpu.vector_store %arg4[%c0_5, %c0_6], %10 {strides = array<i32>} : memref<16x128xbf16, #tpu.memory_space<vmem>>, vector<16x128xbf16>,
    return
  }
  func.func @transform_0(%arg0: i32) -> (i32, i32) {
    %c0_i32 = arith.constant 0 : i32
    %c0_i32_0 = arith.constant 0 : i32
    return %arg0, %c0_i32 : i32, i32
  }
  func.func @transform_1(%arg0: i32) -> (i32, i32) {
    %c0_i32 = arith.constant 0 : i32
    %c0_i32_0 = arith.constant 0 : i32
    %c0_i32_1 = arith.constant 0 : i32
    return %c0_i32, %c0_i32_0 : i32, i32
  }
  func.func @transform_2(%arg0: i32) -> (i32, i32) {
    %c0_i32 = arith.constant 0 : i32
    %c0_i32_0 = arith.constant 0 : i32
    %c0_i32_1 = arith.constant 0 : i32
    return %c0_i32, %c0_i32_0 : i32, i32
  }
  func.func @transform_3(%arg0: i32) -> (i32, i32) {
    %c0_i32 = arith.constant 0 : i32
    %c0_i32_0 = arith.constant 0 : i32
    return %arg0, %c0_i32 : i32, i32
  }
}

module attributes {stable_mosaic.version = 11 : i64} {
  func.func @_mm_shortcut_kernel(%arg0: i32, %arg1: memref<16x1152xbf16, #tpu.memory_space<vmem>>, %arg2: memref<1152x128xbf16, #tpu.memory_space<vmem>>, %arg3: memref<16x128xbf16, #tpu.memory_space<vmem>>, %arg4: memref<128x128xbf16, #tpu.memory_space<vmem>>, %arg5: memref<16x128xbf16, #tpu.memory_space<vmem>>) attributes {dimension_semantics = [#tpu.dimension_semantics<parallel>], iteration_bounds = array<i64: 2>, scalar_prefetch = 0 : i64, scratch_operands = 0 : i64, tpu.core_type = #tpu.core_type<tc>, window_params = [{transform_indices = @transform_0, window_bounds = array<i64: 16, 1152>}, {pipeline_mode = #tpu.pipeline_mode<synchronous>, transform_indices = @transform_1, window_bounds = array<i64: 1152, 128>}, {transform_indices = @transform_2, window_bounds = array<i64: 16, 128>}, {pipeline_mode = #tpu.pipeline_mode<synchronous>, transform_indices = @transform_3, window_bounds = array<i64: 128, 128>}, {transform_indices = @transform_4, window_bounds = array<i64: 16, 128>}]} {
    %c0 = arith.constant 0 : index
    %c0_0 = arith.constant 0 : index
    %0 = vector.load %arg1[%c0, %c0_0] : memref<16x1152xbf16, #tpu.memory_space<vmem>>, vector<16x1152xbf16>
    %c0_1 = arith.constant 0 : index
    %c0_2 = arith.constant 0 : index
    %1 = vector.load %arg2[%c0_1, %c0_2] : memref<1152x128xbf16, #tpu.memory_space<vmem>>, vector<1152x128xbf16>
    %cst = arith.constant dense<0.000000e+00> : vector<16x128xf32>
    %2 = tpu.matmul %0, %1, %cst {dimension_numbers = #tpu.dot_dimension_numbers<[1], [0], [0], [1], [0, 0, 1, 1], [], []>} : vector<16x1152xbf16>, vector<1152x128xbf16>, vector<16x128xf32> -> vector<16x128xf32>
    %c0_3 = arith.constant 0 : index
    %c0_4 = arith.constant 0 : index
    %3 = vector.load %arg3[%c0_3, %c0_4] : memref<16x128xbf16, #tpu.memory_space<vmem>>, vector<16x128xbf16>
    %c0_5 = arith.constant 0 : index
    %c0_6 = arith.constant 0 : index
    %4 = vector.load %arg4[%c0_5, %c0_6] : memref<128x128xbf16, #tpu.memory_space<vmem>>, vector<128x128xbf16>
    %cst_7 = arith.constant dense<0.000000e+00> : vector<16x128xf32>
    %5 = tpu.matmul %3, %4, %cst_7 {dimension_numbers = #tpu.dot_dimension_numbers<[1], [0], [0], [1], [0, 0, 1, 1], [], []>} : vector<16x128xbf16>, vector<128x128xbf16>, vector<16x128xf32> -> vector<16x128xf32>
    %6 = arith.addf %2, %5 : vector<16x128xf32>
    %7 = arith.truncf %6 : vector<16x128xf32> to vector<16x128xbf16>
    %c0_8 = arith.constant 0 : index
    %c0_9 = arith.constant 0 : index
    %8 = vector.load %arg5[%c0_8, %c0_9] : memref<16x128xbf16, #tpu.memory_space<vmem>>, vector<16x128xbf16>
    tpu.vector_store %arg5[%c0_8, %c0_9], %7 {strides = array<i32>} : memref<16x128xbf16, #tpu.memory_space<vmem>>, vector<16x128xbf16>,
    return
  }
  func.func @transform_0(%arg0: i32) -> (i32, i32) {
    %c0_i32 = arith.constant 0 : i32
    %c0_i32_0 = arith.constant 0 : i32
    return %arg0, %c0_i32 : i32, i32
  }
  func.func @transform_1(%arg0: i32) -> (i32, i32) {
    %c0_i32 = arith.constant 0 : i32
    %c0_i32_0 = arith.constant 0 : i32
    %c0_i32_1 = arith.constant 0 : i32
    return %c0_i32, %c0_i32_0 : i32, i32
  }
  func.func @transform_2(%arg0: i32) -> (i32, i32) {
    %c0_i32 = arith.constant 0 : i32
    %c0_i32_0 = arith.constant 0 : i32
    return %arg0, %c0_i32 : i32, i32
  }
  func.func @transform_3(%arg0: i32) -> (i32, i32) {
    %c0_i32 = arith.constant 0 : i32
    %c0_i32_0 = arith.constant 0 : i32
    %c0_i32_1 = arith.constant 0 : i32
    return %c0_i32, %c0_i32_0 : i32, i32
  }
  func.func @transform_4(%arg0: i32) -> (i32, i32) {
    %c0_i32 = arith.constant 0 : i32
    %c0_i32_0 = arith.constant 0 : i32
    return %arg0, %c0_i32 : i32, i32
  }
}

module attributes {stable_mosaic.version = 11 : i64} {
  func.func @_mm_add_kernel(%arg0: i32, %arg1: memref<16x1152xbf16, #tpu.memory_space<vmem>>, %arg2: memref<1152x128xbf16, #tpu.memory_space<vmem>>, %arg3: memref<16x128xbf16, #tpu.memory_space<vmem>>, %arg4: memref<16x128xbf16, #tpu.memory_space<vmem>>) attributes {dimension_semantics = [#tpu.dimension_semantics<parallel>], iteration_bounds = array<i64: 2>, scalar_prefetch = 0 : i64, scratch_operands = 0 : i64, tpu.core_type = #tpu.core_type<tc>, window_params = [{transform_indices = @transform_0, window_bounds = array<i64: 16, 1152>}, {pipeline_mode = #tpu.pipeline_mode<synchronous>, transform_indices = @transform_1, window_bounds = array<i64: 1152, 128>}, {transform_indices = @transform_2, window_bounds = array<i64: 16, 128>}, {transform_indices = @transform_3, window_bounds = array<i64: 16, 128>}]} {
    %c0 = arith.constant 0 : index
    %c0_0 = arith.constant 0 : index
    %0 = vector.load %arg1[%c0, %c0_0] : memref<16x1152xbf16, #tpu.memory_space<vmem>>, vector<16x1152xbf16>
    %c0_1 = arith.constant 0 : index
    %c0_2 = arith.constant 0 : index
    %1 = vector.load %arg2[%c0_1, %c0_2] : memref<1152x128xbf16, #tpu.memory_space<vmem>>, vector<1152x128xbf16>
    %cst = arith.constant dense<0.000000e+00> : vector<16x128xf32>
    %2 = tpu.matmul %0, %1, %cst {dimension_numbers = #tpu.dot_dimension_numbers<[1], [0], [0], [1], [0, 0, 1, 1], [], []>} : vector<16x1152xbf16>, vector<1152x128xbf16>, vector<16x128xf32> -> vector<16x128xf32>
    %c0_3 = arith.constant 0 : index
    %c0_4 = arith.constant 0 : index
    %3 = vector.load %arg3[%c0_3, %c0_4] : memref<16x128xbf16, #tpu.memory_space<vmem>>, vector<16x128xbf16>
    %4 = arith.extf %3 : vector<16x128xbf16> to vector<16x128xf32>
    %5 = arith.addf %2, %4 : vector<16x128xf32>
    %6 = arith.truncf %5 : vector<16x128xf32> to vector<16x128xbf16>
    %c0_5 = arith.constant 0 : index
    %c0_6 = arith.constant 0 : index
    %7 = vector.load %arg4[%c0_5, %c0_6] : memref<16x128xbf16, #tpu.memory_space<vmem>>, vector<16x128xbf16>
    tpu.vector_store %arg4[%c0_5, %c0_6], %6 {strides = array<i32>} : memref<16x128xbf16, #tpu.memory_space<vmem>>, vector<16x128xbf16>,
    return
  }
  func.func @transform_0(%arg0: i32) -> (i32, i32) {
    %c0_i32 = arith.constant 0 : i32
    %c0_i32_0 = arith.constant 0 : i32
    return %arg0, %c0_i32 : i32, i32
  }
  func.func @transform_1(%arg0: i32) -> (i32, i32) {
    %c0_i32 = arith.constant 0 : i32
    %c0_i32_0 = arith.constant 0 : i32
    %c0_i32_1 = arith.constant 0 : i32
    return %c0_i32, %c0_i32_0 : i32, i32
  }
  func.func @transform_2(%arg0: i32) -> (i32, i32) {
    %c0_i32 = arith.constant 0 : i32
    %c0_i32_0 = arith.constant 0 : i32
    return %arg0, %c0_i32 : i32, i32
  }
  func.func @transform_3(%arg0: i32) -> (i32, i32) {
    %c0_i32 = arith.constant 0 : i32
    %c0_i32_0 = arith.constant 0 : i32
    return %arg0, %c0_i32 : i32, i32
  }
}

module attributes {stable_mosaic.version = 11 : i64} {
  func.func @_bn_relu_pool_fc_kernel(%arg0: i32, %arg1: memref<2x16x128xbf16, #tpu.memory_space<vmem>>, %arg2: memref<1x1x128xf32, #tpu.memory_space<vmem>>, %arg3: memref<1x1x128xf32, #tpu.memory_space<vmem>>, %arg4: memref<128x128xbf16, #tpu.memory_space<vmem>>, %arg5: memref<1x128xf32, #tpu.memory_space<vmem>>, %arg6: memref<2x128xf32, #tpu.memory_space<vmem>>, %arg7: memref<2x128xf32, #tpu.memory_space<vmem>>) attributes {dimension_semantics = [#tpu.dimension_semantics<arbitrary>], iteration_bounds = array<i64: 1>, scalar_prefetch = 0 : i64, scratch_operands = 0 : i64, tpu.core_type = #tpu.core_type<tc>, window_params = [{pipeline_mode = #tpu.pipeline_mode<synchronous>, transform_indices = @transform_0, window_bounds = array<i64: 2, 16, 128>}, {pipeline_mode = #tpu.pipeline_mode<synchronous>, transform_indices = @transform_1, window_bounds = array<i64: 1, 1, 128>}, {pipeline_mode = #tpu.pipeline_mode<synchronous>, transform_indices = @transform_2, window_bounds = array<i64: 1, 1, 128>}, {pipeline_mode = #tpu.pipeline_mode<synchronous>, transform_indices = @transform_3, window_bounds = array<i64: 128, 128>}, {pipeline_mode = #tpu.pipeline_mode<synchronous>, transform_indices = @transform_4, window_bounds = array<i64: 1, 128>}, {pipeline_mode = #tpu.pipeline_mode<synchronous>, transform_indices = @transform_5, window_bounds = array<i64: 2, 128>}, {pipeline_mode = #tpu.pipeline_mode<synchronous>, transform_indices = @transform_6, window_bounds = array<i64: 2, 128>}]} {
    %c0 = arith.constant 0 : index
    %c0_0 = arith.constant 0 : index
    %c0_1 = arith.constant 0 : index
    %0 = vector.load %arg1[%c0, %c0_0, %c0_1] : memref<2x16x128xbf16, #tpu.memory_space<vmem>>, vector<2x16x128xbf16>
    %1 = arith.extf %0 : vector<2x16x128xbf16> to vector<2x16x128xf32>
    %c0_2 = arith.constant 0 : index
    %c0_3 = arith.constant 0 : index
    %c0_4 = arith.constant 0 : index
    %2 = vector.load %arg2[%c0_2, %c0_3, %c0_4] : memref<1x1x128xf32, #tpu.memory_space<vmem>>, vector<1x1x128xf32>
    %3 = vector.broadcast %2 : vector<1x1x128xf32> to vector<2x16x128xf32>
    %4 = arith.mulf %1, %3 : vector<2x16x128xf32>
    %c0_5 = arith.constant 0 : index
    %c0_6 = arith.constant 0 : index
    %c0_7 = arith.constant 0 : index
    %5 = vector.load %arg3[%c0_5, %c0_6, %c0_7] : memref<1x1x128xf32, #tpu.memory_space<vmem>>, vector<1x1x128xf32>
    %6 = vector.broadcast %5 : vector<1x1x128xf32> to vector<2x16x128xf32>
    %7 = arith.addf %4, %6 : vector<2x16x128xf32>
    %cst = arith.constant 0.000000e+00 : f32
    %8 = vector.broadcast %cst : f32 to vector<2x16x128xf32>
    %9 = arith.maximumf %7, %8 : vector<2x16x128xf32>
    %cst_8 = arith.constant dense<0.000000e+00> : vector<2x128xf32>
    %10 = vector.multi_reduction <add>, %9, %cst_8 [1] : vector<2x16x128xf32> to vector<2x128xf32>
    %cst_9 = arith.constant 1.600000e+01 : f32
    %11 = vector.broadcast %cst_9 : f32 to vector<2x128xf32>
    %12 = arith.divf %10, %11 : vector<2x128xf32>
    %c0_10 = arith.constant 0 : index
    %c0_11 = arith.constant 0 : index
    %13 = vector.load %arg6[%c0_10, %c0_11] : memref<2x128xf32, #tpu.memory_space<vmem>>, vector<2x128xf32>
    tpu.vector_store %arg6[%c0_10, %c0_11], %12 {strides = array<i32>} : memref<2x128xf32, #tpu.memory_space<vmem>>, vector<2x128xf32>,
    %14 = arith.truncf %12 : vector<2x128xf32> to vector<2x128xbf16>
    %c0_12 = arith.constant 0 : index
    %c0_13 = arith.constant 0 : index
    %15 = vector.load %arg4[%c0_12, %c0_13] : memref<128x128xbf16, #tpu.memory_space<vmem>>, vector<128x128xbf16>
    %cst_14 = arith.constant dense<0.000000e+00> : vector<2x128xf32>
    %16 = tpu.matmul %14, %15, %cst_14 {dimension_numbers = #tpu.dot_dimension_numbers<[1], [0], [0], [1], [0, 0, 1, 1], [], []>} : vector<2x128xbf16>, vector<128x128xbf16>, vector<2x128xf32> -> vector<2x128xf32>
    %c0_15 = arith.constant 0 : index
    %c0_16 = arith.constant 0 : index
    %17 = vector.load %arg5[%c0_15, %c0_16] : memref<1x128xf32, #tpu.memory_space<vmem>>, vector<1x128xf32>
    %18 = vector.broadcast %17 : vector<1x128xf32> to vector<2x128xf32>
    %19 = arith.addf %16, %18 : vector<2x128xf32>
    %c0_17 = arith.constant 0 : index
    %c0_18 = arith.constant 0 : index
    %20 = vector.load %arg7[%c0_17, %c0_18] : memref<2x128xf32, #tpu.memory_space<vmem>>, vector<2x128xf32>
    tpu.vector_store %arg7[%c0_17, %c0_18], %19 {strides = array<i32>} : memref<2x128xf32, #tpu.memory_space<vmem>>, vector<2x128xf32>,
    return
  }
  func.func @transform_0(%arg0: i32) -> (i32, i32, i32) {
    %c0_i32 = arith.constant 0 : i32
    %c0_i32_0 = arith.constant 0 : i32
    %c0_i32_1 = arith.constant 0 : i32
    %c0_i32_2 = arith.constant 0 : i32
    return %c0_i32, %c0_i32_0, %c0_i32_1 : i32, i32, i32
  }
  func.func @transform_1(%arg0: i32) -> (i32, i32, i32) {
    %c0_i32 = arith.constant 0 : i32
    %c0_i32_0 = arith.constant 0 : i32
    %c0_i32_1 = arith.constant 0 : i32
    %c0_i32_2 = arith.constant 0 : i32
    return %c0_i32, %c0_i32_0, %c0_i32_1 : i32, i32, i32
  }
  func.func @transform_2(%arg0: i32) -> (i32, i32, i32) {
    %c0_i32 = arith.constant 0 : i32
    %c0_i32_0 = arith.constant 0 : i32
    %c0_i32_1 = arith.constant 0 : i32
    %c0_i32_2 = arith.constant 0 : i32
    return %c0_i32, %c0_i32_0, %c0_i32_1 : i32, i32, i32
  }
  func.func @transform_3(%arg0: i32) -> (i32, i32) {
    %c0_i32 = arith.constant 0 : i32
    %c0_i32_0 = arith.constant 0 : i32
    %c0_i32_1 = arith.constant 0 : i32
    return %c0_i32, %c0_i32_0 : i32, i32
  }
  func.func @transform_4(%arg0: i32) -> (i32, i32) {
    %c0_i32 = arith.constant 0 : i32
    %c0_i32_0 = arith.constant 0 : i32
    %c0_i32_1 = arith.constant 0 : i32
    return %c0_i32, %c0_i32_0 : i32, i32
  }
  func.func @transform_5(%arg0: i32) -> (i32, i32) {
    %c0_i32 = arith.constant 0 : i32
    %c0_i32_0 = arith.constant 0 : i32
    %c0_i32_1 = arith.constant 0 : i32
    return %c0_i32, %c0_i32_0 : i32, i32
  }
  func.func @transform_6(%arg0: i32) -> (i32, i32) {
    %c0_i32 = arith.constant 0 : i32
    %c0_i32_0 = arith.constant 0 : i32
    %c0_i32_1 = arith.constant 0 : i32
    return %c0_i32, %c0_i32_0 : i32, i32
  }
}

</mosaic_0001>

<bundles_post_ra>
// kernel: _lambda_.20
= control target key start
LH: loop header
LB: loop body
LE: loop exit
PB: predicated region body
PF: predicated region fallthrough
CT: control target
= control target key end

     0   :  { %s1054_s9 = smov 0   ;;  %s1138_s0 = inlined_call_operand.vmem [shape: bf16[512,128], index: 0, kind: input, shape index: {}]   ;;  %s1139_s1 = inlined_call_operand.vmem [shape: bf16[128,128], index: 1, kind: input, shape index: {}]   ;;  %s1140_s2 = inlined_call_operand.vmem [shape: bf16[512,128], index: 2, kind: output, shape index: {}]  }
   0x1 LB: > { %s717_s10 = sadd.s32 4294967295, %s1037_s9   ;;  %p721_p0 = scmp.ge.s32.totalorder %s1037_s9, 1  ;;  %s1037_s9 = sphi %s1054_s9, %s12_s9  }
   0x2   : > { %p113_p1 = scmp.lt.s32.totalorder %s1037_s9, 3 }
   0x4   : > { %p114_p2 = pnand %p721_p0, %p113_p1 }
   0x5   : > { %v1007_v0 = vld [vmem:[%s1139_s1] sm:$0xff] (!%p114_p2)   ;;  %s722_s13 = sshll.u32 (!%p114_p2), %s717_s10, 5  ;;  %v1008_v1 = vld [vmem:[%s1139_s1 + $0x8] sm:$0xff] (!%p114_p2)   ;;  %v1009_v2 = vld [vmem:[%s1139_s1 + $0x10] sm:$0xff] (!%p114_p2)  }
   0x6   : > { %117 = sbr.rel (%p114_p2) target bundleno = 280 (0x118), region = 28  ;;  %p136_p3 = scmp.lt.s32.totalorder (!%p114_p2), %s722_s13, 63  ;;  %935 = vmatprep.subr.bf16.mxu0 (!%p114_p2), %v1007_v0  ;;  %983 = vmatprep.subr.bf16.mxu1 (!%p114_p2), %v1007_v0  ;;  %v1010_v3 = vld [vmem:[%s1139_s1 + $0x18] sm:$0xff] (!%p114_p2)   ;;  %v1011_v6 = vld [vmem:[%s1139_s1 + $0x20] sm:$0xff] (!%p114_p2)   ;;  %v1012_v7 = vld [vmem:[%s1139_s1 + $0x28] sm:$0xff] (!%p114_p2)  }
   0x7   : > { %936 = vmatpush3.bf16.msra.mxu0 (!%p114_p2), %v1007_v0  ;;  %991 = vmatpush3.bf16.msra.mxu1 (!%p114_p2), %v1007_v0  ;;  %v1013_v8 = vld [vmem:[%s1139_s1 + $0x30] sm:$0xff] (!%p114_p2)   ;;  %v1014_v9 = vld [vmem:[%s1139_s1 + $0x38] sm:$0xff] (!%p114_p2)  }
   0x8   : > { %937 = vmatprep.subr.bf16.mxu0 (!%p114_p2), %v1008_v1  ;;  %984 = vmatprep.subr.bf16.mxu1 (!%p114_p2), %v1008_v1 }
   0xb   : > { %938 = vmatpush3.bf16.msra.mxu0 (!%p114_p2), %v1008_v1  ;;  %992 = vmatpush3.bf16.msra.mxu1 (!%p114_p2), %v1008_v1 }
   0xc   : > { %939 = vmatprep.subr.bf16.mxu0 (!%p114_p2), %v1009_v2  ;;  %985 = vmatprep.subr.bf16.mxu1 (!%p114_p2), %v1009_v2 }
   0xd   : > { %s1142_s13 = smov (!%p136_p3, %s722_s13), 63 }
   0xe   : > { %s723_s18 = sshll.u32 %s1142_s13, 2 }
   0xf   : > { %s1079_s21 = scalar_lea.vmem %s1138_s0, %s723_s18  ;;  %940 = vmatpush3.bf16.msra.mxu0 %v1009_v2  ;;  %993 = vmatpush3.bf16.msra.mxu1 %v1009_v2  ;;  %s1117_s6 = scalar_lea.vmem %s1140_s2, %s723_s18 }
  0x10   : > { %v1015_v4 = vld [vmem:[%s1079_s21] sm:$0xff]   ;;  %941 = vmatprep.subr.bf16.mxu0 %v1010_v3  ;;  %986 = vmatprep.subr.bf16.mxu1 %v1010_v3  ;;  %v1017_v10 = vld [vmem:[%s1079_s21 + $0x8] sm:$0xff]   ;;  %v1019_v12 = vld [vmem:[%s1079_s21 + $0x10] sm:$0xff]  }
  0x11   : > { %v1016_v5 = vld [vmem:[%s1079_s21 + $0x40] sm:$0xff]   ;;  %951 = vmatprep.mubr.bf16.mxu0 %v1015_v4  ;;  %v1018_v11 = vld [vmem:[%s1079_s21 + $0x48] sm:$0xff]   ;;  %v1020_v13 = vld [vmem:[%s1079_s21 + $0x50] sm:$0xff]  }
  0x12   : > { %967 = vmatprep.mubr.bf16.mxu1 %v1016_v5  ;;  %v1021_v14 = vld [vmem:[%s1079_s21 + $0x18] sm:$0xff]   ;;  %v1023_v16 = vld [vmem:[%s1079_s21 + $0x20] sm:$0xff]   ;;  %v1025_v18 = vld [vmem:[%s1079_s21 + $0x28] sm:$0xff]  }
  0x13   : > { %942 = vmatpush3.bf16.msra.mxu0 %v1010_v3  ;;  %994 = vmatpush3.bf16.msra.mxu1 %v1010_v3  ;;  %v1022_v15 = vld [vmem:[%s1079_s21 + $0x58] sm:$0xff]   ;;  %v1024_v17 = vld [vmem:[%s1079_s21 + $0x60] sm:$0xff]   ;;  %v1026_v19 = vld [vmem:[%s1079_s21 + $0x68] sm:$0xff]  }
  0x14   : > { %943 = vmatprep.subr.bf16.mxu0 %v1011_v6  ;;  %987 = vmatprep.subr.bf16.mxu1 %v1011_v6  ;;  %v1027_v20 = vld [vmem:[%s1079_s21 + $0x30] sm:$0xff]   ;;  %v1029_v22 = vld [vmem:[%s1079_s21 + $0x38] sm:$0xff]  }
  0x15   : > { %v1028_v21 = vld [vmem:[%s1079_s21 + $0x70] sm:$0xff]   ;;  %v1030_v23 = vld [vmem:[%s1079_s21 + $0x78] sm:$0xff]  }
  0x17   : > { %944 = vmatpush3.bf16.msra.mxu0 %v1011_v6  ;;  %995 = vmatpush3.bf16.msra.mxu1 %v1011_v6 }
  0x18   : > { %945 = vmatprep.subr.bf16.mxu0 %v1012_v7  ;;  %988 = vmatprep.subr.bf16.mxu1 %v1012_v7 }
  0x1b   : > { %946 = vmatpush3.bf16.msra.mxu0 %v1012_v7  ;;  %996 = vmatpush3.bf16.msra.mxu1 %v1012_v7 }
  0x1c   : > { %947 = vmatprep.subr.bf16.mxu0 %v1013_v8  ;;  %989 = vmatprep.subr.bf16.mxu1 %v1013_v8 }
  0x1f   : > { %948 = vmatpush3.bf16.msra.mxu0 %v1013_v8  ;;  %997 = vmatpush3.bf16.msra.mxu1 %v1013_v8 }
  0x20   : > { %949 = vmatprep.subr.bf16.mxu0 %v1014_v9  ;;  %990 = vmatprep.subr.bf16.mxu1 %v1014_v9 }
  0x23   : > { %950 = vmatpush3.bf16.msra.mxu0 %v1014_v9  ;;  %998 = vmatpush3.bf16.msra.mxu1 %v1014_v9 }
  0x26   : > { %952 = vmatmul.mubr.bf16.vlgmr.msra.gmra.mrb[0].mxu0 %v1017_v10  ;;  %968 = vmatmul.mubr.bf16.vlgmr.msra.gmra.mrb[0].mxu1 %v1018_v11 }
  0x27   : > { %955 = vmatprep.mubr.bf16.mxu0 %v1019_v12  ;;  %971 = vmatprep.mubr.bf16.mxu1 %v1020_v13 }
  0x2e   : > { %956 = vmatmul.mubr.bf16.gmra.mrb[4].mxu0 %v1021_v14  ;;  %972 = vmatmul.mubr.bf16.gmra.mrb[4].mxu1 %v1022_v15 }
  0x2f   : > { %959 = vmatprep.mubr.bf16.mxu0 %v1023_v16  ;;  %975 = vmatprep.mubr.bf16.mxu1 %v1024_v17 }
  0x36   : > { %960 = vmatmul.mubr.bf16.gmra.mrb[8].mxu0 %v1025_v18  ;;  %976 = vmatmul.mubr.bf16.gmra.mrb[8].mxu1 %v1026_v19 }
  0x37   : > { %963 = vmatprep.mubr.bf16.mxu0 %v1027_v20  ;;  %979 = vmatprep.mubr.bf16.mxu1 %v1028_v21 }
  0x3e   : > { %964 = vmatmul.mubr.bf16.gmra.mrb[12].mxu0 %v1029_v22  ;;  %980 = vmatmul.mubr.bf16.gmra.mrb[12].mxu1 %v1030_v23 }
  0xf9   : > { %v953_v24 = vpop.f32.mrb[0].mxu0  ;;  %v969_v25 = vpop.f32.mrb[0].mxu1 }
  0xfa   : > { %v374_v26 = vpop.f32.mrb[1].mxu0  ;;  %v438_v27 = vpop.f32.mrb[1].mxu1 }
  0xfb   : > { %v954_v28 = vpop.f32.mrb[2].mxu0  ;;  %v970_v29 = vpop.f32.mrb[2].mxu1 }
  0xfc   : > { %v824_v30 = vpack.c.bf16 %v954_v28, %v953_v24  ;;  %v864_v31 = vpack.c.bf16 %v970_v29, %v969_v25  ;;  %v377_v32 = vpop.f32.mrb[3].mxu0  ;;  %v441_v33 = vpop.f32.mrb[3].mxu1 }
  0xfd   : > { %v819_v34 = vpack.c.bf16 %v377_v32, %v374_v26  ;;  %v859_v35 = vpack.c.bf16 %v441_v33, %v438_v27 }
  0xfe   : > { %896 = vst [vmem:[%s1117_s6 + $0x8] sm:$0xff] %v824_v30   ;;  %904 = vst [vmem:[%s1117_s6 + $0x48] sm:$0xff] %v864_v31  }
  0xff   : > { %820 = vst [vmem:[%s1117_s6] sm:$0xff] %v819_v34   ;;  %903 = vst [vmem:[%s1117_s6 + $0x40] sm:$0xff] %v859_v35  }
 0x101   : > { %v957_v36 = vpop.f32.mrb[4].mxu0  ;;  %v973_v37 = vpop.f32.mrb[4].mxu1 }
 0x102   : > { %v390_v38 = vpop.f32.mrb[5].mxu0  ;;  %v454_v39 = vpop.f32.mrb[5].mxu1 }
 0x103   : > { %v958_v40 = vpop.f32.mrb[6].mxu0  ;;  %v974_v41 = vpop.f32.mrb[6].mxu1 }
 0x104   : > { %v834_v42 = vpack.c.bf16 %v958_v40, %v957_v36  ;;  %v874_v43 = vpack.c.bf16 %v974_v41, %v973_v37  ;;  %v393_v44 = vpop.f32.mrb[7].mxu0  ;;  %v457_v45 = vpop.f32.mrb[7].mxu1 }
 0x105   : > { %v829_v46 = vpack.c.bf16 %v393_v44, %v390_v38  ;;  %v869_v47 = vpack.c.bf16 %v457_v45, %v454_v39 }
 0x106   : > { %898 = vst [vmem:[%s1117_s6 + $0x18] sm:$0xff] %v834_v42   ;;  %906 = vst [vmem:[%s1117_s6 + $0x58] sm:$0xff] %v874_v43  }
 0x107   : > { %897 = vst [vmem:[%s1117_s6 + $0x10] sm:$0xff] %v829_v46   ;;  %905 = vst [vmem:[%s1117_s6 + $0x50] sm:$0xff] %v869_v47  }
 0x109   : > { %v961_v48 = vpop.f32.mrb[8].mxu0  ;;  %v977_v49 = vpop.f32.mrb[8].mxu1 }
 0x10a   : > { %v406_v50 = vpop.f32.mrb[9].mxu0  ;;  %v470_v51 = vpop.f32.mrb[9].mxu1 }
 0x10b   : > { %v962_v52 = vpop.f32.mrb[10].mxu0  ;;  %v978_v53 = vpop.f32.mrb[10].mxu1 }
 0x10c   : > { %v844_v54 = vpack.c.bf16 %v962_v52, %v961_v48  ;;  %v884_v55 = vpack.c.bf16 %v978_v53, %v977_v49  ;;  %v409_v56 = vpop.f32.mrb[11].mxu0  ;;  %v473_v57 = vpop.f32.mrb[11].mxu1 }
 0x10d   : > { %v839_v58 = vpack.c.bf16 %v409_v56, %v406_v50  ;;  %v879_v59 = vpack.c.bf16 %v473_v57, %v470_v51 }
 0x10e   : > { %900 = vst [vmem:[%s1117_s6 + $0x28] sm:$0xff] %v844_v54   ;;  %908 = vst [vmem:[%s1117_s6 + $0x68] sm:$0xff] %v884_v55  }
 0x10f   : > { %899 = vst [vmem:[%s1117_s6 + $0x20] sm:$0xff] %v839_v58   ;;  %907 = vst [vmem:[%s1117_s6 + $0x60] sm:$0xff] %v879_v59  }
 0x111   : > { %v965_v60 = vpop.f32.mrb[12].mxu0  ;;  %v981_v61 = vpop.f32.mrb[12].mxu1 }
 0x112   : > { %v422_v62 = vpop.f32.mrb[13].mxu0  ;;  %v486_v63 = vpop.f32.mrb[13].mxu1 }
 0x113   : > { %v966_v0 = vpop.f32.mrb[14].mxu0  ;;  %v982_v1 = vpop.f32.mrb[14].mxu1 }
 0x114   : > { %v854_v2 = vpack.c.bf16 %v966_v0, %v965_v60  ;;  %v894_v3 = vpack.c.bf16 %v982_v1, %v981_v61  ;;  %v425_v4 = vpop.f32.mrb[15].mxu0  ;;  %v489_v5 = vpop.f32.mrb[15].mxu1 }
 0x115   : > { %v849_v6 = vpack.c.bf16 %v425_v4, %v422_v62  ;;  %v889_v7 = vpack.c.bf16 %v489_v5, %v486_v63 }
 0x116   : > { %902 = vst [vmem:[%s1117_s6 + $0x38] sm:$0xff] %v854_v2   ;;  %910 = vst [vmem:[%s1117_s6 + $0x78] sm:$0xff] %v894_v3  }
 0x117   : > { %901 = vst [vmem:[%s1117_s6 + $0x30] sm:$0xff] %v849_v6   ;;  %909 = vst [vmem:[%s1117_s6 + $0x70] sm:$0xff] %v889_v7  }
 0x118 PF: > { %s12_s9 = sadd.s32 1, %s1037_s9  }
 0x119   : > { %p9_p4 = scmp.ge.s32.totalorder %s12_s9, 4  }
 0x11b   :  { %11 = sbr.rel (!%p9_p4) target bundleno = 1 (0x1), region = 58 }

// kernel: _lambda_.21
= control target key start
LH: loop header
LB: loop body
LE: loop exit
PB: predicated region body
PF: predicated region fallthrough
CT: control target
= control target key end

     0   :  { %s851_s12 = smov 0   ;;  %s985_s0 = inlined_call_operand.vmem [shape: bf16[512,128], index: 0, kind: input, shape index: {}]   ;;  %s986_s1 = inlined_call_operand.vmem [shape: f32[1,128], index: 1, kind: input, shape index: {}]   ;;  %s987_s2 = inlined_call_operand.vmem [shape: f32[1,128], index: 2, kind: input, shape index: {}]   ;;  %s988_s3 = inlined_call_operand.vmem [shape: bf16[512,128], index: 3, kind: output, shape index: {}]  }
   0x1 LB: > { %s564_s13 = sadd.s32 4294967295, %s829_s12   ;;  %p568_p0 = scmp.ge.s32.totalorder %s829_s12, 1  ;;  %s829_s12 = sphi %s851_s12, %s13_s12  }
   0x2   : > { %p138_p1 = scmp.lt.s32.totalorder %s829_s12, 3 }
   0x4   : > { %p139_p2 = pnand %p568_p0, %p138_p1 }
   0x5   : > { %s569_s14 = sshll.u32 (!%p139_p2), %s564_s13, 5  ;;  %v872_v0 = vld [vmem:[%s986_s1] ss:$0 sm:$0xff] (!%p139_p2) }
   0x6   : > { %142 = sbr.rel (%p139_p2) target bundleno = 59 (0x3b), region = 32  ;;  %p163_p3 = scmp.lt.s32.totalorder (!%p139_p2), %s569_s14, 63  ;;  %v881_v9 = vld [vmem:[%s987_s2] ss:$0 sm:$0xff] (!%p139_p2) }
   0xd   : > { %s990_s14 = smov (!%p163_p3, %s569_s14), 63 }
   0xe   : > { %s570_s15 = sshll.u32 %s990_s14, 2 }
   0xf   : > { %s867_s18 = scalar_lea.vmem %s985_s0, %s570_s15  ;;  %s906_s25 = scalar_lea.vmem %s988_s3, %s570_s15 }
  0x10   : > { %v642_v1 = vld [vmem:[%s867_s18] sm:$0xff]   ;;  %v785_v2 = vld [vmem:[%s867_s18 + $0x8] sm:$0xff]   ;;  %v786_v3 = vld [vmem:[%s867_s18 + $0x10] sm:$0xff]  }
  0x11   : > { %v643_v4 = vunpack.c.l.bf16 %v642_v1  ;;  %v644_v5 = vunpack.c.h.bf16 %v642_v1  ;;  %v647_v6 = vunpack.c.l.bf16 %v785_v2  ;;  %v648_v7 = vunpack.c.h.bf16 %v785_v2  ;;  %v787_v8 = vld [vmem:[%s867_s18 + $0x18] sm:$0xff]   ;;  %v788_v30 = vld [vmem:[%s867_s18 + $0x20] sm:$0xff]   ;;  %v789_v35 = vld [vmem:[%s867_s18 + $0x28] sm:$0xff]  }
  0x12   : > { %v651_v10 = vunpack.c.l.bf16 %v786_v3  ;;  %v652_v11 = vunpack.c.h.bf16 %v786_v3  ;;  %v655_v12 = vunpack.c.l.bf16 %v787_v8  ;;  %v656_v13 = vunpack.c.h.bf16 %v787_v8  ;;  %v790_v40 = vld [vmem:[%s867_s18 + $0x30] sm:$0xff]   ;;  %v791_v45 = vld [vmem:[%s867_s18 + $0x38] sm:$0xff]   ;;  %v792_v3 = vld [vmem:[%s867_s18 + $0x40] sm:$0xff]  }
  0x13   : > { %v245_v14 = vmul.f32 %v643_v4, %v872_v0  ;;  %v246_v15 = vmul.f32 %v644_v5, %v872_v0  ;;  %v247_v16 = vmul.f32 %v647_v6, %v872_v0  ;;  %v248_v17 = vmul.f32 %v648_v7, %v872_v0 }
  0x14   : > { %v249_v18 = vmul.f32 %v651_v10, %v872_v0  ;;  %v250_v19 = vmul.f32 %v652_v11, %v872_v0  ;;  %v251_v20 = vmul.f32 %v655_v12, %v872_v0  ;;  %v252_v21 = vmul.f32 %v656_v13, %v872_v0  ;;  %v793_v13 = vld [vmem:[%s867_s18 + $0x48] sm:$0xff]  }
  0x15   : > { %v284_v22 = vadd.f32 %v881_v9, %v245_v14  ;;  %v285_v23 = vadd.f32 %v881_v9, %v246_v15  ;;  %v286_v24 = vadd.f32 %v881_v9, %v247_v16  ;;  %v287_v25 = vadd.f32 %v881_v9, %v248_v17 }
  0x16   : > { %v288_v26 = vadd.f32 %v881_v9, %v249_v18  ;;  %v289_v27 = vadd.f32 %v881_v9, %v250_v19  ;;  %v290_v28 = vadd.f32 %v881_v9, %v251_v20  ;;  %v291_v29 = vadd.f32 %v881_v9, %v252_v21  ;;  %v794_v18 = vld [vmem:[%s867_s18 + $0x50] sm:$0xff]  }
  0x17   : > { %v316_v31 = vmax.f32 %v284_v22, 0.0  ;;  %v317_v32 = vmax.f32 %v285_v23, 0.0  ;;  %v318_v33 = vmax.f32 %v286_v24, 0.0  ;;  %v319_v34 = vmax.f32 %v287_v25, 0.0  ;;  %v795_v23 = vld [vmem:[%s867_s18 + $0x58] sm:$0xff]  }
  0x18   : > { %v320_v36 = vmax.f32 %v288_v26, 0.0  ;;  %v321_v37 = vmax.f32 %v289_v27, 0.0  ;;  %v322_v38 = vmax.f32 %v290_v28, 0.0  ;;  %v323_v39 = vmax.f32 %v291_v29, 0.0 }
  0x19   : > { %v708_v41 = vpack.c.bf16 %v317_v32, %v316_v31  ;;  %v713_v42 = vpack.c.bf16 %v319_v34, %v318_v33  ;;  %v659_v43 = vunpack.c.l.bf16 %v788_v30  ;;  %v660_v44 = vunpack.c.h.bf16 %v788_v30 }
  0x1a   : > { %v718_v46 = vpack.c.bf16 %v321_v37, %v320_v36  ;;  %v723_v47 = vpack.c.bf16 %v323_v39, %v322_v38  ;;  %v663_v48 = vunpack.c.l.bf16 %v789_v35  ;;  %v664_v49 = vunpack.c.h.bf16 %v789_v35 }
  0x1b   : > { %709 = vst [vmem:[%s906_s25] sm:$0xff] %v708_v41   ;;  %800 = vst [vmem:[%s906_s25 + $0x8] sm:$0xff] %v713_v42   ;;  %v253_v50 = vmul.f32 %v659_v43, %v872_v0  ;;  %v254_v51 = vmul.f32 %v660_v44, %v872_v0  ;;  %v667_v52 = vunpack.c.l.bf16 %v790_v40  ;;  %v668_v53 = vunpack.c.h.bf16 %v790_v40  ;;  %v796_v40 = vld [vmem:[%s867_s18 + $0x60] sm:$0xff]  }
  0x1c   : > { %801 = vst [vmem:[%s906_s25 + $0x10] sm:$0xff] %v718_v46   ;;  %802 = vst [vmem:[%s906_s25 + $0x18] sm:$0xff] %v723_v47   ;;  %v255_v54 = vmul.f32 %v663_v48, %v872_v0  ;;  %v256_v55 = vmul.f32 %v664_v49, %v872_v0  ;;  %v671_v56 = vunpack.c.l.bf16 %v791_v45  ;;  %v672_v57 = vunpack.c.h.bf16 %v791_v45 }
  0x1d   : > { %v292_v58 = vadd.f32 %v881_v9, %v253_v50  ;;  %v293_v59 = vadd.f32 %v881_v9, %v254_v51  ;;  %v257_v60 = vmul.f32 %v667_v52, %v872_v0  ;;  %v258_v61 = vmul.f32 %v668_v53, %v872_v0  ;;  %v797_v53 = vld [vmem:[%s867_s18 + $0x68] sm:$0xff]  }
  0x1e   : > { %v294_v62 = vadd.f32 %v881_v9, %v255_v54  ;;  %v295_v63 = vadd.f32 %v881_v9, %v256_v55  ;;  %v259_v1 = vmul.f32 %v671_v56, %v872_v0  ;;  %v260_v2 = vmul.f32 %v672_v57, %v872_v0 }
  0x1f   : > { %v324_v4 = vmax.f32 %v292_v58, 0.0  ;;  %v325_v5 = vmax.f32 %v293_v59, 0.0  ;;  %v296_v6 = vadd.f32 %v881_v9, %v257_v60  ;;  %v297_v7 = vadd.f32 %v881_v9, %v258_v61  ;;  %v798_v58 = vld [vmem:[%s867_s18 + $0x70] sm:$0xff]  }
  0x20   : > { %v326_v8 = vmax.f32 %v294_v62, 0.0  ;;  %v327_v10 = vmax.f32 %v295_v63, 0.0  ;;  %v298_v11 = vadd.f32 %v881_v9, %v259_v1  ;;  %v299_v12 = vadd.f32 %v881_v9, %v260_v2  ;;  %v799_v63 = vld [vmem:[%s867_s18 + $0x78] sm:$0xff]  }
  0x21   : > { %v728_v14 = vpack.c.bf16 %v325_v5, %v324_v4  ;;  %v328_v15 = vmax.f32 %v296_v6, 0.0  ;;  %v329_v16 = vmax.f32 %v297_v7, 0.0  ;;  %v675_v17 = vunpack.c.l.bf16 %v792_v3 }
  0x22   : > { %v733_v19 = vpack.c.bf16 %v327_v10, %v326_v8  ;;  %v330_v20 = vmax.f32 %v298_v11, 0.0  ;;  %v331_v21 = vmax.f32 %v299_v12, 0.0  ;;  %v676_v22 = vunpack.c.h.bf16 %v792_v3 }
  0x23   : > { %803 = vst [vmem:[%s906_s25 + $0x20] sm:$0xff] %v728_v14   ;;  %v738_v24 = vpack.c.bf16 %v329_v16, %v328_v15  ;;  %v261_v25 = vmul.f32 %v675_v17, %v872_v0  ;;  %v679_v26 = vunpack.c.l.bf16 %v793_v13  ;;  %v680_v27 = vunpack.c.h.bf16 %v793_v13 }
  0x24   : > { %804 = vst [vmem:[%s906_s25 + $0x28] sm:$0xff] %v733_v19   ;;  %v743_v28 = vpack.c.bf16 %v331_v21, %v330_v20  ;;  %v262_v29 = vmul.f32 %v676_v22, %v872_v0  ;;  %v683_v30 = vunpack.c.l.bf16 %v794_v18  ;;  %v684_v31 = vunpack.c.h.bf16 %v794_v18 }
  0x25   : > { %805 = vst [vmem:[%s906_s25 + $0x30] sm:$0xff] %v738_v24   ;;  %v300_v32 = vadd.f32 %v881_v9, %v261_v25  ;;  %v263_v33 = vmul.f32 %v679_v26, %v872_v0  ;;  %v264_v34 = vmul.f32 %v680_v27, %v872_v0  ;;  %v687_v35 = vunpack.c.l.bf16 %v795_v23 }
  0x26   : > { %806 = vst [vmem:[%s906_s25 + $0x38] sm:$0xff] %v743_v28   ;;  %v301_v36 = vadd.f32 %v881_v9, %v262_v29  ;;  %v265_v37 = vmul.f32 %v683_v30, %v872_v0  ;;  %v266_v38 = vmul.f32 %v684_v31, %v872_v0  ;;  %v688_v39 = vunpack.c.h.bf16 %v795_v23 }
  0x27   : > { %v332_v41 = vmax.f32 %v300_v32, 0.0  ;;  %v302_v42 = vadd.f32 %v881_v9, %v263_v33  ;;  %v303_v43 = vadd.f32 %v881_v9, %v264_v34  ;;  %v267_v44 = vmul.f32 %v687_v35, %v872_v0 }
  0x28   : > { %v333_v45 = vmax.f32 %v301_v36, 0.0  ;;  %v304_v46 = vadd.f32 %v881_v9, %v265_v37  ;;  %v305_v47 = vadd.f32 %v881_v9, %v266_v38  ;;  %v268_v48 = vmul.f32 %v688_v39, %v872_v0 }
  0x29   : > { %v334_v49 = vmax.f32 %v302_v42, 0.0  ;;  %v335_v50 = vmax.f32 %v303_v43, 0.0  ;;  %v306_v51 = vadd.f32 %v881_v9, %v267_v44  ;;  %v691_v52 = vunpack.c.l.bf16 %v796_v40 }
  0x2a   : > { %v748_v54 = vpack.c.bf16 %v333_v45, %v332_v41  ;;  %v336_v55 = vmax.f32 %v304_v46, 0.0  ;;  %v337_v56 = vmax.f32 %v305_v47, 0.0  ;;  %v307_v57 = vadd.f32 %v881_v9, %v268_v48 }
  0x2b   : > { %v753_v59 = vpack.c.bf16 %v335_v50, %v334_v49  ;;  %v338_v60 = vmax.f32 %v306_v51, 0.0  ;;  %v692_v61 = vunpack.c.h.bf16 %v796_v40  ;;  %v269_v62 = vmul.f32 %v691_v52, %v872_v0 }
  0x2c   : > { %807 = vst [vmem:[%s906_s25 + $0x40] sm:$0xff] %v748_v54   ;;  %v758_v1 = vpack.c.bf16 %v337_v56, %v336_v55  ;;  %v339_v2 = vmax.f32 %v307_v57, 0.0  ;;  %v695_v3 = vunpack.c.l.bf16 %v797_v53  ;;  %v696_v4 = vunpack.c.h.bf16 %v797_v53 }
  0x2d   : > { %808 = vst [vmem:[%s906_s25 + $0x48] sm:$0xff] %v753_v59   ;;  %v270_v5 = vmul.f32 %v692_v61, %v872_v0  ;;  %v308_v6 = vadd.f32 %v881_v9, %v269_v62  ;;  %v699_v7 = vunpack.c.l.bf16 %v798_v58  ;;  %v700_v8 = vunpack.c.h.bf16 %v798_v58 }
  0x2e   : > { %809 = vst [vmem:[%s906_s25 + $0x50] sm:$0xff] %v758_v1   ;;  %v763_v10 = vpack.c.bf16 %v339_v2, %v338_v60  ;;  %v271_v11 = vmul.f32 %v695_v3, %v872_v0  ;;  %v272_v12 = vmul.f32 %v696_v4, %v872_v0  ;;  %v703_v13 = vunpack.c.l.bf16 %v799_v63 }
  0x2f   : > { %v309_v14 = vadd.f32 %v881_v9, %v270_v5  ;;  %v340_v15 = vmax.f32 %v308_v6, 0.0  ;;  %v273_v16 = vmul.f32 %v699_v7, %v872_v0  ;;  %v274_v17 = vmul.f32 %v700_v8, %v872_v0 }
  0x30   : > { %810 = vst [vmem:[%s906_s25 + $0x58] sm:$0xff] %v763_v10   ;;  %v310_v18 = vadd.f32 %v881_v9, %v271_v11  ;;  %v311_v19 = vadd.f32 %v881_v9, %v272_v12  ;;  %v704_v20 = vunpack.c.h.bf16 %v799_v63  ;;  %v275_v21 = vmul.f32 %v703_v13, %v872_v0 }
  0x31   : > { %v341_v22 = vmax.f32 %v309_v14, 0.0  ;;  %v312_v23 = vadd.f32 %v881_v9, %v273_v16  ;;  %v313_v24 = vadd.f32 %v881_v9, %v274_v17 }
  0x32   : > { %v342_v25 = vmax.f32 %v310_v18, 0.0  ;;  %v343_v26 = vmax.f32 %v311_v19, 0.0  ;;  %v276_v27 = vmul.f32 %v704_v20, %v872_v0  ;;  %v314_v28 = vadd.f32 %v881_v9, %v275_v21 }
  0x33   : > { %v768_v29 = vpack.c.bf16 %v341_v22, %v340_v15  ;;  %v344_v30 = vmax.f32 %v312_v23, 0.0  ;;  %v345_v31 = vmax.f32 %v313_v24, 0.0 }
  0x34   : > { %v773_v32 = vpack.c.bf16 %v343_v26, %v342_v25  ;;  %v315_v33 = vadd.f32 %v881_v9, %v276_v27  ;;  %v346_v34 = vmax.f32 %v314_v28, 0.0 }
  0x35   : > { %811 = vst [vmem:[%s906_s25 + $0x60] sm:$0xff] %v768_v29   ;;  %v778_v35 = vpack.c.bf16 %v345_v31, %v344_v30 }
  0x36   : > { %812 = vst [vmem:[%s906_s25 + $0x68] sm:$0xff] %v773_v32   ;;  %v347_v36 = vmax.f32 %v315_v33, 0.0 }
  0x37   : > { %813 = vst [vmem:[%s906_s25 + $0x70] sm:$0xff] %v778_v35  }
  0x38   : > { %v783_v37 = vpack.c.bf16 %v347_v36, %v346_v34 }
  0x3a   : > { %814 = vst [vmem:[%s906_s25 + $0x78] sm:$0xff] %v783_v37  }
  0x3b PF: > { %s13_s12 = sadd.s32 1, %s829_s12  }
  0x3c   : > { %p10_p4 = scmp.ge.s32.totalorder %s13_s12, 4  }
  0x3e   :  { %12 = sbr.rel (!%p10_p4) target bundleno = 1 (0x1), region = 62 }

// kernel: _lambda_.26
= control target key start
LH: loop header
LB: loop body
LE: loop exit
PB: predicated region body
PF: predicated region fallthrough
CT: control target
= control target key end

     0   :  { %s4089_s12 = smov 0   ;;  %s4857_s0 = inlined_call_operand.vmem [shape: bf16[512,1152], index: 0, kind: input, shape index: {}]   ;;  %s4858_s1 = inlined_call_operand.vmem [shape: bf16[1152,128], index: 1, kind: input, shape index: {}]   ;;  %s4859_s2 = inlined_call_operand.vmem [shape: bf16[512,128], index: 2, kind: input, shape index: {}]   ;;  %s4860_s3 = inlined_call_operand.vmem [shape: bf16[512,128], index: 3, kind: output, shape index: {}]  }
   0x1 LB: > { %s2769_s13 = sadd.s32 4294967295, %s4067_s12   ;;  %p2773_p0 = scmp.ge.s32.totalorder %s4067_s12, 1  ;;  %s4067_s12 = sphi %s4089_s12, %s13_s12  }
   0x2   : > { %p150_p1 = scmp.lt.s32.totalorder %s4067_s12, 3 }
   0x4   : > { %p151_p2 = pnand %p2773_p0, %p150_p1 }
   0x5   : > { %v3781_v0 = vld [vmem:[%s4858_s1 + $0x40] sm:$0xff] (!%p151_p2)   ;;  %s2774_s16 = sshll.u32 (!%p151_p2), %s2769_s13, 5  ;;  %v3783_v2 = vld [vmem:[%s4858_s1 + $0x48] sm:$0xff] (!%p151_p2)   ;;  %v3785_v4 = vld [vmem:[%s4858_s1 + $0x50] sm:$0xff] (!%p151_p2)  }
   0x6   : > { %154 = sbr.rel (%p151_p2) target bundleno = 542 (0x21e), region = 32  ;;  %v3782_v1 = vld [vmem:[%s4858_s1] sm:$0xff] (!%p151_p2)   ;;  %3236 = vmatprep.subr.bf16.mxu0 (!%p151_p2), %v3781_v0  ;;  %3756 = vmatprep.subr.bf16.mxu1 (!%p151_p2), %v3781_v0  ;;  %p181_p3 = scmp.lt.s32.totalorder (!%p151_p2), %s2774_s16, 63  ;;  %v3784_v3 = vld [vmem:[%s4858_s1 + $0x8] sm:$0xff] (!%p151_p2)   ;;  %v3786_v5 = vld [vmem:[%s4858_s1 + $0x10] sm:$0xff] (!%p151_p2)  }
   0x7   : > { %3237 = vmatpush3.bf16.msra.mxu0 (!%p151_p2), %v3782_v1  ;;  %3764 = vmatpush3.bf16.msra.mxu1 (!%p151_p2), %v3782_v1  ;;  %v3787_v6 = vld [vmem:[%s4858_s1 + $0x58] sm:$0xff] (!%p151_p2)   ;;  %v3789_v8 = vld [vmem:[%s4858_s1 + $0x60] sm:$0xff] (!%p151_p2)   ;;  %v3791_v10 = vld [vmem:[%s4858_s1 + $0x68] sm:$0xff] (!%p151_p2)  }
   0x8   : > { %3238 = vmatprep.subr.bf16.mxu0 (!%p151_p2), %v3783_v2  ;;  %3757 = vmatprep.subr.bf16.mxu1 (!%p151_p2), %v3783_v2  ;;  %v3788_v7 = vld [vmem:[%s4858_s1 + $0x18] sm:$0xff] (!%p151_p2)   ;;  %v3790_v9 = vld [vmem:[%s4858_s1 + $0x20] sm:$0xff] (!%p151_p2)   ;;  %v3792_v13 = vld [vmem:[%s4858_s1 + $0x28] sm:$0xff] (!%p151_p2)  }
   0x9   : > { %v3793_v14 = vld [vmem:[%s4858_s1 + $0x70] sm:$0xff] (!%p151_p2)   ;;  %v3795_v16 = vld [vmem:[%s4858_s1 + $0x78] sm:$0xff] (!%p151_p2)   ;;  %v3803_v18 = vld [vmem:[%s4858_s1 + $0xc0] sm:$0xff] (!%p151_p2)  }
   0xa   : > { %v3794_v15 = vld [vmem:[%s4858_s1 + $0x30] sm:$0xff] (!%p151_p2)   ;;  %v3796_v17 = vld [vmem:[%s4858_s1 + $0x38] sm:$0xff] (!%p151_p2)   ;;  %v3806_v21 = vld [vmem:[%s4858_s1 + $0x140] sm:$0xff] (!%p151_p2)  }
   0xb   : > { %3239 = vmatpush3.bf16.msra.mxu0 (!%p151_p2), %v3784_v3  ;;  %3765 = vmatpush3.bf16.msra.mxu1 (!%p151_p2), %v3784_v3  ;;  %v3804_v22 = vld [vmem:[%s4858_s1 + $0x80] sm:$0xff] (!%p151_p2)   ;;  %v3805_v23 = vld [vmem:[%s4858_s1 + $0xc8] sm:$0xff] (!%p151_p2)   ;;  %v3815_v31 = vld [vmem:[%s4858_s1 + $0xd0] sm:$0xff] (!%p151_p2)  }
   0xc   : > { %3240 = vmatprep.subr.bf16.mxu0 (!%p151_p2), %v3785_v4  ;;  %3758 = vmatprep.subr.bf16.mxu1 (!%p151_p2), %v3785_v4  ;;  %v3808_v24 = vld [vmem:[%s4858_s1 + $0x100] sm:$0xff] (!%p151_p2)   ;;  %v3807_v27 = vld [vmem:[%s4858_s1 + $0x88] sm:$0xff] (!%p151_p2)   ;;  %v3816_v32 = vld [vmem:[%s4858_s1 + $0x90] sm:$0xff] (!%p151_p2)  }
   0xd   : > { %s4862_s16 = smov (!%p181_p3, %s2774_s16), 63  ;;  %v3826_v28 = vld [vmem:[%s4858_s1 + $0x148] sm:$0xff]   ;;  %v3817_v34 = vld [vmem:[%s4858_s1 + $0xd8] sm:$0xff]   ;;  %v3825_v40 = vld [vmem:[%s4858_s1 + $0xe0] sm:$0xff]  }
   0xe   : > { %s3772_s29 = smul.u32 36, %s4862_s16  ;;  %v3828_v33 = vld [vmem:[%s4858_s1 + $0x108] sm:$0xff]   ;;  %v3818_v37 = vld [vmem:[%s4858_s1 + $0x98] sm:$0xff]   ;;  %v3827_v41 = vld [vmem:[%s4858_s1 + $0xa0] sm:$0xff]   ;;  %s2777_s18 = sshll.u32 %s4862_s16, 2 }
   0xf   : > { %3241 = vmatpush3.bf16.msra.mxu0 %v3786_v5  ;;  %3766 = vmatpush3.bf16.msra.mxu1 %v3786_v5  ;;  %v3829_v42 = vld [vmem:[%s4858_s1 + $0xe8] sm:$0xff]   ;;  %v3840_v43 = vld [vmem:[%s4858_s1 + $0x150] sm:$0xff]   ;;  %v3839_v52 = vld [vmem:[%s4858_s1 + $0xf8] sm:$0xff]   ;;  %s4475_s21 = scalar_lea.vmem %s4859_s2, %s2777_s18  ;;  %s4801_s23 = scalar_lea.vmem %s4860_s3, %s2777_s18 }
  0x10   : > { %3242 = vmatprep.subr.bf16.mxu0 %v3787_v6  ;;  %3759 = vmatprep.subr.bf16.mxu1 %v3787_v6  ;;  %s4130_s9 = scalar_lea.vmem %s4857_s0, %s3772_s29  ;;  %v3842_v46 = vld [vmem:[%s4858_s1 + $0x110] sm:$0xff]   ;;  %v3830_v47 = vld [vmem:[%s4858_s1 + $0xa8] sm:$0xff]   ;;  %v3857_v55 = vld [vmem:[%s4858_s1 + $0x158] sm:$0xff]  }
  0x11   : > { %v3799_v11 = vld [vmem:[%s4130_s9 + $0x4] ss:$36 sps:$4 sm:$0xff]   ;;  %v3809_v25 = vld [vmem:[%s4130_s9 + $0x4c] ss:$36 sps:$4 sm:$0xff]   ;;  %v3819_v35 = vld [vmem:[%s4130_s9 + $0x94] ss:$36 sps:$4 sm:$0xff]  }
  0x12   : > { %v3802_v12 = vld [vmem:[%s4130_s9 + $0x364] ss:$36 sps:$4 sm:$0xff]   ;;  %1768 = vmatprep.mubr.bf16.mxu0 %v3799_v11  ;;  %v3811_v26 = vld [vmem:[%s4130_s9 + $0x3ac] ss:$36 sps:$4 sm:$0xff]   ;;  %v3821_v36 = vld [vmem:[%s4130_s9 + $0x3f4] ss:$36 sps:$4 sm:$0xff]  }
  0x13   : > { %3243 = vmatpush3.bf16.msra.mxu0 %v3788_v7  ;;  %3767 = vmatpush3.bf16.msra.mxu1 %v3788_v7  ;;  %v3797_v19 = vld [vmem:[%s4130_s9] ss:$36 sps:$4 sm:$0xff]   ;;  %v3813_v29 = vld [vmem:[%s4130_s9 + $0x48] ss:$36 sps:$4 sm:$0xff]   ;;  %v3823_v38 = vld [vmem:[%s4130_s9 + $0x90] ss:$36 sps:$4 sm:$0xff]  }
  0x14   : > { %3244 = vmatprep.subr.bf16.mxu0 %v3789_v8  ;;  %3760 = vmatprep.subr.bf16.mxu1 %v3789_v8  ;;  %v3800_v20 = vld [vmem:[%s4130_s9 + $0x360] ss:$36 sps:$4 sm:$0xff]   ;;  %v3814_v30 = vld [vmem:[%s4130_s9 + $0x3a8] ss:$36 sps:$4 sm:$0xff]   ;;  %v3824_v39 = vld [vmem:[%s4130_s9 + $0x3f0] ss:$36 sps:$4 sm:$0xff]  }
  0x15   : > { %1864 = vmatprep.mubr.bf16.mxu1 %v3802_v12  ;;  %v3831_v44 = vld [vmem:[%s4130_s9 + $0xdc] ss:$36 sps:$4 sm:$0xff]   ;;  %v3837_v48 = vld [vmem:[%s4858_s1 + $0xf0] sm:$0xff]   ;;  %v3843_v53 = vld [vmem:[%s4130_s9 + $0x124] ss:$36 sps:$4 sm:$0xff]  }
  0x16   : > { %v3833_v45 = vld [vmem:[%s4130_s9 + $0x43c] ss:$36 sps:$4 sm:$0xff]   ;;  %v3838_v51 = vld [vmem:[%s4858_s1 + $0xb0] sm:$0xff]   ;;  %v3845_v58 = vld [vmem:[%s4130_s9 + $0x8] ss:$36 sps:$4 sm:$0xff]  }
  0x17   : > { %3245 = vmatpush3.bf16.msra.mxu0 %v3790_v9  ;;  %3768 = vmatpush3.bf16.msra.mxu1 %v3790_v9  ;;  %v3835_v49 = vld [vmem:[%s4130_s9 + $0xd8] ss:$36 sps:$4 sm:$0xff]   ;;  %v3847_v54 = vld [vmem:[%s4130_s9 + $0xc] ss:$36 sps:$4 sm:$0xff]   ;;  %v3848_v59 = vld [vmem:[%s4130_s9 + $0x120] ss:$36 sps:$4 sm:$0xff]  }
  0x18   : > { %3246 = vmatprep.subr.bf16.mxu0 %v3791_v10  ;;  %3761 = vmatprep.subr.bf16.mxu1 %v3791_v10  ;;  %v3836_v50 = vld [vmem:[%s4130_s9 + $0x438] ss:$36 sps:$4 sm:$0xff]   ;;  %v3849_v60 = vld [vmem:[%s4858_s1 + $0x1c0] sm:$0xff]   ;;  %v3851_v62 = vld [vmem:[%s4130_s9 + $0x16c] ss:$36 sps:$4 sm:$0xff]  }
  0x19   : > { %v3858_v56 = vld [vmem:[%s4858_s1 + $0x118] sm:$0xff]   ;;  %v3850_v61 = vld [vmem:[%s4858_s1 + $0x180] sm:$0xff]   ;;  %v3865_v1 = vld [vmem:[%s4858_s1 + $0x1c8] sm:$0xff]  }
  0x1a   : > { %v3841_v57 = vld [vmem:[%s4858_s1 + $0xb8] sm:$0xff]   ;;  %v3867_v0 = vld [vmem:[%s4858_s1 + $0x160] sm:$0xff]   ;;  %v3866_v3 = vld [vmem:[%s4858_s1 + $0x188] sm:$0xff]  }
  0x1b   : > { %3247 = vmatpush3.bf16.msra.mxu0 %v3792_v13  ;;  %3769 = vmatpush3.bf16.msra.mxu1 %v3792_v13  ;;  %v3853_v63 = vld [vmem:[%s4130_s9 + $0x54] ss:$36 sps:$4 sm:$0xff]   ;;  %v3868_v2 = vld [vmem:[%s4858_s1 + $0x120] sm:$0xff]   ;;  %v3855_v4 = vld [vmem:[%s4130_s9 + $0x168] ss:$36 sps:$4 sm:$0xff]  }
  0x1c   : > { %3248 = vmatprep.subr.bf16.mxu0 %v3793_v14  ;;  %3762 = vmatprep.subr.bf16.mxu1 %v3793_v14  ;;  %v3856_v5 = vld [vmem:[%s4130_s9 + $0x50] ss:$36 sps:$4 sm:$0xff]   ;;  %v3861_v7 = vld [vmem:[%s4130_s9 + $0x9c] ss:$36 sps:$4 sm:$0xff]   ;;  %v3881_v8 = vld [vmem:[%s4858_s1 + $0x168] sm:$0xff]  }
  0x1d   : > { %v3859_v6 = vld [vmem:[%s4130_s9 + $0x1b4] ss:$36 sps:$4 sm:$0xff]   ;;  %v3883_v10 = vld [vmem:[%s4858_s1 + $0x128] sm:$0xff]   ;;  %v3869_v14 = vld [vmem:[%s4130_s9 + $0x1fc] ss:$36 sps:$4 sm:$0xff]  }
  0x1e   : > { %v3882_v9 = vld [vmem:[%s4858_s1 + $0x1d0] sm:$0xff]   ;;  %v3864_v13 = vld [vmem:[%s4130_s9 + $0x98] ss:$36 sps:$4 sm:$0xff]  }
  0x1f   : > { %3249 = vmatpush3.bf16.msra.mxu0 %v3794_v15  ;;  %3770 = vmatpush3.bf16.msra.mxu1 %v3794_v15  ;;  %v3884_v11 = vld [vmem:[%s4858_s1 + $0x190] sm:$0xff]  }
  0x20   : > { %3250 = vmatprep.subr.bf16.mxu0 %v3795_v16  ;;  %3763 = vmatprep.subr.bf16.mxu1 %v3795_v16  ;;  %v3863_v12 = vld [vmem:[%s4130_s9 + $0x1b0] ss:$36 sps:$4 sm:$0xff]  }
  0x21   : > { %v3891_v15 = vld [vmem:[%s4858_s1 + $0x170] sm:$0xff]  }
  0x22   : > { %v3892_v16 = vld [vmem:[%s4858_s1 + $0x130] sm:$0xff]  }
  0x23   : > { %3251 = vmatpush3.bf16.msra.mxu0 %v3796_v17  ;;  %3771 = vmatpush3.bf16.msra.mxu1 %v3796_v17  ;;  %v3871_v17 = vld [vmem:[%s4130_s9 + $0xe4] ss:$36 sps:$4 sm:$0xff]  }
  0x24   : > { %3348 = vmatprep.subr.bf16.mxu1 %v3803_v18  ;;  %3460 = vmatprep.subr.bf16.mxu0 %v3806_v21  ;;  %v3899_v18 = vld [vmem:[%s4858_s1 + $0x1d8] sm:$0xff]   ;;  %v3874_v21 = vld [vmem:[%s4130_s9 + $0xe0] ss:$36 sps:$4 sm:$0xff]  }
  0x26   : > { %1769 = vmatmul.mubr.bf16.vlgmr.msra.gmra.mrb[0].mxu0 %v3797_v19  ;;  %1865 = vmatmul.mubr.bf16.vlgmr.msra.gmra.mrb[0].mxu1 %v3800_v20  ;;  %v3900_v19 = vld [vmem:[%s4858_s1 + $0x198] sm:$0xff]  }
  0x27   : > { %3349 = vmatpush3.bf16.msra.mxu1 %v3804_v22  ;;  %3461 = vmatpush3.bf16.msra.mxu0 %v3808_v24  ;;  %v3873_v20 = vld [vmem:[%s4130_s9 + $0x1f8] ss:$36 sps:$4 sm:$0xff]   ;;  %v3875_v22 = vld [vmem:[%s4130_s9 + $0x244] ss:$36 sps:$4 sm:$0xff]  }
  0x28   : > { %3350 = vmatprep.subr.bf16.mxu1 %v3805_v23  ;;  %1776 = vmatprep.mubr.bf16.mxu0 %v3809_v25  ;;  %v3877_v23 = vld [vmem:[%s4130_s9 + $0x12c] ss:$36 sps:$4 sm:$0xff]   ;;  %v3907_v24 = vld [vmem:[%s4858_s1 + $0x178] sm:$0xff]  }
  0x29   : > { %1872 = vmatprep.mubr.bf16.mxu1 %v3811_v26  ;;  %3462 = vmatprep.subr.bf16.mxu0 %v3826_v28  ;;  %v3908_v25 = vld [vmem:[%s4858_s1 + $0x138] sm:$0xff]   ;;  %v3915_v26 = vld [vmem:[%s4858_s1 + $0x1e0] sm:$0xff]  }
  0x2a   : > { %v3916_v28 = vld [vmem:[%s4858_s1 + $0x1a0] sm:$0xff]  }
  0x2b   : > { %3351 = vmatpush3.bf16.msra.mxu1 %v3807_v27  ;;  %3463 = vmatpush3.bf16.msra.mxu0 %v3828_v33  ;;  %v3879_v27 = vld [vmem:[%s4130_s9 + $0x240] ss:$36 sps:$4 sm:$0xff]   ;;  %v3930_v33 = vld [vmem:[%s4858_s1 + $0x1e8] sm:$0xff]  }
  0x2c   : > { %3352 = vmatprep.subr.bf16.mxu1 %v3815_v31  ;;  %3464 = vmatprep.subr.bf16.mxu0 %v3840_v43  ;;  %v3885_v31 = vld [vmem:[%s4130_s9 + $0x28c] ss:$36 sps:$4 sm:$0xff]   ;;  %v3901_v43 = vld [vmem:[%s4130_s9 + $0x31c] ss:$36 sps:$4 sm:$0xff]  }
  0x2e   : > { %1777 = vmatmul.mubr.bf16.gmra.mrb[4].mxu0 %v3813_v29  ;;  %1873 = vmatmul.mubr.bf16.gmra.mrb[4].mxu1 %v3814_v30  ;;  %v3917_v29 = vld [vmem:[%s4858_s1 + $0x200] sm:$0xff]   ;;  %v3880_v30 = vld [vmem:[%s4130_s9 + $0x128] ss:$36 sps:$4 sm:$0xff]  }
  0x2f   : > { %3353 = vmatpush3.bf16.msra.mxu1 %v3816_v32  ;;  %1784 = vmatprep.mubr.bf16.mxu0 %v3819_v35  ;;  %v3887_v32 = vld [vmem:[%s4130_s9 + $0x174] ss:$36 sps:$4 sm:$0xff]   ;;  %v3931_v35 = vld [vmem:[%s4858_s1 + $0x1a8] sm:$0xff]  }
  0x30   : > { %3354 = vmatprep.subr.bf16.mxu1 %v3817_v34  ;;  %1880 = vmatprep.mubr.bf16.mxu1 %v3821_v36  ;;  %v3889_v34 = vld [vmem:[%s4130_s9 + $0x288] ss:$36 sps:$4 sm:$0xff]   ;;  %v3890_v36 = vld [vmem:[%s4130_s9 + $0x170] ss:$36 sps:$4 sm:$0xff]  }
  0x31   : > { %3465 = vmatpush3.bf16.msra.mxu0 %v3842_v46  ;;  %v3906_v46 = vld [vmem:[%s4130_s9 + $0x200] ss:$36 sps:$4 sm:$0xff]  }
  0x32   : > { %3466 = vmatprep.subr.bf16.mxu0 %v3857_v55  ;;  %v3932_v55 = vld [vmem:[%s4858_s1 + $0x208] sm:$0xff]  }
  0x33   : > { %3355 = vmatpush3.bf16.msra.mxu1 %v3818_v37  ;;  %v3893_v37 = vld [vmem:[%s4130_s9 + $0x2d4] ss:$36 sps:$4 sm:$0xff]  }
  0x34   : > { %3356 = vmatprep.subr.bf16.mxu1 %v3825_v40  ;;  %v3898_v40 = vld [vmem:[%s4130_s9 + $0x1b8] ss:$36 sps:$4 sm:$0xff]  }
  0x35   : > { %3467 = vmatpush3.bf16.msra.mxu0 %v3858_v56  ;;  %v3947_v56 = vld [vmem:[%s4858_s1 + $0x210] sm:$0xff]  }
  0x36   : > { %1785 = vmatmul.mubr.bf16.gmra.mrb[8].mxu0 %v3823_v38  ;;  %1881 = vmatmul.mubr.bf16.gmra.mrb[8].mxu1 %v3824_v39  ;;  %v3895_v38 = vld [vmem:[%s4130_s9 + $0x1bc] ss:$36 sps:$4 sm:$0xff]   ;;  %v3897_v39 = vld [vmem:[%s4130_s9 + $0x2d0] ss:$36 sps:$4 sm:$0xff]  }
  0x37   : > { %3357 = vmatpush3.bf16.msra.mxu1 %v3827_v41  ;;  %1792 = vmatprep.mubr.bf16.mxu0 %v3831_v44  ;;  %v3945_v41 = vld [vmem:[%s4858_s1 + $0x1f0] sm:$0xff]   ;;  %v3903_v44 = vld [vmem:[%s4130_s9 + $0x204] ss:$36 sps:$4 sm:$0xff]  }
  0x38   : > { %3358 = vmatprep.subr.bf16.mxu1 %v3829_v42  ;;  %1888 = vmatprep.mubr.bf16.mxu1 %v3833_v45  ;;  %v3946_v42 = vld [vmem:[%s4858_s1 + $0x1b0] sm:$0xff]   ;;  %v3905_v45 = vld [vmem:[%s4130_s9 + $0x318] ss:$36 sps:$4 sm:$0xff]  }
  0x39   : > { %3468 = vmatprep.subr.bf16.mxu0 %v3867_v0  ;;  %v3929_v0 = vld [vmem:[%s4130_s9 + $0xa0] ss:$36 sps:$4 sm:$0xff]  }
  0x3a   : > { %3469 = vmatpush3.bf16.msra.mxu0 %v3868_v2  ;;  %v3935_v2 = vld [vmem:[%s4130_s9 + $0xec] ss:$36 sps:$4 sm:$0xff]  }
  0x3b   : > { %3359 = vmatpush3.bf16.msra.mxu1 %v3830_v47  ;;  %3470 = vmatprep.subr.bf16.mxu0 %v3881_v8  ;;  %v3960_v47 = vld [vmem:[%s4858_s1 + $0x1f8] sm:$0xff]  }
  0x3c   : > { %3360 = vmatprep.subr.bf16.mxu1 %v3837_v48  ;;  %v3961_v48 = vld [vmem:[%s4858_s1 + $0x1b8] sm:$0xff]  }
  0x3d   : > { %v3941_v8 = vld [vmem:[%s4130_s9 + $0x134] ss:$36 sps:$4 sm:$0xff]  }
  0x3e   : > { %1793 = vmatmul.mubr.bf16.gmra.mrb[12].mxu0 %v3835_v49  ;;  %1889 = vmatmul.mubr.bf16.gmra.mrb[12].mxu1 %v3836_v50  ;;  %v3909_v49 = vld [vmem:[%s4130_s9 + $0x24c] ss:$36 sps:$4 sm:$0xff]   ;;  %v3913_v50 = vld [vmem:[%s4130_s9 + $0x14] ss:$36 sps:$4 sm:$0xff]  }
  0x3f   : > { %3361 = vmatpush3.bf16.msra.mxu1 %v3838_v51  ;;  %1800 = vmatprep.mubr.bf16.mxu0 %v3843_v53  ;;  %v3911_v51 = vld [vmem:[%s4130_s9 + $0x10] ss:$36 sps:$4 sm:$0xff]  }
  0x40   : > { %3362 = vmatprep.subr.bf16.mxu1 %v3839_v52  ;;  %1929 = vmatprep.mubr.bf16.mxu1 %v3847_v54  ;;  %v3914_v52 = vld [vmem:[%s4130_s9 + $0x248] ss:$36 sps:$4 sm:$0xff]   ;;  %v3918_v53 = vld [vmem:[%s4130_s9 + $0x294] ss:$36 sps:$4 sm:$0xff]   ;;  %v3920_v54 = vld [vmem:[%s4130_s9 + $0x5c] ss:$36 sps:$4 sm:$0xff]  }
  0x41   : > { %3471 = vmatpush3.bf16.msra.mxu0 %v3883_v10  ;;  %v3943_v10 = vld [vmem:[%s4130_s9 + $0x368] ss:$36 sps:$4 sm:$0xff]  }
  0x42   : > { %3472 = vmatprep.subr.bf16.mxu0 %v3891_v15  ;;  %v3953_v15 = vld [vmem:[%s4130_s9 + $0x178] ss:$36 sps:$4 sm:$0xff]  }
  0x43   : > { %3363 = vmatpush3.bf16.msra.mxu1 %v3841_v57  ;;  %v3922_v57 = vld [vmem:[%s4130_s9 + $0x290] ss:$36 sps:$4 sm:$0xff]  }
  0x44   : > { %3572 = vmatprep.subr.bf16.mxu1 %v3849_v60  ;;  %v3926_v60 = vld [vmem:[%s4130_s9 + $0xa4] ss:$36 sps:$4 sm:$0xff]  }
  0x45   : > { %3473 = vmatpush3.bf16.msra.mxu0 %v3892_v16  ;;  %v3954_v16 = vld [vmem:[%s4130_s9 + $0x3fc] ss:$36 sps:$4 sm:$0xff]  }
  0x46   : > { %1801 = vmatmul.mubr.bf16.gmra.mrb[16].mxu0 %v3848_v59  ;;  %1930 = vmatmul.mubr.bf16.vlgmr.msra.gmra.mrb[16].mxu1 %v3845_v58  ;;  %v3923_v58 = vld [vmem:[%s4130_s9 + $0x58] ss:$36 sps:$4 sm:$0xff]  }
  0x47   : > { %3573 = vmatpush3.bf16.msra.mxu1 %v3850_v61  ;;  %1808 = vmatprep.mubr.bf16.mxu0 %v3851_v62  ;;  %v3924_v59 = vld [vmem:[%s4130_s9 + $0x2dc] ss:$36 sps:$4 sm:$0xff]  }
  0x48   : > { %1937 = vmatprep.mubr.bf16.mxu1 %v3853_v63  ;;  %3574 = vmatprep.subr.bf16.mxu1 %v3865_v1  ;;  %v3962_v61 = vld [vmem:[%s4858_s1 + $0x218] sm:$0xff]   ;;  %v3975_v62 = vld [vmem:[%s4858_s1 + $0x220] sm:$0xff]  }
  0x49   : > { %3474 = vmatprep.subr.bf16.mxu0 %v3907_v24  ;;  %v3928_v63 = vld [vmem:[%s4130_s9 + $0x2d8] ss:$36 sps:$4 sm:$0xff]   ;;  %v3933_v1 = vld [vmem:[%s4130_s9 + $0x324] ss:$36 sps:$4 sm:$0xff]  }
  0x4a   : > { %3475 = vmatpush3.bf16.msra.mxu0 %v3908_v25  ;;  %v3969_v24 = vld [vmem:[%s4130_s9 + $0x254] ss:$36 sps:$4 sm:$0xff]   ;;  %v3973_v25 = vld [vmem:[%s4130_s9 + $0x1c] ss:$36 sps:$4 sm:$0xff]  }
  0x4b   : > { %3575 = vmatpush3.bf16.msra.mxu1 %v3866_v3  ;;  %3708 = vmatprep.subr.bf16.mxu0 %v3917_v29  ;;  %v3988_v3 = vld [vmem:[%s4858_s1 + $0x228] sm:$0xff]  }
  0x4c   : > { %3576 = vmatprep.subr.bf16.mxu1 %v3882_v9  ;;  %v4014_v9 = vld [vmem:[%s4858_s1 + $0x238] sm:$0xff]  }
  0x4e   : > { %1809 = vmatmul.mubr.bf16.gmra.mrb[20].mxu0 %v3855_v4  ;;  %1938 = vmatmul.mubr.bf16.gmra.mrb[20].mxu1 %v3856_v5  ;;  %v3937_v4 = vld [vmem:[%s4130_s9 + $0x320] ss:$36 sps:$4 sm:$0xff]   ;;  %v4001_v5 = vld [vmem:[%s4858_s1 + $0x230] sm:$0xff]  }
  0x4f   : > { %1816 = vmatprep.mubr.bf16.mxu0 %v3859_v6  ;;  %1945 = vmatprep.mubr.bf16.mxu1 %v3861_v7  ;;  %v3938_v6 = vld [vmem:[%s4130_s9 + $0xe8] ss:$36 sps:$4 sm:$0xff]  }
  0x50   : > { %3577 = vmatpush3.bf16.msra.mxu1 %v3884_v11  ;;  %v3939_v7 = vld [vmem:[%s4130_s9 + $0x36c] ss:$36 sps:$4 sm:$0xff]  }
  0x51   : > { %3578 = vmatprep.subr.bf16.mxu1 %v3899_v18  ;;  %v3944_v11 = vld [vmem:[%s4130_s9 + $0x130] ss:$36 sps:$4 sm:$0xff]   ;;  %v3958_v18 = vld [vmem:[%s4130_s9 + $0x3f8] ss:$36 sps:$4 sm:$0xff]  }
  0x54   : > { %3579 = vmatpush3.bf16.msra.mxu1 %v3900_v19  ;;  %v3959_v19 = vld [vmem:[%s4130_s9 + $0x1c0] ss:$36 sps:$4 sm:$0xff]  }
  0x55   : > { %3580 = vmatprep.subr.bf16.mxu1 %v3915_v26  ;;  %v3971_v26 = vld [vmem:[%s4130_s9 + $0x18] ss:$36 sps:$4 sm:$0xff]  }
  0x56   : > { %1817 = vmatmul.mubr.bf16.gmra.mrb[24].mxu0 %v3863_v12  ;;  %1946 = vmatmul.mubr.bf16.gmra.mrb[24].mxu1 %v3864_v13  ;;  %v3948_v12 = vld [vmem:[%s4130_s9 + $0x3b4] ss:$36 sps:$4 sm:$0xff]   ;;  %v3950_v13 = vld [vmem:[%s4130_s9 + $0x17c] ss:$36 sps:$4 sm:$0xff]  }
  0x57   : > { %1824 = vmatprep.mubr.bf16.mxu0 %v3869_v14  ;;  %1953 = vmatprep.mubr.bf16.mxu1 %v3871_v17  ;;  %v3952_v14 = vld [vmem:[%s4130_s9 + $0x3b0] ss:$36 sps:$4 sm:$0xff]   ;;  %v3956_v17 = vld [vmem:[%s4130_s9 + $0x1c4] ss:$36 sps:$4 sm:$0xff]  }
  0x58   : > { %3581 = vmatpush3.bf16.msra.mxu1 %v3916_v28  ;;  %v3976_v28 = vld [vmem:[%s4130_s9 + $0x29c] ss:$36 sps:$4 sm:$0xff]  }
  0x59   : > { %3582 = vmatprep.subr.bf16.mxu1 %v3930_v33  ;;  %v3984_v33 = vld [vmem:[%s4130_s9 + $0xac] ss:$36 sps:$4 sm:$0xff]  }
  0x5c   : > { %3583 = vmatpush3.bf16.msra.mxu1 %v3931_v35  ;;  %v3987_v35 = vld [vmem:[%s4130_s9 + $0xa8] ss:$36 sps:$4 sm:$0xff]  }
  0x5d   : > { %3584 = vmatprep.subr.bf16.mxu1 %v3945_v41  ;;  %v3997_v41 = vld [vmem:[%s4130_s9 + $0x13c] ss:$36 sps:$4 sm:$0xff]  }
  0x5e   : > { %1825 = vmatmul.mubr.bf16.gmra.mrb[28].mxu0 %v3873_v20  ;;  %1954 = vmatmul.mubr.bf16.gmra.mrb[28].mxu1 %v3874_v21  ;;  %v3963_v20 = vld [vmem:[%s4130_s9 + $0x444] ss:$36 sps:$4 sm:$0xff]   ;;  %v3965_v21 = vld [vmem:[%s4130_s9 + $0x20c] ss:$36 sps:$4 sm:$0xff]  }
  0x5f   : > { %1832 = vmatprep.mubr.bf16.mxu0 %v3875_v22  ;;  %1961 = vmatprep.mubr.bf16.mxu1 %v3877_v23  ;;  %v3967_v22 = vld [vmem:[%s4130_s9 + $0x440] ss:$36 sps:$4 sm:$0xff]   ;;  %v3968_v23 = vld [vmem:[%s4130_s9 + $0x208] ss:$36 sps:$4 sm:$0xff]  }
  0x60   : > { %3585 = vmatpush3.bf16.msra.mxu1 %v3946_v42  ;;  %v3999_v42 = vld [vmem:[%s4130_s9 + $0x370] ss:$36 sps:$4 sm:$0xff]  }
  0x61   : > { %3586 = vmatprep.subr.bf16.mxu1 %v3960_v47  ;;  %v4007_v47 = vld [vmem:[%s4130_s9 + $0x180] ss:$36 sps:$4 sm:$0xff]  }
  0x64   : > { %3587 = vmatpush3.bf16.msra.mxu1 %v3961_v48  ;;  %v4008_v48 = vld [vmem:[%s4130_s9 + $0x404] ss:$36 sps:$4 sm:$0xff]  }
  0x66   : > { %1833 = vmatmul.mubr.bf16.gmra.mrb[32].mxu0 %v3879_v27  ;;  %1962 = vmatmul.mubr.bf16.gmra.mrb[32].mxu1 %v3880_v30  ;;  %v3974_v27 = vld [vmem:[%s4130_s9 + $0x250] ss:$36 sps:$4 sm:$0xff]   ;;  %v3980_v30 = vld [vmem:[%s4130_s9 + $0x298] ss:$36 sps:$4 sm:$0xff]  }
  0x67   : > { %1840 = vmatprep.mubr.bf16.mxu0 %v3885_v31  ;;  %1969 = vmatprep.mubr.bf16.mxu1 %v3887_v32  ;;  %v3981_v31 = vld [vmem:[%s4130_s9 + $0x60] ss:$36 sps:$4 sm:$0xff]  }
  0x68   : > { %v3982_v32 = vld [vmem:[%s4130_s9 + $0x2e4] ss:$36 sps:$4 sm:$0xff]  }
  0x6e   : > { %1841 = vmatmul.mubr.bf16.gmra.mrb[36].mxu0 %v3889_v34  ;;  %1970 = vmatmul.mubr.bf16.gmra.mrb[36].mxu1 %v3890_v36  ;;  %v3986_v34 = vld [vmem:[%s4130_s9 + $0x2e0] ss:$36 sps:$4 sm:$0xff]   ;;  %v3989_v36 = vld [vmem:[%s4130_s9 + $0x32c] ss:$36 sps:$4 sm:$0xff]  }
  0x6f   : > { %1848 = vmatprep.mubr.bf16.mxu0 %v3893_v37  ;;  %1977 = vmatprep.mubr.bf16.mxu1 %v3895_v38  ;;  %v3991_v37 = vld [vmem:[%s4130_s9 + $0xf4] ss:$36 sps:$4 sm:$0xff]   ;;  %v3993_v38 = vld [vmem:[%s4130_s9 + $0x328] ss:$36 sps:$4 sm:$0xff]  }
  0x76   : > { %1849 = vmatmul.mubr.bf16.gmra.mrb[40].mxu0 %v3897_v39  ;;  %1978 = vmatmul.mubr.bf16.gmra.mrb[40].mxu1 %v3898_v40  ;;  %v3994_v39 = vld [vmem:[%s4130_s9 + $0xf0] ss:$36 sps:$4 sm:$0xff]  }
  0x77   : > { %1856 = vmatprep.mubr.bf16.mxu0 %v3901_v43  ;;  %1985 = vmatprep.mubr.bf16.mxu1 %v3903_v44  ;;  %v3995_v40 = vld [vmem:[%s4130_s9 + $0x374] ss:$36 sps:$4 sm:$0xff]   ;;  %v4002_v44 = vld [vmem:[%s4130_s9 + $0x3bc] ss:$36 sps:$4 sm:$0xff]  }
  0x78   : > { %v4000_v43 = vld [vmem:[%s4130_s9 + $0x138] ss:$36 sps:$4 sm:$0xff]  }
  0x7e   : > { %1857 = vmatmul.mubr.bf16.gmra.mrb[44].mxu0 %v3905_v45  ;;  %1986 = vmatmul.mubr.bf16.gmra.mrb[44].mxu1 %v3906_v46  ;;  %v4004_v45 = vld [vmem:[%s4130_s9 + $0x184] ss:$36 sps:$4 sm:$0xff]   ;;  %v4006_v46 = vld [vmem:[%s4130_s9 + $0x3b8] ss:$36 sps:$4 sm:$0xff]  }
  0x7f   : > { %1993 = vmatprep.mubr.bf16.mxu1 %v3909_v49  ;;  %2090 = vmatprep.mubr.bf16.mxu0 %v3913_v50  ;;  %v4010_v49 = vld [vmem:[%s4130_s9 + $0x1cc] ss:$36 sps:$4 sm:$0xff]   ;;  %v4012_v50 = vld [vmem:[%s4130_s9 + $0x400] ss:$36 sps:$4 sm:$0xff]  }
  0x86   : > { %1994 = vmatmul.mubr.bf16.gmra.mrb[48].mxu1 %v3914_v52  ;;  %2091 = vmatmul.mubr.bf16.vlgmr.msra.gmra.mrb[48].mxu0 %v3911_v51  ;;  %v4013_v51 = vld [vmem:[%s4130_s9 + $0x1c8] ss:$36 sps:$4 sm:$0xff]  }
  0x87   : > { %3709 = vmatpush3.bf16.msra.mxu0 %v3917_v29  ;;  %2001 = vmatprep.mubr.bf16.mxu1 %v3918_v53  ;;  %v3978_v29 = vld [vmem:[%s4130_s9 + $0x64] ss:$36 sps:$4 sm:$0xff]   ;;  %v4015_v52 = vld [vmem:[%s4130_s9 + $0x44c] ss:$36 sps:$4 sm:$0xff]   ;;  %v4017_v53 = vld [vmem:[%s4130_s9 + $0x214] ss:$36 sps:$4 sm:$0xff]  }
  0x88   : > { %2098 = vmatprep.mubr.bf16.mxu0 %v3920_v54  ;;  %3710 = vmatprep.subr.bf16.mxu0 %v3932_v55 }
  0x8b   : > { %3711 = vmatpush3.bf16.msra.mxu0 %v3932_v55 }
  0x8c   : > { %3712 = vmatprep.subr.bf16.mxu0 %v3947_v56 }
  0x8e   : > { %2002 = vmatmul.mubr.bf16.gmra.mrb[52].mxu1 %v3922_v57  ;;  %2099 = vmatmul.mubr.bf16.gmra.mrb[52].mxu0 %v3923_v58  ;;  %v4019_v58 = vld [vmem:[%s4130_s9 + $0x448] ss:$36 sps:$4 sm:$0xff]  }
  0x8f   : > { %2009 = vmatprep.mubr.bf16.mxu1 %v3924_v59  ;;  %2106 = vmatprep.mubr.bf16.mxu0 %v3926_v60  ;;  %v4020_v59 = vld [vmem:[%s4130_s9 + $0x210] ss:$36 sps:$4 sm:$0xff]  }
  0x90   : > { %3713 = vmatpush3.bf16.msra.mxu0 %v3947_v56 }
  0x91   : > { %3714 = vmatprep.subr.bf16.mxu0 %v3962_v61 }
  0x94   : > { %3715 = vmatpush3.bf16.msra.mxu0 %v3962_v61 }
  0x95   : > { %3716 = vmatprep.subr.bf16.mxu0 %v3975_v62 }
  0x96   : > { %2010 = vmatmul.mubr.bf16.gmra.mrb[56].mxu1 %v3928_v63  ;;  %2107 = vmatmul.mubr.bf16.gmra.mrb[56].mxu0 %v3929_v0  ;;  %v4021_v0 = vld [vmem:[%s4130_s9 + $0x25c] ss:$36 sps:$4 sm:$0xff]  }
  0x97   : > { %2017 = vmatprep.mubr.bf16.mxu1 %v3933_v1  ;;  %2114 = vmatprep.mubr.bf16.mxu0 %v3935_v2  ;;  %v4023_v1 = vld [vmem:[%s4130_s9 + $0x20] ss:$36 sps:$4 sm:$0xff]  }
  0x98   : > { %3717 = vmatpush3.bf16.msra.mxu0 %v3975_v62 }
  0x99   : > { %3718 = vmatprep.subr.bf16.mxu0 %v3988_v3 }
  0x9c   : > { %3719 = vmatpush3.bf16.msra.mxu0 %v3988_v3 }
  0x9d   : > { %3720 = vmatprep.subr.bf16.mxu0 %v4001_v5 }
  0x9e   : > { %2018 = vmatmul.mubr.bf16.gmra.mrb[60].mxu1 %v3937_v4  ;;  %2115 = vmatmul.mubr.bf16.gmra.mrb[60].mxu0 %v3938_v6 }
  0x9f   : > { %2025 = vmatprep.mubr.bf16.mxu1 %v3939_v7  ;;  %2122 = vmatprep.mubr.bf16.mxu0 %v3941_v8 }
  0xa0   : > { %3721 = vmatpush3.bf16.msra.mxu0 %v4001_v5 }
  0xa1   : > { %3722 = vmatprep.subr.bf16.mxu0 %v4014_v9 }
  0xa4   : > { %3723 = vmatpush3.bf16.msra.mxu0 %v4014_v9 }
  0xa6   : > { %2026 = vmatmul.mubr.bf16.gmra.mrb[64].mxu1 %v3943_v10  ;;  %2123 = vmatmul.mubr.bf16.gmra.mrb[64].mxu0 %v3944_v11  ;;  %v4024_v10 = vld [vmem:[%s4130_s9 + $0x258] ss:$36 sps:$4 sm:$0xff]   ;;  %v4025_v11 = vld [vmem:[%s4130_s9 + $0x68] ss:$36 sps:$4 sm:$0xff]  }
  0xa7   : > { %2033 = vmatprep.mubr.bf16.mxu1 %v3948_v12  ;;  %2130 = vmatprep.mubr.bf16.mxu0 %v3950_v13 }
  0xae   : > { %2034 = vmatmul.mubr.bf16.gmra.mrb[68].mxu1 %v3952_v14  ;;  %2131 = vmatmul.mubr.bf16.gmra.mrb[68].mxu0 %v3953_v15 }
  0xaf   : > { %2041 = vmatprep.mubr.bf16.mxu1 %v3954_v16  ;;  %2138 = vmatprep.mubr.bf16.mxu0 %v3956_v17  ;;  %v4026_v16 = vld [vmem:[%s4130_s9 + $0x2a4] ss:$36 sps:$4 sm:$0xff]   ;;  %v4028_v17 = vld [vmem:[%s4130_s9 + $0xb0] ss:$36 sps:$4 sm:$0xff]  }
  0xb6   : > { %2042 = vmatmul.mubr.bf16.gmra.mrb[72].mxu1 %v3958_v18  ;;  %2139 = vmatmul.mubr.bf16.gmra.mrb[72].mxu0 %v3959_v19 }
  0xb7   : > { %2049 = vmatprep.mubr.bf16.mxu1 %v3963_v20  ;;  %2146 = vmatprep.mubr.bf16.mxu0 %v3965_v21 }
  0xbe   : > { %2050 = vmatmul.mubr.bf16.gmra.mrb[76].mxu1 %v3967_v22  ;;  %2147 = vmatmul.mubr.bf16.gmra.mrb[76].mxu0 %v3968_v23 }
  0xbf   : > { %2154 = vmatprep.mubr.bf16.mxu0 %v3969_v24  ;;  %2251 = vmatprep.mubr.bf16.mxu1 %v3973_v25 }
  0xc6   : > { %2155 = vmatmul.mubr.bf16.gmra.mrb[80].mxu0 %v3974_v27  ;;  %2252 = vmatmul.mubr.bf16.vlgmr.msra.gmra.mrb[80].mxu1 %v3971_v26  ;;  %v4029_v26 = vld [vmem:[%s4130_s9 + $0x2a0] ss:$36 sps:$4 sm:$0xff]   ;;  %v4030_v27 = vld [vmem:[%s4130_s9 + $0xf8] ss:$36 sps:$4 sm:$0xff]  }
  0xc7   : > { %2162 = vmatprep.mubr.bf16.mxu0 %v3976_v28  ;;  %2259 = vmatprep.mubr.bf16.mxu1 %v3978_v29 }
  0xce   : > { %2163 = vmatmul.mubr.bf16.gmra.mrb[84].mxu0 %v3980_v30  ;;  %2260 = vmatmul.mubr.bf16.gmra.mrb[84].mxu1 %v3981_v31 }
  0xcf   : > { %2170 = vmatprep.mubr.bf16.mxu0 %v3982_v32  ;;  %2267 = vmatprep.mubr.bf16.mxu1 %v3984_v33  ;;  %v4031_v32 = vld [vmem:[%s4130_s9 + $0x2ec] ss:$36 sps:$4 sm:$0xff]   ;;  %v4033_v33 = vld [vmem:[%s4130_s9 + $0x140] ss:$36 sps:$4 sm:$0xff]  }
  0xd6   : > { %2171 = vmatmul.mubr.bf16.gmra.mrb[88].mxu0 %v3986_v34  ;;  %2268 = vmatmul.mubr.bf16.gmra.mrb[88].mxu1 %v3987_v35 }
  0xd7   : > { %2178 = vmatprep.mubr.bf16.mxu0 %v3989_v36  ;;  %2275 = vmatprep.mubr.bf16.mxu1 %v3991_v37 }
  0xde   : > { %2179 = vmatmul.mubr.bf16.gmra.mrb[92].mxu0 %v3993_v38  ;;  %2276 = vmatmul.mubr.bf16.gmra.mrb[92].mxu1 %v3994_v39 }
  0xdf   : > { %2186 = vmatprep.mubr.bf16.mxu0 %v3995_v40  ;;  %2283 = vmatprep.mubr.bf16.mxu1 %v3997_v41 }
  0xe6   : > { %2187 = vmatmul.mubr.bf16.gmra.mrb[96].mxu0 %v3999_v42  ;;  %2284 = vmatmul.mubr.bf16.gmra.mrb[96].mxu1 %v4000_v43  ;;  %v4034_v42 = vld [vmem:[%s4130_s9 + $0x2e8] ss:$36 sps:$4 sm:$0xff]  }
  0xe7   : > { %2194 = vmatprep.mubr.bf16.mxu0 %v4002_v44  ;;  %2291 = vmatprep.mubr.bf16.mxu1 %v4004_v45  ;;  %v4035_v43 = vld [vmem:[%s4130_s9 + $0x188] ss:$36 sps:$4 sm:$0xff]  }
  0xee   : > { %2195 = vmatmul.mubr.bf16.gmra.mrb[100].mxu0 %v4006_v46  ;;  %2292 = vmatmul.mubr.bf16.gmra.mrb[100].mxu1 %v4007_v47 }
  0xef   : > { %2202 = vmatprep.mubr.bf16.mxu0 %v4008_v48  ;;  %2299 = vmatprep.mubr.bf16.mxu1 %v4010_v49  ;;  %v4036_v48 = vld [vmem:[%s4130_s9 + $0x334] ss:$36 sps:$4 sm:$0xff]  }
  0xf0   : > { %v4038_v49 = vld [vmem:[%s4130_s9 + $0x1d0] ss:$36 sps:$4 sm:$0xff]  }
  0xf6   : > { %2203 = vmatmul.mubr.bf16.gmra.mrb[104].mxu0 %v4012_v50  ;;  %2300 = vmatmul.mubr.bf16.gmra.mrb[104].mxu1 %v4013_v51  ;;  %v3063_v50 = vld [vmem:[%s4475_s21] sm:$0xff]  }
  0xf7   : > { %2210 = vmatprep.mubr.bf16.mxu0 %v4015_v52  ;;  %2307 = vmatprep.mubr.bf16.mxu1 %v4017_v53 }
  0xf9   : > { %v3324_v54 = vpop.f32.mrb[0].mxu1  ;;  %v3252_v55 = vpop.f32.mrb[0].mxu0 }
  0xfa   : > { %v3325_v56 = vpop.f32.mrb[1].mxu1  ;;  %v3253_v57 = vpop.f32.mrb[1].mxu0 }
  0xfb   : > { %v4433_v60 = vadd.f32 %v3325_v56, %v3324_v54  ;;  %v3327_v61 = vpop.f32.mrb[2].mxu1  ;;  %v4435_v62 = vadd.f32 %v3253_v57, %v3252_v55  ;;  %v3255_v63 = vpop.f32.mrb[2].mxu0  ;;  %v3064_v55 = vunpack.c.l.bf16 %v3063_v50  ;;  %v3065_v56 = vunpack.c.h.bf16 %v3063_v50 }
  0xfc   : > { %v3328_v2 = vpop.f32.mrb[3].mxu1  ;;  %v3256_v3 = vpop.f32.mrb[3].mxu0 }
  0xfd   : > { %v4439_v4 = vadd.f32 %v3328_v2, %v3327_v61  ;;  %v4441_v5 = vadd.f32 %v3256_v3, %v3255_v63  ;;  %v4039_v63 = vld [vmem:[%s4130_s9 + $0x330] ss:$36 sps:$4 sm:$0xff]  }
  0xfe   : > { %2211 = vmatmul.mubr.bf16.gmra.mrb[108].mxu0 %v4019_v58  ;;  %2308 = vmatmul.mubr.bf16.gmra.mrb[108].mxu1 %v4020_v59 }
  0xff   : > { %2315 = vmatprep.mubr.bf16.mxu1 %v4021_v0  ;;  %3724 = vmatprep.mubr.bf16.mxu0 %v4023_v1  ;;  %v4040_v0 = vld [vmem:[%s4130_s9 + $0x218] ss:$36 sps:$4 sm:$0xff]   ;;  %v1771_v1 = vadd.f32 %v4435_v62, %v3064_v55  ;;  %v4049_v55 = vld [vmem:[%s4130_s9 + $0x3c0] ss:$36 sps:$4 sm:$0xff]  }
 0x101   : > { %v3330_v6 = vpop.f32.mrb[4].mxu1  ;;  %v3258_v7 = vpop.f32.mrb[4].mxu0 }
 0x102   : > { %v3331_v8 = vpop.f32.mrb[5].mxu1  ;;  %v3259_v9 = vpop.f32.mrb[5].mxu0 }
 0x103   : > { %v4445_v12 = vadd.f32 %v3331_v8, %v3330_v6  ;;  %v3333_v13 = vpop.f32.mrb[6].mxu1  ;;  %v4447_v14 = vadd.f32 %v3259_v9, %v3258_v7  ;;  %v3261_v15 = vpop.f32.mrb[6].mxu0  ;;  %v4041_v8 = vld [vmem:[%s4130_s9 + $0x37c] ss:$36 sps:$4 sm:$0xff]  }
 0x104   : > { %v3334_v18 = vpop.f32.mrb[7].mxu1  ;;  %v3262_v19 = vpop.f32.mrb[7].mxu0  ;;  %v4043_v9 = vld [vmem:[%s4130_s9 + $0x260] ss:$36 sps:$4 sm:$0xff]  }
 0x105   : > { %v4451_v20 = vadd.f32 %v3334_v18, %v3333_v13  ;;  %v4453_v21 = vadd.f32 %v3262_v19, %v3261_v15  ;;  %v1774_v15 = vadd.f32 %v4441_v5, %v3065_v56  ;;  %v4050_v56 = vld [vmem:[%s4130_s9 + $0x338] ss:$36 sps:$4 sm:$0xff]  }
 0x106   : > { %2316 = vmatmul.mubr.bf16.gmra.mrb[112].mxu1 %v4024_v10  ;;  %3725 = vmatmul.mubr.bf16.vlgmr.msra.gmra.mrb[112].mxu0 %v4025_v11  ;;  %v3206_v10 = vld [vmem:[%s4475_s21 + $0x8] sm:$0xff]  }
 0x107   : > { %2323 = vmatprep.mubr.bf16.mxu1 %v4026_v16  ;;  %3728 = vmatprep.mubr.bf16.mxu0 %v4028_v17  ;;  %v3068_v62 = vunpack.c.l.bf16 %v3206_v10 }
 0x109   : > { %v3336_v22 = vpop.f32.mrb[8].mxu1  ;;  %v3264_v23 = vpop.f32.mrb[8].mxu0 }
 0x10a   : > { %v3337_v24 = vpop.f32.mrb[9].mxu1  ;;  %v3265_v25 = vpop.f32.mrb[9].mxu0 }
 0x10b   : > { %v4457_v28 = vadd.f32 %v3337_v24, %v3336_v22  ;;  %v3339_v29 = vpop.f32.mrb[10].mxu1  ;;  %v4459_v30 = vadd.f32 %v3265_v25, %v3264_v23  ;;  %v3267_v31 = vpop.f32.mrb[10].mxu0  ;;  %v3069_v22 = vunpack.c.h.bf16 %v3206_v10 }
 0x10c   : > { %v3340_v34 = vpop.f32.mrb[11].mxu1  ;;  %v3268_v35 = vpop.f32.mrb[11].mxu0 }
 0x10d   : > { %v4463_v36 = vadd.f32 %v3340_v34, %v3339_v29  ;;  %v4465_v37 = vadd.f32 %v3268_v35, %v3267_v31  ;;  %v1779_v29 = vadd.f32 %v4447_v14, %v3068_v62  ;;  %v4046_v35 = vld [vmem:[%s4130_s9 + $0x3c4] ss:$36 sps:$4 sm:$0xff]  }
 0x10e   : > { %2324 = vmatmul.mubr.bf16.gmra.mrb[116].mxu1 %v4029_v26  ;;  %3729 = vmatmul.mubr.bf16.gmra.mrb[116].mxu0 %v4030_v27  ;;  %v4044_v26 = vld [vmem:[%s4130_s9 + $0x378] ss:$36 sps:$4 sm:$0xff]   ;;  %v4045_v27 = vld [vmem:[%s4130_s9 + $0x2a8] ss:$36 sps:$4 sm:$0xff]  }
 0x10f   : > { %2331 = vmatprep.mubr.bf16.mxu1 %v4031_v32  ;;  %3732 = vmatprep.mubr.bf16.mxu0 %v4033_v33 }
 0x111   : > { %v3342_v38 = vpop.f32.mrb[12].mxu1  ;;  %v3270_v39 = vpop.f32.mrb[12].mxu0 }
 0x112   : > { %v3343_v40 = vpop.f32.mrb[13].mxu1  ;;  %v3271_v41 = vpop.f32.mrb[13].mxu0 }
 0x113   : > { %v4477_v44 = vadd.f32 %v3343_v40, %v3342_v38  ;;  %v3345_v45 = vpop.f32.mrb[14].mxu1  ;;  %v4479_v46 = vadd.f32 %v3271_v41, %v3270_v39  ;;  %v3273_v47 = vpop.f32.mrb[14].mxu0  ;;  %v4048_v38 = vld [vmem:[%s4130_s9 + $0x2f0] ss:$36 sps:$4 sm:$0xff]  }
 0x114   : > { %v3346_v51 = vpop.f32.mrb[15].mxu1  ;;  %v3274_v52 = vpop.f32.mrb[15].mxu0  ;;  %v3207_v39 = vld [vmem:[%s4475_s21 + $0x10] sm:$0xff]  }
 0x115   : > { %v4484_v53 = vadd.f32 %v3346_v51, %v3345_v45  ;;  %v4486_v54 = vadd.f32 %v3274_v52, %v3273_v47  ;;  %v3072_v14 = vunpack.c.l.bf16 %v3207_v39 }
 0x116   : > { %2332 = vmatmul.mubr.bf16.gmra.mrb[120].mxu1 %v4034_v42  ;;  %3733 = vmatmul.mubr.bf16.gmra.mrb[120].mxu0 %v4035_v43  ;;  %v1782_v42 = vadd.f32 %v4453_v21, %v3069_v22 }
 0x117   : > { %2339 = vmatprep.mubr.bf16.mxu1 %v4036_v48  ;;  %3736 = vmatprep.mubr.bf16.mxu0 %v4038_v49  ;;  %v3073_v49 = vunpack.c.h.bf16 %v3207_v39 }
 0x119   : > { %v3364_v57 = vpop.f32.mrb[16].mxu1  ;;  %v3276_v58 = vpop.f32.mrb[16].mxu0 }
 0x11a   : > { %v3365_v59 = vpop.f32.mrb[17].mxu1  ;;  %v3277_v61 = vpop.f32.mrb[17].mxu0 }
 0x11b   : > { %v3366_v2 = vadd.f32 %v3365_v59, %v3364_v57  ;;  %v3367_v3 = vpop.f32.mrb[18].mxu1  ;;  %v4491_v6 = vadd.f32 %v3277_v61, %v3276_v58  ;;  %v3279_v7 = vpop.f32.mrb[18].mxu0  ;;  %v1787_v57 = vadd.f32 %v4459_v30, %v3072_v14 }
 0x11c   : > { %v3368_v11 = vpop.f32.mrb[19].mxu1  ;;  %v3280_v13 = vpop.f32.mrb[19].mxu0 }
 0x11d   : > { %v4497_v16 = vadd.f32 %v3366_v2, %v1771_v1  ;;  %v3369_v17 = vadd.f32 %v3368_v11, %v3367_v3  ;;  %v4499_v18 = vadd.f32 %v3280_v13, %v3279_v7  ;;  %v4053_v1 = vld [vmem:[%s4130_s9 + $0x380] ss:$36 sps:$4 sm:$0xff]   ;;  %v3208_v2 = vld [vmem:[%s4475_s21 + $0x18] sm:$0xff]  }
 0x11e   : > { %2340 = vmatmul.mubr.bf16.gmra.mrb[124].mxu1 %v4039_v63  ;;  %3737 = vmatmul.mubr.bf16.gmra.mrb[124].mxu0 %v4040_v0  ;;  %v4051_v0 = vld [vmem:[%s4130_s9 + $0x40c] ss:$36 sps:$4 sm:$0xff]   ;;  %v3076_v30 = vunpack.c.l.bf16 %v3208_v2 }
 0x11f   : > { %v4501_v19 = vadd.f32 %v3369_v17, %v1774_v15  ;;  %2347 = vmatprep.mubr.bf16.mxu1 %v4041_v8  ;;  %3740 = vmatprep.mubr.bf16.mxu0 %v4043_v9  ;;  %v1790_v8 = vadd.f32 %v4465_v37, %v3073_v49  ;;  %v3077_v15 = vunpack.c.h.bf16 %v3208_v2 }
 0x121   : > { %v3370_v23 = vpop.f32.mrb[20].mxu1  ;;  %v3282_v24 = vpop.f32.mrb[20].mxu0  ;;  %v1798_v39 = vadd.f32 %v4486_v54, %v3077_v15  ;;  %v4059_v54 = vld [vmem:[%s4130_s9 + $0x450] ss:$36 sps:$4 sm:$0xff]  }
 0x122   : > { %v3371_v5 = vpop.f32.mrb[21].mxu1  ;;  %v3283_v25 = vpop.f32.mrb[21].mxu0 }
 0x123   : > { %v3372_v31 = vadd.f32 %v3371_v5, %v3370_v23  ;;  %v3373_v32 = vpop.f32.mrb[22].mxu1  ;;  %v4506_v33 = vadd.f32 %v3283_v25, %v3282_v24  ;;  %v3285_v34 = vpop.f32.mrb[22].mxu0  ;;  %v4054_v23 = vld [vmem:[%s4130_s9 + $0x408] ss:$36 sps:$4 sm:$0xff]   ;;  %v1795_v5 = vadd.f32 %v4479_v46, %v3076_v30 }
 0x124   : > { %v3374_v40 = vpop.f32.mrb[23].mxu1  ;;  %v3286_v41 = vpop.f32.mrb[23].mxu0  ;;  %v4055_v24 = vld [vmem:[%s4130_s9 + $0x3c8] ss:$36 sps:$4 sm:$0xff]  }
 0x125   : > { %v4512_v43 = vadd.f32 %v3372_v31, %v1779_v29  ;;  %v3375_v45 = vadd.f32 %v3374_v40, %v3373_v32  ;;  %v4514_v47 = vadd.f32 %v3286_v41, %v3285_v34  ;;  %v4056_v31 = vld [vmem:[%s4130_s9 + $0x454] ss:$36 sps:$4 sm:$0xff]   ;;  %v3209_v34 = vld [vmem:[%s4475_s21 + $0x20] sm:$0xff]  }
 0x126   : > { %2348 = vmatmul.mubr.bf16.gmra.mrb[128].mxu1 %v4044_v26  ;;  %3741 = vmatmul.mubr.bf16.gmra.mrb[128].mxu0 %v4045_v27  ;;  %v4058_v32 = vld [vmem:[%s4130_s9 + $0x410] ss:$36 sps:$4 sm:$0xff]   ;;  %v3080_v46 = vunpack.c.l.bf16 %v3209_v34  ;;  %v3081_v14 = vunpack.c.h.bf16 %v3209_v34 }
 0x127   : > { %v4516_v48 = vadd.f32 %v3375_v45, %v1782_v42  ;;  %2355 = vmatprep.mubr.bf16.mxu1 %v4046_v35  ;;  %3744 = vmatprep.mubr.bf16.mxu0 %v4048_v38 }
 0x128   : > { %v1806_v2 = vadd.f32 %v4499_v18, %v3081_v14 }
 0x129   : > { %v3376_v50 = vpop.f32.mrb[24].mxu1  ;;  %v3288_v51 = vpop.f32.mrb[24].mxu0 }
 0x12a   : > { %v3377_v21 = vpop.f32.mrb[25].mxu1  ;;  %v3289_v52 = vpop.f32.mrb[25].mxu0 }
 0x12b   : > { %v3378_v58 = vadd.f32 %v3377_v21, %v3376_v50  ;;  %v3379_v59 = vpop.f32.mrb[26].mxu1  ;;  %v4521_v61 = vadd.f32 %v3289_v52, %v3288_v51  ;;  %v3291_v63 = vpop.f32.mrb[26].mxu0  ;;  %v4060_v52 = vld [vmem:[%s4130_s9 + $0x458] ss:$36 sps:$4 sm:$0xff]  }
 0x12c   : > { %v3380_v3 = vpop.f32.mrb[27].mxu1  ;;  %v3292_v7 = vpop.f32.mrb[27].mxu0 }
 0x12d   : > { %v4527_v9 = vadd.f32 %v3378_v58, %v1787_v57  ;;  %v3381_v10 = vadd.f32 %v3380_v3, %v3379_v59  ;;  %v4529_v11 = vadd.f32 %v3292_v7, %v3291_v63  ;;  %v3210_v63 = vld [vmem:[%s4475_s21 + $0x28] sm:$0xff]  }
 0x12e   : > { %2356 = vmatmul.mubr.bf16.gmra.mrb[132].mxu1 %v4049_v55  ;;  %3745 = vmatmul.mubr.bf16.gmra.mrb[132].mxu0 %v4050_v56  ;;  %v1803_v55 = vadd.f32 %v4491_v6, %v3080_v46  ;;  %v3085_v30 = vunpack.c.h.bf16 %v3210_v63 }
 0x12f   : > { %v4531_v13 = vadd.f32 %v3381_v10, %v1790_v8  ;;  %2363 = vmatprep.mubr.bf16.mxu1 %v4051_v0  ;;  %3748 = vmatprep.mubr.bf16.mxu0 %v4053_v1  ;;  %v3084_v10 = vunpack.c.l.bf16 %v3210_v63 }
 0x131   : > { %v3382_v17 = vpop.f32.mrb[28].mxu1  ;;  %v3294_v62 = vpop.f32.mrb[28].mxu0 }
 0x132   : > { %v3383_v37 = vpop.f32.mrb[29].mxu1  ;;  %v3295_v22 = vpop.f32.mrb[29].mxu0 }
 0x133   : > { %v3384_v25 = vadd.f32 %v3383_v37, %v3382_v17  ;;  %v3385_v26 = vpop.f32.mrb[30].mxu1  ;;  %v4536_v27 = vadd.f32 %v3295_v22, %v3294_v62  ;;  %v3297_v29 = vpop.f32.mrb[30].mxu0  ;;  %v1811_v22 = vadd.f32 %v4506_v33, %v3084_v10 }
 0x134   : > { %v3386_v35 = vpop.f32.mrb[31].mxu1  ;;  %v3298_v38 = vpop.f32.mrb[31].mxu0 }
 0x135   : > { %v4542_v40 = vadd.f32 %v3384_v25, %v1795_v5  ;;  %v3387_v41 = vadd.f32 %v3386_v35, %v3385_v26  ;;  %v4544_v42 = vadd.f32 %v3298_v38, %v3297_v29  ;;  %v3211_v25 = vld [vmem:[%s4475_s21 + $0x30] sm:$0xff]  }
 0x136   : > { %2364 = vmatmul.mubr.bf16.gmra.mrb[136].mxu1 %v4054_v23  ;;  %3749 = vmatmul.mubr.bf16.gmra.mrb[136].mxu0 %v4055_v24  ;;  %v3088_v38 = vunpack.c.l.bf16 %v3211_v25  ;;  %v3089_v33 = vunpack.c.h.bf16 %v3211_v25 }
 0x137   : > { %v4546_v45 = vadd.f32 %v3387_v41, %v1798_v39  ;;  %2371 = vmatprep.mubr.bf16.mxu1 %v4056_v31  ;;  %3752 = vmatprep.mubr.bf16.mxu0 %v4058_v32  ;;  %v1814_v31 = vadd.f32 %v4514_v47, %v3085_v30 }
 0x139   : > { %v3388_v49 = vpop.f32.mrb[32].mxu1  ;;  %v3300_v50 = vpop.f32.mrb[32].mxu0 }
 0x13a   : > { %v3389_v51 = vpop.f32.mrb[33].mxu1  ;;  %v3301_v21 = vpop.f32.mrb[33].mxu0 }
 0x13b   : > { %v3390_v56 = vadd.f32 %v3389_v51, %v3388_v49  ;;  %v3391_v57 = vpop.f32.mrb[34].mxu1  ;;  %v4551_v58 = vadd.f32 %v3301_v21, %v3300_v50  ;;  %v3303_v59 = vpop.f32.mrb[34].mxu0  ;;  %v1819_v50 = vadd.f32 %v4521_v61, %v3088_v38 }
 0x13c   : > { %v3392_v0 = vpop.f32.mrb[35].mxu1  ;;  %v3304_v1 = vpop.f32.mrb[35].mxu0 }
 0x13d   : > { %v4555_v3 = vadd.f32 %v3390_v56, %v1803_v55  ;;  %v3393_v7 = vadd.f32 %v3392_v0, %v3391_v57  ;;  %v4557_v8 = vadd.f32 %v3304_v1, %v3303_v59  ;;  %v1822_v57 = vadd.f32 %v4529_v11, %v3089_v33 }
 0x13e   : > { %2372 = vmatmul.mubr.bf16.gmra.mrb[140].mxu1 %v4059_v54  ;;  %3753 = vmatmul.mubr.bf16.gmra.mrb[140].mxu0 %v4060_v52  ;;  %v3212_v52 = vld [vmem:[%s4475_s21 + $0x38] sm:$0xff]  }
 0x13f   : > { %v4559_v6 = vadd.f32 %v3393_v7, %v1806_v2  ;;  %v3092_v1 = vunpack.c.l.bf16 %v3212_v52  ;;  %v3093_v61 = vunpack.c.h.bf16 %v3212_v52  ;;  %v3214_v52 = vld [vmem:[%s4475_s21 + $0x48] sm:$0xff]  }
 0x141   : > { %v3394_v15 = vpop.f32.mrb[36].mxu1  ;;  %v3306_v17 = vpop.f32.mrb[36].mxu0  ;;  %v1830_v25 = vadd.f32 %v4544_v42, %v3093_v61 }
 0x142   : > { %v3395_v62 = vpop.f32.mrb[37].mxu1  ;;  %v3307_v37 = vpop.f32.mrb[37].mxu0 }
 0x143   : > { %v3396_v23 = vadd.f32 %v3395_v62, %v3394_v15  ;;  %v3397_v18 = vpop.f32.mrb[38].mxu1  ;;  %v4562_v24 = vadd.f32 %v3307_v37, %v3306_v17  ;;  %v3309_v5 = vpop.f32.mrb[38].mxu0  ;;  %v1827_v17 = vadd.f32 %v4536_v27, %v3092_v1 }
 0x144   : > { %v3398_v26 = vpop.f32.mrb[39].mxu1  ;;  %v3310_v29 = vpop.f32.mrb[39].mxu0 }
 0x145   : > { %v4566_v32 = vadd.f32 %v3396_v23, %v1811_v22  ;;  %v3399_v34 = vadd.f32 %v3398_v26, %v3397_v18  ;;  %v4568_v35 = vadd.f32 %v3310_v29, %v3309_v5  ;;  %v3213_v23 = vld [vmem:[%s4475_s21 + $0x40] sm:$0xff]  }
 0x146   : > { %v3097_v27 = vunpack.c.h.bf16 %v3213_v23 }
 0x147   : > { %v4570_v39 = vadd.f32 %v3399_v34, %v1814_v31  ;;  %v3096_v34 = vunpack.c.l.bf16 %v3213_v23 }
 0x149   : > { %v3400_v41 = vpop.f32.mrb[40].mxu1  ;;  %v3312_v46 = vpop.f32.mrb[40].mxu0 }
 0x14a   : > { %v3401_v14 = vpop.f32.mrb[41].mxu1  ;;  %v3313_v49 = vpop.f32.mrb[41].mxu0 }
 0x14b   : > { %v3402_v51 = vadd.f32 %v3401_v14, %v3400_v41  ;;  %v3403_v21 = vpop.f32.mrb[42].mxu1  ;;  %v4573_v54 = vadd.f32 %v3313_v49, %v3312_v46  ;;  %v3315_v47 = vpop.f32.mrb[42].mxu0  ;;  %v1835_v49 = vadd.f32 %v4551_v58, %v3096_v34 }
 0x14c   : > { %v3404_v55 = vpop.f32.mrb[43].mxu1  ;;  %v3316_v56 = vpop.f32.mrb[43].mxu0 }
 0x14d   : > { %v4577_v59 = vadd.f32 %v3402_v51, %v1819_v50  ;;  %v3405_v63 = vadd.f32 %v3404_v55, %v3403_v21  ;;  %v4579_v0 = vadd.f32 %v3316_v56, %v3315_v47  ;;  %v1838_v47 = vadd.f32 %v4557_v8, %v3097_v27 }
 0x14f   : > { %v4581_v2 = vadd.f32 %v3405_v63, %v1822_v57 }
 0x151   : > { %v3406_v7 = vpop.f32.mrb[44].mxu1  ;;  %v3318_v10 = vpop.f32.mrb[44].mxu0 }
 0x152   : > { %v3407_v30 = vpop.f32.mrb[45].mxu1  ;;  %v3319_v15 = vpop.f32.mrb[45].mxu0 }
 0x153   : > { %v3408_v62 = vadd.f32 %v3407_v30, %v3406_v7  ;;  %v3409_v37 = vpop.f32.mrb[46].mxu1  ;;  %v4584_v22 = vadd.f32 %v3319_v15, %v3318_v10  ;;  %v3321_v11 = vpop.f32.mrb[46].mxu0  ;;  %v3100_v7 = vunpack.c.l.bf16 %v3214_v52  ;;  %v3101_v30 = vunpack.c.h.bf16 %v3214_v52 }
 0x154   : > { %v3410_v18 = vpop.f32.mrb[47].mxu1  ;;  %v3322_v5 = vpop.f32.mrb[47].mxu0 }
 0x155   : > { %v4588_v26 = vadd.f32 %v3408_v62, %v1827_v17  ;;  %v3411_v29 = vadd.f32 %v3410_v18, %v3409_v37  ;;  %v4590_v31 = vadd.f32 %v3322_v5, %v3321_v11  ;;  %v1843_v37 = vadd.f32 %v4562_v24, %v3100_v7 }
 0x156   : > { %v1846_v5 = vadd.f32 %v4568_v35, %v3101_v30 }
 0x157   : > { %v4592_v38 = vadd.f32 %v3411_v29, %v1830_v25  ;;  %v3215_v25 = vld [vmem:[%s4475_s21 + $0x50] sm:$0xff]  }
 0x159   : > { %v3412_v33 = vpop.f32.mrb[48].mxu1  ;;  %v3476_v41 = vpop.f32.mrb[48].mxu0 }
 0x15a   : > { %v3413_v46 = vpop.f32.mrb[49].mxu1  ;;  %v3477_v14 = vpop.f32.mrb[49].mxu0 }
 0x15b   : > { %v3414_v50 = vadd.f32 %v3413_v46, %v3412_v33  ;;  %v3478_v51 = vadd.f32 %v3477_v14, %v3476_v41  ;;  %v3415_v21 = vpop.f32.mrb[50].mxu1  ;;  %v3479_v42 = vpop.f32.mrb[50].mxu0  ;;  %v3104_v46 = vunpack.c.l.bf16 %v3215_v25 }
 0x15c   : > { %v3416_v55 = vpop.f32.mrb[51].mxu1  ;;  %v3480_v56 = vpop.f32.mrb[51].mxu0 }
 0x15d   : > { %v4597_v57 = vadd.f32 %v3414_v50, %v1835_v49  ;;  %v4600_v63 = vadd.f32 %v3478_v51, %v4497_v16  ;;  %v3417_v1 = vadd.f32 %v3416_v55, %v3415_v21  ;;  %v3481_v61 = vadd.f32 %v3480_v56, %v3479_v42 }
 0x15e   : > { %v3105_v49 = vunpack.c.h.bf16 %v3215_v25  ;;  %v1851_v42 = vadd.f32 %v4573_v54, %v3104_v46 }
 0x15f   : > { %v4602_v10 = vadd.f32 %v3417_v1, %v1838_v47  ;;  %v4605_v58 = vadd.f32 %v3481_v61, %v4501_v19  ;;  %v3216_v1 = vld [vmem:[%s4475_s21 + $0x58] sm:$0xff]  }
 0x160   : > { %v1854_v56 = vadd.f32 %v4579_v0, %v3105_v49 }
 0x161   : > { %v3418_v15 = vpop.f32.mrb[52].mxu1  ;;  %v3482_v8 = vpop.f32.mrb[52].mxu0 }
 0x162   : > { %v3419_v17 = vpop.f32.mrb[53].mxu1  ;;  %v3483_v62 = vpop.f32.mrb[53].mxu0 }
 0x163   : > { %v3420_v11 = vadd.f32 %v3419_v17, %v3418_v15  ;;  %v3484_v23 = vadd.f32 %v3483_v62, %v3482_v8  ;;  %v3421_v16 = vpop.f32.mrb[54].mxu1  ;;  %v3485_v18 = vpop.f32.mrb[54].mxu0  ;;  %v3108_v17 = vunpack.c.l.bf16 %v3216_v1 }
 0x164   : > { %v3422_v29 = vpop.f32.mrb[55].mxu1  ;;  %v3486_v34 = vpop.f32.mrb[55].mxu0 }
 0x165   : > { %v4610_v27 = vadd.f32 %v3420_v11, %v1843_v37  ;;  %v4613_v19 = vadd.f32 %v3484_v23, %v4512_v43  ;;  %v3423_v33 = vadd.f32 %v3422_v29, %v3421_v16  ;;  %v3487_v41 = vadd.f32 %v3486_v34, %v3485_v18  ;;  %v3217_v34 = vld [vmem:[%s4475_s21 + $0x60] sm:$0xff]  }
 0x166   : > { %v3109_v37 = vunpack.c.h.bf16 %v3216_v1  ;;  %v1859_v18 = vadd.f32 %v4584_v22, %v3108_v17 }
 0x167   : > { %v4615_v14 = vadd.f32 %v3423_v33, %v1846_v5  ;;  %v4618_v24 = vadd.f32 %v3487_v41, %v4516_v48 }
 0x168   : > { %v1862_v33 = vadd.f32 %v4590_v31, %v3109_v37 }
 0x169   : > { %v3424_v50 = vpop.f32.mrb[56].mxu1  ;;  %v3488_v35 = vpop.f32.mrb[56].mxu0 }
 0x16a   : > { %v3425_v51 = vpop.f32.mrb[57].mxu1  ;;  %v3489_v21 = vpop.f32.mrb[57].mxu0 }
 0x16b   : > { %v3426_v47 = vadd.f32 %v3425_v51, %v3424_v50  ;;  %v3490_v52 = vadd.f32 %v3489_v21, %v3488_v35  ;;  %v3427_v43 = vpop.f32.mrb[58].mxu1  ;;  %v3491_v55 = vpop.f32.mrb[58].mxu0  ;;  %v3112_v51 = vunpack.c.l.bf16 %v3217_v34 }
 0x16c   : > { %v3428_v61 = vpop.f32.mrb[59].mxu1  ;;  %v3492_v7 = vpop.f32.mrb[59].mxu0 }
 0x16d   : > { %v4623_v30 = vadd.f32 %v3426_v47, %v1851_v42  ;;  %v4626_v48 = vadd.f32 %v3490_v52, %v4527_v9  ;;  %v3429_v15 = vadd.f32 %v3428_v61, %v3427_v43  ;;  %v3493_v8 = vadd.f32 %v3492_v7, %v3491_v55 }
 0x16e   : > { %v3113_v42 = vunpack.c.h.bf16 %v3217_v34  ;;  %v1867_v55 = vadd.f32 %v4433_v60, %v3112_v51 }
 0x16f   : > { %v4628_v62 = vadd.f32 %v3429_v15, %v1854_v56  ;;  %v4631_v54 = vadd.f32 %v3493_v8, %v4531_v13  ;;  %v3218_v15 = vld [vmem:[%s4475_s21 + $0x68] sm:$0xff]  }
 0x170   : > { %v1870_v7 = vadd.f32 %v4439_v4, %v3113_v42 }
 0x171   : > { %v3430_v11 = vpop.f32.mrb[60].mxu1  ;;  %v3494_v0 = vpop.f32.mrb[60].mxu0 }
 0x172   : > { %v3431_v23 = vpop.f32.mrb[61].mxu1  ;;  %v3495_v16 = vpop.f32.mrb[61].mxu0 }
 0x173   : > { %v3432_v5 = vadd.f32 %v3431_v23, %v3430_v11  ;;  %v3496_v25 = vadd.f32 %v3495_v16, %v3494_v0  ;;  %v3433_v9 = vpop.f32.mrb[62].mxu1  ;;  %v3497_v29 = vpop.f32.mrb[62].mxu0  ;;  %v3116_v23 = vunpack.c.l.bf16 %v3218_v15 }
 0x174   : > { %v3434_v41 = vpop.f32.mrb[63].mxu1  ;;  %v3498_v46 = vpop.f32.mrb[63].mxu0 }
 0x175   : > { %v4636_v49 = vadd.f32 %v3432_v5, %v1859_v18  ;;  %v4639_v13 = vadd.f32 %v3496_v25, %v4542_v40  ;;  %v3435_v50 = vadd.f32 %v3434_v41, %v3433_v9  ;;  %v3499_v35 = vadd.f32 %v3498_v46, %v3497_v29 }
 0x176   : > { %v3117_v18 = vunpack.c.h.bf16 %v3218_v15  ;;  %v1875_v29 = vadd.f32 %v4445_v12, %v3116_v23 }
 0x177   : > { %v4641_v21 = vadd.f32 %v3435_v50, %v1862_v33  ;;  %v4644_v22 = vadd.f32 %v3499_v35, %v4546_v45  ;;  %v3219_v50 = vld [vmem:[%s4475_s21 + $0x70] sm:$0xff]  }
 0x178   : > { %v1878_v46 = vadd.f32 %v4451_v20, %v3117_v18 }
 0x179   : > { %v3436_v47 = vpop.f32.mrb[64].mxu1  ;;  %v3500_v52 = vpop.f32.mrb[64].mxu0 }
 0x17a   : > { %v3437_v31 = vpop.f32.mrb[65].mxu1  ;;  %v3501_v43 = vpop.f32.mrb[65].mxu0 }
 0x17b   : > { %v3438_v56 = vadd.f32 %v3437_v31, %v3436_v47  ;;  %v3502_v1 = vadd.f32 %v3501_v43, %v3500_v52  ;;  %v3439_v40 = vpop.f32.mrb[66].mxu1  ;;  %v3503_v61 = vpop.f32.mrb[66].mxu0  ;;  %v3120_v31 = vunpack.c.l.bf16 %v3219_v50 }
 0x17c   : > { %v3440_v8 = vpop.f32.mrb[67].mxu1  ;;  %v3504_v17 = vpop.f32.mrb[67].mxu0 }
 0x17d   : > { %v4649_v37 = vadd.f32 %v3438_v56, %v1867_v55  ;;  %v4652_v45 = vadd.f32 %v3502_v1, %v4555_v3  ;;  %v3441_v11 = vadd.f32 %v3440_v8, %v3439_v40  ;;  %v3505_v0 = vadd.f32 %v3504_v17, %v3503_v61 }
 0x17e   : > { %v3121_v55 = vunpack.c.h.bf16 %v3219_v50  ;;  %v1883_v61 = vadd.f32 %v4457_v28, %v3120_v31 }
 0x17f   : > { %v4654_v16 = vadd.f32 %v3441_v11, %v1870_v7  ;;  %v4657_v60 = vadd.f32 %v3505_v0, %v4559_v6  ;;  %v3220_v11 = vld [vmem:[%s4475_s21 + $0x78] sm:$0xff]  }
 0x180   : > { %v1886_v17 = vadd.f32 %v4463_v36, %v3121_v55 }
 0x181   : > { %v3442_v5 = vpop.f32.mrb[68].mxu1  ;;  %v3506_v4 = vpop.f32.mrb[68].mxu0 }
 0x182   : > { %v3443_v25 = vpop.f32.mrb[69].mxu1  ;;  %v3507_v9 = vpop.f32.mrb[69].mxu0 }
 0x183   : > { %v3444_v34 = vadd.f32 %v3443_v25, %v3442_v5  ;;  %v3508_v33 = vadd.f32 %v3507_v9, %v3506_v4  ;;  %v3445_v3 = vpop.f32.mrb[70].mxu1  ;;  %v3509_v41 = vpop.f32.mrb[70].mxu0  ;;  %v3124_v25 = vunpack.c.l.bf16 %v3220_v11 }
 0x184   : > { %v3446_v35 = vpop.f32.mrb[71].mxu1  ;;  %v3510_v51 = vpop.f32.mrb[71].mxu0 }
 0x185   : > { %v4662_v42 = vadd.f32 %v3444_v34, %v1875_v29  ;;  %v4665_v6 = vadd.f32 %v3508_v33, %v4566_v32  ;;  %v3447_v47 = vadd.f32 %v3446_v35, %v3445_v3  ;;  %v3511_v52 = vadd.f32 %v3510_v51, %v3509_v41 }
 0x186   : > { %v3125_v29 = vunpack.c.h.bf16 %v3220_v11  ;;  %v1891_v41 = vadd.f32 %v4477_v44, %v3124_v25 }
 0x187   : > { %v4667_v43 = vadd.f32 %v3447_v47, %v1878_v46  ;;  %v4670_v12 = vadd.f32 %v3511_v52, %v4570_v39 }
 0x188   : > { %v1894_v51 = vadd.f32 %v4484_v53, %v3125_v29 }
 0x189   : > { %v3448_v56 = vpop.f32.mrb[72].mxu1  ;;  %v3512_v20 = vpop.f32.mrb[72].mxu0 }
 0x18a   : > { %v3449_v1 = vpop.f32.mrb[73].mxu1  ;;  %v3513_v40 = vpop.f32.mrb[73].mxu0 }
 0x18b   : > { %v3450_v7 = vadd.f32 %v3449_v1, %v3448_v56  ;;  %v3514_v15 = vadd.f32 %v3513_v40, %v3512_v20  ;;  %v3451_v32 = vpop.f32.mrb[74].mxu1  ;;  %v3515_v8 = vpop.f32.mrb[74].mxu0 }
 0x18c   : > { %v3452_v0 = vpop.f32.mrb[75].mxu1  ;;  %v3516_v23 = vpop.f32.mrb[75].mxu0 }
 0x18d   : > { %v4675_v18 = vadd.f32 %v3450_v7, %v1883_v61  ;;  %v4678_v39 = vadd.f32 %v3514_v15, %v4577_v59  ;;  %v3453_v5 = vadd.f32 %v3452_v0, %v3451_v32  ;;  %v3517_v4 = vadd.f32 %v3516_v23, %v3515_v8 }
 0x18f   : > { %v4680_v9 = vadd.f32 %v3453_v5, %v1886_v17  ;;  %v4683_v28 = vadd.f32 %v3517_v4, %v4581_v2 }
 0x191   : > { %v3454_v34 = vpop.f32.mrb[76].mxu1  ;;  %v3518_v33 = vpop.f32.mrb[76].mxu0 }
 0x192   : > { %v3455_v36 = vpop.f32.mrb[77].mxu1  ;;  %v3519_v3 = vpop.f32.mrb[77].mxu0 }
 0x193   : > { %v3456_v46 = vadd.f32 %v3455_v36, %v3454_v34  ;;  %v3520_v50 = vadd.f32 %v3519_v3, %v3518_v33  ;;  %v3457_v35 = vpop.f32.mrb[78].mxu1  ;;  %v3521_v59 = vpop.f32.mrb[78].mxu0 }
 0x194   : > { %v3458_v47 = vpop.f32.mrb[79].mxu1  ;;  %v3522_v52 = vpop.f32.mrb[79].mxu0 }
 0x195   : > { %v4687_v31 = vadd.f32 %v3456_v46, %v1891_v41  ;;  %v4690_v2 = vadd.f32 %v3520_v50, %v4588_v26  ;;  %v3459_v55 = vadd.f32 %v3458_v47, %v3457_v35  ;;  %v3523_v56 = vadd.f32 %v3522_v52, %v3521_v59 }
 0x197   : > { %v4692_v20 = vadd.f32 %v3459_v55, %v1894_v51  ;;  %v4695_v1 = vadd.f32 %v3523_v56, %v4592_v38 }
 0x199   : > { %v3524_v44 = vpop.f32.mrb[80].mxu0  ;;  %v3588_v40 = vpop.f32.mrb[80].mxu1 }
 0x19a   : > { %v3525_v61 = vpop.f32.mrb[81].mxu0  ;;  %v3589_v7 = vpop.f32.mrb[81].mxu1 }
 0x19b   : > { %v3526_v15 = vadd.f32 %v3525_v61, %v3524_v44  ;;  %v3590_v53 = vadd.f32 %v3589_v7, %v3588_v40  ;;  %v3527_v32 = vpop.f32.mrb[82].mxu0  ;;  %v3591_v8 = vpop.f32.mrb[82].mxu1 }
 0x19c   : > { %v3528_v17 = vpop.f32.mrb[83].mxu0  ;;  %v3592_v11 = vpop.f32.mrb[83].mxu1 }
 0x19d   : > { %v4698_v26 = vadd.f32 %v3526_v15, %v4597_v57  ;;  %v3529_v0 = vadd.f32 %v3528_v17, %v3527_v32  ;;  %v3593_v23 = vadd.f32 %v3592_v11, %v3591_v8  ;;  %v4701_v5 = vadd.f32 %v3590_v53, %v4600_v63 }
 0x19f   : > { %v4704_v38 = vadd.f32 %v3529_v0, %v4602_v10  ;;  %v4707_v4 = vadd.f32 %v3593_v23, %v4605_v58 }
 0x1a1   : > { %v3530_v25 = vpop.f32.mrb[84].mxu0  ;;  %v3594_v29 = vpop.f32.mrb[84].mxu1 }
 0x1a2   : > { %v3531_v34 = vpop.f32.mrb[85].mxu0  ;;  %v3595_v33 = vpop.f32.mrb[85].mxu1 }
 0x1a3   : > { %v3532_v36 = vadd.f32 %v3531_v34, %v3530_v25  ;;  %v3596_v3 = vadd.f32 %v3595_v33, %v3594_v29  ;;  %v3533_v41 = vpop.f32.mrb[86].mxu0  ;;  %v3597_v57 = vpop.f32.mrb[86].mxu1 }
 0x1a4   : > { %v3534_v46 = vpop.f32.mrb[87].mxu0  ;;  %v3598_v50 = vpop.f32.mrb[87].mxu1 }
 0x1a5   : > { %v4710_v35 = vadd.f32 %v3532_v36, %v4610_v27  ;;  %v3535_v63 = vadd.f32 %v3534_v46, %v3533_v41  ;;  %v3599_v59 = vadd.f32 %v3598_v50, %v3597_v57  ;;  %v4713_v10 = vadd.f32 %v3596_v3, %v4613_v19 }
 0x1a7   : > { %v4716_v58 = vadd.f32 %v3535_v63, %v4615_v14  ;;  %v4719_v51 = vadd.f32 %v3599_v59, %v4618_v24 }
 0x1a9   : > { %v3536_v47 = vpop.f32.mrb[88].mxu0  ;;  %v3600_v52 = vpop.f32.mrb[88].mxu1 }
 0x1aa   : > { %v3537_v55 = vpop.f32.mrb[89].mxu0  ;;  %v3601_v56 = vpop.f32.mrb[89].mxu1 }
 0x1ab   : > { %v3538_v44 = vadd.f32 %v3537_v55, %v3536_v47  ;;  %v3602_v40 = vadd.f32 %v3601_v56, %v3600_v52  ;;  %v3539_v61 = vpop.f32.mrb[90].mxu0  ;;  %v3603_v27 = vpop.f32.mrb[90].mxu1 }
 0x1ac   : > { %v3540_v7 = vpop.f32.mrb[91].mxu0  ;;  %v3604_v15 = vpop.f32.mrb[91].mxu1 }
 0x1ad   : > { %v4722_v53 = vadd.f32 %v3538_v44, %v4623_v30  ;;  %v3541_v19 = vadd.f32 %v3540_v7, %v3539_v61  ;;  %v3605_v32 = vadd.f32 %v3604_v15, %v3603_v27  ;;  %v4725_v14 = vadd.f32 %v3602_v40, %v4626_v48 }
 0x1af   : > { %v4728_v24 = vadd.f32 %v3541_v19, %v4628_v62  ;;  %v4731_v8 = vadd.f32 %v3605_v32, %v4631_v54 }
 0x1b1   : > { %v3542_v17 = vpop.f32.mrb[92].mxu0  ;;  %v3606_v11 = vpop.f32.mrb[92].mxu1 }
 0x1b2   : > { %v3543_v0 = vpop.f32.mrb[93].mxu0  ;;  %v3607_v23 = vpop.f32.mrb[93].mxu1 }
 0x1b3   : > { %v3544_v25 = vadd.f32 %v3543_v0, %v3542_v17  ;;  %v3608_v29 = vadd.f32 %v3607_v23, %v3606_v11  ;;  %v3545_v34 = vpop.f32.mrb[94].mxu0  ;;  %v3609_v30 = vpop.f32.mrb[94].mxu1 }
 0x1b4   : > { %v3546_v33 = vpop.f32.mrb[95].mxu0  ;;  %v3610_v36 = vpop.f32.mrb[95].mxu1 }
 0x1b5   : > { %v4734_v3 = vadd.f32 %v3544_v25, %v4636_v49  ;;  %v3547_v48 = vadd.f32 %v3546_v33, %v3545_v34  ;;  %v3611_v41 = vadd.f32 %v3610_v36, %v3609_v30  ;;  %v4737_v62 = vadd.f32 %v3608_v29, %v4639_v13 }
 0x1b7   : > { %v4740_v54 = vadd.f32 %v3547_v48, %v4641_v21  ;;  %v4743_v57 = vadd.f32 %v3611_v41, %v4644_v22 }
 0x1b9   : > { %v3548_v46 = vpop.f32.mrb[96].mxu0  ;;  %v3612_v50 = vpop.f32.mrb[96].mxu1 }
 0x1ba   : > { %v3549_v63 = vpop.f32.mrb[97].mxu0  ;;  %v3613_v59 = vpop.f32.mrb[97].mxu1 }
 0x1bb   : > { %v3550_v47 = vadd.f32 %v3549_v63, %v3548_v46  ;;  %v3614_v52 = vadd.f32 %v3613_v59, %v3612_v50  ;;  %v3551_v55 = vpop.f32.mrb[98].mxu0  ;;  %v3615_v49 = vpop.f32.mrb[98].mxu1 }
 0x1bc   : > { %v3552_v56 = vpop.f32.mrb[99].mxu0  ;;  %v3616_v44 = vpop.f32.mrb[99].mxu1 }
 0x1bd   : > { %v4746_v40 = vadd.f32 %v3550_v47, %v4649_v37  ;;  %v3553_v13 = vadd.f32 %v3552_v56, %v3551_v55  ;;  %v3617_v61 = vadd.f32 %v3616_v44, %v3615_v49  ;;  %v4749_v21 = vadd.f32 %v3614_v52, %v4652_v45 }
 0x1bf   : > { %v4752_v22 = vadd.f32 %v3553_v13, %v4654_v16  ;;  %v4755_v27 = vadd.f32 %v3617_v61, %v4657_v60 }
 0x1c1   : > { %v3554_v7 = vpop.f32.mrb[100].mxu0  ;;  %v3618_v15 = vpop.f32.mrb[100].mxu1 }
 0x1c2   : > { %v3555_v19 = vpop.f32.mrb[101].mxu0  ;;  %v3619_v32 = vpop.f32.mrb[101].mxu1 }
 0x1c3   : > { %v3556_v17 = vadd.f32 %v3555_v19, %v3554_v7  ;;  %v3620_v11 = vadd.f32 %v3619_v32, %v3618_v15  ;;  %v3557_v0 = vpop.f32.mrb[102].mxu0  ;;  %v3621_v37 = vpop.f32.mrb[102].mxu1 }
 0x1c4   : > { %v3558_v23 = vpop.f32.mrb[103].mxu0  ;;  %v3622_v25 = vpop.f32.mrb[103].mxu1 }
 0x1c5   : > { %v4758_v29 = vadd.f32 %v3556_v17, %v4662_v42  ;;  %v3559_v45 = vadd.f32 %v3558_v23, %v3557_v0  ;;  %v3623_v34 = vadd.f32 %v3622_v25, %v3621_v37  ;;  %v4761_v16 = vadd.f32 %v3620_v11, %v4665_v6 }
 0x1c7   : > { %v4764_v60 = vadd.f32 %v3559_v45, %v4667_v43  ;;  %v4767_v30 = vadd.f32 %v3623_v34, %v4670_v12 }
 0x1c9   : > { %v3560_v33 = vpop.f32.mrb[104].mxu0  ;;  %v3624_v36 = vpop.f32.mrb[104].mxu1 }
 0x1ca   : > { %v3561_v48 = vpop.f32.mrb[105].mxu0  ;;  %v3625_v41 = vpop.f32.mrb[105].mxu1 }
 0x1cb   : > { %v3562_v46 = vadd.f32 %v3561_v48, %v3560_v33  ;;  %v3626_v50 = vadd.f32 %v3625_v41, %v3624_v36  ;;  %v3563_v63 = vpop.f32.mrb[106].mxu0  ;;  %v3627_v42 = vpop.f32.mrb[106].mxu1 }
 0x1cc   : > { %v3564_v59 = vpop.f32.mrb[107].mxu0  ;;  %v3628_v47 = vpop.f32.mrb[107].mxu1 }
 0x1cd   : > { %v4770_v52 = vadd.f32 %v3562_v46, %v4675_v18  ;;  %v3565_v6 = vadd.f32 %v3564_v59, %v3563_v63  ;;  %v3629_v55 = vadd.f32 %v3628_v47, %v3627_v42  ;;  %v4773_v43 = vadd.f32 %v3626_v50, %v4678_v39 }
 0x1cf   : > { %v4776_v12 = vadd.f32 %v3565_v6, %v4680_v9  ;;  %v4779_v49 = vadd.f32 %v3629_v55, %v4683_v28 }
 0x1d1   : > { %v3566_v56 = vpop.f32.mrb[108].mxu0  ;;  %v3630_v44 = vpop.f32.mrb[108].mxu1 }
 0x1d2   : > { %v3567_v13 = vpop.f32.mrb[109].mxu0  ;;  %v3631_v61 = vpop.f32.mrb[109].mxu1 }
 0x1d3   : > { %v3568_v7 = vadd.f32 %v3567_v13, %v3566_v56  ;;  %v3632_v15 = vadd.f32 %v3631_v61, %v3630_v44  ;;  %v3569_v19 = vpop.f32.mrb[110].mxu0  ;;  %v3633_v18 = vpop.f32.mrb[110].mxu1 }
 0x1d4   : > { %v3570_v32 = vpop.f32.mrb[111].mxu0  ;;  %v3634_v17 = vpop.f32.mrb[111].mxu1 }
 0x1d5   : > { %v4782_v11 = vadd.f32 %v3568_v7, %v4687_v31  ;;  %v3571_v39 = vadd.f32 %v3570_v32, %v3569_v19  ;;  %v3635_v0 = vadd.f32 %v3634_v17, %v3633_v18  ;;  %v4785_v9 = vadd.f32 %v3632_v15, %v4690_v2 }
 0x1d7   : > { %v4788_v28 = vadd.f32 %v3571_v39, %v4692_v20  ;;  %v4791_v37 = vadd.f32 %v3635_v0, %v4695_v1 }
 0x1d9   : > { %v3636_v23 = vpop.f32.mrb[112].mxu1  ;;  %v3726_v25 = vpop.f32.mrb[112].mxu0 }
 0x1da   : > { %v2423_v45 = vadd.f32 %v3726_v25, %v4713_v10  ;;  %v3637_v34 = vpop.f32.mrb[113].mxu1  ;;  %v2414_v33 = vpop.f32.mrb[113].mxu0 }
 0x1db   : > { %v3638_v31 = vadd.f32 %v3637_v34, %v3636_v23  ;;  %v2415_v36 = vadd.f32 %v2414_v33, %v4701_v5  ;;  %v3639_v48 = vpop.f32.mrb[114].mxu1  ;;  %v3727_v41 = vpop.f32.mrb[114].mxu0 }
 0x1dc   : > { %v2426_v2 = vadd.f32 %v3727_v41, %v4719_v51  ;;  %v3640_v46 = vpop.f32.mrb[115].mxu1  ;;  %v2417_v50 = vpop.f32.mrb[115].mxu0 }
 0x1dd   : > { %v3641_v20 = vadd.f32 %v3640_v46, %v3639_v48  ;;  %v2418_v1 = vadd.f32 %v2417_v50, %v4707_v4  ;;  %v4805_v10 = vadd.f32 %v3638_v31, %v4698_v26 }
 0x1de   : > { %v3134_v5 = vpack.c.bf16 %v2426_v2, %v2423_v45 }
 0x1df   : > { %v3129_v63 = vpack.c.bf16 %v2418_v1, %v2415_v36  ;;  %v4808_v51 = vadd.f32 %v3641_v20, %v4704_v38 }
 0x1e0   : > { %3221 = vst [vmem:[%s4801_s23 + $0x8] sm:$0xff] %v3134_v5  }
 0x1e1   : > { %3130 = vst [vmem:[%s4801_s23] sm:$0xff] %v3129_v63   ;;  %v3642_v42 = vpop.f32.mrb[116].mxu1  ;;  %v3730_v59 = vpop.f32.mrb[116].mxu0 }
 0x1e2   : > { %v2439_v47 = vadd.f32 %v3730_v59, %v4737_v62  ;;  %v3643_v6 = vpop.f32.mrb[117].mxu1  ;;  %v2430_v55 = vpop.f32.mrb[117].mxu0 }
 0x1e3   : > { %v3644_v56 = vadd.f32 %v3643_v6, %v3642_v42  ;;  %v2431_v4 = vadd.f32 %v2430_v55, %v4725_v14  ;;  %v3645_v26 = vpop.f32.mrb[118].mxu1  ;;  %v3731_v44 = vpop.f32.mrb[118].mxu0 }
 0x1e4   : > { %v2442_v13 = vadd.f32 %v3731_v44, %v4743_v57  ;;  %v3646_v61 = vpop.f32.mrb[119].mxu1  ;;  %v2433_v38 = vpop.f32.mrb[119].mxu0 }
 0x1e5   : > { %v3647_v7 = vadd.f32 %v3646_v61, %v3645_v26  ;;  %v2434_v15 = vadd.f32 %v2433_v38, %v4731_v8  ;;  %v2326_v19 = vadd.f32 %v3644_v56, %v4710_v35 }
 0x1e6   : > { %v3144_v18 = vpack.c.bf16 %v2442_v13, %v2439_v47 }
 0x1e7   : > { %v3139_v62 = vpack.c.bf16 %v2434_v15, %v2431_v4  ;;  %v2329_v32 = vadd.f32 %v3647_v7, %v4716_v58 }
 0x1e8   : > { %3223 = vst [vmem:[%s4801_s23 + $0x18] sm:$0xff] %v3144_v18  }
 0x1e9   : > { %3222 = vst [vmem:[%s4801_s23 + $0x10] sm:$0xff] %v3139_v62   ;;  %v3648_v17 = vpop.f32.mrb[120].mxu1  ;;  %v3734_v39 = vpop.f32.mrb[120].mxu0 }
 0x1ea   : > { %v2455_v14 = vadd.f32 %v3734_v39, %v4761_v16  ;;  %v3649_v0 = vpop.f32.mrb[121].mxu1  ;;  %v2446_v57 = vpop.f32.mrb[121].mxu0 }
 0x1eb   : > { %v3650_v23 = vadd.f32 %v3649_v0, %v3648_v17  ;;  %v2447_v25 = vadd.f32 %v2446_v57, %v4749_v21  ;;  %v3651_v8 = vpop.f32.mrb[122].mxu1  ;;  %v3735_v45 = vpop.f32.mrb[122].mxu0 }
 0x1ec   : > { %v2458_v35 = vadd.f32 %v3735_v45, %v4767_v30  ;;  %v3652_v34 = vpop.f32.mrb[123].mxu1  ;;  %v2449_v33 = vpop.f32.mrb[123].mxu0 }
 0x1ed   : > { %v3653_v58 = vadd.f32 %v3652_v34, %v3651_v8  ;;  %v2450_v31 = vadd.f32 %v2449_v33, %v4755_v27  ;;  %v2334_v36 = vadd.f32 %v3650_v23, %v4722_v53 }
 0x1ee   : > { %v3154_v48 = vpack.c.bf16 %v2458_v35, %v2455_v14 }
 0x1ef   : > { %v3149_v16 = vpack.c.bf16 %v2450_v31, %v2447_v25  ;;  %v2337_v41 = vadd.f32 %v3653_v58, %v4728_v24 }
 0x1f0   : > { %3225 = vst [vmem:[%s4801_s23 + $0x28] sm:$0xff] %v3154_v48  }
 0x1f1   : > { %3224 = vst [vmem:[%s4801_s23 + $0x20] sm:$0xff] %v3149_v16   ;;  %v3654_v2 = vpop.f32.mrb[124].mxu1  ;;  %v3738_v46 = vpop.f32.mrb[124].mxu0 }
 0x1f2   : > { %v2471_v21 = vadd.f32 %v3738_v46, %v4785_v9  ;;  %v3655_v50 = vpop.f32.mrb[125].mxu1  ;;  %v2462_v30 = vpop.f32.mrb[125].mxu0 }
 0x1f3   : > { %v3656_v20 = vadd.f32 %v3655_v50, %v3654_v2  ;;  %v2463_v1 = vadd.f32 %v2462_v30, %v4773_v43  ;;  %v3657_v27 = vpop.f32.mrb[126].mxu1  ;;  %v3739_v5 = vpop.f32.mrb[126].mxu0 }
 0x1f4   : > { %v2474_v53 = vadd.f32 %v3739_v5, %v4791_v37  ;;  %v3658_v63 = vpop.f32.mrb[127].mxu1  ;;  %v2465_v42 = vpop.f32.mrb[127].mxu0 }
 0x1f5   : > { %v3659_v24 = vadd.f32 %v3658_v63, %v3657_v27  ;;  %v2466_v59 = vadd.f32 %v2465_v42, %v4779_v49  ;;  %v2342_v47 = vadd.f32 %v3656_v20, %v4734_v3 }
 0x1f6   : > { %v3164_v6 = vpack.c.bf16 %v2474_v53, %v2471_v21 }
 0x1f7   : > { %v3159_v9 = vpack.c.bf16 %v2466_v59, %v2463_v1  ;;  %v2345_v55 = vadd.f32 %v3659_v24, %v4740_v54 }
 0x1f8   : > { %3227 = vst [vmem:[%s4801_s23 + $0x38] sm:$0xff] %v3164_v6  }
 0x1f9   : > { %3226 = vst [vmem:[%s4801_s23 + $0x30] sm:$0xff] %v3159_v9   ;;  %v3660_v56 = vpop.f32.mrb[128].mxu1  ;;  %v3742_v4 = vpop.f32.mrb[128].mxu0 }
 0x1fa   : > { %v2487_v43 = vadd.f32 %v3742_v4, %v2326_v19  ;;  %v3661_v26 = vpop.f32.mrb[129].mxu1  ;;  %v2478_v37 = vpop.f32.mrb[129].mxu0 }
 0x1fb   : > { %v3662_v44 = vadd.f32 %v3661_v26, %v3660_v56  ;;  %v2479_v13 = vadd.f32 %v2478_v37, %v4805_v10  ;;  %v3663_v61 = vpop.f32.mrb[130].mxu1  ;;  %v3743_v49 = vpop.f32.mrb[130].mxu0 }
 0x1fc   : > { %v2490_v38 = vadd.f32 %v3743_v49, %v2329_v32  ;;  %v3664_v3 = vpop.f32.mrb[131].mxu1  ;;  %v2481_v7 = vpop.f32.mrb[131].mxu0 }
 0x1fd   : > { %v3665_v15 = vadd.f32 %v3664_v3, %v3663_v61  ;;  %v2482_v54 = vadd.f32 %v2481_v7, %v4808_v51  ;;  %v2350_v18 = vadd.f32 %v3662_v44, %v4746_v40 }
 0x1fe   : > { %v3174_v62 = vpack.c.bf16 %v2490_v38, %v2487_v43 }
 0x1ff   : > { %v3169_v17 = vpack.c.bf16 %v2482_v54, %v2479_v13  ;;  %v2353_v19 = vadd.f32 %v3665_v15, %v4752_v22 }
 0x200   : > { %3229 = vst [vmem:[%s4801_s23 + $0x48] sm:$0xff] %v3174_v62  }
 0x201   : > { %3228 = vst [vmem:[%s4801_s23 + $0x40] sm:$0xff] %v3169_v17   ;;  %v3666_v39 = vpop.f32.mrb[132].mxu1  ;;  %v3746_v14 = vpop.f32.mrb[132].mxu0 }
 0x202   : > { %v2503_v0 = vadd.f32 %v3746_v14, %v2342_v47  ;;  %v3667_v10 = vpop.f32.mrb[133].mxu1  ;;  %v2494_v32 = vpop.f32.mrb[133].mxu0 }
 0x203   : > { %v3668_v57 = vadd.f32 %v3667_v10, %v3666_v39  ;;  %v2495_v23 = vadd.f32 %v2494_v32, %v2334_v36  ;;  %v3669_v25 = vpop.f32.mrb[134].mxu1  ;;  %v3747_v8 = vpop.f32.mrb[134].mxu0 }
 0x204   : > { %v2506_v51 = vadd.f32 %v3747_v8, %v2345_v55  ;;  %v3670_v45 = vpop.f32.mrb[135].mxu1  ;;  %v2497_v40 = vpop.f32.mrb[135].mxu0 }
 0x205   : > { %v3671_v35 = vadd.f32 %v3670_v45, %v3669_v25  ;;  %v2498_v34 = vadd.f32 %v2497_v40, %v2337_v41  ;;  %v2358_v22 = vadd.f32 %v3668_v57, %v4758_v29 }
 0x206   : > { %v3184_v33 = vpack.c.bf16 %v2506_v51, %v2503_v0 }
 0x207   : > { %v3179_v58 = vpack.c.bf16 %v2498_v34, %v2495_v23  ;;  %v2361_v31 = vadd.f32 %v3671_v35, %v4764_v60 }
 0x208   : > { %3231 = vst [vmem:[%s4801_s23 + $0x58] sm:$0xff] %v3184_v33  }
 0x209   : > { %3230 = vst [vmem:[%s4801_s23 + $0x50] sm:$0xff] %v3179_v58   ;;  %v3672_v48 = vpop.f32.mrb[136].mxu1  ;;  %v3750_v16 = vpop.f32.mrb[136].mxu0 }
 0x20a   : > { %v2519_v2 = vadd.f32 %v3750_v16, %v2358_v22  ;;  %v3673_v36 = vpop.f32.mrb[137].mxu1  ;;  %v2510_v46 = vpop.f32.mrb[137].mxu0 }
 0x20b   : > { %v3674_v21 = vadd.f32 %v3673_v36, %v3672_v48  ;;  %v2511_v50 = vadd.f32 %v2510_v46, %v2350_v18  ;;  %v3675_v30 = vpop.f32.mrb[138].mxu1  ;;  %v3751_v20 = vpop.f32.mrb[138].mxu0 }
 0x20c   : > { %v2522_v41 = vadd.f32 %v3751_v20, %v2361_v31  ;;  %v3676_v1 = vpop.f32.mrb[139].mxu1  ;;  %v2513_v29 = vpop.f32.mrb[139].mxu0 }
 0x20d   : > { %v3677_v27 = vadd.f32 %v3676_v1, %v3675_v30  ;;  %v2514_v5 = vadd.f32 %v2513_v29, %v2353_v19  ;;  %v2366_v60 = vadd.f32 %v3674_v21, %v4770_v52 }
 0x20e   : > { %v3194_v53 = vpack.c.bf16 %v2522_v41, %v2519_v2 }
 0x20f   : > { %v3189_v63 = vpack.c.bf16 %v2514_v5, %v2511_v50  ;;  %v2369_v42 = vadd.f32 %v3677_v27, %v4776_v12 }
 0x210   : > { %3233 = vst [vmem:[%s4801_s23 + $0x68] sm:$0xff] %v3194_v53  }
 0x211   : > { %3232 = vst [vmem:[%s4801_s23 + $0x60] sm:$0xff] %v3189_v63   ;;  %v3678_v24 = vpop.f32.mrb[140].mxu1  ;;  %v3754_v59 = vpop.f32.mrb[140].mxu0 }
 0x212   : > { %v3679_v47 = vpop.f32.mrb[141].mxu1  ;;  %v2526_v6 = vpop.f32.mrb[141].mxu0 }
 0x213   : > { %v3680_v9 = vadd.f32 %v3679_v47, %v3678_v24  ;;  %v2527_v55 = vadd.f32 %v2526_v6, %v2366_v60  ;;  %v3681_v56 = vpop.f32.mrb[142].mxu1  ;;  %v3755_v4 = vpop.f32.mrb[142].mxu0 }
 0x214   : > { %v3682_v43 = vpop.f32.mrb[143].mxu1  ;;  %v2529_v26 = vpop.f32.mrb[143].mxu0 }
 0x215   : > { %v2374_v52 = vadd.f32 %v3680_v9, %v4782_v11  ;;  %v3683_v37 = vadd.f32 %v3682_v43, %v3681_v56  ;;  %v2530_v44 = vadd.f32 %v2529_v26, %v2369_v42 }
 0x217   : > { %v2535_v13 = vadd.f32 %v3754_v59, %v2374_v52  ;;  %v2377_v12 = vadd.f32 %v3683_v37, %v4788_v28  ;;  %v3199_v61 = vpack.c.bf16 %v2530_v44, %v2527_v55 }
 0x219   : > { %v2538_v49 = vadd.f32 %v3755_v4, %v2377_v12  ;;  %3234 = vst [vmem:[%s4801_s23 + $0x70] sm:$0xff] %v3199_v61  }
 0x21b   : > { %v3204_v38 = vpack.c.bf16 %v2538_v49, %v2535_v13 }
 0x21d   : > { %3235 = vst [vmem:[%s4801_s23 + $0x78] sm:$0xff] %v3204_v38  }
 0x21e PF: > { %s13_s12 = sadd.s32 1, %s4067_s12  }
 0x21f   : > { %p10_p4 = scmp.ge.s32.totalorder %s13_s12, 4  }
 0x221   :  { %12 = sbr.rel (!%p10_p4) target bundleno = 1 (0x1), region = 65 }

// kernel: _lambda_.22
= control target key start
LH: loop header
LB: loop body
LE: loop exit
PB: predicated region body
PF: predicated region fallthrough
CT: control target
= control target key end

     0   :  { %s4054_s15 = smov 0   ;;  %s4868_s0 = inlined_call_operand.vmem [shape: bf16[512,1152], index: 0, kind: input, shape index: {}]   ;;  %s4869_s1 = inlined_call_operand.vmem [shape: bf16[1152,128], index: 1, kind: input, shape index: {}]   ;;  %s4870_s2 = inlined_call_operand.vmem [shape: f32[1,128], index: 2, kind: input, shape index: {}]   ;;  %s4871_s3 = inlined_call_operand.vmem [shape: f32[1,128], index: 3, kind: input, shape index: {}]   ;;  %s4872_s4 = inlined_call_operand.vmem [shape: bf16[512,128], index: 4, kind: output, shape index: {}]  }
   0x1 LB: > { %s2808_s16 = sadd.s32 4294967295, %s4027_s15   ;;  %p2812_p0 = scmp.ge.s32.totalorder %s4027_s15, 1  ;;  %s4027_s15 = sphi %s4054_s15, %s14_s15  }
   0x2   : > { %p164_p1 = scmp.lt.s32.totalorder %s4027_s15, 3 }
   0x4   : > { %p165_p2 = pnand %p2812_p0, %p164_p1 }
   0x5   : > { %v3741_v0 = vld [vmem:[%s4869_s1 + $0x40] sm:$0xff] (!%p165_p2)   ;;  %s2813_s19 = sshll.u32 (!%p165_p2), %s2808_s16, 5  ;;  %v3743_v2 = vld [vmem:[%s4869_s1 + $0x48] sm:$0xff] (!%p165_p2)   ;;  %v3745_v4 = vld [vmem:[%s4869_s1 + $0x50] sm:$0xff] (!%p165_p2)  }
   0x6   : > { %168 = sbr.rel (%p165_p2) target bundleno = 548 (0x224), region = 36  ;;  %v3742_v1 = vld [vmem:[%s4869_s1] sm:$0xff] (!%p165_p2)   ;;  %3196 = vmatprep.subr.bf16.mxu0 (!%p165_p2), %v3741_v0  ;;  %3716 = vmatprep.subr.bf16.mxu1 (!%p165_p2), %v3741_v0  ;;  %p192_p3 = scmp.lt.s32.totalorder (!%p165_p2), %s2813_s19, 63  ;;  %v3744_v3 = vld [vmem:[%s4869_s1 + $0x8] sm:$0xff] (!%p165_p2)   ;;  %v3746_v5 = vld [vmem:[%s4869_s1 + $0x10] sm:$0xff] (!%p165_p2)  }
   0x7   : > { %3197 = vmatpush3.bf16.msra.mxu0 (!%p165_p2), %v3742_v1  ;;  %3724 = vmatpush3.bf16.msra.mxu1 (!%p165_p2), %v3742_v1  ;;  %v3747_v6 = vld [vmem:[%s4869_s1 + $0x58] sm:$0xff] (!%p165_p2)   ;;  %v3749_v8 = vld [vmem:[%s4869_s1 + $0x60] sm:$0xff] (!%p165_p2)   ;;  %v3751_v10 = vld [vmem:[%s4869_s1 + $0x68] sm:$0xff] (!%p165_p2)  }
   0x8   : > { %3198 = vmatprep.subr.bf16.mxu0 (!%p165_p2), %v3743_v2  ;;  %3717 = vmatprep.subr.bf16.mxu1 (!%p165_p2), %v3743_v2  ;;  %v3748_v7 = vld [vmem:[%s4869_s1 + $0x18] sm:$0xff] (!%p165_p2)   ;;  %v3750_v9 = vld [vmem:[%s4869_s1 + $0x20] sm:$0xff] (!%p165_p2)   ;;  %v3752_v13 = vld [vmem:[%s4869_s1 + $0x28] sm:$0xff] (!%p165_p2)  }
   0x9   : > { %v3753_v14 = vld [vmem:[%s4869_s1 + $0x70] sm:$0xff] (!%p165_p2)   ;;  %v3755_v16 = vld [vmem:[%s4869_s1 + $0x78] sm:$0xff] (!%p165_p2)   ;;  %v3763_v18 = vld [vmem:[%s4869_s1 + $0xc0] sm:$0xff] (!%p165_p2)  }
   0xa   : > { %v3754_v15 = vld [vmem:[%s4869_s1 + $0x30] sm:$0xff] (!%p165_p2)   ;;  %v3756_v17 = vld [vmem:[%s4869_s1 + $0x38] sm:$0xff] (!%p165_p2)   ;;  %v3766_v21 = vld [vmem:[%s4869_s1 + $0x140] sm:$0xff] (!%p165_p2)  }
   0xb   : > { %3199 = vmatpush3.bf16.msra.mxu0 (!%p165_p2), %v3744_v3  ;;  %3725 = vmatpush3.bf16.msra.mxu1 (!%p165_p2), %v3744_v3  ;;  %v3764_v22 = vld [vmem:[%s4869_s1 + $0x80] sm:$0xff] (!%p165_p2)   ;;  %v3765_v23 = vld [vmem:[%s4869_s1 + $0xc8] sm:$0xff] (!%p165_p2)   ;;  %v3775_v31 = vld [vmem:[%s4869_s1 + $0xd0] sm:$0xff] (!%p165_p2)  }
   0xc   : > { %3200 = vmatprep.subr.bf16.mxu0 (!%p165_p2), %v3745_v4  ;;  %3718 = vmatprep.subr.bf16.mxu1 (!%p165_p2), %v3745_v4  ;;  %v3768_v24 = vld [vmem:[%s4869_s1 + $0x100] sm:$0xff] (!%p165_p2)   ;;  %v3767_v27 = vld [vmem:[%s4869_s1 + $0x88] sm:$0xff] (!%p165_p2)   ;;  %v3776_v32 = vld [vmem:[%s4869_s1 + $0x90] sm:$0xff] (!%p165_p2)  }
   0xd   : > { %s4874_s19 = smov (!%p192_p3, %s2813_s19), 63  ;;  %v3786_v28 = vld [vmem:[%s4869_s1 + $0x148] sm:$0xff]   ;;  %v3777_v34 = vld [vmem:[%s4869_s1 + $0xd8] sm:$0xff]   ;;  %v3785_v40 = vld [vmem:[%s4869_s1 + $0xe0] sm:$0xff]  }
   0xe   : > { %s3732_s6 = smul.u32 36, %s4874_s19  ;;  %v3788_v33 = vld [vmem:[%s4869_s1 + $0x108] sm:$0xff]   ;;  %v3778_v37 = vld [vmem:[%s4869_s1 + $0x98] sm:$0xff]   ;;  %v3787_v41 = vld [vmem:[%s4869_s1 + $0xa0] sm:$0xff]   ;;  %s2816_s30 = sshll.u32 %s4874_s19, 2 }
   0xf   : > { %3201 = vmatpush3.bf16.msra.mxu0 %v3746_v5  ;;  %3726 = vmatpush3.bf16.msra.mxu1 %v3746_v5  ;;  %v3789_v42 = vld [vmem:[%s4869_s1 + $0xe8] sm:$0xff]   ;;  %v3800_v43 = vld [vmem:[%s4869_s1 + $0x150] sm:$0xff]   ;;  %v3799_v52 = vld [vmem:[%s4869_s1 + $0xf8] sm:$0xff]   ;;  %s4752_s7 = scalar_lea.vmem %s4872_s4, %s2816_s30 }
  0x10   : > { %3202 = vmatprep.subr.bf16.mxu0 %v3747_v6  ;;  %3719 = vmatprep.subr.bf16.mxu1 %v3747_v6  ;;  %s4095_s13 = scalar_lea.vmem %s4868_s0, %s3732_s6  ;;  %v3802_v46 = vld [vmem:[%s4869_s1 + $0x110] sm:$0xff]   ;;  %v3790_v47 = vld [vmem:[%s4869_s1 + $0xa8] sm:$0xff]   ;;  %v3817_v55 = vld [vmem:[%s4869_s1 + $0x158] sm:$0xff]  }
  0x11   : > { %v3759_v11 = vld [vmem:[%s4095_s13 + $0x4] ss:$36 sps:$4 sm:$0xff]   ;;  %v3769_v25 = vld [vmem:[%s4095_s13 + $0x4c] ss:$36 sps:$4 sm:$0xff]   ;;  %v3779_v35 = vld [vmem:[%s4095_s13 + $0x94] ss:$36 sps:$4 sm:$0xff]  }
  0x12   : > { %v3762_v12 = vld [vmem:[%s4095_s13 + $0x364] ss:$36 sps:$4 sm:$0xff]   ;;  %1709 = vmatprep.mubr.bf16.mxu0 %v3759_v11  ;;  %v3771_v26 = vld [vmem:[%s4095_s13 + $0x3ac] ss:$36 sps:$4 sm:$0xff]   ;;  %v3781_v36 = vld [vmem:[%s4095_s13 + $0x3f4] ss:$36 sps:$4 sm:$0xff]  }
  0x13   : > { %3203 = vmatpush3.bf16.msra.mxu0 %v3748_v7  ;;  %3727 = vmatpush3.bf16.msra.mxu1 %v3748_v7  ;;  %v3757_v19 = vld [vmem:[%s4095_s13] ss:$36 sps:$4 sm:$0xff]   ;;  %v3773_v29 = vld [vmem:[%s4095_s13 + $0x48] ss:$36 sps:$4 sm:$0xff]   ;;  %v3783_v38 = vld [vmem:[%s4095_s13 + $0x90] ss:$36 sps:$4 sm:$0xff]  }
  0x14   : > { %3204 = vmatprep.subr.bf16.mxu0 %v3749_v8  ;;  %3720 = vmatprep.subr.bf16.mxu1 %v3749_v8  ;;  %v3760_v20 = vld [vmem:[%s4095_s13 + $0x360] ss:$36 sps:$4 sm:$0xff]   ;;  %v3774_v30 = vld [vmem:[%s4095_s13 + $0x3a8] ss:$36 sps:$4 sm:$0xff]   ;;  %v3784_v39 = vld [vmem:[%s4095_s13 + $0x3f0] ss:$36 sps:$4 sm:$0xff]  }
  0x15   : > { %1805 = vmatprep.mubr.bf16.mxu1 %v3762_v12  ;;  %v3791_v44 = vld [vmem:[%s4095_s13 + $0xdc] ss:$36 sps:$4 sm:$0xff]   ;;  %v3797_v48 = vld [vmem:[%s4869_s1 + $0xf0] sm:$0xff]   ;;  %v3803_v53 = vld [vmem:[%s4095_s13 + $0x124] ss:$36 sps:$4 sm:$0xff]  }
  0x16   : > { %v3793_v45 = vld [vmem:[%s4095_s13 + $0x43c] ss:$36 sps:$4 sm:$0xff]   ;;  %v3798_v51 = vld [vmem:[%s4869_s1 + $0xb0] sm:$0xff]   ;;  %v3805_v58 = vld [vmem:[%s4095_s13 + $0x8] ss:$36 sps:$4 sm:$0xff]  }
  0x17   : > { %3205 = vmatpush3.bf16.msra.mxu0 %v3750_v9  ;;  %3728 = vmatpush3.bf16.msra.mxu1 %v3750_v9  ;;  %v3795_v49 = vld [vmem:[%s4095_s13 + $0xd8] ss:$36 sps:$4 sm:$0xff]   ;;  %v3807_v54 = vld [vmem:[%s4095_s13 + $0xc] ss:$36 sps:$4 sm:$0xff]   ;;  %v3808_v59 = vld [vmem:[%s4095_s13 + $0x120] ss:$36 sps:$4 sm:$0xff]  }
  0x18   : > { %3206 = vmatprep.subr.bf16.mxu0 %v3751_v10  ;;  %3721 = vmatprep.subr.bf16.mxu1 %v3751_v10  ;;  %v3796_v50 = vld [vmem:[%s4095_s13 + $0x438] ss:$36 sps:$4 sm:$0xff]   ;;  %v3809_v60 = vld [vmem:[%s4869_s1 + $0x1c0] sm:$0xff]   ;;  %v3811_v62 = vld [vmem:[%s4095_s13 + $0x16c] ss:$36 sps:$4 sm:$0xff]  }
  0x19   : > { %v3818_v56 = vld [vmem:[%s4869_s1 + $0x118] sm:$0xff]   ;;  %v3810_v61 = vld [vmem:[%s4869_s1 + $0x180] sm:$0xff]   ;;  %v3825_v1 = vld [vmem:[%s4869_s1 + $0x1c8] sm:$0xff]  }
  0x1a   : > { %v3801_v57 = vld [vmem:[%s4869_s1 + $0xb8] sm:$0xff]   ;;  %v3827_v0 = vld [vmem:[%s4869_s1 + $0x160] sm:$0xff]   ;;  %v3826_v3 = vld [vmem:[%s4869_s1 + $0x188] sm:$0xff]  }
  0x1b   : > { %3207 = vmatpush3.bf16.msra.mxu0 %v3752_v13  ;;  %3729 = vmatpush3.bf16.msra.mxu1 %v3752_v13  ;;  %v3813_v63 = vld [vmem:[%s4095_s13 + $0x54] ss:$36 sps:$4 sm:$0xff]   ;;  %v3828_v2 = vld [vmem:[%s4869_s1 + $0x120] sm:$0xff]   ;;  %v3815_v4 = vld [vmem:[%s4095_s13 + $0x168] ss:$36 sps:$4 sm:$0xff]  }
  0x1c   : > { %3208 = vmatprep.subr.bf16.mxu0 %v3753_v14  ;;  %3722 = vmatprep.subr.bf16.mxu1 %v3753_v14  ;;  %v3816_v5 = vld [vmem:[%s4095_s13 + $0x50] ss:$36 sps:$4 sm:$0xff]   ;;  %v3821_v7 = vld [vmem:[%s4095_s13 + $0x9c] ss:$36 sps:$4 sm:$0xff]   ;;  %v3841_v8 = vld [vmem:[%s4869_s1 + $0x168] sm:$0xff]  }
  0x1d   : > { %v3819_v6 = vld [vmem:[%s4095_s13 + $0x1b4] ss:$36 sps:$4 sm:$0xff]   ;;  %v3843_v10 = vld [vmem:[%s4869_s1 + $0x128] sm:$0xff]   ;;  %v3829_v14 = vld [vmem:[%s4095_s13 + $0x1fc] ss:$36 sps:$4 sm:$0xff]  }
  0x1e   : > { %v3842_v9 = vld [vmem:[%s4869_s1 + $0x1d0] sm:$0xff]   ;;  %v3824_v13 = vld [vmem:[%s4095_s13 + $0x98] ss:$36 sps:$4 sm:$0xff]  }
  0x1f   : > { %3209 = vmatpush3.bf16.msra.mxu0 %v3754_v15  ;;  %3730 = vmatpush3.bf16.msra.mxu1 %v3754_v15  ;;  %v3844_v11 = vld [vmem:[%s4869_s1 + $0x190] sm:$0xff]  }
  0x20   : > { %3210 = vmatprep.subr.bf16.mxu0 %v3755_v16  ;;  %3723 = vmatprep.subr.bf16.mxu1 %v3755_v16  ;;  %v3823_v12 = vld [vmem:[%s4095_s13 + $0x1b0] ss:$36 sps:$4 sm:$0xff]  }
  0x21   : > { %v3851_v15 = vld [vmem:[%s4869_s1 + $0x170] sm:$0xff]  }
  0x22   : > { %v3852_v16 = vld [vmem:[%s4869_s1 + $0x130] sm:$0xff]  }
  0x23   : > { %3211 = vmatpush3.bf16.msra.mxu0 %v3756_v17  ;;  %3731 = vmatpush3.bf16.msra.mxu1 %v3756_v17  ;;  %v3831_v17 = vld [vmem:[%s4095_s13 + $0xe4] ss:$36 sps:$4 sm:$0xff]  }
  0x24   : > { %3308 = vmatprep.subr.bf16.mxu1 %v3763_v18  ;;  %3420 = vmatprep.subr.bf16.mxu0 %v3766_v21  ;;  %v3859_v18 = vld [vmem:[%s4869_s1 + $0x1d8] sm:$0xff]   ;;  %v3834_v21 = vld [vmem:[%s4095_s13 + $0xe0] ss:$36 sps:$4 sm:$0xff]  }
  0x26   : > { %1710 = vmatmul.mubr.bf16.vlgmr.msra.gmra.mrb[0].mxu0 %v3757_v19  ;;  %1806 = vmatmul.mubr.bf16.vlgmr.msra.gmra.mrb[0].mxu1 %v3760_v20  ;;  %v3860_v19 = vld [vmem:[%s4869_s1 + $0x198] sm:$0xff]  }
  0x27   : > { %3309 = vmatpush3.bf16.msra.mxu1 %v3764_v22  ;;  %3421 = vmatpush3.bf16.msra.mxu0 %v3768_v24  ;;  %v3833_v20 = vld [vmem:[%s4095_s13 + $0x1f8] ss:$36 sps:$4 sm:$0xff]   ;;  %v3835_v22 = vld [vmem:[%s4095_s13 + $0x244] ss:$36 sps:$4 sm:$0xff]  }
  0x28   : > { %3310 = vmatprep.subr.bf16.mxu1 %v3765_v23  ;;  %1717 = vmatprep.mubr.bf16.mxu0 %v3769_v25  ;;  %v3837_v23 = vld [vmem:[%s4095_s13 + $0x12c] ss:$36 sps:$4 sm:$0xff]   ;;  %v3867_v24 = vld [vmem:[%s4869_s1 + $0x178] sm:$0xff]  }
  0x29   : > { %1813 = vmatprep.mubr.bf16.mxu1 %v3771_v26  ;;  %3422 = vmatprep.subr.bf16.mxu0 %v3786_v28  ;;  %v3868_v25 = vld [vmem:[%s4869_s1 + $0x138] sm:$0xff]   ;;  %v3875_v26 = vld [vmem:[%s4869_s1 + $0x1e0] sm:$0xff]  }
  0x2a   : > { %v3876_v28 = vld [vmem:[%s4869_s1 + $0x1a0] sm:$0xff]  }
  0x2b   : > { %3311 = vmatpush3.bf16.msra.mxu1 %v3767_v27  ;;  %3423 = vmatpush3.bf16.msra.mxu0 %v3788_v33  ;;  %v3839_v27 = vld [vmem:[%s4095_s13 + $0x240] ss:$36 sps:$4 sm:$0xff]   ;;  %v3890_v33 = vld [vmem:[%s4869_s1 + $0x1e8] sm:$0xff]  }
  0x2c   : > { %3312 = vmatprep.subr.bf16.mxu1 %v3775_v31  ;;  %3424 = vmatprep.subr.bf16.mxu0 %v3800_v43  ;;  %v3845_v31 = vld [vmem:[%s4095_s13 + $0x28c] ss:$36 sps:$4 sm:$0xff]   ;;  %v3861_v43 = vld [vmem:[%s4095_s13 + $0x31c] ss:$36 sps:$4 sm:$0xff]  }
  0x2e   : > { %1718 = vmatmul.mubr.bf16.gmra.mrb[4].mxu0 %v3773_v29  ;;  %1814 = vmatmul.mubr.bf16.gmra.mrb[4].mxu1 %v3774_v30  ;;  %v3877_v29 = vld [vmem:[%s4869_s1 + $0x200] sm:$0xff]   ;;  %v3840_v30 = vld [vmem:[%s4095_s13 + $0x128] ss:$36 sps:$4 sm:$0xff]  }
  0x2f   : > { %3313 = vmatpush3.bf16.msra.mxu1 %v3776_v32  ;;  %1725 = vmatprep.mubr.bf16.mxu0 %v3779_v35  ;;  %v3847_v32 = vld [vmem:[%s4095_s13 + $0x174] ss:$36 sps:$4 sm:$0xff]   ;;  %v3891_v35 = vld [vmem:[%s4869_s1 + $0x1a8] sm:$0xff]  }
  0x30   : > { %3314 = vmatprep.subr.bf16.mxu1 %v3777_v34  ;;  %1821 = vmatprep.mubr.bf16.mxu1 %v3781_v36  ;;  %v3849_v34 = vld [vmem:[%s4095_s13 + $0x288] ss:$36 sps:$4 sm:$0xff]   ;;  %v3850_v36 = vld [vmem:[%s4095_s13 + $0x170] ss:$36 sps:$4 sm:$0xff]  }
  0x31   : > { %3425 = vmatpush3.bf16.msra.mxu0 %v3802_v46  ;;  %v3866_v46 = vld [vmem:[%s4095_s13 + $0x200] ss:$36 sps:$4 sm:$0xff]  }
  0x32   : > { %3426 = vmatprep.subr.bf16.mxu0 %v3817_v55  ;;  %v3892_v55 = vld [vmem:[%s4869_s1 + $0x208] sm:$0xff]  }
  0x33   : > { %3315 = vmatpush3.bf16.msra.mxu1 %v3778_v37  ;;  %v3853_v37 = vld [vmem:[%s4095_s13 + $0x2d4] ss:$36 sps:$4 sm:$0xff]  }
  0x34   : > { %3316 = vmatprep.subr.bf16.mxu1 %v3785_v40  ;;  %v3858_v40 = vld [vmem:[%s4095_s13 + $0x1b8] ss:$36 sps:$4 sm:$0xff]  }
  0x35   : > { %3427 = vmatpush3.bf16.msra.mxu0 %v3818_v56  ;;  %v3907_v56 = vld [vmem:[%s4869_s1 + $0x210] sm:$0xff]  }
  0x36   : > { %1726 = vmatmul.mubr.bf16.gmra.mrb[8].mxu0 %v3783_v38  ;;  %1822 = vmatmul.mubr.bf16.gmra.mrb[8].mxu1 %v3784_v39  ;;  %v3855_v38 = vld [vmem:[%s4095_s13 + $0x1bc] ss:$36 sps:$4 sm:$0xff]   ;;  %v3857_v39 = vld [vmem:[%s4095_s13 + $0x2d0] ss:$36 sps:$4 sm:$0xff]  }
  0x37   : > { %3317 = vmatpush3.bf16.msra.mxu1 %v3787_v41  ;;  %1733 = vmatprep.mubr.bf16.mxu0 %v3791_v44  ;;  %v3905_v41 = vld [vmem:[%s4869_s1 + $0x1f0] sm:$0xff]   ;;  %v3863_v44 = vld [vmem:[%s4095_s13 + $0x204] ss:$36 sps:$4 sm:$0xff]  }
  0x38   : > { %3318 = vmatprep.subr.bf16.mxu1 %v3789_v42  ;;  %1829 = vmatprep.mubr.bf16.mxu1 %v3793_v45  ;;  %v3906_v42 = vld [vmem:[%s4869_s1 + $0x1b0] sm:$0xff]   ;;  %v3865_v45 = vld [vmem:[%s4095_s13 + $0x318] ss:$36 sps:$4 sm:$0xff]  }
  0x39   : > { %3428 = vmatprep.subr.bf16.mxu0 %v3827_v0  ;;  %v3889_v0 = vld [vmem:[%s4095_s13 + $0xa0] ss:$36 sps:$4 sm:$0xff]  }
  0x3a   : > { %3429 = vmatpush3.bf16.msra.mxu0 %v3828_v2  ;;  %v3895_v2 = vld [vmem:[%s4095_s13 + $0xec] ss:$36 sps:$4 sm:$0xff]  }
  0x3b   : > { %3319 = vmatpush3.bf16.msra.mxu1 %v3790_v47  ;;  %3430 = vmatprep.subr.bf16.mxu0 %v3841_v8  ;;  %v3920_v47 = vld [vmem:[%s4869_s1 + $0x1f8] sm:$0xff]  }
  0x3c   : > { %3320 = vmatprep.subr.bf16.mxu1 %v3797_v48  ;;  %v3921_v48 = vld [vmem:[%s4869_s1 + $0x1b8] sm:$0xff]  }
  0x3d   : > { %v3901_v8 = vld [vmem:[%s4095_s13 + $0x134] ss:$36 sps:$4 sm:$0xff]  }
  0x3e   : > { %1734 = vmatmul.mubr.bf16.gmra.mrb[12].mxu0 %v3795_v49  ;;  %1830 = vmatmul.mubr.bf16.gmra.mrb[12].mxu1 %v3796_v50  ;;  %v3869_v49 = vld [vmem:[%s4095_s13 + $0x24c] ss:$36 sps:$4 sm:$0xff]   ;;  %v3873_v50 = vld [vmem:[%s4095_s13 + $0x14] ss:$36 sps:$4 sm:$0xff]  }
  0x3f   : > { %3321 = vmatpush3.bf16.msra.mxu1 %v3798_v51  ;;  %1741 = vmatprep.mubr.bf16.mxu0 %v3803_v53  ;;  %v3871_v51 = vld [vmem:[%s4095_s13 + $0x10] ss:$36 sps:$4 sm:$0xff]  }
  0x40   : > { %3322 = vmatprep.subr.bf16.mxu1 %v3799_v52  ;;  %1870 = vmatprep.mubr.bf16.mxu1 %v3807_v54  ;;  %v3874_v52 = vld [vmem:[%s4095_s13 + $0x248] ss:$36 sps:$4 sm:$0xff]   ;;  %v3878_v53 = vld [vmem:[%s4095_s13 + $0x294] ss:$36 sps:$4 sm:$0xff]   ;;  %v3880_v54 = vld [vmem:[%s4095_s13 + $0x5c] ss:$36 sps:$4 sm:$0xff]  }
  0x41   : > { %3431 = vmatpush3.bf16.msra.mxu0 %v3843_v10  ;;  %v3903_v10 = vld [vmem:[%s4095_s13 + $0x368] ss:$36 sps:$4 sm:$0xff]  }
  0x42   : > { %3432 = vmatprep.subr.bf16.mxu0 %v3851_v15  ;;  %v3913_v15 = vld [vmem:[%s4095_s13 + $0x178] ss:$36 sps:$4 sm:$0xff]  }
  0x43   : > { %3323 = vmatpush3.bf16.msra.mxu1 %v3801_v57  ;;  %v3882_v57 = vld [vmem:[%s4095_s13 + $0x290] ss:$36 sps:$4 sm:$0xff]  }
  0x44   : > { %3532 = vmatprep.subr.bf16.mxu1 %v3809_v60  ;;  %v3886_v60 = vld [vmem:[%s4095_s13 + $0xa4] ss:$36 sps:$4 sm:$0xff]  }
  0x45   : > { %3433 = vmatpush3.bf16.msra.mxu0 %v3852_v16  ;;  %v3914_v16 = vld [vmem:[%s4095_s13 + $0x3fc] ss:$36 sps:$4 sm:$0xff]  }
  0x46   : > { %1742 = vmatmul.mubr.bf16.gmra.mrb[16].mxu0 %v3808_v59  ;;  %1871 = vmatmul.mubr.bf16.vlgmr.msra.gmra.mrb[16].mxu1 %v3805_v58  ;;  %v3883_v58 = vld [vmem:[%s4095_s13 + $0x58] ss:$36 sps:$4 sm:$0xff]  }
  0x47   : > { %3533 = vmatpush3.bf16.msra.mxu1 %v3810_v61  ;;  %1749 = vmatprep.mubr.bf16.mxu0 %v3811_v62  ;;  %v3884_v59 = vld [vmem:[%s4095_s13 + $0x2dc] ss:$36 sps:$4 sm:$0xff]  }
  0x48   : > { %1878 = vmatprep.mubr.bf16.mxu1 %v3813_v63  ;;  %3534 = vmatprep.subr.bf16.mxu1 %v3825_v1  ;;  %v3922_v61 = vld [vmem:[%s4869_s1 + $0x218] sm:$0xff]   ;;  %v3935_v62 = vld [vmem:[%s4869_s1 + $0x220] sm:$0xff]  }
  0x49   : > { %3434 = vmatprep.subr.bf16.mxu0 %v3867_v24  ;;  %v3888_v63 = vld [vmem:[%s4095_s13 + $0x2d8] ss:$36 sps:$4 sm:$0xff]   ;;  %v3893_v1 = vld [vmem:[%s4095_s13 + $0x324] ss:$36 sps:$4 sm:$0xff]  }
  0x4a   : > { %3435 = vmatpush3.bf16.msra.mxu0 %v3868_v25  ;;  %v3929_v24 = vld [vmem:[%s4095_s13 + $0x254] ss:$36 sps:$4 sm:$0xff]   ;;  %v3933_v25 = vld [vmem:[%s4095_s13 + $0x1c] ss:$36 sps:$4 sm:$0xff]  }
  0x4b   : > { %3535 = vmatpush3.bf16.msra.mxu1 %v3826_v3  ;;  %3668 = vmatprep.subr.bf16.mxu0 %v3877_v29  ;;  %v3948_v3 = vld [vmem:[%s4869_s1 + $0x228] sm:$0xff]  }
  0x4c   : > { %3536 = vmatprep.subr.bf16.mxu1 %v3842_v9  ;;  %v3974_v9 = vld [vmem:[%s4869_s1 + $0x238] sm:$0xff]  }
  0x4e   : > { %1750 = vmatmul.mubr.bf16.gmra.mrb[20].mxu0 %v3815_v4  ;;  %1879 = vmatmul.mubr.bf16.gmra.mrb[20].mxu1 %v3816_v5  ;;  %v3897_v4 = vld [vmem:[%s4095_s13 + $0x320] ss:$36 sps:$4 sm:$0xff]   ;;  %v3898_v5 = vld [vmem:[%s4095_s13 + $0xe8] ss:$36 sps:$4 sm:$0xff]  }
  0x4f   : > { %1757 = vmatprep.mubr.bf16.mxu0 %v3819_v6  ;;  %1886 = vmatprep.mubr.bf16.mxu1 %v3821_v7  ;;  %v3961_v6 = vld [vmem:[%s4869_s1 + $0x230] sm:$0xff]  }
  0x50   : > { %3537 = vmatpush3.bf16.msra.mxu1 %v3844_v11  ;;  %v3899_v7 = vld [vmem:[%s4095_s13 + $0x36c] ss:$36 sps:$4 sm:$0xff]  }
  0x51   : > { %3538 = vmatprep.subr.bf16.mxu1 %v3859_v18  ;;  %v3904_v11 = vld [vmem:[%s4095_s13 + $0x130] ss:$36 sps:$4 sm:$0xff]   ;;  %v3918_v18 = vld [vmem:[%s4095_s13 + $0x3f8] ss:$36 sps:$4 sm:$0xff]  }
  0x54   : > { %3539 = vmatpush3.bf16.msra.mxu1 %v3860_v19  ;;  %v3919_v19 = vld [vmem:[%s4095_s13 + $0x1c0] ss:$36 sps:$4 sm:$0xff]  }
  0x55   : > { %3540 = vmatprep.subr.bf16.mxu1 %v3875_v26  ;;  %v3931_v26 = vld [vmem:[%s4095_s13 + $0x18] ss:$36 sps:$4 sm:$0xff]  }
  0x56   : > { %1758 = vmatmul.mubr.bf16.gmra.mrb[24].mxu0 %v3823_v12  ;;  %1887 = vmatmul.mubr.bf16.gmra.mrb[24].mxu1 %v3824_v13  ;;  %v3908_v12 = vld [vmem:[%s4095_s13 + $0x3b4] ss:$36 sps:$4 sm:$0xff]   ;;  %v3910_v13 = vld [vmem:[%s4095_s13 + $0x17c] ss:$36 sps:$4 sm:$0xff]  }
  0x57   : > { %1765 = vmatprep.mubr.bf16.mxu0 %v3829_v14  ;;  %1894 = vmatprep.mubr.bf16.mxu1 %v3831_v17  ;;  %v3912_v14 = vld [vmem:[%s4095_s13 + $0x3b0] ss:$36 sps:$4 sm:$0xff]   ;;  %v3916_v17 = vld [vmem:[%s4095_s13 + $0x1c4] ss:$36 sps:$4 sm:$0xff]  }
  0x58   : > { %3541 = vmatpush3.bf16.msra.mxu1 %v3876_v28  ;;  %v3936_v28 = vld [vmem:[%s4095_s13 + $0x29c] ss:$36 sps:$4 sm:$0xff]  }
  0x59   : > { %3542 = vmatprep.subr.bf16.mxu1 %v3890_v33  ;;  %v3944_v33 = vld [vmem:[%s4095_s13 + $0xac] ss:$36 sps:$4 sm:$0xff]  }
  0x5c   : > { %3543 = vmatpush3.bf16.msra.mxu1 %v3891_v35  ;;  %v3947_v35 = vld [vmem:[%s4095_s13 + $0xa8] ss:$36 sps:$4 sm:$0xff]  }
  0x5d   : > { %3544 = vmatprep.subr.bf16.mxu1 %v3905_v41  ;;  %v3957_v41 = vld [vmem:[%s4095_s13 + $0x13c] ss:$36 sps:$4 sm:$0xff]  }
  0x5e   : > { %1766 = vmatmul.mubr.bf16.gmra.mrb[28].mxu0 %v3833_v20  ;;  %1895 = vmatmul.mubr.bf16.gmra.mrb[28].mxu1 %v3834_v21  ;;  %v3923_v20 = vld [vmem:[%s4095_s13 + $0x444] ss:$36 sps:$4 sm:$0xff]   ;;  %v3925_v21 = vld [vmem:[%s4095_s13 + $0x20c] ss:$36 sps:$4 sm:$0xff]  }
  0x5f   : > { %1773 = vmatprep.mubr.bf16.mxu0 %v3835_v22  ;;  %1902 = vmatprep.mubr.bf16.mxu1 %v3837_v23  ;;  %v3927_v22 = vld [vmem:[%s4095_s13 + $0x440] ss:$36 sps:$4 sm:$0xff]   ;;  %v3928_v23 = vld [vmem:[%s4095_s13 + $0x208] ss:$36 sps:$4 sm:$0xff]  }
  0x60   : > { %3545 = vmatpush3.bf16.msra.mxu1 %v3906_v42  ;;  %v3959_v42 = vld [vmem:[%s4095_s13 + $0x370] ss:$36 sps:$4 sm:$0xff]  }
  0x61   : > { %3546 = vmatprep.subr.bf16.mxu1 %v3920_v47  ;;  %v3967_v47 = vld [vmem:[%s4095_s13 + $0x180] ss:$36 sps:$4 sm:$0xff]  }
  0x64   : > { %3547 = vmatpush3.bf16.msra.mxu1 %v3921_v48  ;;  %v3968_v48 = vld [vmem:[%s4095_s13 + $0x404] ss:$36 sps:$4 sm:$0xff]  }
  0x66   : > { %1774 = vmatmul.mubr.bf16.gmra.mrb[32].mxu0 %v3839_v27  ;;  %1903 = vmatmul.mubr.bf16.gmra.mrb[32].mxu1 %v3840_v30  ;;  %v3934_v27 = vld [vmem:[%s4095_s13 + $0x250] ss:$36 sps:$4 sm:$0xff]   ;;  %v3940_v30 = vld [vmem:[%s4095_s13 + $0x298] ss:$36 sps:$4 sm:$0xff]  }
  0x67   : > { %1781 = vmatprep.mubr.bf16.mxu0 %v3845_v31  ;;  %1910 = vmatprep.mubr.bf16.mxu1 %v3847_v32  ;;  %v3941_v31 = vld [vmem:[%s4095_s13 + $0x60] ss:$36 sps:$4 sm:$0xff]  }
  0x68   : > { %v3942_v32 = vld [vmem:[%s4095_s13 + $0x2e4] ss:$36 sps:$4 sm:$0xff]  }
  0x6e   : > { %1782 = vmatmul.mubr.bf16.gmra.mrb[36].mxu0 %v3849_v34  ;;  %1911 = vmatmul.mubr.bf16.gmra.mrb[36].mxu1 %v3850_v36  ;;  %v3946_v34 = vld [vmem:[%s4095_s13 + $0x2e0] ss:$36 sps:$4 sm:$0xff]   ;;  %v3949_v36 = vld [vmem:[%s4095_s13 + $0x32c] ss:$36 sps:$4 sm:$0xff]  }
  0x6f   : > { %1789 = vmatprep.mubr.bf16.mxu0 %v3853_v37  ;;  %1918 = vmatprep.mubr.bf16.mxu1 %v3855_v38  ;;  %v3951_v37 = vld [vmem:[%s4095_s13 + $0xf4] ss:$36 sps:$4 sm:$0xff]   ;;  %v3953_v38 = vld [vmem:[%s4095_s13 + $0x328] ss:$36 sps:$4 sm:$0xff]  }
  0x76   : > { %1790 = vmatmul.mubr.bf16.gmra.mrb[40].mxu0 %v3857_v39  ;;  %1919 = vmatmul.mubr.bf16.gmra.mrb[40].mxu1 %v3858_v40  ;;  %v3954_v39 = vld [vmem:[%s4095_s13 + $0xf0] ss:$36 sps:$4 sm:$0xff]  }
  0x77   : > { %1797 = vmatprep.mubr.bf16.mxu0 %v3861_v43  ;;  %1926 = vmatprep.mubr.bf16.mxu1 %v3863_v44  ;;  %v3955_v40 = vld [vmem:[%s4095_s13 + $0x374] ss:$36 sps:$4 sm:$0xff]   ;;  %v3962_v44 = vld [vmem:[%s4095_s13 + $0x3bc] ss:$36 sps:$4 sm:$0xff]  }
  0x78   : > { %v3960_v43 = vld [vmem:[%s4095_s13 + $0x138] ss:$36 sps:$4 sm:$0xff]  }
  0x7e   : > { %1798 = vmatmul.mubr.bf16.gmra.mrb[44].mxu0 %v3865_v45  ;;  %1927 = vmatmul.mubr.bf16.gmra.mrb[44].mxu1 %v3866_v46  ;;  %v3964_v45 = vld [vmem:[%s4095_s13 + $0x184] ss:$36 sps:$4 sm:$0xff]   ;;  %v3966_v46 = vld [vmem:[%s4095_s13 + $0x3b8] ss:$36 sps:$4 sm:$0xff]  }
  0x7f   : > { %1934 = vmatprep.mubr.bf16.mxu1 %v3869_v49  ;;  %2031 = vmatprep.mubr.bf16.mxu0 %v3873_v50  ;;  %v3970_v49 = vld [vmem:[%s4095_s13 + $0x1cc] ss:$36 sps:$4 sm:$0xff]   ;;  %v3972_v50 = vld [vmem:[%s4095_s13 + $0x400] ss:$36 sps:$4 sm:$0xff]  }
  0x86   : > { %1935 = vmatmul.mubr.bf16.gmra.mrb[48].mxu1 %v3874_v52  ;;  %2032 = vmatmul.mubr.bf16.vlgmr.msra.gmra.mrb[48].mxu0 %v3871_v51  ;;  %v3973_v51 = vld [vmem:[%s4095_s13 + $0x1c8] ss:$36 sps:$4 sm:$0xff]  }
  0x87   : > { %3669 = vmatpush3.bf16.msra.mxu0 %v3877_v29  ;;  %1942 = vmatprep.mubr.bf16.mxu1 %v3878_v53  ;;  %v3938_v29 = vld [vmem:[%s4095_s13 + $0x64] ss:$36 sps:$4 sm:$0xff]   ;;  %v3975_v52 = vld [vmem:[%s4095_s13 + $0x44c] ss:$36 sps:$4 sm:$0xff]   ;;  %v3977_v53 = vld [vmem:[%s4095_s13 + $0x214] ss:$36 sps:$4 sm:$0xff]  }
  0x88   : > { %2039 = vmatprep.mubr.bf16.mxu0 %v3880_v54  ;;  %3670 = vmatprep.subr.bf16.mxu0 %v3892_v55 }
  0x8b   : > { %3671 = vmatpush3.bf16.msra.mxu0 %v3892_v55 }
  0x8c   : > { %3672 = vmatprep.subr.bf16.mxu0 %v3907_v56 }
  0x8e   : > { %1943 = vmatmul.mubr.bf16.gmra.mrb[52].mxu1 %v3882_v57  ;;  %2040 = vmatmul.mubr.bf16.gmra.mrb[52].mxu0 %v3883_v58  ;;  %v3979_v58 = vld [vmem:[%s4095_s13 + $0x448] ss:$36 sps:$4 sm:$0xff]  }
  0x8f   : > { %1950 = vmatprep.mubr.bf16.mxu1 %v3884_v59  ;;  %2047 = vmatprep.mubr.bf16.mxu0 %v3886_v60  ;;  %v3980_v59 = vld [vmem:[%s4095_s13 + $0x210] ss:$36 sps:$4 sm:$0xff]  }
  0x90   : > { %3673 = vmatpush3.bf16.msra.mxu0 %v3907_v56 }
  0x91   : > { %3674 = vmatprep.subr.bf16.mxu0 %v3922_v61 }
  0x94   : > { %3675 = vmatpush3.bf16.msra.mxu0 %v3922_v61 }
  0x95   : > { %3676 = vmatprep.subr.bf16.mxu0 %v3935_v62 }
  0x96   : > { %1951 = vmatmul.mubr.bf16.gmra.mrb[56].mxu1 %v3888_v63  ;;  %2048 = vmatmul.mubr.bf16.gmra.mrb[56].mxu0 %v3889_v0  ;;  %v3981_v0 = vld [vmem:[%s4095_s13 + $0x25c] ss:$36 sps:$4 sm:$0xff]  }
  0x97   : > { %1958 = vmatprep.mubr.bf16.mxu1 %v3893_v1  ;;  %2055 = vmatprep.mubr.bf16.mxu0 %v3895_v2  ;;  %v3983_v1 = vld [vmem:[%s4095_s13 + $0x20] ss:$36 sps:$4 sm:$0xff]  }
  0x98   : > { %3677 = vmatpush3.bf16.msra.mxu0 %v3935_v62 }
  0x99   : > { %3678 = vmatprep.subr.bf16.mxu0 %v3948_v3 }
  0x9c   : > { %3679 = vmatpush3.bf16.msra.mxu0 %v3948_v3 }
  0x9d   : > { %3680 = vmatprep.subr.bf16.mxu0 %v3961_v6 }
  0x9e   : > { %1959 = vmatmul.mubr.bf16.gmra.mrb[60].mxu1 %v3897_v4  ;;  %2056 = vmatmul.mubr.bf16.gmra.mrb[60].mxu0 %v3898_v5 }
  0x9f   : > { %1966 = vmatprep.mubr.bf16.mxu1 %v3899_v7  ;;  %2063 = vmatprep.mubr.bf16.mxu0 %v3901_v8 }
  0xa0   : > { %3681 = vmatpush3.bf16.msra.mxu0 %v3961_v6 }
  0xa1   : > { %3682 = vmatprep.subr.bf16.mxu0 %v3974_v9 }
  0xa4   : > { %3683 = vmatpush3.bf16.msra.mxu0 %v3974_v9 }
  0xa6   : > { %1967 = vmatmul.mubr.bf16.gmra.mrb[64].mxu1 %v3903_v10  ;;  %2064 = vmatmul.mubr.bf16.gmra.mrb[64].mxu0 %v3904_v11  ;;  %v3984_v10 = vld [vmem:[%s4095_s13 + $0x258] ss:$36 sps:$4 sm:$0xff]   ;;  %v3985_v11 = vld [vmem:[%s4095_s13 + $0x68] ss:$36 sps:$4 sm:$0xff]  }
  0xa7   : > { %1974 = vmatprep.mubr.bf16.mxu1 %v3908_v12  ;;  %2071 = vmatprep.mubr.bf16.mxu0 %v3910_v13 }
  0xae   : > { %1975 = vmatmul.mubr.bf16.gmra.mrb[68].mxu1 %v3912_v14  ;;  %2072 = vmatmul.mubr.bf16.gmra.mrb[68].mxu0 %v3913_v15 }
  0xaf   : > { %1982 = vmatprep.mubr.bf16.mxu1 %v3914_v16  ;;  %2079 = vmatprep.mubr.bf16.mxu0 %v3916_v17  ;;  %v3986_v16 = vld [vmem:[%s4095_s13 + $0x2a4] ss:$36 sps:$4 sm:$0xff]   ;;  %v3988_v17 = vld [vmem:[%s4095_s13 + $0xb0] ss:$36 sps:$4 sm:$0xff]  }
  0xb6   : > { %1983 = vmatmul.mubr.bf16.gmra.mrb[72].mxu1 %v3918_v18  ;;  %2080 = vmatmul.mubr.bf16.gmra.mrb[72].mxu0 %v3919_v19 }
  0xb7   : > { %1990 = vmatprep.mubr.bf16.mxu1 %v3923_v20  ;;  %2087 = vmatprep.mubr.bf16.mxu0 %v3925_v21 }
  0xbe   : > { %1991 = vmatmul.mubr.bf16.gmra.mrb[76].mxu1 %v3927_v22  ;;  %2088 = vmatmul.mubr.bf16.gmra.mrb[76].mxu0 %v3928_v23 }
  0xbf   : > { %2095 = vmatprep.mubr.bf16.mxu0 %v3929_v24  ;;  %2192 = vmatprep.mubr.bf16.mxu1 %v3933_v25 }
  0xc6   : > { %2096 = vmatmul.mubr.bf16.gmra.mrb[80].mxu0 %v3934_v27  ;;  %2193 = vmatmul.mubr.bf16.vlgmr.msra.gmra.mrb[80].mxu1 %v3931_v26  ;;  %v3989_v26 = vld [vmem:[%s4095_s13 + $0x2a0] ss:$36 sps:$4 sm:$0xff]   ;;  %v3990_v27 = vld [vmem:[%s4095_s13 + $0xf8] ss:$36 sps:$4 sm:$0xff]  }
  0xc7   : > { %2103 = vmatprep.mubr.bf16.mxu0 %v3936_v28  ;;  %2200 = vmatprep.mubr.bf16.mxu1 %v3938_v29 }
  0xce   : > { %2104 = vmatmul.mubr.bf16.gmra.mrb[84].mxu0 %v3940_v30  ;;  %2201 = vmatmul.mubr.bf16.gmra.mrb[84].mxu1 %v3941_v31 }
  0xcf   : > { %2111 = vmatprep.mubr.bf16.mxu0 %v3942_v32  ;;  %2208 = vmatprep.mubr.bf16.mxu1 %v3944_v33  ;;  %v3991_v32 = vld [vmem:[%s4095_s13 + $0x2ec] ss:$36 sps:$4 sm:$0xff]   ;;  %v3993_v33 = vld [vmem:[%s4095_s13 + $0x140] ss:$36 sps:$4 sm:$0xff]  }
  0xd6   : > { %2112 = vmatmul.mubr.bf16.gmra.mrb[88].mxu0 %v3946_v34  ;;  %2209 = vmatmul.mubr.bf16.gmra.mrb[88].mxu1 %v3947_v35 }
  0xd7   : > { %2119 = vmatprep.mubr.bf16.mxu0 %v3949_v36  ;;  %2216 = vmatprep.mubr.bf16.mxu1 %v3951_v37 }
  0xde   : > { %2120 = vmatmul.mubr.bf16.gmra.mrb[92].mxu0 %v3953_v38  ;;  %2217 = vmatmul.mubr.bf16.gmra.mrb[92].mxu1 %v3954_v39 }
  0xdf   : > { %2127 = vmatprep.mubr.bf16.mxu0 %v3955_v40  ;;  %2224 = vmatprep.mubr.bf16.mxu1 %v3957_v41 }
  0xe6   : > { %2128 = vmatmul.mubr.bf16.gmra.mrb[96].mxu0 %v3959_v42  ;;  %2225 = vmatmul.mubr.bf16.gmra.mrb[96].mxu1 %v3960_v43  ;;  %v3994_v42 = vld [vmem:[%s4095_s13 + $0x2e8] ss:$36 sps:$4 sm:$0xff]  }
  0xe7   : > { %2135 = vmatprep.mubr.bf16.mxu0 %v3962_v44  ;;  %2232 = vmatprep.mubr.bf16.mxu1 %v3964_v45  ;;  %v3995_v43 = vld [vmem:[%s4095_s13 + $0x188] ss:$36 sps:$4 sm:$0xff]  }
  0xee   : > { %2136 = vmatmul.mubr.bf16.gmra.mrb[100].mxu0 %v3966_v46  ;;  %2233 = vmatmul.mubr.bf16.gmra.mrb[100].mxu1 %v3967_v47 }
  0xef   : > { %2143 = vmatprep.mubr.bf16.mxu0 %v3968_v48  ;;  %2240 = vmatprep.mubr.bf16.mxu1 %v3970_v49  ;;  %v3996_v48 = vld [vmem:[%s4095_s13 + $0x334] ss:$36 sps:$4 sm:$0xff]  }
  0xf0   : > { %v3998_v49 = vld [vmem:[%s4095_s13 + $0x1d0] ss:$36 sps:$4 sm:$0xff]  }
  0xf6   : > { %2144 = vmatmul.mubr.bf16.gmra.mrb[104].mxu0 %v3972_v50  ;;  %2241 = vmatmul.mubr.bf16.gmra.mrb[104].mxu1 %v3973_v51 }
  0xf7   : > { %2151 = vmatprep.mubr.bf16.mxu0 %v3975_v52  ;;  %2248 = vmatprep.mubr.bf16.mxu1 %v3977_v53 }
  0xf9   : > { %v3284_v54 = vpop.f32.mrb[0].mxu1  ;;  %v3212_v55 = vpop.f32.mrb[0].mxu0 }
  0xfa   : > { %v3285_v56 = vpop.f32.mrb[1].mxu1  ;;  %v3213_v57 = vpop.f32.mrb[1].mxu0 }
  0xfb   : > { %v4398_v60 = vadd.f32 %v3285_v56, %v3284_v54  ;;  %v3287_v61 = vpop.f32.mrb[2].mxu1  ;;  %v4400_v62 = vadd.f32 %v3213_v57, %v3212_v55  ;;  %v3215_v63 = vpop.f32.mrb[2].mxu0 }
  0xfc   : > { %v3288_v2 = vpop.f32.mrb[3].mxu1  ;;  %v3216_v3 = vpop.f32.mrb[3].mxu0 }
  0xfd   : > { %v4404_v4 = vadd.f32 %v3288_v2, %v3287_v61  ;;  %v4406_v5 = vadd.f32 %v3216_v3, %v3215_v63  ;;  %v4001_v2 = vld [vmem:[%s4095_s13 + $0x37c] ss:$36 sps:$4 sm:$0xff]  }
  0xfe   : > { %2152 = vmatmul.mubr.bf16.gmra.mrb[108].mxu0 %v3979_v58  ;;  %2249 = vmatmul.mubr.bf16.gmra.mrb[108].mxu1 %v3980_v59  ;;  %v3999_v58 = vld [vmem:[%s4095_s13 + $0x330] ss:$36 sps:$4 sm:$0xff]   ;;  %v4000_v59 = vld [vmem:[%s4095_s13 + $0x218] ss:$36 sps:$4 sm:$0xff]   ;;  %v4003_v3 = vld [vmem:[%s4095_s13 + $0x260] ss:$36 sps:$4 sm:$0xff]  }
  0xff   : > { %2256 = vmatprep.mubr.bf16.mxu1 %v3981_v0  ;;  %3684 = vmatprep.mubr.bf16.mxu0 %v3983_v1 }
 0x101   : > { %v3290_v6 = vpop.f32.mrb[4].mxu1  ;;  %v3218_v7 = vpop.f32.mrb[4].mxu0 }
 0x102   : > { %v3291_v8 = vpop.f32.mrb[5].mxu1  ;;  %v3219_v9 = vpop.f32.mrb[5].mxu0 }
 0x103   : > { %v4410_v12 = vadd.f32 %v3291_v8, %v3290_v6  ;;  %v3293_v13 = vpop.f32.mrb[6].mxu1  ;;  %v4412_v14 = vadd.f32 %v3219_v9, %v3218_v7  ;;  %v3221_v15 = vpop.f32.mrb[6].mxu0 }
 0x104   : > { %v3294_v18 = vpop.f32.mrb[7].mxu1  ;;  %v3222_v19 = vpop.f32.mrb[7].mxu0 }
 0x105   : > { %v4416_v20 = vadd.f32 %v3294_v18, %v3293_v13  ;;  %v4418_v21 = vadd.f32 %v3222_v19, %v3221_v15  ;;  %v4004_v18 = vld [vmem:[%s4095_s13 + $0x378] ss:$36 sps:$4 sm:$0xff]   ;;  %v4005_v19 = vld [vmem:[%s4095_s13 + $0x2a8] ss:$36 sps:$4 sm:$0xff]  }
 0x106   : > { %2257 = vmatmul.mubr.bf16.gmra.mrb[112].mxu1 %v3984_v10  ;;  %3685 = vmatmul.mubr.bf16.vlgmr.msra.gmra.mrb[112].mxu0 %v3985_v11 }
 0x107   : > { %2264 = vmatprep.mubr.bf16.mxu1 %v3986_v16  ;;  %3688 = vmatprep.mubr.bf16.mxu0 %v3988_v17 }
 0x109   : > { %v3296_v22 = vpop.f32.mrb[8].mxu1  ;;  %v3224_v23 = vpop.f32.mrb[8].mxu0 }
 0x10a   : > { %v3297_v24 = vpop.f32.mrb[9].mxu1  ;;  %v3225_v25 = vpop.f32.mrb[9].mxu0 }
 0x10b   : > { %v4422_v28 = vadd.f32 %v3297_v24, %v3296_v22  ;;  %v3299_v29 = vpop.f32.mrb[10].mxu1  ;;  %v4424_v30 = vadd.f32 %v3225_v25, %v3224_v23  ;;  %v3227_v31 = vpop.f32.mrb[10].mxu0  ;;  %v4006_v25 = vld [vmem:[%s4095_s13 + $0x3c4] ss:$36 sps:$4 sm:$0xff]  }
 0x10c   : > { %v3300_v34 = vpop.f32.mrb[11].mxu1  ;;  %v3228_v35 = vpop.f32.mrb[11].mxu0 }
 0x10d   : > { %v4428_v36 = vadd.f32 %v3300_v34, %v3299_v29  ;;  %v4430_v37 = vadd.f32 %v3228_v35, %v3227_v31 }
 0x10e   : > { %2265 = vmatmul.mubr.bf16.gmra.mrb[116].mxu1 %v3989_v26  ;;  %3689 = vmatmul.mubr.bf16.gmra.mrb[116].mxu0 %v3990_v27  ;;  %v4008_v26 = vld [vmem:[%s4095_s13 + $0x2f0] ss:$36 sps:$4 sm:$0xff]  }
 0x10f   : > { %2272 = vmatprep.mubr.bf16.mxu1 %v3991_v32  ;;  %3692 = vmatprep.mubr.bf16.mxu0 %v3993_v33 }
 0x111   : > { %v3302_v38 = vpop.f32.mrb[12].mxu1  ;;  %v3230_v39 = vpop.f32.mrb[12].mxu0 }
 0x112   : > { %v3303_v40 = vpop.f32.mrb[13].mxu1  ;;  %v3231_v41 = vpop.f32.mrb[13].mxu0 }
 0x113   : > { %v4434_v44 = vadd.f32 %v3303_v40, %v3302_v38  ;;  %v3305_v45 = vpop.f32.mrb[14].mxu1  ;;  %v4436_v46 = vadd.f32 %v3231_v41, %v3230_v39  ;;  %v3233_v47 = vpop.f32.mrb[14].mxu0  ;;  %v4009_v40 = vld [vmem:[%s4095_s13 + $0x3c0] ss:$36 sps:$4 sm:$0xff]   ;;  %v4010_v41 = vld [vmem:[%s4095_s13 + $0x338] ss:$36 sps:$4 sm:$0xff]  }
 0x114   : > { %v3306_v50 = vpop.f32.mrb[15].mxu1  ;;  %v3234_v51 = vpop.f32.mrb[15].mxu0 }
 0x115   : > { %v4440_v52 = vadd.f32 %v3306_v50, %v3305_v45  ;;  %v4442_v53 = vadd.f32 %v3234_v51, %v3233_v47  ;;  %v4011_v47 = vld [vmem:[%s4095_s13 + $0x40c] ss:$36 sps:$4 sm:$0xff]  }
 0x116   : > { %2273 = vmatmul.mubr.bf16.gmra.mrb[120].mxu1 %v3994_v42  ;;  %3693 = vmatmul.mubr.bf16.gmra.mrb[120].mxu0 %v3995_v43 }
 0x117   : > { %2280 = vmatprep.mubr.bf16.mxu1 %v3996_v48  ;;  %3696 = vmatprep.mubr.bf16.mxu0 %v3998_v49  ;;  %v4013_v48 = vld [vmem:[%s4095_s13 + $0x380] ss:$36 sps:$4 sm:$0xff]  }
 0x119   : > { %v3324_v54 = vpop.f32.mrb[16].mxu1  ;;  %v3236_v55 = vpop.f32.mrb[16].mxu0 }
 0x11a   : > { %v3325_v56 = vpop.f32.mrb[17].mxu1  ;;  %v3237_v57 = vpop.f32.mrb[17].mxu0 }
 0x11b   : > { %v3326_v61 = vadd.f32 %v3325_v56, %v3324_v54  ;;  %v3327_v63 = vpop.f32.mrb[18].mxu1  ;;  %v4446_v0 = vadd.f32 %v3237_v57, %v3236_v55  ;;  %v3239_v1 = vpop.f32.mrb[18].mxu0 }
 0x11c   : > { %v3328_v6 = vpop.f32.mrb[19].mxu1  ;;  %v3240_v7 = vpop.f32.mrb[19].mxu0 }
 0x11d   : > { %v4451_v8 = vadd.f32 %v3326_v61, %v4400_v62  ;;  %v3329_v9 = vadd.f32 %v3328_v6, %v3327_v63  ;;  %v4453_v10 = vadd.f32 %v3240_v7, %v3239_v1  ;;  %v4014_v61 = vld [vmem:[%s4095_s13 + $0x408] ss:$36 sps:$4 sm:$0xff]   ;;  %v4016_v6 = vld [vmem:[%s4095_s13 + $0x454] ss:$36 sps:$4 sm:$0xff]  }
 0x11e   : > { %2281 = vmatmul.mubr.bf16.gmra.mrb[124].mxu1 %v3999_v58  ;;  %3697 = vmatmul.mubr.bf16.gmra.mrb[124].mxu0 %v4000_v59  ;;  %v4015_v63 = vld [vmem:[%s4095_s13 + $0x3c8] ss:$36 sps:$4 sm:$0xff]   ;;  %v4018_v7 = vld [vmem:[%s4095_s13 + $0x410] ss:$36 sps:$4 sm:$0xff]  }
 0x11f   : > { %v4456_v11 = vadd.f32 %v3329_v9, %v4406_v5  ;;  %2288 = vmatprep.mubr.bf16.mxu1 %v4001_v2  ;;  %3700 = vmatprep.mubr.bf16.mxu0 %v4003_v3 }
 0x121   : > { %v3330_v13 = vpop.f32.mrb[20].mxu1  ;;  %v3242_v15 = vpop.f32.mrb[20].mxu0 }
 0x122   : > { %v3331_v16 = vpop.f32.mrb[21].mxu1  ;;  %v3243_v17 = vpop.f32.mrb[21].mxu0 }
 0x123   : > { %v3332_v62 = vadd.f32 %v3331_v16, %v3330_v13  ;;  %v3333_v22 = vpop.f32.mrb[22].mxu1  ;;  %v4460_v23 = vadd.f32 %v3243_v17, %v3242_v15  ;;  %v3245_v24 = vpop.f32.mrb[22].mxu0 }
 0x124   : > { %v3334_v27 = vpop.f32.mrb[23].mxu1  ;;  %v3246_v5 = vpop.f32.mrb[23].mxu0 }
 0x125   : > { %v4465_v29 = vadd.f32 %v3332_v62, %v4412_v14  ;;  %v3335_v31 = vadd.f32 %v3334_v27, %v3333_v22  ;;  %v4467_v32 = vadd.f32 %v3246_v5, %v3245_v24  ;;  %v4019_v24 = vld [vmem:[%s4095_s13 + $0x450] ss:$36 sps:$4 sm:$0xff]  }
 0x126   : > { %2289 = vmatmul.mubr.bf16.gmra.mrb[128].mxu1 %v4004_v18  ;;  %3701 = vmatmul.mubr.bf16.gmra.mrb[128].mxu0 %v4005_v19 }
 0x127   : > { %v4470_v33 = vadd.f32 %v3335_v31, %v4418_v21  ;;  %2296 = vmatprep.mubr.bf16.mxu1 %v4006_v25  ;;  %3704 = vmatprep.mubr.bf16.mxu0 %v4008_v26  ;;  %v4020_v25 = vld [vmem:[%s4095_s13 + $0x458] ss:$36 sps:$4 sm:$0xff]  }
 0x129   : > { %v3336_v34 = vpop.f32.mrb[24].mxu1  ;;  %v3248_v35 = vpop.f32.mrb[24].mxu0 }
 0x12a   : > { %v3337_v38 = vpop.f32.mrb[25].mxu1  ;;  %v3249_v39 = vpop.f32.mrb[25].mxu0 }
 0x12b   : > { %v3338_v14 = vadd.f32 %v3337_v38, %v3336_v34  ;;  %v3339_v42 = vpop.f32.mrb[26].mxu1  ;;  %v4474_v43 = vadd.f32 %v3249_v39, %v3248_v35  ;;  %v3251_v45 = vpop.f32.mrb[26].mxu0 }
 0x12c   : > { %v3340_v49 = vpop.f32.mrb[27].mxu1  ;;  %v3252_v21 = vpop.f32.mrb[27].mxu0 }
 0x12d   : > { %v4479_v50 = vadd.f32 %v3338_v14, %v4424_v30  ;;  %v3341_v51 = vadd.f32 %v3340_v49, %v3339_v42  ;;  %v4481_v54 = vadd.f32 %v3252_v21, %v3251_v45 }
 0x12e   : > { %2297 = vmatmul.mubr.bf16.gmra.mrb[132].mxu1 %v4009_v40  ;;  %3705 = vmatmul.mubr.bf16.gmra.mrb[132].mxu0 %v4010_v41 }
 0x12f   : > { %v4484_v55 = vadd.f32 %v3341_v51, %v4430_v37  ;;  %2304 = vmatprep.mubr.bf16.mxu1 %v4011_v47  ;;  %3708 = vmatprep.mubr.bf16.mxu0 %v4013_v48 }
 0x131   : > { %v3342_v56 = vpop.f32.mrb[28].mxu1  ;;  %v3254_v57 = vpop.f32.mrb[28].mxu0 }
 0x132   : > { %v3343_v58 = vpop.f32.mrb[29].mxu1  ;;  %v3255_v59 = vpop.f32.mrb[29].mxu0 }
 0x133   : > { %v3344_v30 = vadd.f32 %v3343_v58, %v3342_v56  ;;  %v3345_v1 = vpop.f32.mrb[30].mxu1  ;;  %v4488_v2 = vadd.f32 %v3255_v59, %v3254_v57  ;;  %v3257_v3 = vpop.f32.mrb[30].mxu0 }
 0x134   : > { %v3346_v9 = vpop.f32.mrb[31].mxu1  ;;  %v3258_v37 = vpop.f32.mrb[31].mxu0 }
 0x135   : > { %v4493_v13 = vadd.f32 %v3344_v30, %v4436_v46  ;;  %v3347_v15 = vadd.f32 %v3346_v9, %v3345_v1  ;;  %v4495_v16 = vadd.f32 %v3258_v37, %v3257_v3 }
 0x136   : > { %2305 = vmatmul.mubr.bf16.gmra.mrb[136].mxu1 %v4014_v61  ;;  %3709 = vmatmul.mubr.bf16.gmra.mrb[136].mxu0 %v4015_v63 }
 0x137   : > { %v4498_v17 = vadd.f32 %v3347_v15, %v4442_v53  ;;  %2312 = vmatprep.mubr.bf16.mxu1 %v4016_v6  ;;  %3712 = vmatprep.mubr.bf16.mxu0 %v4018_v7 }
 0x139   : > { %v3348_v18 = vpop.f32.mrb[32].mxu1  ;;  %v3260_v19 = vpop.f32.mrb[32].mxu0 }
 0x13a   : > { %v3349_v62 = vpop.f32.mrb[33].mxu1  ;;  %v3261_v22 = vpop.f32.mrb[33].mxu0 }
 0x13b   : > { %v3350_v26 = vadd.f32 %v3349_v62, %v3348_v18  ;;  %v3351_v27 = vpop.f32.mrb[34].mxu1  ;;  %v3262_v46 = vadd.f32 %v3261_v22, %v3260_v19  ;;  %v3263_v5 = vpop.f32.mrb[34].mxu0 }
 0x13c   : > { %v3352_v31 = vpop.f32.mrb[35].mxu1  ;;  %v3264_v34 = vpop.f32.mrb[35].mxu0 }
 0x13d   : > { %v4503_v35 = vadd.f32 %v3350_v26, %v4446_v0  ;;  %v3353_v38 = vadd.f32 %v3352_v31, %v3351_v27  ;;  %v3265_v53 = vadd.f32 %v3264_v34, %v3263_v5 }
 0x13e   : > { %2313 = vmatmul.mubr.bf16.gmra.mrb[140].mxu1 %v4019_v24  ;;  %3713 = vmatmul.mubr.bf16.gmra.mrb[140].mxu0 %v4020_v25 }
 0x13f   : > { %v4506_v39 = vadd.f32 %v3353_v38, %v4453_v10 }
 0x141   : > { %v3354_v40 = vpop.f32.mrb[36].mxu1  ;;  %v3266_v41 = vpop.f32.mrb[36].mxu0 }
 0x142   : > { %v3355_v14 = vpop.f32.mrb[37].mxu1  ;;  %v3267_v42 = vpop.f32.mrb[37].mxu0 }
 0x143   : > { %v3356_v45 = vadd.f32 %v3355_v14, %v3354_v40  ;;  %v3357_v47 = vpop.f32.mrb[38].mxu1  ;;  %v3268_v48 = vadd.f32 %v3267_v42, %v3266_v41  ;;  %v3269_v49 = vpop.f32.mrb[38].mxu0 }
 0x144   : > { %v3358_v21 = vpop.f32.mrb[39].mxu1  ;;  %v3270_v51 = vpop.f32.mrb[39].mxu0 }
 0x145   : > { %v4509_v0 = vadd.f32 %v3356_v45, %v4460_v23  ;;  %v3359_v56 = vadd.f32 %v3358_v21, %v3357_v47  ;;  %v3271_v57 = vadd.f32 %v3270_v51, %v3269_v49 }
 0x147   : > { %v4512_v58 = vadd.f32 %v3359_v56, %v4467_v32 }
 0x149   : > { %v3360_v10 = vpop.f32.mrb[40].mxu1  ;;  %v3272_v59 = vpop.f32.mrb[40].mxu0 }
 0x14a   : > { %v3361_v61 = vpop.f32.mrb[41].mxu1  ;;  %v3273_v63 = vpop.f32.mrb[41].mxu0 }
 0x14b   : > { %v3362_v30 = vadd.f32 %v3361_v61, %v3360_v10  ;;  %v3363_v1 = vpop.f32.mrb[42].mxu1  ;;  %v4514_v3 = vadd.f32 %v3273_v63, %v3272_v59  ;;  %v3275_v6 = vpop.f32.mrb[42].mxu0 }
 0x14c   : > { %v3364_v7 = vpop.f32.mrb[43].mxu1  ;;  %v3276_v9 = vpop.f32.mrb[43].mxu0 }
 0x14d   : > { %v4517_v37 = vadd.f32 %v3362_v30, %v4474_v43  ;;  %v3365_v23 = vadd.f32 %v3364_v7, %v3363_v1  ;;  %v3277_v15 = vadd.f32 %v3276_v9, %v3275_v6 }
 0x14f   : > { %v4520_v18 = vadd.f32 %v3365_v23, %v4481_v54 }
 0x151   : > { %v3366_v32 = vpop.f32.mrb[44].mxu1  ;;  %v3278_v19 = vpop.f32.mrb[44].mxu0 }
 0x152   : > { %v3367_v62 = vpop.f32.mrb[45].mxu1  ;;  %v3279_v22 = vpop.f32.mrb[45].mxu0 }
 0x153   : > { %v3368_v24 = vadd.f32 %v3367_v62, %v3366_v32  ;;  %v3369_v25 = vpop.f32.mrb[46].mxu1  ;;  %v4522_v26 = vadd.f32 %v3279_v22, %v3278_v19  ;;  %v3281_v27 = vpop.f32.mrb[46].mxu0 }
 0x154   : > { %v3370_v5 = vpop.f32.mrb[47].mxu1  ;;  %v3282_v31 = vpop.f32.mrb[47].mxu0 }
 0x155   : > { %v4525_v34 = vadd.f32 %v3368_v24, %v4488_v2  ;;  %v3371_v43 = vadd.f32 %v3370_v5, %v3369_v25  ;;  %v4527_v38 = vadd.f32 %v3282_v31, %v3281_v27 }
 0x157   : > { %v4530_v54 = vadd.f32 %v3371_v43, %v4495_v16 }
 0x159   : > { %v3372_v40 = vpop.f32.mrb[48].mxu1  ;;  %v3436_v41 = vpop.f32.mrb[48].mxu0 }
 0x15a   : > { %v3373_v14 = vpop.f32.mrb[49].mxu1  ;;  %v3437_v42 = vpop.f32.mrb[49].mxu0 }
 0x15b   : > { %v3374_v45 = vadd.f32 %v3373_v14, %v3372_v40  ;;  %v3438_v47 = vadd.f32 %v3437_v42, %v3436_v41  ;;  %v3375_v49 = vpop.f32.mrb[50].mxu1  ;;  %v3439_v21 = vpop.f32.mrb[50].mxu0 }
 0x15c   : > { %v3376_v51 = vpop.f32.mrb[51].mxu1  ;;  %v3440_v56 = vpop.f32.mrb[51].mxu0 }
 0x15d   : > { %v4532_v10 = vadd.f32 %v3374_v45, %v3262_v46  ;;  %v4535_v2 = vadd.f32 %v3438_v47, %v4451_v8  ;;  %v3377_v59 = vadd.f32 %v3376_v51, %v3375_v49  ;;  %v3441_v61 = vadd.f32 %v3440_v56, %v3439_v21 }
 0x15f   : > { %v4537_v63 = vadd.f32 %v3377_v59, %v3265_v53  ;;  %v4540_v16 = vadd.f32 %v3441_v61, %v4456_v11 }
 0x161   : > { %v3378_v30 = vpop.f32.mrb[52].mxu1  ;;  %v3442_v1 = vpop.f32.mrb[52].mxu0 }
 0x162   : > { %v3379_v6 = vpop.f32.mrb[53].mxu1  ;;  %v3443_v7 = vpop.f32.mrb[53].mxu0 }
 0x163   : > { %v3380_v9 = vadd.f32 %v3379_v6, %v3378_v30  ;;  %v3444_v23 = vadd.f32 %v3443_v7, %v3442_v1  ;;  %v3381_v32 = vpop.f32.mrb[54].mxu1  ;;  %v3445_v19 = vpop.f32.mrb[54].mxu0 }
 0x164   : > { %v3382_v46 = vpop.f32.mrb[55].mxu1  ;;  %v3446_v62 = vpop.f32.mrb[55].mxu0 }
 0x165   : > { %v4542_v22 = vadd.f32 %v3380_v9, %v3268_v48  ;;  %v4545_v8 = vadd.f32 %v3444_v23, %v4465_v29  ;;  %v3383_v53 = vadd.f32 %v3382_v46, %v3381_v32  ;;  %v3447_v24 = vadd.f32 %v3446_v62, %v3445_v19 }
 0x167   : > { %v4547_v25 = vadd.f32 %v3383_v53, %v3271_v57  ;;  %v4550_v11 = vadd.f32 %v3447_v24, %v4470_v33 }
 0x169   : > { %v3384_v27 = vpop.f32.mrb[56].mxu1  ;;  %v3448_v5 = vpop.f32.mrb[56].mxu0 }
 0x16a   : > { %v3385_v31 = vpop.f32.mrb[57].mxu1  ;;  %v3449_v43 = vpop.f32.mrb[57].mxu0 }
 0x16b   : > { %v3386_v40 = vadd.f32 %v3385_v31, %v3384_v27  ;;  %v3450_v41 = vadd.f32 %v3449_v43, %v3448_v5  ;;  %v3387_v14 = vpop.f32.mrb[58].mxu1  ;;  %v3451_v42 = vpop.f32.mrb[58].mxu0 }
 0x16c   : > { %v3388_v48 = vpop.f32.mrb[59].mxu1  ;;  %v3452_v45 = vpop.f32.mrb[59].mxu0 }
 0x16d   : > { %v4553_v29 = vadd.f32 %v3386_v40, %v4514_v3  ;;  %v4556_v47 = vadd.f32 %v3450_v41, %v4479_v50  ;;  %v3389_v57 = vadd.f32 %v3388_v48, %v3387_v14  ;;  %v3453_v49 = vadd.f32 %v3452_v45, %v3451_v42 }
 0x16f   : > { %v4558_v33 = vadd.f32 %v3389_v57, %v3277_v15  ;;  %v4561_v21 = vadd.f32 %v3453_v49, %v4484_v55 }
 0x171   : > { %v3390_v51 = vpop.f32.mrb[60].mxu1  ;;  %v3454_v56 = vpop.f32.mrb[60].mxu0 }
 0x172   : > { %v3391_v59 = vpop.f32.mrb[61].mxu1  ;;  %v3455_v61 = vpop.f32.mrb[61].mxu0 }
 0x173   : > { %v3392_v30 = vadd.f32 %v3391_v59, %v3390_v51  ;;  %v3456_v1 = vadd.f32 %v3455_v61, %v3454_v56  ;;  %v3393_v6 = vpop.f32.mrb[62].mxu1  ;;  %v3457_v7 = vpop.f32.mrb[62].mxu0 }
 0x174   : > { %v3394_v3 = vpop.f32.mrb[63].mxu1  ;;  %v3458_v9 = vpop.f32.mrb[63].mxu0 }
 0x175   : > { %v4564_v50 = vadd.f32 %v3392_v30, %v4522_v26  ;;  %v4567_v23 = vadd.f32 %v3456_v1, %v4493_v13  ;;  %v3395_v15 = vadd.f32 %v3394_v3, %v3393_v6  ;;  %v3459_v32 = vadd.f32 %v3458_v9, %v3457_v7 }
 0x177   : > { %v4570_v55 = vadd.f32 %v3395_v15, %v4527_v38  ;;  %v4573_v19 = vadd.f32 %v3459_v32, %v4498_v17 }
 0x179   : > { %v3396_v46 = vpop.f32.mrb[64].mxu1  ;;  %v3460_v62 = vpop.f32.mrb[64].mxu0 }
 0x17a   : > { %v3397_v53 = vpop.f32.mrb[65].mxu1  ;;  %v3461_v24 = vpop.f32.mrb[65].mxu0 }
 0x17b   : > { %v3398_v27 = vadd.f32 %v3397_v53, %v3396_v46  ;;  %v3462_v5 = vadd.f32 %v3461_v24, %v3460_v62  ;;  %v3399_v31 = vpop.f32.mrb[66].mxu1  ;;  %v3463_v26 = vpop.f32.mrb[66].mxu0 }
 0x17c   : > { %v3400_v43 = vpop.f32.mrb[67].mxu1  ;;  %v3464_v40 = vpop.f32.mrb[67].mxu0 }
 0x17d   : > { %v4576_v13 = vadd.f32 %v3398_v27, %v4398_v60  ;;  %v4579_v41 = vadd.f32 %v3462_v5, %v4503_v35  ;;  %v3401_v38 = vadd.f32 %v3400_v43, %v3399_v31  ;;  %v3465_v14 = vadd.f32 %v3464_v40, %v3463_v26 }
 0x17f   : > { %v4582_v17 = vadd.f32 %v3401_v38, %v4404_v4  ;;  %v4585_v42 = vadd.f32 %v3465_v14, %v4506_v39 }
 0x181   : > { %v3402_v48 = vpop.f32.mrb[68].mxu1  ;;  %v3466_v45 = vpop.f32.mrb[68].mxu0 }
 0x182   : > { %v3403_v57 = vpop.f32.mrb[69].mxu1  ;;  %v3467_v49 = vpop.f32.mrb[69].mxu0 }
 0x183   : > { %v3404_v51 = vadd.f32 %v3403_v57, %v3402_v48  ;;  %v3468_v56 = vadd.f32 %v3467_v49, %v3466_v45  ;;  %v3405_v59 = vpop.f32.mrb[70].mxu1  ;;  %v3469_v60 = vpop.f32.mrb[70].mxu0 }
 0x184   : > { %v3406_v61 = vpop.f32.mrb[71].mxu1  ;;  %v3470_v30 = vpop.f32.mrb[71].mxu0 }
 0x185   : > { %v4588_v35 = vadd.f32 %v3404_v51, %v4410_v12  ;;  %v4591_v1 = vadd.f32 %v3468_v56, %v4509_v0  ;;  %v3407_v4 = vadd.f32 %v3406_v61, %v3405_v59  ;;  %v3471_v6 = vadd.f32 %v3470_v30, %v3469_v60 }
 0x187   : > { %v4594_v39 = vadd.f32 %v3407_v4, %v4416_v20  ;;  %v4597_v7 = vadd.f32 %v3471_v6, %v4512_v58 }
 0x189   : > { %v3408_v3 = vpop.f32.mrb[72].mxu1  ;;  %v3472_v9 = vpop.f32.mrb[72].mxu0 }
 0x18a   : > { %v3409_v15 = vpop.f32.mrb[73].mxu1  ;;  %v3473_v32 = vpop.f32.mrb[73].mxu0 }
 0x18b   : > { %v3410_v46 = vadd.f32 %v3409_v15, %v3408_v3  ;;  %v3474_v62 = vadd.f32 %v3473_v32, %v3472_v9  ;;  %v3411_v53 = vpop.f32.mrb[74].mxu1  ;;  %v3475_v12 = vpop.f32.mrb[74].mxu0 }
 0x18c   : > { %v3412_v24 = vpop.f32.mrb[75].mxu1  ;;  %v3476_v27 = vpop.f32.mrb[75].mxu0 }
 0x18d   : > { %v4600_v0 = vadd.f32 %v3410_v46, %v4422_v28  ;;  %v4603_v5 = vadd.f32 %v3474_v62, %v4517_v37  ;;  %v3413_v20 = vadd.f32 %v3412_v24, %v3411_v53  ;;  %v3477_v31 = vadd.f32 %v3476_v27, %v3475_v12 }
 0x18f   : > { %v4606_v58 = vadd.f32 %v3413_v20, %v4428_v36  ;;  %v4609_v26 = vadd.f32 %v3477_v31, %v4520_v18 }
 0x191   : > { %v3414_v43 = vpop.f32.mrb[76].mxu1  ;;  %v3478_v40 = vpop.f32.mrb[76].mxu0 }
 0x192   : > { %v3415_v38 = vpop.f32.mrb[77].mxu1  ;;  %v3479_v14 = vpop.f32.mrb[77].mxu0 }
 0x193   : > { %v3416_v48 = vadd.f32 %v3415_v38, %v3414_v43  ;;  %v3480_v45 = vadd.f32 %v3479_v14, %v3478_v40  ;;  %v3417_v57 = vpop.f32.mrb[78].mxu1  ;;  %v3481_v28 = vpop.f32.mrb[78].mxu0 }
 0x194   : > { %v3418_v49 = vpop.f32.mrb[79].mxu1  ;;  %v3482_v51 = vpop.f32.mrb[79].mxu0 }
 0x195   : > { %v4612_v37 = vadd.f32 %v3416_v48, %v4434_v44  ;;  %v4615_v56 = vadd.f32 %v3480_v45, %v4525_v34  ;;  %v3419_v36 = vadd.f32 %v3418_v49, %v3417_v57  ;;  %v3483_v59 = vadd.f32 %v3482_v51, %v3481_v28 }
 0x197   : > { %v4618_v18 = vadd.f32 %v3419_v36, %v4440_v52  ;;  %v4621_v60 = vadd.f32 %v3483_v59, %v4530_v54 }
 0x199   : > { %v3484_v61 = vpop.f32.mrb[80].mxu0  ;;  %v3548_v30 = vpop.f32.mrb[80].mxu1 }
 0x19a   : > { %v3485_v4 = vpop.f32.mrb[81].mxu0  ;;  %v3549_v6 = vpop.f32.mrb[81].mxu1 }
 0x19b   : > { %v3486_v3 = vadd.f32 %v3485_v4, %v3484_v61  ;;  %v3550_v9 = vadd.f32 %v3549_v6, %v3548_v30  ;;  %v3487_v15 = vpop.f32.mrb[82].mxu0  ;;  %v3551_v44 = vpop.f32.mrb[82].mxu1 }
 0x19c   : > { %v3488_v32 = vpop.f32.mrb[83].mxu0  ;;  %v3552_v46 = vpop.f32.mrb[83].mxu1 }
 0x19d   : > { %v4624_v34 = vadd.f32 %v3486_v3, %v4532_v10  ;;  %v3489_v62 = vadd.f32 %v3488_v32, %v3487_v15  ;;  %v3553_v53 = vadd.f32 %v3552_v46, %v3551_v44  ;;  %v4627_v52 = vadd.f32 %v3550_v9, %v4535_v2 }
 0x19f   : > { %v4630_v54 = vadd.f32 %v3489_v62, %v4537_v63  ;;  %v4633_v12 = vadd.f32 %v3553_v53, %v4540_v16 }
 0x1a1   : > { %v3490_v24 = vpop.f32.mrb[84].mxu0  ;;  %v3554_v27 = vpop.f32.mrb[84].mxu1 }
 0x1a2   : > { %v3491_v20 = vpop.f32.mrb[85].mxu0  ;;  %v3555_v31 = vpop.f32.mrb[85].mxu1 }
 0x1a3   : > { %v3492_v43 = vadd.f32 %v3491_v20, %v3490_v24  ;;  %v3556_v40 = vadd.f32 %v3555_v31, %v3554_v27  ;;  %v3493_v38 = vpop.f32.mrb[86].mxu0  ;;  %v3557_v10 = vpop.f32.mrb[86].mxu1 }
 0x1a4   : > { %v3494_v14 = vpop.f32.mrb[87].mxu0  ;;  %v3558_v48 = vpop.f32.mrb[87].mxu1 }
 0x1a5   : > { %v4636_v45 = vadd.f32 %v3492_v43, %v4542_v22  ;;  %v3495_v2 = vadd.f32 %v3494_v14, %v3493_v38  ;;  %v3559_v57 = vadd.f32 %v3558_v48, %v3557_v10  ;;  %v4639_v63 = vadd.f32 %v3556_v40, %v4545_v8 }
 0x1a7   : > { %v4642_v16 = vadd.f32 %v3495_v2, %v4547_v25  ;;  %v4645_v28 = vadd.f32 %v3559_v57, %v4550_v11 }
 0x1a9   : > { %v3496_v49 = vpop.f32.mrb[88].mxu0  ;;  %v3560_v51 = vpop.f32.mrb[88].mxu1 }
 0x1aa   : > { %v3497_v36 = vpop.f32.mrb[89].mxu0  ;;  %v3561_v59 = vpop.f32.mrb[89].mxu1 }
 0x1ab   : > { %v3498_v61 = vadd.f32 %v3497_v36, %v3496_v49  ;;  %v3562_v30 = vadd.f32 %v3561_v59, %v3560_v51  ;;  %v3499_v4 = vpop.f32.mrb[90].mxu0  ;;  %v3563_v22 = vpop.f32.mrb[90].mxu1 }
 0x1ac   : > { %v3500_v6 = vpop.f32.mrb[91].mxu0  ;;  %v3564_v3 = vpop.f32.mrb[91].mxu1 }
 0x1ad   : > { %v4648_v9 = vadd.f32 %v3498_v61, %v4553_v29  ;;  %v3501_v8 = vadd.f32 %v3500_v6, %v3499_v4  ;;  %v3565_v15 = vadd.f32 %v3564_v3, %v3563_v22  ;;  %v4651_v25 = vadd.f32 %v3562_v30, %v4556_v47 }
 0x1af   : > { %v4654_v11 = vadd.f32 %v3501_v8, %v4558_v33  ;;  %v4657_v44 = vadd.f32 %v3565_v15, %v4561_v21 }
 0x1b1   : > { %v3502_v32 = vpop.f32.mrb[92].mxu0  ;;  %v3566_v46 = vpop.f32.mrb[92].mxu1 }
 0x1b2   : > { %v3503_v62 = vpop.f32.mrb[93].mxu0  ;;  %v3567_v53 = vpop.f32.mrb[93].mxu1 }
 0x1b3   : > { %v3504_v24 = vadd.f32 %v3503_v62, %v3502_v32  ;;  %v3568_v27 = vadd.f32 %v3567_v53, %v3566_v46  ;;  %v3505_v20 = vpop.f32.mrb[94].mxu0  ;;  %v3569_v29 = vpop.f32.mrb[94].mxu1 }
 0x1b4   : > { %v3506_v31 = vpop.f32.mrb[95].mxu0  ;;  %v3570_v43 = vpop.f32.mrb[95].mxu1 }
 0x1b5   : > { %v4660_v40 = vadd.f32 %v3504_v24, %v4564_v50  ;;  %v3507_v47 = vadd.f32 %v3506_v31, %v3505_v20  ;;  %v3571_v38 = vadd.f32 %v3570_v43, %v3569_v29  ;;  %v4663_v33 = vadd.f32 %v3568_v27, %v4567_v23 }
 0x1b7   : > { %v4666_v21 = vadd.f32 %v3507_v47, %v4570_v55  ;;  %v4669_v10 = vadd.f32 %v3571_v38, %v4573_v19 }
 0x1b9   : > { %v3508_v14 = vpop.f32.mrb[96].mxu0  ;;  %v3572_v48 = vpop.f32.mrb[96].mxu1 }
 0x1ba   : > { %v3509_v2 = vpop.f32.mrb[97].mxu0  ;;  %v3573_v57 = vpop.f32.mrb[97].mxu1 }
 0x1bb   : > { %v3510_v49 = vadd.f32 %v3509_v2, %v3508_v14  ;;  %v3574_v51 = vadd.f32 %v3573_v57, %v3572_v48  ;;  %v3511_v36 = vpop.f32.mrb[98].mxu0  ;;  %v3575_v50 = vpop.f32.mrb[98].mxu1 }
 0x1bc   : > { %v3512_v59 = vpop.f32.mrb[99].mxu0  ;;  %v3576_v61 = vpop.f32.mrb[99].mxu1 }
 0x1bd   : > { %v4672_v30 = vadd.f32 %v3510_v49, %v4576_v13  ;;  %v3513_v23 = vadd.f32 %v3512_v59, %v3511_v36  ;;  %v3577_v4 = vadd.f32 %v3576_v61, %v3575_v50  ;;  %v4675_v55 = vadd.f32 %v3574_v51, %v4579_v41 }
 0x1bf   : > { %v4678_v19 = vadd.f32 %v3513_v23, %v4582_v17  ;;  %v4681_v22 = vadd.f32 %v3577_v4, %v4585_v42 }
 0x1c1   : > { %v3514_v6 = vpop.f32.mrb[100].mxu0  ;;  %v3578_v3 = vpop.f32.mrb[100].mxu1 }
 0x1c2   : > { %v3515_v8 = vpop.f32.mrb[101].mxu0  ;;  %v3579_v15 = vpop.f32.mrb[101].mxu1 }
 0x1c3   : > { %v3516_v32 = vadd.f32 %v3515_v8, %v3514_v6  ;;  %v3580_v46 = vadd.f32 %v3579_v15, %v3578_v3  ;;  %v3517_v62 = vpop.f32.mrb[102].mxu0  ;;  %v3581_v13 = vpop.f32.mrb[102].mxu1 }
 0x1c4   : > { %v3518_v53 = vpop.f32.mrb[103].mxu0  ;;  %v3582_v24 = vpop.f32.mrb[103].mxu1 }
 0x1c5   : > { %v4684_v27 = vadd.f32 %v3516_v32, %v4588_v35  ;;  %v3519_v41 = vadd.f32 %v3518_v53, %v3517_v62  ;;  %v3583_v20 = vadd.f32 %v3582_v24, %v3581_v13  ;;  %v4687_v17 = vadd.f32 %v3580_v46, %v4591_v1 }
 0x1c7   : > { %v4690_v42 = vadd.f32 %v3519_v41, %v4594_v39  ;;  %v4693_v29 = vadd.f32 %v3583_v20, %v4597_v7  ;;  %v4722_v41 = vld [vmem:[%s4870_s2] ss:$0 sm:$0xff] }
 0x1c9   : > { %v3520_v31 = vpop.f32.mrb[104].mxu0  ;;  %v3584_v43 = vpop.f32.mrb[104].mxu1 }
 0x1ca   : > { %v3521_v47 = vpop.f32.mrb[105].mxu0  ;;  %v3585_v38 = vpop.f32.mrb[105].mxu1 }
 0x1cb   : > { %v3522_v14 = vadd.f32 %v3521_v47, %v3520_v31  ;;  %v3586_v48 = vadd.f32 %v3585_v38, %v3584_v43  ;;  %v3523_v2 = vpop.f32.mrb[106].mxu0  ;;  %v3587_v35 = vpop.f32.mrb[106].mxu1 }
 0x1cc   : > { %v3524_v57 = vpop.f32.mrb[107].mxu0  ;;  %v3588_v49 = vpop.f32.mrb[107].mxu1 }
 0x1cd   : > { %v4696_v51 = vadd.f32 %v3522_v14, %v4600_v0  ;;  %v3525_v1 = vadd.f32 %v3524_v57, %v3523_v2  ;;  %v3589_v36 = vadd.f32 %v3588_v49, %v3587_v35  ;;  %v4699_v39 = vadd.f32 %v3586_v48, %v4603_v5 }
 0x1cf   : > { %v4702_v7 = vadd.f32 %v3525_v1, %v4606_v58  ;;  %v4705_v50 = vadd.f32 %v3589_v36, %v4609_v26 }
 0x1d1   : > { %v3526_v59 = vpop.f32.mrb[108].mxu0  ;;  %v3590_v61 = vpop.f32.mrb[108].mxu1 }
 0x1d2   : > { %v3527_v23 = vpop.f32.mrb[109].mxu0  ;;  %v3591_v4 = vpop.f32.mrb[109].mxu1 }
 0x1d3   : > { %v3528_v6 = vadd.f32 %v3527_v23, %v3526_v59  ;;  %v3592_v3 = vadd.f32 %v3591_v4, %v3590_v61  ;;  %v3529_v8 = vpop.f32.mrb[110].mxu0  ;;  %v3593_v0 = vpop.f32.mrb[110].mxu1 }
 0x1d4   : > { %v3530_v15 = vpop.f32.mrb[111].mxu0  ;;  %v3594_v32 = vpop.f32.mrb[111].mxu1 }
 0x1d5   : > { %v4708_v46 = vadd.f32 %v3528_v6, %v4612_v37  ;;  %v3531_v5 = vadd.f32 %v3530_v15, %v3529_v8  ;;  %v3595_v62 = vadd.f32 %v3594_v32, %v3593_v0  ;;  %v4711_v58 = vadd.f32 %v3592_v3, %v4615_v56  ;;  %v4728_v56 = vld [vmem:[%s4871_s3] ss:$0 sm:$0xff] }
 0x1d7   : > { %v4714_v26 = vadd.f32 %v3531_v5, %v4618_v18  ;;  %v4717_v13 = vadd.f32 %v3595_v62, %v4621_v60 }
 0x1d9   : > { %v3596_v53 = vpop.f32.mrb[112].mxu1  ;;  %v3686_v24 = vpop.f32.mrb[112].mxu0 }
 0x1da   : > { %v2364_v37 = vadd.f32 %v3686_v24, %v4639_v63  ;;  %v3597_v20 = vpop.f32.mrb[113].mxu1  ;;  %v2355_v31 = vpop.f32.mrb[113].mxu0 }
 0x1db   : > { %v3598_v18 = vadd.f32 %v3597_v20, %v3596_v53  ;;  %v2356_v60 = vadd.f32 %v2355_v31, %v4627_v52  ;;  %v3599_v43 = vpop.f32.mrb[114].mxu1  ;;  %v3687_v47 = vpop.f32.mrb[114].mxu0 }
 0x1dc   : > { %v2491_v38 = vmul.f32 %v4722_v41, %v2364_v37  ;;  %v2367_v14 = vadd.f32 %v3687_v47, %v4645_v28  ;;  %v3600_v48 = vpop.f32.mrb[115].mxu1  ;;  %v2358_v2 = vpop.f32.mrb[115].mxu0 }
 0x1dd   : > { %v2489_v63 = vmul.f32 %v4722_v41, %v2356_v60  ;;  %v3601_v35 = vadd.f32 %v3600_v48, %v3599_v43  ;;  %v2359_v57 = vadd.f32 %v2358_v2, %v4633_v12  ;;  %v4736_v49 = vadd.f32 %v3598_v18, %v4624_v34 }
 0x1de   : > { %v2530_v1 = vadd.f32 %v4728_v56, %v2491_v38  ;;  %v2492_v52 = vmul.f32 %v4722_v41, %v2367_v14 }
 0x1df   : > { %v2528_v36 = vadd.f32 %v4728_v56, %v2489_v63  ;;  %v2490_v59 = vmul.f32 %v4722_v41, %v2359_v57  ;;  %v4743_v28 = vadd.f32 %v3601_v35, %v4630_v54 }
 0x1e0   : > { %v2531_v61 = vadd.f32 %v4728_v56, %v2492_v52  ;;  %v2562_v34 = vmax.f32 %v2530_v1, 0.0 }
 0x1e1   : > { %v2529_v23 = vadd.f32 %v4728_v56, %v2490_v59  ;;  %v3602_v12 = vpop.f32.mrb[116].mxu1  ;;  %v3690_v4 = vpop.f32.mrb[116].mxu0  ;;  %v2560_v15 = vmax.f32 %v2528_v36, 0.0 }
 0x1e2   : > { %v2563_v6 = vmax.f32 %v2531_v61, 0.0  ;;  %v2380_v3 = vadd.f32 %v3690_v4, %v4663_v33  ;;  %v3603_v8 = vpop.f32.mrb[117].mxu1  ;;  %v2371_v0 = vpop.f32.mrb[117].mxu0 }
 0x1e3   : > { %v2561_v54 = vmax.f32 %v2529_v23, 0.0  ;;  %v3604_v32 = vadd.f32 %v3603_v8, %v3602_v12  ;;  %v2372_v5 = vadd.f32 %v2371_v0, %v4651_v25  ;;  %v3605_v62 = vpop.f32.mrb[118].mxu1  ;;  %v3691_v53 = vpop.f32.mrb[118].mxu0 }
 0x1e4   : > { %v3109_v24 = vpack.c.bf16 %v2563_v6, %v2562_v34  ;;  %v2495_v37 = vmul.f32 %v4722_v41, %v2380_v3  ;;  %v2383_v33 = vadd.f32 %v3691_v53, %v4669_v10  ;;  %v3606_v20 = vpop.f32.mrb[119].mxu1  ;;  %v2374_v31 = vpop.f32.mrb[119].mxu0 }
 0x1e5   : > { %v3104_v18 = vpack.c.bf16 %v2561_v54, %v2560_v15  ;;  %v2493_v60 = vmul.f32 %v4722_v41, %v2372_v5  ;;  %v3607_v43 = vadd.f32 %v3606_v20, %v3605_v62  ;;  %v2375_v47 = vadd.f32 %v2374_v31, %v4657_v44 }
 0x1e6   : > { %3181 = vst [vmem:[%s4752_s7 + $0x8] sm:$0xff] %v3109_v24   ;;  %v2534_v38 = vadd.f32 %v4728_v56, %v2495_v37  ;;  %v2496_v25 = vmul.f32 %v4722_v41, %v2383_v33  ;;  %v4763_v14 = vadd.f32 %v3604_v32, %v4636_v45 }
 0x1e7   : > { %3105 = vst [vmem:[%s4752_s7] sm:$0xff] %v3104_v18   ;;  %v2532_v48 = vadd.f32 %v4728_v56, %v2493_v60  ;;  %v2494_v10 = vmul.f32 %v4722_v41, %v2375_v47  ;;  %v4769_v2 = vadd.f32 %v3607_v43, %v4642_v16 }
 0x1e8   : > { %v2535_v63 = vadd.f32 %v4728_v56, %v2496_v25  ;;  %v2566_v1 = vmax.f32 %v2534_v38, 0.0 }
 0x1e9   : > { %v2533_v44 = vadd.f32 %v4728_v56, %v2494_v10  ;;  %v3608_v35 = vpop.f32.mrb[120].mxu1  ;;  %v3694_v57 = vpop.f32.mrb[120].mxu0  ;;  %v2564_v61 = vmax.f32 %v2532_v48, 0.0 }
 0x1ea   : > { %v2567_v52 = vmax.f32 %v2535_v63, 0.0  ;;  %v2396_v36 = vadd.f32 %v3694_v57, %v4687_v17  ;;  %v3609_v45 = vpop.f32.mrb[121].mxu1  ;;  %v2387_v59 = vpop.f32.mrb[121].mxu0 }
 0x1eb   : > { %v2565_v23 = vmax.f32 %v2533_v44, 0.0  ;;  %v3610_v12 = vadd.f32 %v3609_v45, %v3608_v35  ;;  %v2388_v4 = vadd.f32 %v2387_v59, %v4675_v55  ;;  %v3611_v16 = vpop.f32.mrb[122].mxu1  ;;  %v3695_v34 = vpop.f32.mrb[122].mxu0 }
 0x1ec   : > { %v3119_v6 = vpack.c.bf16 %v2567_v52, %v2566_v1  ;;  %v2499_v3 = vmul.f32 %v4722_v41, %v2396_v36  ;;  %v2399_v8 = vadd.f32 %v3695_v34, %v4693_v29  ;;  %v3612_v0 = vpop.f32.mrb[123].mxu1  ;;  %v2390_v15 = vpop.f32.mrb[123].mxu0 }
 0x1ed   : > { %v3114_v54 = vpack.c.bf16 %v2565_v23, %v2564_v61  ;;  %v2497_v17 = vmul.f32 %v4722_v41, %v2388_v4  ;;  %v3613_v32 = vadd.f32 %v3612_v0, %v3611_v16  ;;  %v2391_v5 = vadd.f32 %v2390_v15, %v4681_v22 }
 0x1ee   : > { %3183 = vst [vmem:[%s4752_s7 + $0x18] sm:$0xff] %v3119_v6   ;;  %v2538_v62 = vadd.f32 %v4728_v56, %v2499_v3  ;;  %v2500_v55 = vmul.f32 %v4722_v41, %v2399_v8  ;;  %v4783_v53 = vadd.f32 %v3610_v12, %v4648_v9 }
 0x1ef   : > { %3182 = vst [vmem:[%s4752_s7 + $0x10] sm:$0xff] %v3114_v54   ;;  %v2536_v24 = vadd.f32 %v4728_v56, %v2497_v17  ;;  %v2498_v29 = vmul.f32 %v4722_v41, %v2391_v5  ;;  %v4789_v37 = vadd.f32 %v3613_v32, %v4654_v11 }
 0x1f0   : > { %v2539_v33 = vadd.f32 %v4728_v56, %v2500_v55  ;;  %v2570_v18 = vmax.f32 %v2538_v62, 0.0 }
 0x1f1   : > { %v2537_v22 = vadd.f32 %v4728_v56, %v2498_v29  ;;  %v3614_v20 = vpop.f32.mrb[124].mxu1  ;;  %v3698_v31 = vpop.f32.mrb[124].mxu0  ;;  %v2568_v38 = vmax.f32 %v2536_v24, 0.0 }
 0x1f2   : > { %v2571_v60 = vmax.f32 %v2539_v33, 0.0  ;;  %v2412_v43 = vadd.f32 %v3698_v31, %v4711_v58  ;;  %v3615_v9 = vpop.f32.mrb[125].mxu1  ;;  %v2403_v47 = vpop.f32.mrb[125].mxu0 }
 0x1f3   : > { %v2569_v25 = vmax.f32 %v2537_v22, 0.0  ;;  %v3616_v48 = vadd.f32 %v3615_v9, %v3614_v20  ;;  %v2404_v10 = vadd.f32 %v2403_v47, %v4699_v39  ;;  %v3617_v11 = vpop.f32.mrb[126].mxu1  ;;  %v3699_v63 = vpop.f32.mrb[126].mxu0 }
 0x1f4   : > { %v3129_v44 = vpack.c.bf16 %v2571_v60, %v2570_v18  ;;  %v2503_v35 = vmul.f32 %v4722_v41, %v2412_v43  ;;  %v2415_v57 = vadd.f32 %v3699_v63, %v4717_v13  ;;  %v3618_v1 = vpop.f32.mrb[127].mxu1  ;;  %v2406_v52 = vpop.f32.mrb[127].mxu0 }
 0x1f5   : > { %v3124_v36 = vpack.c.bf16 %v2569_v25, %v2568_v38  ;;  %v2501_v58 = vmul.f32 %v4722_v41, %v2404_v10  ;;  %v3619_v45 = vadd.f32 %v3618_v1, %v3617_v11  ;;  %v2407_v59 = vadd.f32 %v2406_v52, %v4705_v50 }
 0x1f6   : > { %3185 = vst [vmem:[%s4752_s7 + $0x28] sm:$0xff] %v3129_v44   ;;  %v2542_v61 = vadd.f32 %v4728_v56, %v2503_v35  ;;  %v2504_v39 = vmul.f32 %v4722_v41, %v2415_v57  ;;  %v2283_v23 = vadd.f32 %v3616_v48, %v4660_v40 }
 0x1f7   : > { %3184 = vst [vmem:[%s4752_s7 + $0x20] sm:$0xff] %v3124_v36   ;;  %v2540_v12 = vadd.f32 %v4728_v56, %v2501_v58  ;;  %v2502_v13 = vmul.f32 %v4722_v41, %v2407_v59  ;;  %v2286_v4 = vadd.f32 %v3619_v45, %v4666_v21 }
 0x1f8   : > { %v2543_v16 = vadd.f32 %v4728_v56, %v2504_v39  ;;  %v2574_v3 = vmax.f32 %v2542_v61, 0.0 }
 0x1f9   : > { %v2541_v34 = vadd.f32 %v4728_v56, %v2502_v13  ;;  %v3620_v6 = vpop.f32.mrb[128].mxu1  ;;  %v3702_v50 = vpop.f32.mrb[128].mxu0  ;;  %v2572_v40 = vmax.f32 %v2540_v12, 0.0 }
 0x1fa   : > { %v2575_v8 = vmax.f32 %v2543_v16, 0.0  ;;  %v2428_v0 = vadd.f32 %v3702_v50, %v4763_v14  ;;  %v3621_v15 = vpop.f32.mrb[129].mxu1  ;;  %v2419_v54 = vpop.f32.mrb[129].mxu0 }
 0x1fb   : > { %v2573_v17 = vmax.f32 %v2541_v34, 0.0  ;;  %v3622_v32 = vadd.f32 %v3621_v15, %v3620_v6  ;;  %v2420_v5 = vadd.f32 %v2419_v54, %v4736_v49  ;;  %v3623_v21 = vpop.f32.mrb[130].mxu1  ;;  %v3703_v62 = vpop.f32.mrb[130].mxu0 }
 0x1fc   : > { %v3139_v55 = vpack.c.bf16 %v2575_v8, %v2574_v3  ;;  %v2507_v24 = vmul.f32 %v4722_v41, %v2428_v0  ;;  %v2431_v29 = vadd.f32 %v3703_v62, %v4769_v2  ;;  %v3624_v33 = vpop.f32.mrb[131].mxu1  ;;  %v2422_v22 = vpop.f32.mrb[131].mxu0 }
 0x1fd   : > { %v3134_v20 = vpack.c.bf16 %v2573_v17, %v2572_v40  ;;  %v2505_v14 = vmul.f32 %v4722_v41, %v2420_v5  ;;  %v3625_v31 = vadd.f32 %v3624_v33, %v3623_v21  ;;  %v2423_v18 = vadd.f32 %v2422_v22, %v4743_v28 }
 0x1fe   : > { %3187 = vst [vmem:[%s4752_s7 + $0x38] sm:$0xff] %v3139_v55   ;;  %v2546_v60 = vadd.f32 %v4728_v56, %v2507_v24  ;;  %v2508_v49 = vmul.f32 %v4722_v41, %v2431_v29  ;;  %v2291_v43 = vadd.f32 %v3622_v32, %v4672_v30 }
 0x1ff   : > { %3186 = vst [vmem:[%s4752_s7 + $0x30] sm:$0xff] %v3134_v20   ;;  %v2544_v9 = vadd.f32 %v4728_v56, %v2505_v14  ;;  %v2506_v2 = vmul.f32 %v4722_v41, %v2423_v18  ;;  %v2294_v47 = vadd.f32 %v3625_v31, %v4678_v19 }
 0x200   : > { %v2547_v38 = vadd.f32 %v4728_v56, %v2508_v49  ;;  %v2578_v10 = vmax.f32 %v2546_v60, 0.0 }
 0x201   : > { %v2545_v25 = vadd.f32 %v4728_v56, %v2506_v2  ;;  %v3626_v48 = vpop.f32.mrb[132].mxu1  ;;  %v3706_v28 = vpop.f32.mrb[132].mxu0  ;;  %v2576_v30 = vmax.f32 %v2544_v9, 0.0 }
 0x202   : > { %v2579_v11 = vmax.f32 %v2547_v38, 0.0  ;;  %v2444_v63 = vadd.f32 %v3706_v28, %v2283_v23  ;;  %v3627_v44 = vpop.f32.mrb[133].mxu1  ;;  %v2435_v35 = vpop.f32.mrb[133].mxu0 }
 0x203   : > { %v2577_v57 = vmax.f32 %v2545_v25, 0.0  ;;  %v3628_v1 = vadd.f32 %v3627_v44, %v3626_v48  ;;  %v2436_v52 = vadd.f32 %v2435_v35, %v4783_v53  ;;  %v3629_v36 = vpop.f32.mrb[134].mxu1  ;;  %v3707_v19 = vpop.f32.mrb[134].mxu0 }
 0x204   : > { %v3149_v58 = vpack.c.bf16 %v2579_v11, %v2578_v10  ;;  %v2511_v45 = vmul.f32 %v4722_v41, %v2444_v63  ;;  %v2447_v59 = vadd.f32 %v3707_v19, %v2286_v4  ;;  %v3630_v61 = vpop.f32.mrb[135].mxu1  ;;  %v2438_v39 = vpop.f32.mrb[135].mxu0 }
 0x205   : > { %v3144_v12 = vpack.c.bf16 %v2577_v57, %v2576_v30  ;;  %v2509_v23 = vmul.f32 %v4722_v41, %v2436_v52  ;;  %v3631_v13 = vadd.f32 %v3630_v61, %v3629_v36  ;;  %v2439_v16 = vadd.f32 %v2438_v39, %v4789_v37 }
 0x206   : > { %3189 = vst [vmem:[%s4752_s7 + $0x48] sm:$0xff] %v3149_v58   ;;  %v2550_v34 = vadd.f32 %v4728_v56, %v2511_v45  ;;  %v2512_v53 = vmul.f32 %v4722_v41, %v2447_v59  ;;  %v2299_v6 = vadd.f32 %v3628_v1, %v4684_v27 }
 0x207   : > { %3188 = vst [vmem:[%s4752_s7 + $0x40] sm:$0xff] %v3144_v12   ;;  %v2548_v50 = vadd.f32 %v4728_v56, %v2509_v23  ;;  %v2510_v4 = vmul.f32 %v4722_v41, %v2439_v16  ;;  %v2302_v3 = vadd.f32 %v3631_v13, %v4690_v42 }
 0x208   : > { %v2551_v8 = vadd.f32 %v4728_v56, %v2512_v53  ;;  %v2582_v54 = vmax.f32 %v2550_v34, 0.0 }
 0x209   : > { %v2549_v0 = vadd.f32 %v4728_v56, %v2510_v4  ;;  %v3632_v15 = vpop.f32.mrb[136].mxu1  ;;  %v3710_v37 = vpop.f32.mrb[136].mxu0  ;;  %v2580_v27 = vmax.f32 %v2548_v50, 0.0 }
 0x20a   : > { %v2583_v40 = vmax.f32 %v2551_v8, 0.0  ;;  %v2460_v17 = vadd.f32 %v3710_v37, %v2299_v6  ;;  %v3633_v32 = vpop.f32.mrb[137].mxu1  ;;  %v2451_v5 = vpop.f32.mrb[137].mxu0 }
 0x20b   : > { %v2581_v21 = vmax.f32 %v2549_v0, 0.0  ;;  %v3634_v62 = vadd.f32 %v3633_v32, %v3632_v15  ;;  %v2452_v55 = vadd.f32 %v2451_v5, %v2291_v43  ;;  %v3635_v24 = vpop.f32.mrb[138].mxu1  ;;  %v3711_v29 = vpop.f32.mrb[138].mxu0 }
 0x20c   : > { %v3159_v42 = vpack.c.bf16 %v2583_v40, %v2582_v54  ;;  %v2515_v33 = vmul.f32 %v4722_v41, %v2460_v17  ;;  %v2463_v22 = vadd.f32 %v3711_v29, %v2302_v3  ;;  %v3636_v20 = vpop.f32.mrb[139].mxu1  ;;  %v2454_v14 = vpop.f32.mrb[139].mxu0 }
 0x20d   : > { %v3154_v31 = vpack.c.bf16 %v2581_v21, %v2580_v27  ;;  %v2513_v18 = vmul.f32 %v4722_v41, %v2452_v55  ;;  %v3637_v60 = vadd.f32 %v3636_v20, %v3635_v24  ;;  %v2455_v49 = vadd.f32 %v2454_v14, %v2294_v47 }
 0x20e   : > { %3191 = vst [vmem:[%s4752_s7 + $0x58] sm:$0xff] %v3159_v42   ;;  %v2554_v9 = vadd.f32 %v4728_v56, %v2515_v33  ;;  %v2516_v2 = vmul.f32 %v4722_v41, %v2463_v22  ;;  %v2307_v43 = vadd.f32 %v3634_v62, %v4696_v51 }
 0x20f   : > { %3190 = vst [vmem:[%s4752_s7 + $0x50] sm:$0xff] %v3154_v31   ;;  %v2552_v38 = vadd.f32 %v4728_v56, %v2513_v18  ;;  %v2514_v25 = vmul.f32 %v4722_v41, %v2455_v49  ;;  %v2310_v48 = vadd.f32 %v3637_v60, %v4702_v7 }
 0x210   : > { %v2555_v28 = vadd.f32 %v4728_v56, %v2516_v2  ;;  %v2586_v63 = vmax.f32 %v2554_v9, 0.0 }
 0x211   : > { %v2553_v10 = vadd.f32 %v4728_v56, %v2514_v25  ;;  %v3638_v11 = vpop.f32.mrb[140].mxu1  ;;  %v3714_v47 = vpop.f32.mrb[140].mxu0  ;;  %v2584_v51 = vmax.f32 %v2552_v38, 0.0 }
 0x212   : > { %v2587_v44 = vmax.f32 %v2555_v28, 0.0  ;;  %v3639_v35 = vpop.f32.mrb[141].mxu1  ;;  %v2467_v30 = vpop.f32.mrb[141].mxu0 }
 0x213   : > { %v2585_v57 = vmax.f32 %v2553_v10, 0.0  ;;  %v3640_v1 = vadd.f32 %v3639_v35, %v3638_v11  ;;  %v2468_v52 = vadd.f32 %v2467_v30, %v2307_v43  ;;  %v3641_v36 = vpop.f32.mrb[142].mxu1  ;;  %v3715_v19 = vpop.f32.mrb[142].mxu0 }
 0x214   : > { %v3169_v58 = vpack.c.bf16 %v2587_v44, %v2586_v63  ;;  %v3642_v7 = vpop.f32.mrb[143].mxu1  ;;  %v2470_v45 = vpop.f32.mrb[143].mxu0 }
 0x215   : > { %v3164_v59 = vpack.c.bf16 %v2585_v57, %v2584_v51  ;;  %v2315_v61 = vadd.f32 %v3640_v1, %v4708_v46  ;;  %v2517_v39 = vmul.f32 %v4722_v41, %v2468_v52  ;;  %v3643_v12 = vadd.f32 %v3642_v7, %v3641_v36 }
 0x216   : > { %3193 = vst [vmem:[%s4752_s7 + $0x68] sm:$0xff] %v3169_v58   ;;  %v2471_v23 = vadd.f32 %v2470_v45, %v2310_v48 }
 0x217   : > { %3192 = vst [vmem:[%s4752_s7 + $0x60] sm:$0xff] %v3164_v59   ;;  %v2476_v13 = vadd.f32 %v3714_v47, %v2315_v61  ;;  %v2318_v16 = vadd.f32 %v3643_v12, %v4714_v26  ;;  %v2556_v34 = vadd.f32 %v4728_v56, %v2517_v39 }
 0x218   : > { %v2518_v53 = vmul.f32 %v4722_v41, %v2471_v23 }
 0x219   : > { %v2519_v6 = vmul.f32 %v4722_v41, %v2476_v13  ;;  %v2479_v50 = vadd.f32 %v3715_v19, %v2318_v16  ;;  %v2588_v8 = vmax.f32 %v2556_v34, 0.0 }
 0x21a   : > { %v2557_v46 = vadd.f32 %v4728_v56, %v2518_v53 }
 0x21b   : > { %v2558_v4 = vadd.f32 %v4728_v56, %v2519_v6  ;;  %v2520_v3 = vmul.f32 %v4722_v41, %v2479_v50 }
 0x21c   : > { %v2589_v0 = vmax.f32 %v2557_v46, 0.0 }
 0x21d   : > { %v2559_v15 = vadd.f32 %v4728_v56, %v2520_v3  ;;  %v2590_v26 = vmax.f32 %v2558_v4, 0.0 }
 0x21e   : > { %v3174_v37 = vpack.c.bf16 %v2589_v0, %v2588_v8 }
 0x21f   : > { %v2591_v54 = vmax.f32 %v2559_v15, 0.0 }
 0x220   : > { %3194 = vst [vmem:[%s4752_s7 + $0x70] sm:$0xff] %v3174_v37  }
 0x221   : > { %v3179_v40 = vpack.c.bf16 %v2591_v54, %v2590_v26 }
 0x223   : > { %3195 = vst [vmem:[%s4752_s7 + $0x78] sm:$0xff] %v3179_v40  }
 0x224 PF: > { %s14_s15 = sadd.s32 1, %s4027_s15  }
 0x225   : > { %p11_p4 = scmp.ge.s32.totalorder %s14_s15, 4  }
 0x227   :  { %13 = sbr.rel (!%p11_p4) target bundleno = 1 (0x1), region = 66 }

// kernel: _lambda_.23
= control target key start
LH: loop header
LB: loop body
LE: loop exit
PB: predicated region body
PF: predicated region fallthrough
CT: control target
= control target key end

     0   :  { %s4595_s15 = smov 0   ;;  %s5487_s0 = inlined_call_operand.vmem [shape: bf16[512,1152], index: 0, kind: input, shape index: {}]   ;;  %s5488_s1 = inlined_call_operand.vmem [shape: bf16[1152,128], index: 1, kind: input, shape index: {}]   ;;  %s5489_s2 = inlined_call_operand.vmem [shape: bf16[512,128], index: 2, kind: input, shape index: {}]   ;;  %s5490_s3 = inlined_call_operand.vmem [shape: bf16[128,128], index: 3, kind: input, shape index: {}]   ;;  %s5491_s4 = inlined_call_operand.vmem [shape: bf16[512,128], index: 4, kind: output, shape index: {}]  }
   0x1 LB: > { %s3085_s16 = sadd.s32 4294967295, %s4568_s15   ;;  %p3089_p0 = scmp.ge.s32.totalorder %s4568_s15, 1  ;;  %s4568_s15 = sphi %s4595_s15, %s14_s15  }
   0x2   : > { %p175_p1 = scmp.lt.s32.totalorder %s4568_s15, 3 }
   0x4   : > { %p176_p2 = pnand %p3089_p0, %p175_p1 }
   0x6   : > { %179 = sbr.rel (%p176_p2) target bundleno = 584 (0x248), region = 36 }
   0xd   : > { %v4258_v0 = vld [vmem:[%s5490_s3] sm:$0xff]   ;;  %v4261_v3 = vld [vmem:[%s5490_s3 + $0x8] sm:$0xff]   ;;  %v4264_v6 = vld [vmem:[%s5490_s3 + $0x10] sm:$0xff]   ;;  %s3090_s7 = sshll.u32 %s3085_s16, 5 }
   0xe   : > { %v4259_v1 = vld [vmem:[%s5488_s1 + $0xc0] sm:$0xff]   ;;  %3993 = vmatprep.subr.bf16.mxu1 %v4258_v0  ;;  %v4262_v4 = vld [vmem:[%s5488_s1 + $0xc8] sm:$0xff]   ;;  %v4265_v7 = vld [vmem:[%s5488_s1 + $0xd0] sm:$0xff]   ;;  %p208_p3 = scmp.lt.s32.totalorder %s3090_s7, 63 }
   0xf   : > { %v4260_v2 = vld [vmem:[%s5488_s1 + $0x80] sm:$0xff]   ;;  %3633 = vmatprep.subr.bf16.mxu0 %v4259_v1  ;;  %3994 = vmatpush3.bf16.msra.mxu1 %v4258_v0  ;;  %v4263_v5 = vld [vmem:[%s5488_s1 + $0x88] sm:$0xff]   ;;  %v4266_v8 = vld [vmem:[%s5488_s1 + $0x90] sm:$0xff]  }
  0x10   : > { %3634 = vmatpush3.bf16.msra.mxu0 %v4260_v2  ;;  %3995 = vmatprep.subr.bf16.mxu1 %v4261_v3  ;;  %v4267_v9 = vld [vmem:[%s5490_s3 + $0x18] sm:$0xff]   ;;  %v4270_v12 = vld [vmem:[%s5490_s3 + $0x20] sm:$0xff]   ;;  %s5505_s7 = smov (!%p208_p3, %s3090_s7), 63  ;;  %v4273_v15 = vld [vmem:[%s5490_s3 + $0x28] sm:$0xff]  }
  0x11   : > { %3635 = vmatprep.subr.bf16.mxu0 %v4262_v4  ;;  %v4268_v10 = vld [vmem:[%s5488_s1 + $0xd8] sm:$0xff]   ;;  %v4271_v13 = vld [vmem:[%s5488_s1 + $0xe0] sm:$0xff]   ;;  %v4274_v16 = vld [vmem:[%s5488_s1 + $0xe8] sm:$0xff]   ;;  %s3093_s27 = sshll.u32 %s5505_s7, 2  ;;  %s4249_s30 = smul.u32 36, %s5505_s7 }
  0x12   : > { %v4269_v11 = vld [vmem:[%s5488_s1 + $0x98] sm:$0xff]   ;;  %v4272_v14 = vld [vmem:[%s5488_s1 + $0xa0] sm:$0xff]   ;;  %v4275_v17 = vld [vmem:[%s5488_s1 + $0xa8] sm:$0xff]   ;;  %s4672_s12 = scalar_lea.vmem %s5489_s2, %s3093_s27  ;;  %s5416_s5 = scalar_lea.vmem %s5491_s4, %s3093_s27 }
  0x13   : > { %3996 = vmatpush3.bf16.msra.mxu1 %v4261_v3  ;;  %v4276_v18 = vld [vmem:[%s5490_s3 + $0x30] sm:$0xff]   ;;  %v4279_v21 = vld [vmem:[%s5490_s3 + $0x38] sm:$0xff]   ;;  %s4683_s20 = scalar_lea.vmem %s5487_s0, %s4249_s30  ;;  %v4282_v22 = vld [vmem:[%s4672_s12] sm:$0xff]  }
  0x14   : > { %3636 = vmatpush3.bf16.msra.mxu0 %v4263_v5  ;;  %3997 = vmatprep.subr.bf16.mxu1 %v4264_v6  ;;  %v4277_v19 = vld [vmem:[%s5488_s1 + $0xf0] sm:$0xff]   ;;  %v4280_v23 = vld [vmem:[%s5488_s1 + $0xf8] sm:$0xff]   ;;  %v4286_v26 = vld [vmem:[%s4672_s12 + $0x8] sm:$0xff]  }
  0x15   : > { %3637 = vmatprep.subr.bf16.mxu0 %v4265_v7  ;;  %v4278_v20 = vld [vmem:[%s5488_s1 + $0xb0] sm:$0xff]   ;;  %4009 = vmatprep.mubr.bf16.mxu1 %v4282_v22  ;;  %v4281_v25 = vld [vmem:[%s5488_s1 + $0xb8] sm:$0xff]   ;;  %v4287_v27 = vld [vmem:[%s5488_s1 + $0x40] sm:$0xff]  }
  0x16   : > { %v4285_v24 = vld [vmem:[%s4683_s20 + $0xc] ss:$36 sps:$4 sm:$0xff]   ;;  %v4288_v29 = vld [vmem:[%s5488_s1] sm:$0xff]   ;;  %v4291_v32 = vld [vmem:[%s4683_s20 + $0x54] ss:$36 sps:$4 sm:$0xff]  }
  0x17   : > { %3998 = vmatpush3.bf16.msra.mxu1 %v4264_v6  ;;  %v4283_v28 = vld [vmem:[%s4683_s20 + $0x8] ss:$36 sps:$4 sm:$0xff]   ;;  %2245 = vmatprep.mubr.bf16.mxu0 %v4285_v24  ;;  %v4289_v30 = vld [vmem:[%s5488_s1 + $0x1c0] sm:$0xff]   ;;  %v4290_v31 = vld [vmem:[%s4672_s12 + $0x10] sm:$0xff]  }
  0x18   : > { %3638 = vmatpush3.bf16.msra.mxu0 %v4266_v8  ;;  %3999 = vmatprep.subr.bf16.mxu1 %v4267_v9  ;;  %v4293_v33 = vld [vmem:[%s5488_s1 + $0x180] sm:$0xff]   ;;  %v4295_v34 = vld [vmem:[%s5488_s1 + $0x48] sm:$0xff]   ;;  %v4294_v36 = vld [vmem:[%s4672_s12 + $0x18] sm:$0xff]  }
  0x19   : > { %3639 = vmatprep.subr.bf16.mxu0 %v4268_v10  ;;  %v4297_v35 = vld [vmem:[%s5488_s1 + $0x8] sm:$0xff]   ;;  %v4296_v37 = vld [vmem:[%s4683_s20 + $0x50] ss:$36 sps:$4 sm:$0xff]   ;;  %v4298_v38 = vld [vmem:[%s4672_s12 + $0x20] sm:$0xff]  }
  0x1a   : > { %v4299_v39 = vld [vmem:[%s4683_s20 + $0x9c] ss:$36 sps:$4 sm:$0xff]   ;;  %v4302_v40 = vld [vmem:[%s5488_s1 + $0x50] sm:$0xff]   ;;  %v4305_v42 = vld [vmem:[%s5488_s1 + $0x1c8] sm:$0xff]  }
  0x1b   : > { %4000 = vmatpush3.bf16.msra.mxu1 %v4267_v9  ;;  %v4304_v41 = vld [vmem:[%s5488_s1 + $0x10] sm:$0xff]   ;;  %v4301_v43 = vld [vmem:[%s4672_s12 + $0x28] sm:$0xff]   ;;  %v4303_v44 = vld [vmem:[%s4683_s20 + $0x98] ss:$36 sps:$4 sm:$0xff]  }
  0x1c   : > { %3640 = vmatpush3.bf16.msra.mxu0 %v4269_v11  ;;  %4001 = vmatprep.subr.bf16.mxu1 %v4270_v12  ;;  %v4309_v45 = vld [vmem:[%s5488_s1 + $0x188] sm:$0xff]   ;;  %v4306_v46 = vld [vmem:[%s4672_s12 + $0x30] sm:$0xff]   ;;  %v4311_v47 = vld [vmem:[%s5488_s1 + $0x58] sm:$0xff]  }
  0x1d   : > { %3641 = vmatprep.subr.bf16.mxu0 %v4271_v13  ;;  %v4307_v48 = vld [vmem:[%s4683_s20 + $0xe4] ss:$36 sps:$4 sm:$0xff]   ;;  %v4313_v49 = vld [vmem:[%s5488_s1 + $0x18] sm:$0xff]   ;;  %v4321_v55 = vld [vmem:[%s5488_s1 + $0x1d0] sm:$0xff]  }
  0x1e   : > { %v4310_v50 = vld [vmem:[%s4672_s12 + $0x38] sm:$0xff]   ;;  %v4312_v51 = vld [vmem:[%s4683_s20 + $0xe0] ss:$36 sps:$4 sm:$0xff]   ;;  %v4315_v56 = vld [vmem:[%s4683_s20 + $0x12c] ss:$36 sps:$4 sm:$0xff]  }
  0x1f   : > { %4002 = vmatpush3.bf16.msra.mxu1 %v4270_v12  ;;  %v4314_v52 = vld [vmem:[%s4672_s12 + $0x40] sm:$0xff]   ;;  %v4325_v57 = vld [vmem:[%s5488_s1 + $0x190] sm:$0xff]   ;;  %v4317_v58 = vld [vmem:[%s4672_s12 + $0x48] sm:$0xff]  }
  0x20   : > { %3642 = vmatpush3.bf16.msra.mxu0 %v4272_v14  ;;  %4003 = vmatprep.subr.bf16.mxu1 %v4273_v15  ;;  %v4318_v53 = vld [vmem:[%s5488_s1 + $0x60] sm:$0xff]   ;;  %v4327_v59 = vld [vmem:[%s5488_s1 + $0x68] sm:$0xff]   ;;  %v4322_v62 = vld [vmem:[%s4672_s12 + $0x50] sm:$0xff]  }
  0x21   : > { %3643 = vmatprep.subr.bf16.mxu0 %v4274_v16  ;;  %v4320_v54 = vld [vmem:[%s5488_s1 + $0x20] sm:$0xff]   ;;  %v4329_v60 = vld [vmem:[%s5488_s1 + $0x28] sm:$0xff]   ;;  %v4323_v63 = vld [vmem:[%s4683_s20 + $0x174] ss:$36 sps:$4 sm:$0xff]  }
  0x22   : > { %v4319_v61 = vld [vmem:[%s4683_s20 + $0x128] ss:$36 sps:$4 sm:$0xff]   ;;  %v4334_v0 = vld [vmem:[%s5488_s1 + $0x70] sm:$0xff]   ;;  %v4326_v2 = vld [vmem:[%s4672_s12 + $0x58] sm:$0xff]  }
  0x23   : > { %4004 = vmatpush3.bf16.msra.mxu1 %v4273_v15  ;;  %v4336_v1 = vld [vmem:[%s5488_s1 + $0x30] sm:$0xff]   ;;  %v4337_v3 = vld [vmem:[%s5488_s1 + $0x1d8] sm:$0xff]   ;;  %v4330_v5 = vld [vmem:[%s4672_s12 + $0x60] sm:$0xff]  }
  0x24   : > { %3644 = vmatpush3.bf16.msra.mxu0 %v4275_v17  ;;  %4005 = vmatprep.subr.bf16.mxu1 %v4276_v18  ;;  %v4328_v4 = vld [vmem:[%s4683_s20 + $0x170] ss:$36 sps:$4 sm:$0xff]   ;;  %v4341_v6 = vld [vmem:[%s5488_s1 + $0x198] sm:$0xff]   ;;  %v4333_v10 = vld [vmem:[%s4672_s12 + $0x68] sm:$0xff]  }
  0x25   : > { %3645 = vmatprep.subr.bf16.mxu0 %v4277_v19  ;;  %v4331_v7 = vld [vmem:[%s4683_s20 + $0x1bc] ss:$36 sps:$4 sm:$0xff]   ;;  %v4338_v12 = vld [vmem:[%s4672_s12 + $0x70] sm:$0xff]   ;;  %v4339_v14 = vld [vmem:[%s4683_s20 + $0x204] ss:$36 sps:$4 sm:$0xff]  }
  0x26   : > { %v4343_v8 = vld [vmem:[%s5488_s1 + $0x78] sm:$0xff]   ;;  %v4352_v13 = vld [vmem:[%s5488_s1 + $0x140] sm:$0xff]   ;;  %v4375_v22 = vld [vmem:[%s5488_s1 + $0x1a8] sm:$0xff]  }
  0x27   : > { %4006 = vmatpush3.bf16.msra.mxu1 %v4276_v18  ;;  %v4345_v9 = vld [vmem:[%s5488_s1 + $0x38] sm:$0xff]   ;;  %v4354_v15 = vld [vmem:[%s5488_s1 + $0x1e0] sm:$0xff]   ;;  %v4351_v24 = vld [vmem:[%s4683_s20 + $0x248] ss:$36 sps:$4 sm:$0xff]  }
  0x28   : > { %3646 = vmatpush3.bf16.msra.mxu0 %v4278_v20  ;;  %4007 = vmatprep.subr.bf16.mxu1 %v4279_v21  ;;  %v4335_v11 = vld [vmem:[%s4683_s20 + $0x1b8] ss:$36 sps:$4 sm:$0xff]   ;;  %v4359_v16 = vld [vmem:[%s5488_s1 + $0x1a0] sm:$0xff]   ;;  %v4349_v20 = vld [vmem:[%s4683_s20 + $0x24c] ss:$36 sps:$4 sm:$0xff]  }
  0x29   : > { %3647 = vmatprep.subr.bf16.mxu0 %v4280_v23  ;;  %v4342_v17 = vld [vmem:[%s4672_s12 + $0x78] sm:$0xff]   ;;  %v4344_v18 = vld [vmem:[%s4683_s20 + $0x200] ss:$36 sps:$4 sm:$0xff]  }
  0x2a   : > { %v4348_v19 = vld [vmem:[%s4683_s20 + $0x4] ss:$36 sps:$4 sm:$0xff]  }
  0x2b   : > { %4008 = vmatpush3.bf16.msra.mxu1 %v4279_v21  ;;  %v4370_v21 = vld [vmem:[%s5488_s1 + $0x1e8] sm:$0xff]   ;;  %v4346_v23 = vld [vmem:[%s4683_s20] ss:$36 sps:$4 sm:$0xff]  }
  0x2c   : > { %3648 = vmatpush3.bf16.msra.mxu0 %v4281_v25  ;;  %3521 = vmatprep.subr.bf16.mxu1 %v4287_v27  ;;  %v4353_v25 = vld [vmem:[%s5488_s1 + $0x100] sm:$0xff]   ;;  %v4357_v27 = vld [vmem:[%s4683_s20 + $0x294] ss:$36 sps:$4 sm:$0xff]  }
  0x2d   : > { %3857 = vmatprep.subr.bf16.mxu0 %v4289_v30  ;;  %v4369_v30 = vld [vmem:[%s5488_s1 + $0x108] sm:$0xff]  }
  0x2e   : > { %4010 = vmatmul.mubr.bf16.vlgmr.msra.gmra.mrb[0].mxu1 %v4286_v26  ;;  %v4355_v26 = vld [vmem:[%s4683_s20 + $0x4c] ss:$36 sps:$4 sm:$0xff]  }
  0x2f   : > { %2246 = vmatmul.mubr.bf16.vlgmr.msra.gmra.mrb[0].mxu0 %v4283_v28  ;;  %3522 = vmatpush3.bf16.msra.mxu1 %v4288_v29  ;;  %v4368_v28 = vld [vmem:[%s5488_s1 + $0x148] sm:$0xff]   ;;  %v4386_v29 = vld [vmem:[%s5488_s1 + $0x1f0] sm:$0xff]  }
  0x30   : > { %4013 = vmatprep.mubr.bf16.mxu1 %v4290_v31  ;;  %2253 = vmatprep.mubr.bf16.mxu0 %v4291_v32  ;;  %v4384_v31 = vld [vmem:[%s5488_s1 + $0x150] sm:$0xff]  }
  0x31   : > { %3858 = vmatpush3.bf16.msra.mxu0 %v4293_v33  ;;  %3523 = vmatprep.subr.bf16.mxu1 %v4295_v34  ;;  %v4391_v32 = vld [vmem:[%s5488_s1 + $0x1b0] sm:$0xff]   ;;  %v4360_v33 = vld [vmem:[%s4683_s20 + $0x48] ss:$36 sps:$4 sm:$0xff]  }
  0x32   : > { %3859 = vmatprep.subr.bf16.mxu0 %v4305_v42  ;;  %v4361_v34 = vld [vmem:[%s4683_s20 + $0x290] ss:$36 sps:$4 sm:$0xff]   ;;  %v4367_v42 = vld [vmem:[%s4683_s20 + $0x2d8] ss:$36 sps:$4 sm:$0xff]  }
  0x33   : > { %3524 = vmatpush3.bf16.msra.mxu1 %v4297_v35  ;;  %v4362_v35 = vld [vmem:[%s4683_s20 + $0x94] ss:$36 sps:$4 sm:$0xff]  }
  0x34   : > { %3525 = vmatprep.subr.bf16.mxu1 %v4302_v40  ;;  %v4402_v40 = vld [vmem:[%s5488_s1 + $0x1f8] sm:$0xff]  }
  0x35   : > { %3860 = vmatpush3.bf16.msra.mxu0 %v4309_v45  ;;  %v4373_v45 = vld [vmem:[%s4683_s20 + $0x324] ss:$36 sps:$4 sm:$0xff]  }
  0x36   : > { %4014 = vmatmul.mubr.bf16.gmra.mrb[4].mxu1 %v4294_v36  ;;  %3861 = vmatprep.subr.bf16.mxu0 %v4321_v55  ;;  %v4364_v36 = vld [vmem:[%s4683_s20 + $0x2dc] ss:$36 sps:$4 sm:$0xff]  }
  0x37   : > { %2254 = vmatmul.mubr.bf16.gmra.mrb[4].mxu0 %v4296_v37  ;;  %4017 = vmatprep.mubr.bf16.mxu1 %v4298_v38  ;;  %v4385_v37 = vld [vmem:[%s5488_s1 + $0x110] sm:$0xff]   ;;  %v4400_v38 = vld [vmem:[%s5488_s1 + $0x158] sm:$0xff]   ;;  %v4382_v55 = vld [vmem:[%s4683_s20 + $0x120] ss:$36 sps:$4 sm:$0xff]  }
  0x38   : > { %2261 = vmatprep.mubr.bf16.mxu0 %v4299_v39  ;;  %3526 = vmatpush3.bf16.msra.mxu1 %v4304_v41  ;;  %v4401_v39 = vld [vmem:[%s5488_s1 + $0x118] sm:$0xff]   ;;  %v4366_v41 = vld [vmem:[%s4683_s20 + $0x90] ss:$36 sps:$4 sm:$0xff]  }
  0x39   : > { %3527 = vmatprep.subr.bf16.mxu1 %v4311_v47  ;;  %3862 = vmatpush3.bf16.msra.mxu0 %v4325_v57  ;;  %v4417_v47 = vld [vmem:[%s5488_s1 + $0x120] sm:$0xff]   ;;  %v4387_v57 = vld [vmem:[%s4683_s20 + $0x16c] ss:$36 sps:$4 sm:$0xff]  }
  0x3a   : > { %3863 = vmatprep.subr.bf16.mxu0 %v4337_v3  ;;  %v4462_v3 = vld [vmem:[%s5488_s1 + $0x138] sm:$0xff]  }
  0x3c   : > { %3528 = vmatpush3.bf16.msra.mxu1 %v4313_v49  ;;  %v4376_v49 = vld [vmem:[%s4683_s20 + $0xd8] ss:$36 sps:$4 sm:$0xff]  }
  0x3d   : > { %3529 = vmatprep.subr.bf16.mxu1 %v4318_v53  ;;  %3864 = vmatpush3.bf16.msra.mxu0 %v4341_v6  ;;  %v4430_v53 = vld [vmem:[%s5488_s1 + $0x168] sm:$0xff]  }
  0x3e   : > { %4018 = vmatmul.mubr.bf16.gmra.mrb[8].mxu1 %v4301_v43  ;;  %3865 = vmatprep.subr.bf16.mxu0 %v4354_v15  ;;  %v4371_v43 = vld [vmem:[%s4683_s20 + $0xdc] ss:$36 sps:$4 sm:$0xff]   ;;  %v4405_v6 = vld [vmem:[%s4683_s20 + $0x444] ss:$36 sps:$4 sm:$0xff]  }
  0x3f   : > { %2262 = vmatmul.mubr.bf16.gmra.mrb[8].mxu0 %v4303_v44  ;;  %4021 = vmatprep.mubr.bf16.mxu1 %v4306_v46  ;;  %v4407_v44 = vld [vmem:[%s5488_s1 + $0x1b8] sm:$0xff]   ;;  %v4416_v46 = vld [vmem:[%s5488_s1 + $0x160] sm:$0xff]   ;;  %v4433_v15 = vld [vmem:[%s5488_s1 + $0x208] sm:$0xff]  }
  0x40   : > { %2269 = vmatprep.mubr.bf16.mxu0 %v4307_v48  ;;  %3530 = vmatpush3.bf16.msra.mxu1 %v4320_v54  ;;  %v4866_v48 = vld [vmem:[%s5488_s1 + $0x200] sm:$0xff]   ;;  %v4432_v54 = vld [vmem:[%s5488_s1 + $0x128] sm:$0xff]  }
  0x41   : > { %3531 = vmatprep.subr.bf16.mxu1 %v4327_v59  ;;  %3866 = vmatpush3.bf16.msra.mxu0 %v4359_v16  ;;  %v4445_v59 = vld [vmem:[%s5488_s1 + $0x170] sm:$0xff]  }
  0x42   : > { %3867 = vmatprep.subr.bf16.mxu0 %v4370_v21  ;;  %v4448_v16 = vld [vmem:[%s5488_s1 + $0x210] sm:$0xff]   ;;  %v4463_v21 = vld [vmem:[%s5488_s1 + $0x218] sm:$0xff]  }
  0x44   : > { %3532 = vmatpush3.bf16.msra.mxu1 %v4329_v60  ;;  %v4392_v60 = vld [vmem:[%s4683_s20 + $0x168] ss:$36 sps:$4 sm:$0xff]  }
  0x45   : > { %3533 = vmatprep.subr.bf16.mxu1 %v4334_v0  ;;  %3868 = vmatpush3.bf16.msra.mxu0 %v4375_v22  ;;  %v4396_v0 = vld [vmem:[%s4683_s20 + $0x3fc] ss:$36 sps:$4 sm:$0xff]   ;;  %v4429_v22 = vld [vmem:[%s4683_s20 + $0x2d0] ss:$36 sps:$4 sm:$0xff]  }
  0x46   : > { %4022 = vmatmul.mubr.bf16.gmra.mrb[12].mxu1 %v4310_v50  ;;  %3869 = vmatprep.subr.bf16.mxu0 %v4386_v29  ;;  %v4377_v50 = vld [vmem:[%s4683_s20 + $0x320] ss:$36 sps:$4 sm:$0xff]   ;;  %v4502_v29 = vld [vmem:[%s5488_s1 + $0x230] sm:$0xff]  }
  0x47   : > { %2270 = vmatmul.mubr.bf16.gmra.mrb[12].mxu0 %v4312_v51  ;;  %4025 = vmatprep.mubr.bf16.mxu1 %v4314_v52  ;;  %v4378_v51 = vld [vmem:[%s4683_s20 + $0x124] ss:$36 sps:$4 sm:$0xff]   ;;  %v4380_v52 = vld [vmem:[%s4683_s20 + $0x36c] ss:$36 sps:$4 sm:$0xff]  }
  0x48   : > { %2277 = vmatprep.mubr.bf16.mxu0 %v4315_v56  ;;  %3534 = vmatpush3.bf16.msra.mxu1 %v4336_v1  ;;  %v4383_v56 = vld [vmem:[%s4683_s20 + $0x368] ss:$36 sps:$4 sm:$0xff]   ;;  %v4398_v1 = vld [vmem:[%s4683_s20 + $0x1b0] ss:$36 sps:$4 sm:$0xff]  }
  0x49   : > { %3535 = vmatprep.subr.bf16.mxu1 %v4343_v8  ;;  %3870 = vmatpush3.bf16.msra.mxu0 %v4391_v32  ;;  %v4409_v8 = vld [vmem:[%s4683_s20 + $0x440] ss:$36 sps:$4 sm:$0xff]  }
  0x4a   : > { %3871 = vmatprep.subr.bf16.mxu0 %v4402_v40  ;;  %v4442_v32 = vld [vmem:[%s4683_s20 + $0x13c] ss:$36 sps:$4 sm:$0xff]   ;;  %v4455_v40 = vld [vmem:[%s4683_s20 + $0x3f4] ss:$36 sps:$4 sm:$0xff]  }
  0x4c   : > { %3536 = vmatpush3.bf16.msra.mxu1 %v4345_v9  ;;  %v4410_v9 = vld [vmem:[%s4683_s20 + $0x244] ss:$36 sps:$4 sm:$0xff]  }
  0x4d   : > { %3745 = vmatprep.subr.bf16.mxu1 %v4352_v13  ;;  %3872 = vmatpush3.bf16.msra.mxu0 %v4407_v44  ;;  %v4419_v13 = vld [vmem:[%s4683_s20 + $0x28c] ss:$36 sps:$4 sm:$0xff]   ;;  %v4464_v44 = vld [vmem:[%s4683_s20 + $0x43c] ss:$36 sps:$4 sm:$0xff]  }
  0x4e   : > { %4026 = vmatmul.mubr.bf16.gmra.mrb[16].mxu1 %v4317_v58  ;;  %4041 = vmatprep.subr.bf16.mxu0 %v4866_v48  ;;  %v4389_v58 = vld [vmem:[%s4683_s20 + $0x3b4] ss:$36 sps:$4 sm:$0xff]  }
  0x4f   : > { %2278 = vmatmul.mubr.bf16.gmra.mrb[16].mxu0 %v4319_v61  ;;  %4029 = vmatprep.mubr.bf16.mxu1 %v4322_v62  ;;  %v4447_v61 = vld [vmem:[%s5488_s1 + $0x130] sm:$0xff]  }
  0x50   : > { %2285 = vmatprep.mubr.bf16.mxu0 %v4323_v63  ;;  %v4393_v62 = vld [vmem:[%s4683_s20 + $0x3b0] ss:$36 sps:$4 sm:$0xff]  }
  0x51   : > { %v4394_v63 = vld [vmem:[%s4683_s20 + $0x1b4] ss:$36 sps:$4 sm:$0xff]  }
  0x56   : > { %4030 = vmatmul.mubr.bf16.gmra.mrb[20].mxu1 %v4326_v2  ;;  %v4460_v2 = vld [vmem:[%s5488_s1 + $0x178] sm:$0xff]  }
  0x57   : > { %2286 = vmatmul.mubr.bf16.gmra.mrb[20].mxu0 %v4328_v4  ;;  %4033 = vmatprep.mubr.bf16.mxu1 %v4330_v5  ;;  %v4399_v4 = vld [vmem:[%s4683_s20 + $0x3f8] ss:$36 sps:$4 sm:$0xff]  }
  0x58   : > { %2293 = vmatprep.mubr.bf16.mxu0 %v4331_v7  ;;  %v4403_v5 = vld [vmem:[%s4683_s20 + $0x1fc] ss:$36 sps:$4 sm:$0xff]  }
  0x59   : > { %v4408_v7 = vld [vmem:[%s4683_s20 + $0x1f8] ss:$36 sps:$4 sm:$0xff]  }
  0x5e   : > { %4034 = vmatmul.mubr.bf16.gmra.mrb[24].mxu1 %v4333_v10  ;;  %v4414_v10 = vld [vmem:[%s4683_s20 + $0x1c] ss:$36 sps:$4 sm:$0xff]  }
  0x5f   : > { %2294 = vmatmul.mubr.bf16.gmra.mrb[24].mxu0 %v4335_v11  ;;  %4037 = vmatprep.mubr.bf16.mxu1 %v4338_v12  ;;  %v4412_v11 = vld [vmem:[%s4683_s20 + $0x18] ss:$36 sps:$4 sm:$0xff]   ;;  %v4415_v12 = vld [vmem:[%s4683_s20 + $0x240] ss:$36 sps:$4 sm:$0xff]  }
  0x60   : > { %2301 = vmatprep.mubr.bf16.mxu0 %v4339_v14  ;;  %v4421_v14 = vld [vmem:[%s4683_s20 + $0x64] ss:$36 sps:$4 sm:$0xff]  }
  0x66   : > { %4038 = vmatmul.mubr.bf16.gmra.mrb[28].mxu1 %v4342_v17  ;;  %v4423_v17 = vld [vmem:[%s4683_s20 + $0x288] ss:$36 sps:$4 sm:$0xff]  }
  0x67   : > { %2302 = vmatmul.mubr.bf16.gmra.mrb[28].mxu0 %v4344_v18  ;;  %2084 = vmatprep.mubr.bf16.mxu1 %v4348_v19  ;;  %v4424_v18 = vld [vmem:[%s4683_s20 + $0x60] ss:$36 sps:$4 sm:$0xff]   ;;  %v4425_v19 = vld [vmem:[%s4683_s20 + $0x2d4] ss:$36 sps:$4 sm:$0xff]  }
  0x68   : > { %2309 = vmatprep.mubr.bf16.mxu0 %v4349_v20  ;;  %v4427_v20 = vld [vmem:[%s4683_s20 + $0xac] ss:$36 sps:$4 sm:$0xff]  }
  0x6e   : > { %2085 = vmatmul.mubr.bf16.vlgmr.msra.gmra.mrb[32].mxu1 %v4346_v23  ;;  %v4476_v23 = vld [vmem:[%s5488_s1 + $0x220] sm:$0xff]  }
  0x6f   : > { %2310 = vmatmul.mubr.bf16.gmra.mrb[32].mxu0 %v4351_v24  ;;  %3746 = vmatpush3.bf16.msra.mxu1 %v4353_v25  ;;  %v4431_v24 = vld [vmem:[%s4683_s20 + $0xa8] ss:$36 sps:$4 sm:$0xff]   ;;  %v4434_v25 = vld [vmem:[%s4683_s20 + $0x31c] ss:$36 sps:$4 sm:$0xff]  }
  0x70   : > { %2092 = vmatprep.mubr.bf16.mxu1 %v4355_v26  ;;  %2317 = vmatprep.mubr.bf16.mxu0 %v4357_v27  ;;  %v4436_v26 = vld [vmem:[%s4683_s20 + $0xf4] ss:$36 sps:$4 sm:$0xff]   ;;  %v4489_v27 = vld [vmem:[%s5488_s1 + $0x228] sm:$0xff]  }
  0x71   : > { %3747 = vmatprep.subr.bf16.mxu1 %v4368_v28  ;;  %v4438_v28 = vld [vmem:[%s4683_s20 + $0x318] ss:$36 sps:$4 sm:$0xff]  }
  0x73   : > { %3748 = vmatpush3.bf16.msra.mxu1 %v4369_v30  ;;  %v4439_v30 = vld [vmem:[%s4683_s20 + $0xf0] ss:$36 sps:$4 sm:$0xff]  }
  0x74   : > { %3749 = vmatprep.subr.bf16.mxu1 %v4384_v31  ;;  %v4440_v31 = vld [vmem:[%s4683_s20 + $0x364] ss:$36 sps:$4 sm:$0xff]  }
  0x76   : > { %2093 = vmatmul.mubr.bf16.gmra.mrb[36].mxu1 %v4360_v33  ;;  %v4515_v33 = vld [vmem:[%s5488_s1 + $0x238] sm:$0xff]  }
  0x77   : > { %2318 = vmatmul.mubr.bf16.gmra.mrb[36].mxu0 %v4361_v34  ;;  %2100 = vmatprep.mubr.bf16.mxu1 %v4362_v35  ;;  %v4444_v34 = vld [vmem:[%s4683_s20 + $0x360] ss:$36 sps:$4 sm:$0xff]   ;;  %v4446_v35 = vld [vmem:[%s4683_s20 + $0x138] ss:$36 sps:$4 sm:$0xff]  }
  0x78   : > { %2325 = vmatprep.mubr.bf16.mxu0 %v4364_v36  ;;  %3750 = vmatpush3.bf16.msra.mxu1 %v4385_v37  ;;  %v4449_v36 = vld [vmem:[%s4683_s20 + $0x3ac] ss:$36 sps:$4 sm:$0xff]   ;;  %v4451_v37 = vld [vmem:[%s4683_s20 + $0x184] ss:$36 sps:$4 sm:$0xff]  }
  0x79   : > { %3751 = vmatprep.subr.bf16.mxu1 %v4400_v38  ;;  %v4453_v38 = vld [vmem:[%s4683_s20 + $0x3a8] ss:$36 sps:$4 sm:$0xff]  }
  0x7c   : > { %3752 = vmatpush3.bf16.msra.mxu1 %v4401_v39  ;;  %v4454_v39 = vld [vmem:[%s4683_s20 + $0x180] ss:$36 sps:$4 sm:$0xff]  }
  0x7d   : > { %3753 = vmatprep.subr.bf16.mxu1 %v4416_v46  ;;  %v4468_v46 = vld [vmem:[%s4683_s20 + $0x438] ss:$36 sps:$4 sm:$0xff]  }
  0x7e   : > { %2101 = vmatmul.mubr.bf16.gmra.mrb[40].mxu1 %v4366_v41  ;;  %v4457_v41 = vld [vmem:[%s4683_s20 + $0x1cc] ss:$36 sps:$4 sm:$0xff]  }
  0x7f   : > { %2326 = vmatmul.mubr.bf16.gmra.mrb[40].mxu0 %v4367_v42  ;;  %2108 = vmatprep.mubr.bf16.mxu1 %v4371_v43  ;;  %v4459_v42 = vld [vmem:[%s4683_s20 + $0x3f0] ss:$36 sps:$4 sm:$0xff]   ;;  %v4461_v43 = vld [vmem:[%s4683_s20 + $0x1c8] ss:$36 sps:$4 sm:$0xff]  }
  0x80   : > { %2333 = vmatprep.mubr.bf16.mxu0 %v4373_v45  ;;  %3754 = vmatpush3.bf16.msra.mxu1 %v4417_v47  ;;  %v4466_v45 = vld [vmem:[%s4683_s20 + $0x214] ss:$36 sps:$4 sm:$0xff]  }
  0x81   : > { %3755 = vmatprep.subr.bf16.mxu1 %v4430_v53  ;;  %v4469_v47 = vld [vmem:[%s4683_s20 + $0x210] ss:$36 sps:$4 sm:$0xff]   ;;  %v4479_v53 = vld [vmem:[%s4683_s20 + $0x2a4] ss:$36 sps:$4 sm:$0xff]  }
  0x84   : > { %3756 = vmatpush3.bf16.msra.mxu1 %v4432_v54  ;;  %v4481_v54 = vld [vmem:[%s4683_s20 + $0x58] ss:$36 sps:$4 sm:$0xff]  }
  0x85   : > { %3757 = vmatprep.subr.bf16.mxu1 %v4445_v59  ;;  %v4488_v59 = vld [vmem:[%s4683_s20 + $0x2e8] ss:$36 sps:$4 sm:$0xff]  }
  0x86   : > { %2109 = vmatmul.mubr.bf16.gmra.mrb[44].mxu1 %v4376_v49  ;;  %v4473_v49 = vld [vmem:[%s4683_s20 + $0x25c] ss:$36 sps:$4 sm:$0xff]  }
  0x87   : > { %2334 = vmatmul.mubr.bf16.gmra.mrb[44].mxu0 %v4377_v50  ;;  %2116 = vmatprep.mubr.bf16.mxu1 %v4378_v51  ;;  %v4470_v50 = vld [vmem:[%s4683_s20 + $0x10] ss:$36 sps:$4 sm:$0xff]   ;;  %v4475_v51 = vld [vmem:[%s4683_s20 + $0x258] ss:$36 sps:$4 sm:$0xff]  }
  0x88   : > { %2341 = vmatprep.mubr.bf16.mxu0 %v4380_v52  ;;  %3758 = vmatpush3.bf16.msra.mxu1 %v4447_v61  ;;  %v4477_v52 = vld [vmem:[%s4683_s20 + $0x5c] ss:$36 sps:$4 sm:$0xff]   ;;  %v4492_v61 = vld [vmem:[%s4683_s20 + $0x334] ss:$36 sps:$4 sm:$0xff]  }
  0x89   : > { %3759 = vmatprep.subr.bf16.mxu1 %v4460_v2 }
  0x8c   : > { %3760 = vmatpush3.bf16.msra.mxu1 %v4462_v3 }
  0x8e   : > { %2117 = vmatmul.mubr.bf16.gmra.mrb[48].mxu1 %v4382_v55  ;;  %v4482_v55 = vld [vmem:[%s4683_s20 + $0x2a0] ss:$36 sps:$4 sm:$0xff]  }
  0x8f   : > { %2342 = vmatmul.mubr.bf16.gmra.mrb[48].mxu0 %v4383_v56  ;;  %2124 = vmatprep.mubr.bf16.mxu1 %v4387_v57  ;;  %v4483_v56 = vld [vmem:[%s4683_s20 + $0xa4] ss:$36 sps:$4 sm:$0xff]   ;;  %v4485_v57 = vld [vmem:[%s4683_s20 + $0x2ec] ss:$36 sps:$4 sm:$0xff]  }
  0x90   : > { %2349 = vmatprep.mubr.bf16.mxu0 %v4389_v58  ;;  %v4487_v58 = vld [vmem:[%s4683_s20 + $0xa0] ss:$36 sps:$4 sm:$0xff]  }
  0x96   : > { %2125 = vmatmul.mubr.bf16.gmra.mrb[52].mxu1 %v4392_v60  ;;  %v4490_v60 = vld [vmem:[%s4683_s20 + $0xec] ss:$36 sps:$4 sm:$0xff]  }
  0x97   : > { %2350 = vmatmul.mubr.bf16.gmra.mrb[52].mxu0 %v4393_v62  ;;  %2132 = vmatprep.mubr.bf16.mxu1 %v4394_v63 }
  0x98   : > { %2357 = vmatprep.mubr.bf16.mxu0 %v4396_v0 }
  0x9e   : > { %2133 = vmatmul.mubr.bf16.gmra.mrb[56].mxu1 %v4398_v1  ;;  %v4494_v1 = vld [vmem:[%s4683_s20 + $0xe8] ss:$36 sps:$4 sm:$0xff]  }
  0x9f   : > { %2358 = vmatmul.mubr.bf16.gmra.mrb[56].mxu0 %v4399_v4  ;;  %2140 = vmatprep.mubr.bf16.mxu1 %v4403_v5  ;;  %v4495_v4 = vld [vmem:[%s4683_s20 + $0x330] ss:$36 sps:$4 sm:$0xff]  }
  0xa0   : > { %2365 = vmatprep.mubr.bf16.mxu0 %v4405_v6  ;;  %v4496_v5 = vld [vmem:[%s4683_s20 + $0x134] ss:$36 sps:$4 sm:$0xff]  }
  0xa6   : > { %2141 = vmatmul.mubr.bf16.gmra.mrb[60].mxu1 %v4408_v7 }
  0xa7   : > { %2366 = vmatmul.mubr.bf16.gmra.mrb[60].mxu0 %v4409_v8  ;;  %2148 = vmatprep.mubr.bf16.mxu1 %v4410_v9  ;;  %v4498_v9 = vld [vmem:[%s4683_s20 + $0x37c] ss:$36 sps:$4 sm:$0xff]  }
  0xa8   : > { %2567 = vmatprep.mubr.bf16.mxu0 %v4414_v10 }
  0xae   : > { %2149 = vmatmul.mubr.bf16.gmra.mrb[64].mxu1 %v4415_v12 }
  0xaf   : > { %2568 = vmatmul.mubr.bf16.vlgmr.msra.gmra.mrb[64].mxu0 %v4412_v11  ;;  %2156 = vmatprep.mubr.bf16.mxu1 %v4419_v13 }
  0xb0   : > { %2575 = vmatprep.mubr.bf16.mxu0 %v4421_v14  ;;  %4042 = vmatpush3.bf16.msra.mxu0 %v4866_v48  ;;  %v4472_v48 = vld [vmem:[%s4683_s20 + $0x14] ss:$36 sps:$4 sm:$0xff]  }
  0xb1   : > { %4043 = vmatprep.subr.bf16.mxu0 %v4433_v15 }
  0xb4   : > { %4044 = vmatpush3.bf16.msra.mxu0 %v4433_v15  ;;  %v4500_v15 = vld [vmem:[%s4683_s20 + $0x130] ss:$36 sps:$4 sm:$0xff]  }
  0xb5   : > { %4045 = vmatprep.subr.bf16.mxu0 %v4448_v16 }
  0xb6   : > { %2157 = vmatmul.mubr.bf16.gmra.mrb[68].mxu1 %v4423_v17 }
  0xb7   : > { %2576 = vmatmul.mubr.bf16.gmra.mrb[68].mxu0 %v4424_v18  ;;  %2164 = vmatprep.mubr.bf16.mxu1 %v4425_v19  ;;  %v4501_v18 = vld [vmem:[%s4683_s20 + $0x378] ss:$36 sps:$4 sm:$0xff]  }
  0xb8   : > { %2583 = vmatprep.mubr.bf16.mxu0 %v4427_v20  ;;  %4046 = vmatpush3.bf16.msra.mxu0 %v4448_v16  ;;  %v4503_v19 = vld [vmem:[%s4683_s20 + $0x17c] ss:$36 sps:$4 sm:$0xff]  }
  0xb9   : > { %4047 = vmatprep.subr.bf16.mxu0 %v4463_v21 }
  0xbc   : > { %4048 = vmatpush3.bf16.msra.mxu0 %v4463_v21 }
  0xbd   : > { %4049 = vmatprep.subr.bf16.mxu0 %v4476_v23 }
  0xbe   : > { %2165 = vmatmul.mubr.bf16.gmra.mrb[72].mxu1 %v4429_v22 }
  0xbf   : > { %2584 = vmatmul.mubr.bf16.gmra.mrb[72].mxu0 %v4431_v24  ;;  %2172 = vmatprep.mubr.bf16.mxu1 %v4434_v25 }
  0xc0   : > { %2591 = vmatprep.mubr.bf16.mxu0 %v4436_v26  ;;  %4050 = vmatpush3.bf16.msra.mxu0 %v4476_v23  ;;  %v4505_v23 = vld [vmem:[%s4683_s20 + $0x3c4] ss:$36 sps:$4 sm:$0xff]  }
  0xc1   : > { %4051 = vmatprep.subr.bf16.mxu0 %v4489_v27 }
  0xc4   : > { %4052 = vmatpush3.bf16.msra.mxu0 %v4489_v27 }
  0xc5   : > { %4053 = vmatprep.subr.bf16.mxu0 %v4502_v29 }
  0xc6   : > { %2173 = vmatmul.mubr.bf16.gmra.mrb[76].mxu1 %v4438_v28 }
  0xc7   : > { %2592 = vmatmul.mubr.bf16.gmra.mrb[76].mxu0 %v4439_v30  ;;  %2180 = vmatprep.mubr.bf16.mxu1 %v4440_v31 }
  0xc8   : > { %2599 = vmatprep.mubr.bf16.mxu0 %v4442_v32  ;;  %4054 = vmatpush3.bf16.msra.mxu0 %v4502_v29  ;;  %v4507_v29 = vld [vmem:[%s4683_s20 + $0x178] ss:$36 sps:$4 sm:$0xff]   ;;  %v4508_v32 = vld [vmem:[%s4683_s20 + $0x3c0] ss:$36 sps:$4 sm:$0xff]  }
  0xc9   : > { %4055 = vmatprep.subr.bf16.mxu0 %v4515_v33 }
  0xcc   : > { %4056 = vmatpush3.bf16.msra.mxu0 %v4515_v33  ;;  %v4509_v33 = vld [vmem:[%s4683_s20 + $0x1c4] ss:$36 sps:$4 sm:$0xff]  }
  0xce   : > { %2181 = vmatmul.mubr.bf16.gmra.mrb[80].mxu1 %v4444_v34 }
  0xcf   : > { %2600 = vmatmul.mubr.bf16.gmra.mrb[80].mxu0 %v4446_v35  ;;  %2188 = vmatprep.mubr.bf16.mxu1 %v4449_v36 }
  0xd0   : > { %2607 = vmatprep.mubr.bf16.mxu0 %v4451_v37  ;;  %v4511_v37 = vld [vmem:[%s4683_s20 + $0x40c] ss:$36 sps:$4 sm:$0xff]  }
  0xd6   : > { %2189 = vmatmul.mubr.bf16.gmra.mrb[84].mxu1 %v4453_v38 }
  0xd7   : > { %2608 = vmatmul.mubr.bf16.gmra.mrb[84].mxu0 %v4454_v39  ;;  %2196 = vmatprep.mubr.bf16.mxu1 %v4455_v40 }
  0xd8   : > { %2615 = vmatprep.mubr.bf16.mxu0 %v4457_v41 }
  0xde   : > { %2197 = vmatmul.mubr.bf16.gmra.mrb[88].mxu1 %v4459_v42 }
  0xdf   : > { %2616 = vmatmul.mubr.bf16.gmra.mrb[88].mxu0 %v4461_v43  ;;  %2204 = vmatprep.mubr.bf16.mxu1 %v4464_v44  ;;  %v4513_v43 = vld [vmem:[%s4683_s20 + $0x1c0] ss:$36 sps:$4 sm:$0xff]  }
  0xe0   : > { %2623 = vmatprep.mubr.bf16.mxu0 %v4466_v45 }
  0xe6   : > { %2205 = vmatmul.mubr.bf16.gmra.mrb[92].mxu1 %v4468_v46  ;;  %v4514_v46 = vld [vmem:[%s4683_s20 + $0x408] ss:$36 sps:$4 sm:$0xff]  }
  0xe7   : > { %2624 = vmatmul.mubr.bf16.gmra.mrb[92].mxu0 %v4469_v47  ;;  %2406 = vmatprep.mubr.bf16.mxu1 %v4472_v48  ;;  %v4516_v47 = vld [vmem:[%s4683_s20 + $0x20c] ss:$36 sps:$4 sm:$0xff]  }
  0xe8   : > { %2631 = vmatprep.mubr.bf16.mxu0 %v4473_v49 }
  0xee   : > { %2407 = vmatmul.mubr.bf16.vlgmr.msra.gmra.mrb[96].mxu1 %v4470_v50 }
  0xef   : > { %2632 = vmatmul.mubr.bf16.gmra.mrb[96].mxu0 %v4475_v51  ;;  %2414 = vmatprep.mubr.bf16.mxu1 %v4477_v52  ;;  %v4518_v51 = vld [vmem:[%s4683_s20 + $0x454] ss:$36 sps:$4 sm:$0xff]  }
  0xf0   : > { %2639 = vmatprep.mubr.bf16.mxu0 %v4479_v53 }
  0xf6   : > { %2415 = vmatmul.mubr.bf16.gmra.mrb[100].mxu1 %v4481_v54 }
  0xf7   : > { %2640 = vmatmul.mubr.bf16.gmra.mrb[100].mxu0 %v4482_v55  ;;  %2422 = vmatprep.mubr.bf16.mxu1 %v4483_v56 }
  0xf8   : > { %2647 = vmatprep.mubr.bf16.mxu0 %v4485_v57  ;;  %v4520_v57 = vld [vmem:[%s4683_s20 + $0x208] ss:$36 sps:$4 sm:$0xff]  }
  0xfe   : > { %2423 = vmatmul.mubr.bf16.gmra.mrb[104].mxu1 %v4487_v58 }
  0xff   : > { %2648 = vmatmul.mubr.bf16.gmra.mrb[104].mxu0 %v4488_v59  ;;  %2430 = vmatprep.mubr.bf16.mxu1 %v4490_v60  ;;  %v4521_v60 = vld [vmem:[%s4683_s20 + $0x450] ss:$36 sps:$4 sm:$0xff]  }
 0x100   : > { %2655 = vmatprep.mubr.bf16.mxu0 %v4492_v61  ;;  %v4522_v61 = vld [vmem:[%s4683_s20 + $0x254] ss:$36 sps:$4 sm:$0xff]  }
 0x101   : > { %v4973_v62 = vpop.f32.mrb[0].mxu1 }
 0x102   : > { %v4975_v63 = vpop.f32.mrb[1].mxu1  ;;  %v3649_v0 = vpop.f32.mrb[0].mxu0 }
 0x103   : > { %v4978_v2 = vpop.f32.mrb[2].mxu1  ;;  %v3650_v3 = vpop.f32.mrb[1].mxu0 }
 0x104   : > { %v4982_v6 = vpop.f32.mrb[3].mxu1  ;;  %v4984_v7 = vadd.f32 %v3650_v3, %v3649_v0  ;;  %v3652_v8 = vpop.f32.mrb[2].mxu0 }
 0x105   : > { %v3653_v10 = vpop.f32.mrb[3].mxu0 }
 0x106   : > { %2431 = vmatmul.mubr.bf16.gmra.mrb[108].mxu1 %v4494_v1  ;;  %v4987_v11 = vadd.f32 %v3653_v10, %v3652_v8 }
 0x107   : > { %2656 = vmatmul.mubr.bf16.gmra.mrb[108].mxu0 %v4495_v4  ;;  %2438 = vmatprep.mubr.bf16.mxu1 %v4496_v5  ;;  %v4524_v4 = vld [vmem:[%s4683_s20 + $0x20] ss:$36 sps:$4 sm:$0xff]  }
 0x108   : > { %2663 = vmatprep.mubr.bf16.mxu0 %v4498_v9 }
 0x109   : > { %v4989_v12 = vpop.f32.mrb[4].mxu1 }
 0x10a   : > { %v4991_v13 = vpop.f32.mrb[5].mxu1  ;;  %v3655_v14 = vpop.f32.mrb[4].mxu0 }
 0x10b   : > { %v4994_v16 = vpop.f32.mrb[6].mxu1  ;;  %v3656_v17 = vpop.f32.mrb[5].mxu0 }
 0x10c   : > { %v4998_v20 = vpop.f32.mrb[7].mxu1  ;;  %v5000_v21 = vadd.f32 %v3656_v17, %v3655_v14  ;;  %v3658_v22 = vpop.f32.mrb[6].mxu0 }
 0x10d   : > { %v3659_v24 = vpop.f32.mrb[7].mxu0 }
 0x10e   : > { %2439 = vmatmul.mubr.bf16.gmra.mrb[112].mxu1 %v4500_v15  ;;  %v5003_v25 = vadd.f32 %v3659_v24, %v3658_v22  ;;  %v4525_v15 = vld [vmem:[%s4683_s20 + $0x250] ss:$36 sps:$4 sm:$0xff]   ;;  %v4527_v22 = vld [vmem:[%s4683_s20 + $0x29c] ss:$36 sps:$4 sm:$0xff]  }
 0x10f   : > { %2664 = vmatmul.mubr.bf16.gmra.mrb[112].mxu0 %v4501_v18  ;;  %2446 = vmatprep.mubr.bf16.mxu1 %v4503_v19  ;;  %v4526_v19 = vld [vmem:[%s4683_s20 + $0x68] ss:$36 sps:$4 sm:$0xff]  }
 0x110   : > { %2671 = vmatprep.mubr.bf16.mxu0 %v4505_v23 }
 0x111   : > { %v5005_v26 = vpop.f32.mrb[8].mxu1 }
 0x112   : > { %v5007_v27 = vpop.f32.mrb[9].mxu1  ;;  %v3661_v28 = vpop.f32.mrb[8].mxu0 }
 0x113   : > { %v5010_v30 = vpop.f32.mrb[10].mxu1  ;;  %v3662_v31 = vpop.f32.mrb[9].mxu0 }
 0x114   : > { %v5014_v34 = vpop.f32.mrb[11].mxu1  ;;  %v5016_v35 = vadd.f32 %v3662_v31, %v3661_v28  ;;  %v3664_v36 = vpop.f32.mrb[10].mxu0 }
 0x115   : > { %v3665_v38 = vpop.f32.mrb[11].mxu0 }
 0x116   : > { %2447 = vmatmul.mubr.bf16.gmra.mrb[116].mxu1 %v4507_v29  ;;  %v5019_v39 = vadd.f32 %v3665_v38, %v3664_v36  ;;  %v4529_v29 = vld [vmem:[%s4683_s20 + $0xb0] ss:$36 sps:$4 sm:$0xff]   ;;  %v4530_v38 = vld [vmem:[%s4683_s20 + $0x298] ss:$36 sps:$4 sm:$0xff]  }
 0x117   : > { %2672 = vmatmul.mubr.bf16.gmra.mrb[116].mxu0 %v4508_v32  ;;  %2454 = vmatprep.mubr.bf16.mxu1 %v4509_v33 }
 0x118   : > { %2679 = vmatprep.mubr.bf16.mxu0 %v4511_v37 }
 0x119   : > { %v5021_v40 = vpop.f32.mrb[12].mxu1 }
 0x11a   : > { %v5023_v41 = vpop.f32.mrb[13].mxu1  ;;  %v3667_v42 = vpop.f32.mrb[12].mxu0 }
 0x11b   : > { %v5026_v44 = vpop.f32.mrb[14].mxu1  ;;  %v3668_v45 = vpop.f32.mrb[13].mxu0 }
 0x11c   : > { %v5030_v48 = vpop.f32.mrb[15].mxu1  ;;  %v5032_v49 = vadd.f32 %v3668_v45, %v3667_v42  ;;  %v3670_v50 = vpop.f32.mrb[14].mxu0  ;;  %v4531_v45 = vld [vmem:[%s4683_s20 + $0xf8] ss:$36 sps:$4 sm:$0xff]  }
 0x11d   : > { %v3671_v52 = vpop.f32.mrb[15].mxu0 }
 0x11e   : > { %2455 = vmatmul.mubr.bf16.gmra.mrb[120].mxu1 %v4513_v43  ;;  %v5035_v53 = vadd.f32 %v3671_v52, %v3670_v50  ;;  %v4534_v52 = vld [vmem:[%s4683_s20 + $0x140] ss:$36 sps:$4 sm:$0xff]  }
 0x11f   : > { %2680 = vmatmul.mubr.bf16.gmra.mrb[120].mxu0 %v4514_v46  ;;  %2462 = vmatprep.mubr.bf16.mxu1 %v4516_v47  ;;  %v4532_v46 = vld [vmem:[%s4683_s20 + $0x2e4] ss:$36 sps:$4 sm:$0xff]  }
 0x120   : > { %2687 = vmatprep.mubr.bf16.mxu0 %v4518_v51 }
 0x121   : > { %v5037_v54 = vpop.f32.mrb[16].mxu1 }
 0x122   : > { %v5039_v55 = vpop.f32.mrb[17].mxu1  ;;  %v3673_v56 = vpop.f32.mrb[16].mxu0 }
 0x123   : > { %v5042_v58 = vpop.f32.mrb[18].mxu1  ;;  %v3674_v59 = vpop.f32.mrb[17].mxu0 }
 0x124   : > { %v5046_v0 = vpop.f32.mrb[19].mxu1  ;;  %v5048_v1 = vadd.f32 %v3674_v59, %v3673_v56  ;;  %v3676_v3 = vpop.f32.mrb[18].mxu0 }
 0x125   : > { %v3677_v5 = vpop.f32.mrb[19].mxu0 }
 0x126   : > { %2463 = vmatmul.mubr.bf16.gmra.mrb[124].mxu1 %v4520_v57  ;;  %v5051_v8 = vadd.f32 %v3677_v5, %v3676_v3  ;;  %v4535_v3 = vld [vmem:[%s4683_s20 + $0x2e0] ss:$36 sps:$4 sm:$0xff]  }
 0x127   : > { %2688 = vmatmul.mubr.bf16.gmra.mrb[124].mxu0 %v4521_v60  ;;  %2470 = vmatprep.mubr.bf16.mxu1 %v4522_v61 }
 0x128   : > { %4057 = vmatprep.mubr.bf16.mxu0 %v4524_v4 }
 0x129   : > { %v5053_v9 = vpop.f32.mrb[20].mxu1 }
 0x12a   : > { %v5055_v10 = vpop.f32.mrb[21].mxu1  ;;  %v3679_v14 = vpop.f32.mrb[20].mxu0 }
 0x12b   : > { %v5058_v17 = vpop.f32.mrb[22].mxu1  ;;  %v3680_v18 = vpop.f32.mrb[21].mxu0 }
 0x12c   : > { %v5062_v23 = vpop.f32.mrb[23].mxu1  ;;  %v5064_v24 = vadd.f32 %v3680_v18, %v3679_v14  ;;  %v3682_v28 = vpop.f32.mrb[22].mxu0  ;;  %v4536_v14 = vld [vmem:[%s4683_s20 + $0x188] ss:$36 sps:$4 sm:$0xff]  }
 0x12d   : > { %v3683_v31 = vpop.f32.mrb[23].mxu0 }
 0x12e   : > { %2471 = vmatmul.mubr.bf16.gmra.mrb[128].mxu1 %v4525_v15  ;;  %v5067_v32 = vadd.f32 %v3683_v31, %v3682_v28  ;;  %v4537_v15 = vld [vmem:[%s4683_s20 + $0x32c] ss:$36 sps:$4 sm:$0xff]  }
 0x12f   : > { %4058 = vmatmul.mubr.bf16.vlgmr.msra.gmra.mrb[128].mxu0 %v4526_v19  ;;  %2478 = vmatprep.mubr.bf16.mxu1 %v4527_v22  ;;  %v4539_v28 = vld [vmem:[%s4683_s20 + $0x1d0] ss:$36 sps:$4 sm:$0xff]  }
 0x130   : > { %4061 = vmatprep.mubr.bf16.mxu0 %v4529_v29 }
 0x131   : > { %v5069_v33 = vpop.f32.mrb[24].mxu1 }
 0x132   : > { %v5071_v36 = vpop.f32.mrb[25].mxu1  ;;  %v3685_v37 = vpop.f32.mrb[24].mxu0 }
 0x133   : > { %v5074_v42 = vpop.f32.mrb[26].mxu1  ;;  %v3686_v43 = vpop.f32.mrb[25].mxu0 }
 0x134   : > { %v5078_v47 = vpop.f32.mrb[27].mxu1  ;;  %v5080_v50 = vadd.f32 %v3686_v43, %v3685_v37  ;;  %v3688_v51 = vpop.f32.mrb[26].mxu0 }
 0x135   : > { %v3689_v56 = vpop.f32.mrb[27].mxu0 }
 0x136   : > { %2479 = vmatmul.mubr.bf16.gmra.mrb[132].mxu1 %v4530_v38  ;;  %v5083_v57 = vadd.f32 %v3689_v56, %v3688_v51  ;;  %v4541_v56 = vld [vmem:[%s4683_s20 + $0x218] ss:$36 sps:$4 sm:$0xff]  }
 0x137   : > { %4062 = vmatmul.mubr.bf16.gmra.mrb[132].mxu0 %v4531_v45  ;;  %2486 = vmatprep.mubr.bf16.mxu1 %v4532_v46  ;;  %v4540_v45 = vld [vmem:[%s4683_s20 + $0x328] ss:$36 sps:$4 sm:$0xff]  }
 0x138   : > { %4065 = vmatprep.mubr.bf16.mxu0 %v4534_v52 }
 0x139   : > { %v5085_v59 = vpop.f32.mrb[28].mxu1 }
 0x13a   : > { %5492 = vst [vmem:[#allocation2_spill] sm:$0xff] %v5085_v59  ;;  %v5087_v60 = vpop.f32.mrb[29].mxu1  ;;  %v3691_v61 = vpop.f32.mrb[28].mxu0 }
 0x13b   : > { %v5090_v4 = vpop.f32.mrb[30].mxu1  ;;  %v3692_v5 = vpop.f32.mrb[29].mxu0 }
 0x13c   : > { %5493 = vst [vmem:[#allocation3_spill] sm:$0xff] %v5090_v4  ;;  %v5094_v18 = vpop.f32.mrb[31].mxu1  ;;  %v5096_v19 = vadd.f32 %v3692_v5, %v3691_v61  ;;  %v3694_v22 = vpop.f32.mrb[30].mxu0  ;;  %v4542_v61 = vld [vmem:[%s4683_s20 + $0x374] ss:$36 sps:$4 sm:$0xff]  }
 0x13d   : > { %v3695_v29 = vpop.f32.mrb[31].mxu0 }
 0x13e   : > { %2487 = vmatmul.mubr.bf16.gmra.mrb[136].mxu1 %v4535_v3  ;;  %v5099_v31 = vadd.f32 %v3695_v29, %v3694_v22  ;;  %v4544_v3 = vld [vmem:[%s4683_s20 + $0x260] ss:$36 sps:$4 sm:$0xff]  }
 0x13f   : > { %4066 = vmatmul.mubr.bf16.gmra.mrb[136].mxu0 %v4536_v14  ;;  %2494 = vmatprep.mubr.bf16.mxu1 %v4537_v15 }
 0x140   : > { %4069 = vmatprep.mubr.bf16.mxu0 %v4539_v28 }
 0x141   : > { %v3537_v37 = vpop.f32.mrb[32].mxu1 }
 0x142   : > { %v3538_v38 = vpop.f32.mrb[33].mxu1  ;;  %v3697_v43 = vpop.f32.mrb[32].mxu0 }
 0x143   : > { %v3539_v46 = vadd.f32 %v3538_v38, %v3537_v37  ;;  %v3540_v51 = vpop.f32.mrb[34].mxu1  ;;  %v3698_v52 = vpop.f32.mrb[33].mxu0 }
 0x144   : > { %v3541_v5 = vpop.f32.mrb[35].mxu1  ;;  %v5104_v4 = vadd.f32 %v3698_v52, %v3697_v43  ;;  %v3700_v59 = vpop.f32.mrb[34].mxu0 }
 0x145   : > { %v2087_v22 = vadd.f32 %v3539_v46, %v4975_v63  ;;  %v3542_v14 = vadd.f32 %v3541_v5, %v3540_v51  ;;  %v3701_v15 = vpop.f32.mrb[35].mxu0  ;;  %v4545_v51 = vld [vmem:[%s4683_s20 + $0x370] ss:$36 sps:$4 sm:$0xff]   ;;  %v4546_v5 = vld [vmem:[%s4683_s20 + $0x2a8] ss:$36 sps:$4 sm:$0xff]  }
 0x146   : > { %2495 = vmatmul.mubr.bf16.gmra.mrb[140].mxu1 %v4540_v45  ;;  %v5108_v28 = vadd.f32 %v3701_v15, %v3700_v59  ;;  %v4547_v15 = vld [vmem:[%s4683_s20 + $0x3bc] ss:$36 sps:$4 sm:$0xff]  }
 0x147   : > { %v2090_v29 = vadd.f32 %v3542_v14, %v4982_v6  ;;  %4070 = vmatmul.mubr.bf16.gmra.mrb[140].mxu0 %v4541_v56  ;;  %2502 = vmatprep.mubr.bf16.mxu1 %v4542_v61  ;;  %v5112_v37 = vadd.f32 %v4984_v7, %v2087_v22  ;;  %v4549_v7 = vld [vmem:[%s4683_s20 + $0x2f0] ss:$36 sps:$4 sm:$0xff]  }
 0x148   : > { %4073 = vmatprep.mubr.bf16.mxu0 %v4544_v3 }
 0x149   : > { %v3543_v38 = vpop.f32.mrb[36].mxu1  ;;  %v5115_v43 = vadd.f32 %v4987_v11, %v2090_v29 }
 0x14a   : > { %v3544_v63 = vpop.f32.mrb[37].mxu1  ;;  %v3703_v46 = vpop.f32.mrb[36].mxu0 }
 0x14b   : > { %v3545_v45 = vadd.f32 %v3544_v63, %v3543_v38  ;;  %v3546_v52 = vpop.f32.mrb[38].mxu1  ;;  %v3704_v59 = vpop.f32.mrb[37].mxu0 }
 0x14c   : > { %v3547_v6 = vpop.f32.mrb[39].mxu1  ;;  %v5120_v56 = vadd.f32 %v3704_v59, %v3703_v46  ;;  %v3706_v61 = vpop.f32.mrb[38].mxu0 }
 0x14d   : > { %v2095_v3 = vadd.f32 %v4973_v62, %v3545_v45  ;;  %v3548_v22 = vadd.f32 %v3547_v6, %v3546_v52  ;;  %v3707_v14 = vpop.f32.mrb[39].mxu0  ;;  %v4550_v52 = vld [vmem:[%s4683_s20 + $0x3b8] ss:$36 sps:$4 sm:$0xff]  }
 0x14e   : > { %2503 = vmatmul.mubr.bf16.gmra.mrb[144].mxu1 %v4545_v51  ;;  %v5124_v11 = vadd.f32 %v3707_v14, %v3706_v61  ;;  %v4551_v61 = vld [vmem:[%s4683_s20 + $0x338] ss:$36 sps:$4 sm:$0xff]   ;;  %v4552_v14 = vld [vmem:[%s4683_s20 + $0x404] ss:$36 sps:$4 sm:$0xff]  }
 0x14f   : > { %v2098_v29 = vadd.f32 %v4978_v2, %v3548_v22  ;;  %4074 = vmatmul.mubr.bf16.gmra.mrb[144].mxu0 %v4546_v5  ;;  %2510 = vmatprep.mubr.bf16.mxu1 %v4547_v15  ;;  %v5128_v38 = vadd.f32 %v5000_v21, %v2095_v3  ;;  %v4554_v21 = vld [vmem:[%s4683_s20 + $0x380] ss:$36 sps:$4 sm:$0xff]  }
 0x150   : > { %4077 = vmatprep.mubr.bf16.mxu0 %v4549_v7 }
 0x151   : > { %v3549_v63 = vpop.f32.mrb[40].mxu1  ;;  %v5131_v46 = vadd.f32 %v5003_v25, %v2098_v29 }
 0x152   : > { %v3550_v62 = vpop.f32.mrb[41].mxu1  ;;  %v3709_v45 = vpop.f32.mrb[40].mxu0 }
 0x153   : > { %v3551_v51 = vadd.f32 %v3550_v62, %v3549_v63  ;;  %v3552_v59 = vpop.f32.mrb[42].mxu1  ;;  %v3710_v6 = vpop.f32.mrb[41].mxu0 }
 0x154   : > { %v3553_v2 = vpop.f32.mrb[43].mxu1  ;;  %v5136_v5 = vadd.f32 %v3710_v6, %v3709_v45  ;;  %v3712_v15 = vpop.f32.mrb[42].mxu0 }
 0x155   : > { %v2103_v7 = vadd.f32 %v3551_v51, %v4991_v13  ;;  %v3554_v3 = vadd.f32 %v3553_v2, %v3552_v59  ;;  %v3713_v22 = vpop.f32.mrb[43].mxu0  ;;  %v4555_v59 = vld [vmem:[%s4683_s20 + $0x400] ss:$36 sps:$4 sm:$0xff]  }
 0x156   : > { %2511 = vmatmul.mubr.bf16.gmra.mrb[148].mxu1 %v4550_v52  ;;  %v5140_v25 = vadd.f32 %v3713_v22, %v3712_v15  ;;  %v4556_v15 = vld [vmem:[%s4683_s20 + $0x3c8] ss:$36 sps:$4 sm:$0xff]  }
 0x157   : > { %v2106_v29 = vadd.f32 %v3554_v3, %v4998_v20  ;;  %4078 = vmatmul.mubr.bf16.gmra.mrb[148].mxu0 %v4551_v61  ;;  %2518 = vmatprep.mubr.bf16.mxu1 %v4552_v14  ;;  %v5144_v63 = vadd.f32 %v5016_v35, %v2103_v7  ;;  %v4557_v22 = vld [vmem:[%s4683_s20 + $0x44c] ss:$36 sps:$4 sm:$0xff]  }
 0x158   : > { %4081 = vmatprep.mubr.bf16.mxu0 %v4554_v21  ;;  %v4559_v35 = vld [vmem:[%s4683_s20 + $0x410] ss:$36 sps:$4 sm:$0xff]  }
 0x159   : > { %v3555_v62 = vpop.f32.mrb[44].mxu1  ;;  %v5147_v45 = vadd.f32 %v5019_v39, %v2106_v29 }
 0x15a   : > { %v3556_v13 = vpop.f32.mrb[45].mxu1  ;;  %v3715_v51 = vpop.f32.mrb[44].mxu0 }
 0x15b   : > { %5494 = vst [vmem:[#allocation4_spill] sm:$0xff] %v5147_v45  ;;  %v3557_v52 = vadd.f32 %v3556_v13, %v3555_v62  ;;  %v3558_v6 = vpop.f32.mrb[46].mxu1  ;;  %v3716_v2 = vpop.f32.mrb[45].mxu0 }
 0x15c   : > { %v3559_v20 = vpop.f32.mrb[47].mxu1  ;;  %v5152_v61 = vadd.f32 %v3716_v2, %v3715_v51  ;;  %v3718_v14 = vpop.f32.mrb[46].mxu0 }
 0x15d   : > { %v2111_v21 = vadd.f32 %v4989_v12, %v3557_v52  ;;  %v3560_v7 = vadd.f32 %v3559_v20, %v3558_v6  ;;  %v3719_v3 = vpop.f32.mrb[47].mxu0  ;;  %v4560_v52 = vld [vmem:[%s4683_s20 + $0x448] ss:$36 sps:$4 sm:$0xff]  }
 0x15e   : > { %2519 = vmatmul.mubr.bf16.gmra.mrb[152].mxu1 %v4555_v59  ;;  %v5156_v39 = vadd.f32 %v3719_v3, %v3718_v14  ;;  %v4561_v14 = vld [vmem:[%s4683_s20 + $0x458] ss:$36 sps:$4 sm:$0xff]  }
 0x15f   : > { %v2114_v29 = vadd.f32 %v4994_v16, %v3560_v7  ;;  %4082 = vmatmul.mubr.bf16.gmra.mrb[152].mxu0 %v4556_v15  ;;  %2526 = vmatprep.mubr.bf16.mxu1 %v4557_v22  ;;  %v5160_v62 = vadd.f32 %v5032_v49, %v2111_v21 }
 0x160   : > { %4085 = vmatprep.mubr.bf16.mxu0 %v4559_v35 }
 0x161   : > { %v3561_v13 = vpop.f32.mrb[48].mxu1  ;;  %v5163_v51 = vadd.f32 %v5035_v53, %v2114_v29 }
 0x162   : > { %v3562_v2 = vpop.f32.mrb[49].mxu1  ;;  %v3721_v12 = vpop.f32.mrb[48].mxu0 }
 0x163   : > { %v3563_v6 = vadd.f32 %v3562_v2, %v3561_v13  ;;  %v3564_v20 = vpop.f32.mrb[50].mxu1  ;;  %v3722_v59 = vpop.f32.mrb[49].mxu0 }
 0x164   : > { %v3565_v3 = vpop.f32.mrb[51].mxu1  ;;  %v5167_v45 = vadd.f32 %v3722_v59, %v3721_v12  ;;  %v3724_v16 = vpop.f32.mrb[50].mxu0 }
 0x165   : > { %v2119_v15 = vadd.f32 %v3563_v6, %v5007_v27  ;;  %v3566_v49 = vadd.f32 %v3565_v3, %v3564_v20  ;;  %v3725_v22 = vpop.f32.mrb[51].mxu0 }
 0x166   : > { %2527 = vmatmul.mubr.bf16.gmra.mrb[156].mxu1 %v4560_v52  ;;  %v5170_v35 = vadd.f32 %v3725_v22, %v3724_v16 }
 0x167   : > { %v2122_v53 = vadd.f32 %v3566_v49, %v5014_v34  ;;  %4086 = vmatmul.mubr.bf16.gmra.mrb[156].mxu0 %v4561_v14  ;;  %v5174_v21 = vadd.f32 %v5048_v1, %v2119_v15 }
 0x169   : > { %v3567_v7 = vpop.f32.mrb[52].mxu1  ;;  %v5177_v29 = vadd.f32 %v5051_v8, %v2122_v53 }
 0x16a   : > { %v3568_v13 = vpop.f32.mrb[53].mxu1  ;;  %v3727_v2 = vpop.f32.mrb[52].mxu0 }
 0x16b   : > { %v3569_v12 = vadd.f32 %v3568_v13, %v3567_v7  ;;  %v3570_v59 = vpop.f32.mrb[54].mxu1  ;;  %v3728_v27 = vpop.f32.mrb[53].mxu0 }
 0x16c   : > { %v3571_v6 = vpop.f32.mrb[55].mxu1  ;;  %v5179_v20 = vadd.f32 %v3728_v27, %v3727_v2  ;;  %v3730_v52 = vpop.f32.mrb[54].mxu0 }
 0x16d   : > { %v2127_v3 = vadd.f32 %v5005_v26, %v3569_v12  ;;  %v3572_v34 = vadd.f32 %v3571_v6, %v3570_v59  ;;  %v3731_v14 = vpop.f32.mrb[55].mxu0 }
 0x16e   : > { %v5182_v16 = vadd.f32 %v3731_v14, %v3730_v52 }
 0x16f   : > { %v2130_v1 = vadd.f32 %v5010_v30, %v3572_v34  ;;  %v5186_v8 = vadd.f32 %v5064_v24, %v2127_v3 }
 0x171   : > { %v3573_v15 = vpop.f32.mrb[56].mxu1  ;;  %v5189_v49 = vadd.f32 %v5067_v32, %v2130_v1 }
 0x172   : > { %v3574_v22 = vpop.f32.mrb[57].mxu1  ;;  %v3733_v53 = vpop.f32.mrb[56].mxu0 }
 0x173   : > { %v3575_v7 = vadd.f32 %v3574_v22, %v3573_v15  ;;  %v3576_v13 = vpop.f32.mrb[58].mxu1  ;;  %v3734_v2 = vpop.f32.mrb[57].mxu0 }
 0x174   : > { %v3577_v27 = vpop.f32.mrb[59].mxu1  ;;  %v5191_v26 = vadd.f32 %v3734_v2, %v3733_v53  ;;  %v3736_v12 = vpop.f32.mrb[58].mxu0 }
 0x175   : > { %v2135_v59 = vadd.f32 %v3575_v7, %v5023_v41  ;;  %v3578_v6 = vadd.f32 %v3577_v27, %v3576_v13  ;;  %v3737_v30 = vpop.f32.mrb[59].mxu0 }
 0x176   : > { %v5194_v52 = vadd.f32 %v3737_v30, %v3736_v12 }
 0x177   : > { %v2138_v24 = vadd.f32 %v3578_v6, %v5030_v48  ;;  %v5198_v32 = vadd.f32 %v5080_v50, %v2135_v59 }
 0x179   : > { %v3579_v3 = vpop.f32.mrb[60].mxu1  ;;  %v5201_v34 = vadd.f32 %v5083_v57, %v2138_v24 }
 0x17a   : > { %v3580_v14 = vpop.f32.mrb[61].mxu1  ;;  %v3739_v1 = vpop.f32.mrb[60].mxu0 }
 0x17b   : > { %v3581_v15 = vadd.f32 %v3580_v14, %v3579_v3  ;;  %v3582_v22 = vpop.f32.mrb[62].mxu1  ;;  %v3740_v53 = vpop.f32.mrb[61].mxu0 }
 0x17c   : > { %v3583_v2 = vpop.f32.mrb[63].mxu1  ;;  %v5203_v41 = vadd.f32 %v3740_v53, %v3739_v1  ;;  %v3742_v7 = vpop.f32.mrb[62].mxu0 }
 0x17d   : > { %v2143_v13 = vadd.f32 %v5021_v40, %v3581_v15  ;;  %v3584_v27 = vadd.f32 %v3583_v2, %v3582_v22  ;;  %v3743_v48 = vpop.f32.mrb[63].mxu0 }
 0x17e   : > { %v5206_v12 = vadd.f32 %v3743_v48, %v3742_v7 }
 0x17f   : > { %v2146_v50 = vadd.f32 %v5026_v44, %v3584_v27  ;;  %v5210_v57 = vadd.f32 %v5096_v19, %v2143_v13 }
 0x181   : > { %v3585_v59 = vpop.f32.mrb[64].mxu1  ;;  %v5213_v6 = vadd.f32 %v5099_v31, %v2146_v50 }
 0x182   : > { %v3586_v30 = vpop.f32.mrb[65].mxu1  ;;  %v3873_v24 = vpop.f32.mrb[64].mxu0 }
 0x183   : > { %v3587_v3 = vadd.f32 %v3586_v30, %v3585_v59  ;;  %v3588_v14 = vpop.f32.mrb[66].mxu1  ;;  %v3874_v1 = vpop.f32.mrb[65].mxu0 }
 0x184   : > { %v3589_v53 = vpop.f32.mrb[67].mxu1  ;;  %v5215_v40 = vadd.f32 %v3874_v1, %v3873_v24  ;;  %v3876_v15 = vpop.f32.mrb[66].mxu0 }
 0x185   : > { %v2151_v22 = vadd.f32 %v3587_v3, %v5039_v55  ;;  %v3590_v2 = vadd.f32 %v3589_v53, %v3588_v14  ;;  %v3877_v44 = vpop.f32.mrb[67].mxu0 }
 0x186   : > { %v5218_v7 = vadd.f32 %v3877_v44, %v3876_v15 }
 0x187   : > { %v2154_v19 = vadd.f32 %v3590_v2, %v5046_v0  ;;  %v5222_v31 = vadd.f32 %v5104_v4, %v2151_v22 }
 0x189   : > { %v3591_v13 = vpop.f32.mrb[68].mxu1  ;;  %v5225_v27 = vadd.f32 %v5108_v28, %v2154_v19 }
 0x18a   : > { %v3592_v48 = vpop.f32.mrb[69].mxu1  ;;  %v3879_v50 = vpop.f32.mrb[68].mxu0 }
 0x18b   : > { %v3593_v59 = vadd.f32 %v3592_v48, %v3591_v13  ;;  %v3594_v30 = vpop.f32.mrb[70].mxu1  ;;  %v3880_v24 = vpop.f32.mrb[69].mxu0 }
 0x18c   : > { %v3595_v1 = vpop.f32.mrb[71].mxu1  ;;  %v5227_v55 = vadd.f32 %v3880_v24, %v3879_v50  ;;  %v3882_v3 = vpop.f32.mrb[70].mxu0 }
 0x18d   : > { %v2159_v14 = vadd.f32 %v5037_v54, %v3593_v59  ;;  %v3596_v53 = vadd.f32 %v3595_v1, %v3594_v30  ;;  %v3883_v0 = vpop.f32.mrb[71].mxu0 }
 0x18e   : > { %v5230_v15 = vadd.f32 %v3883_v0, %v3882_v3 }
 0x18f   : > { %v2162_v4 = vadd.f32 %v5042_v58, %v3596_v53  ;;  %v5234_v28 = vadd.f32 %v5120_v56, %v2159_v14 }
 0x191   : > { %v3597_v22 = vpop.f32.mrb[72].mxu1  ;;  %v5237_v2 = vadd.f32 %v5124_v11, %v2162_v4 }
 0x192   : > { %v3598_v44 = vpop.f32.mrb[73].mxu1  ;;  %v3885_v19 = vpop.f32.mrb[72].mxu0 }
 0x193   : > { %v3599_v13 = vadd.f32 %v3598_v44, %v3597_v22  ;;  %v3600_v48 = vpop.f32.mrb[74].mxu1  ;;  %v3886_v50 = vpop.f32.mrb[73].mxu0 }
 0x194   : > { %v3601_v24 = vpop.f32.mrb[75].mxu1  ;;  %v5239_v54 = vadd.f32 %v3886_v50, %v3885_v19  ;;  %v3888_v59 = vpop.f32.mrb[74].mxu0 }
 0x195   : > { %v2167_v30 = vadd.f32 %v3599_v13, %v5055_v10  ;;  %v3602_v1 = vadd.f32 %v3601_v24, %v3600_v48  ;;  %v3889_v58 = vpop.f32.mrb[75].mxu0 }
 0x196   : > { %v5242_v3 = vadd.f32 %v3889_v58, %v3888_v59 }
 0x197   : > { %v2170_v56 = vadd.f32 %v3602_v1, %v5062_v23  ;;  %v5246_v11 = vadd.f32 %v5136_v5, %v2167_v30 }
 0x199   : > { %v3603_v14 = vpop.f32.mrb[76].mxu1  ;;  %v5249_v53 = vadd.f32 %v5140_v25, %v2170_v56 }
 0x19a   : > { %v3604_v0 = vpop.f32.mrb[77].mxu1  ;;  %v3891_v4 = vpop.f32.mrb[76].mxu0 }
 0x19b   : > { %v3605_v22 = vadd.f32 %v3604_v0, %v3603_v14  ;;  %v3606_v44 = vpop.f32.mrb[78].mxu1  ;;  %v3892_v19 = vpop.f32.mrb[77].mxu0 }
 0x19c   : > { %v3607_v50 = vpop.f32.mrb[79].mxu1  ;;  %v5251_v10 = vadd.f32 %v3892_v19, %v3891_v4  ;;  %v3894_v13 = vpop.f32.mrb[78].mxu0 }
 0x19d   : > { %v2175_v48 = vadd.f32 %v5053_v9, %v3605_v22  ;;  %v3608_v24 = vadd.f32 %v3607_v50, %v3606_v44  ;;  %v3895_v23 = vpop.f32.mrb[79].mxu0 }
 0x19e   : > { %v5254_v59 = vadd.f32 %v3895_v23, %v3894_v13 }
 0x19f   : > { %v2178_v5 = vadd.f32 %v5058_v17, %v3608_v24  ;;  %v5258_v25 = vadd.f32 %v5152_v61, %v2175_v48 }
 0x1a1   : > { %v3609_v30 = vpop.f32.mrb[80].mxu1  ;;  %v5261_v1 = vadd.f32 %v5156_v39, %v2178_v5 }
 0x1a2   : > { %v3610_v58 = vpop.f32.mrb[81].mxu1  ;;  %v3897_v56 = vpop.f32.mrb[80].mxu0 }
 0x1a3   : > { %v3611_v14 = vadd.f32 %v3610_v58, %v3609_v30  ;;  %v3612_v0 = vpop.f32.mrb[82].mxu1  ;;  %v3898_v4 = vpop.f32.mrb[81].mxu0 }
 0x1a4   : > { %v3613_v19 = vpop.f32.mrb[83].mxu1  ;;  %v5263_v9 = vadd.f32 %v3898_v4, %v3897_v56  ;;  %v3900_v22 = vpop.f32.mrb[82].mxu0 }
 0x1a5   : > { %v2183_v44 = vadd.f32 %v3611_v14, %v5071_v36  ;;  %v3614_v50 = vadd.f32 %v3613_v19, %v3612_v0  ;;  %v3901_v17 = vpop.f32.mrb[83].mxu0 }
 0x1a6   : > { %v5266_v13 = vadd.f32 %v3901_v17, %v3900_v22 }
 0x1a7   : > { %v2186_v61 = vadd.f32 %v3614_v50, %v5078_v47  ;;  %v5270_v39 = vadd.f32 %v5167_v45, %v2183_v44 }
 0x1a9   : > { %v3615_v48 = vpop.f32.mrb[84].mxu1  ;;  %v5273_v24 = vadd.f32 %v5170_v35, %v2186_v61 }
 0x1aa   : > { %v3616_v23 = vpop.f32.mrb[85].mxu1  ;;  %v3903_v5 = vpop.f32.mrb[84].mxu0 }
 0x1ab   : > { %v3617_v30 = vadd.f32 %v3616_v23, %v3615_v48  ;;  %v3618_v58 = vpop.f32.mrb[86].mxu1  ;;  %v3904_v56 = vpop.f32.mrb[85].mxu0 }
 0x1ac   : > { %v3619_v4 = vpop.f32.mrb[87].mxu1  ;;  %v5275_v36 = vadd.f32 %v3904_v56, %v3903_v5  ;;  %v3906_v14 = vpop.f32.mrb[86].mxu0 }
 0x1ad   : > { %v2191_v0 = vadd.f32 %v5069_v33, %v3617_v30  ;;  %v3620_v19 = vadd.f32 %v3619_v4, %v3618_v58  ;;  %v3907_v47 = vpop.f32.mrb[87].mxu0 }
 0x1ae   : > { %v5278_v22 = vadd.f32 %v3907_v47, %v3906_v14 }
 0x1af   : > { %v2194_v45 = vadd.f32 %v5074_v42, %v3620_v19  ;;  %v5282_v35 = vadd.f32 %v5179_v20, %v2191_v0 }
 0x1b1   : > { %v3621_v44 = vpop.f32.mrb[88].mxu1  ;;  %v5285_v50 = vadd.f32 %v5182_v16, %v2194_v45 }
 0x1b2   : > { %v3622_v17 = vpop.f32.mrb[89].mxu1  ;;  %v3909_v61 = vpop.f32.mrb[88].mxu0 }
 0x1b3   : > { %v3623_v48 = vadd.f32 %v3622_v17, %v3621_v44  ;;  %v3624_v23 = vpop.f32.mrb[90].mxu1  ;;  %v3910_v5 = vpop.f32.mrb[89].mxu0 }
 0x1b4   : > { %v3625_v56 = vpop.f32.mrb[91].mxu1  ;;  %v5287_v33 = vadd.f32 %v3910_v5, %v3909_v61  ;;  %v3912_v30 = vpop.f32.mrb[90].mxu0 }
 0x1b5   : > { %v2199_v58 = vadd.f32 %v3623_v48, %v5087_v60  ;;  %v3626_v4 = vadd.f32 %v3625_v56, %v3624_v23  ;;  %v3913_v42 = vpop.f32.mrb[91].mxu0  ;;  %v5497_v23 = vld [vmem:[#allocation2_spill] sm:$0xff] }
 0x1b6   : > { %v5290_v14 = vadd.f32 %v3913_v42, %v3912_v30 }
 0x1b7   : > { %v2202_v20 = vadd.f32 %v3626_v4, %v5094_v18  ;;  %v5294_v16 = vadd.f32 %v5191_v26, %v2199_v58  ;;  %v5498_v26 = vld [vmem:[#allocation3_spill] sm:$0xff] }
 0x1b9   : > { %5495 = vst [vmem:[#allocation5_spill] sm:$0xff] %v5294_v16  ;;  %v3627_v0 = vpop.f32.mrb[92].mxu1  ;;  %v5297_v19 = vadd.f32 %v5194_v52, %v2202_v20 }
 0x1ba   : > { %v3628_v47 = vpop.f32.mrb[93].mxu1  ;;  %v3915_v45 = vpop.f32.mrb[92].mxu0 }
 0x1bb   : > { %5496 = vst [vmem:[#allocation6_spill] sm:$0xff] %v5297_v19  ;;  %v3629_v44 = vadd.f32 %v3628_v47, %v3627_v0  ;;  %v3630_v17 = vpop.f32.mrb[94].mxu1  ;;  %v3916_v61 = vpop.f32.mrb[93].mxu0 }
 0x1bc   : > { %v3631_v5 = vpop.f32.mrb[95].mxu1  ;;  %v5299_v60 = vadd.f32 %v3916_v61, %v3915_v45  ;;  %v3918_v48 = vpop.f32.mrb[94].mxu0 }
 0x1bd   : > { %v2207_v56 = vadd.f32 %v5497_v23, %v3629_v44  ;;  %v3632_v30 = vadd.f32 %v3631_v5, %v3630_v17  ;;  %v3919_v18 = vpop.f32.mrb[95].mxu0 }
 0x1be   : > { %v5302_v4 = vadd.f32 %v3919_v18, %v3918_v48 }
 0x1bf   : > { %v2210_v58 = vadd.f32 %v5498_v26, %v3632_v30  ;;  %v5306_v52 = vadd.f32 %v5203_v41, %v2207_v56 }
 0x1c1   : > { %v3761_v42 = vpop.f32.mrb[96].mxu1  ;;  %v5309_v20 = vadd.f32 %v5206_v12, %v2210_v58 }
 0x1c2   : > { %v3762_v0 = vpop.f32.mrb[97].mxu1  ;;  %v3921_v47 = vpop.f32.mrb[96].mxu0 }
 0x1c3   : > { %5499 = vst [vmem:[#allocation2_spill] sm:$0xff] %v5309_v20  ;;  %v3763_v45 = vadd.f32 %v3762_v0, %v3761_v42  ;;  %v3764_v61 = vpop.f32.mrb[98].mxu1  ;;  %v3922_v19 = vpop.f32.mrb[97].mxu0 }
 0x1c4   : > { %v3765_v16 = vpop.f32.mrb[99].mxu1  ;;  %v5311_v44 = vadd.f32 %v3922_v19, %v3921_v47  ;;  %v3924_v17 = vpop.f32.mrb[98].mxu0 }
 0x1c5   : > { %v2409_v5 = vadd.f32 %v3763_v45, %v5112_v37  ;;  %v3766_v48 = vadd.f32 %v3765_v16, %v3764_v61  ;;  %v3925_v23 = vpop.f32.mrb[99].mxu0 }
 0x1c6   : > { %v5314_v30 = vadd.f32 %v3925_v23, %v3924_v17 }
 0x1c7   : > { %v2412_v41 = vadd.f32 %v3766_v48, %v5115_v43  ;;  %v5318_v12 = vadd.f32 %v5215_v40, %v2409_v5 }
 0x1c9   : > { %v3767_v56 = vpop.f32.mrb[100].mxu1  ;;  %v5321_v18 = vadd.f32 %v5218_v7, %v2412_v41 }
 0x1ca   : > { %v3768_v26 = vpop.f32.mrb[101].mxu1  ;;  %v3927_v58 = vpop.f32.mrb[100].mxu0 }
 0x1cb   : > { %v3769_v19 = vadd.f32 %v3768_v26, %v3767_v56  ;;  %v3770_v42 = vpop.f32.mrb[102].mxu1  ;;  %v3928_v0 = vpop.f32.mrb[101].mxu0 }
 0x1cc   : > { %v3771_v47 = vpop.f32.mrb[103].mxu1  ;;  %v5323_v37 = vadd.f32 %v3928_v0, %v3927_v58  ;;  %v3930_v16 = vpop.f32.mrb[102].mxu0 }
 0x1cd   : > { %v2417_v45 = vadd.f32 %v3769_v19, %v5128_v38  ;;  %v3772_v61 = vadd.f32 %v3771_v47, %v3770_v42  ;;  %v3931_v43 = vpop.f32.mrb[103].mxu0 }
 0x1ce   : > { %v5326_v17 = vadd.f32 %v3931_v43, %v3930_v16 }
 0x1cf   : > { %v2420_v40 = vadd.f32 %v3772_v61, %v5131_v46  ;;  %v5330_v7 = vadd.f32 %v5227_v55, %v2417_v45  ;;  %v5500_v55 = vld [vmem:[#allocation4_spill] sm:$0xff] }
 0x1d1   : > { %v3773_v5 = vpop.f32.mrb[104].mxu1  ;;  %v5333_v48 = vadd.f32 %v5230_v15, %v2420_v40 }
 0x1d2   : > { %v3774_v23 = vpop.f32.mrb[105].mxu1  ;;  %v3933_v41 = vpop.f32.mrb[104].mxu0 }
 0x1d3   : > { %v3775_v56 = vadd.f32 %v3774_v23, %v3773_v5  ;;  %v3776_v26 = vpop.f32.mrb[106].mxu1  ;;  %v3934_v58 = vpop.f32.mrb[105].mxu0 }
 0x1d4   : > { %v3777_v0 = vpop.f32.mrb[107].mxu1  ;;  %v5335_v38 = vadd.f32 %v3934_v58, %v3933_v41  ;;  %v3936_v19 = vpop.f32.mrb[106].mxu0 }
 0x1d5   : > { %v2425_v42 = vadd.f32 %v3775_v56, %v5144_v63  ;;  %v3778_v47 = vadd.f32 %v3777_v0, %v3776_v26  ;;  %v3937_v46 = vpop.f32.mrb[107].mxu0 }
 0x1d6   : > { %v5338_v16 = vadd.f32 %v3937_v46, %v3936_v19 }
 0x1d7   : > { %v2428_v45 = vadd.f32 %v3778_v47, %v5500_v55  ;;  %v5342_v15 = vadd.f32 %v5239_v54, %v2425_v42 }
 0x1d9   : > { %v3779_v61 = vpop.f32.mrb[108].mxu1  ;;  %v5345_v43 = vadd.f32 %v5242_v3, %v2428_v45 }
 0x1da   : > { %v3780_v40 = vpop.f32.mrb[109].mxu1  ;;  %v3939_v5 = vpop.f32.mrb[108].mxu0 }
 0x1db   : > { %v3781_v23 = vadd.f32 %v3780_v40, %v3779_v61  ;;  %v3782_v41 = vpop.f32.mrb[110].mxu1  ;;  %v3940_v58 = vpop.f32.mrb[109].mxu0 }
 0x1dc   : > { %v3783_v20 = vpop.f32.mrb[111].mxu1  ;;  %v5347_v63 = vadd.f32 %v3940_v58, %v3939_v5  ;;  %v3942_v56 = vpop.f32.mrb[110].mxu0 }
 0x1dd   : > { %v2433_v26 = vadd.f32 %v3781_v23, %v5160_v62  ;;  %v3784_v0 = vadd.f32 %v3783_v20, %v3782_v41  ;;  %v3943_v19 = vpop.f32.mrb[111].mxu0 }
 0x1de   : > { %v5350_v47 = vadd.f32 %v3943_v19, %v3942_v56 }
 0x1df   : > { %v2436_v54 = vadd.f32 %v3784_v0, %v5163_v51  ;;  %v5354_v3 = vadd.f32 %v5251_v10, %v2433_v26 }
 0x1e1   : > { %v3785_v42 = vpop.f32.mrb[112].mxu1  ;;  %v5357_v46 = vadd.f32 %v5254_v59, %v2436_v54 }
 0x1e2   : > { %v3786_v55 = vpop.f32.mrb[113].mxu1  ;;  %v3945_v45 = vpop.f32.mrb[112].mxu0 }
 0x1e3   : > { %v3787_v61 = vadd.f32 %v3786_v55, %v3785_v42  ;;  %v3788_v40 = vpop.f32.mrb[114].mxu1  ;;  %v3946_v5 = vpop.f32.mrb[113].mxu0 }
 0x1e4   : > { %v3789_v58 = vpop.f32.mrb[115].mxu1  ;;  %v5359_v62 = vadd.f32 %v3946_v5, %v3945_v45  ;;  %v3948_v20 = vpop.f32.mrb[114].mxu0 }
 0x1e5   : > { %v2441_v23 = vadd.f32 %v3787_v61, %v5174_v21  ;;  %v3790_v41 = vadd.f32 %v3789_v58, %v3788_v40  ;;  %v3949_v51 = vpop.f32.mrb[115].mxu0 }
 0x1e6   : > { %v5362_v56 = vadd.f32 %v3949_v51, %v3948_v20 }
 0x1e7   : > { %v2444_v10 = vadd.f32 %v3790_v41, %v5177_v29  ;;  %v5366_v59 = vadd.f32 %v5263_v9, %v2441_v23 }
 0x1e9   : > { %v3791_v26 = vpop.f32.mrb[116].mxu1  ;;  %v5369_v0 = vadd.f32 %v5266_v13, %v2444_v10 }
 0x1ea   : > { %v3792_v19 = vpop.f32.mrb[117].mxu1  ;;  %v3951_v54 = vpop.f32.mrb[116].mxu0 }
 0x1eb   : > { %v3793_v42 = vadd.f32 %v3792_v19, %v3791_v26  ;;  %v3794_v55 = vpop.f32.mrb[118].mxu1  ;;  %v3952_v45 = vpop.f32.mrb[117].mxu0 }
 0x1ec   : > { %v3795_v5 = vpop.f32.mrb[119].mxu1  ;;  %v5371_v21 = vadd.f32 %v3952_v45, %v3951_v54  ;;  %v3954_v61 = vpop.f32.mrb[118].mxu0 }
 0x1ed   : > { %v2449_v40 = vadd.f32 %v3793_v42, %v5186_v8  ;;  %v3796_v58 = vadd.f32 %v3795_v5, %v3794_v55  ;;  %v3955_v29 = vpop.f32.mrb[119].mxu0 }
 0x1ee   : > { %v5374_v20 = vadd.f32 %v3955_v29, %v3954_v61 }
 0x1ef   : > { %v2452_v9 = vadd.f32 %v3796_v58, %v5189_v49  ;;  %v5378_v13 = vadd.f32 %v5275_v36, %v2449_v40 }
 0x1f1   : > { %v3797_v23 = vpop.f32.mrb[120].mxu1  ;;  %v5381_v41 = vadd.f32 %v5278_v22, %v2452_v9 }
 0x1f2   : > { %v3798_v51 = vpop.f32.mrb[121].mxu1  ;;  %v3957_v10 = vpop.f32.mrb[120].mxu0 }
 0x1f3   : > { %v3799_v26 = vadd.f32 %v3798_v51, %v3797_v23  ;;  %v3800_v19 = vpop.f32.mrb[122].mxu1  ;;  %v3958_v54 = vpop.f32.mrb[121].mxu0 }
 0x1f4   : > { %v3801_v45 = vpop.f32.mrb[123].mxu1  ;;  %v5383_v8 = vadd.f32 %v3958_v54, %v3957_v10  ;;  %v3960_v42 = vpop.f32.mrb[122].mxu0 }
 0x1f5   : > { %v2457_v55 = vadd.f32 %v3799_v26, %v5198_v32  ;;  %v3802_v5 = vadd.f32 %v3801_v45, %v3800_v19  ;;  %v3961_v49 = vpop.f32.mrb[123].mxu0 }
 0x1f6   : > { %v5386_v61 = vadd.f32 %v3961_v49, %v3960_v42 }
 0x1f7   : > { %v2460_v36 = vadd.f32 %v3802_v5, %v5201_v34  ;;  %v5390_v22 = vadd.f32 %v5287_v33, %v2457_v55 }
 0x1f9   : > { %v3803_v40 = vpop.f32.mrb[124].mxu1  ;;  %v5393_v58 = vadd.f32 %v5290_v14, %v2460_v36 }
 0x1fa   : > { %v3804_v29 = vpop.f32.mrb[125].mxu1  ;;  %v3963_v9 = vpop.f32.mrb[124].mxu0 }
 0x1fb   : > { %v3805_v23 = vadd.f32 %v3804_v29, %v3803_v40  ;;  %v3806_v51 = vpop.f32.mrb[126].mxu1  ;;  %v3964_v10 = vpop.f32.mrb[125].mxu0 }
 0x1fc   : > { %v3807_v54 = vpop.f32.mrb[127].mxu1  ;;  %v5395_v32 = vadd.f32 %v3964_v10, %v3963_v9  ;;  %v3966_v26 = vpop.f32.mrb[126].mxu0 }
 0x1fd   : > { %v2465_v19 = vadd.f32 %v3805_v23, %v5210_v57  ;;  %v3808_v45 = vadd.f32 %v3807_v54, %v3806_v51  ;;  %v3967_v34 = vpop.f32.mrb[127].mxu0 }
 0x1fe   : > { %v5398_v42 = vadd.f32 %v3967_v34, %v3966_v26 }
 0x1ff   : > { %v2468_v33 = vadd.f32 %v3808_v45, %v5213_v6  ;;  %v5402_v14 = vadd.f32 %v5299_v60, %v2465_v19 }
 0x201   : > { %v3809_v55 = vpop.f32.mrb[128].mxu1  ;;  %v5405_v5 = vadd.f32 %v5302_v4, %v2468_v33 }
 0x202   : > { %v4059_v49 = vpop.f32.mrb[128].mxu0  ;;  %v3810_v36 = vpop.f32.mrb[129].mxu1 }
 0x203   : > { %v2739_v40 = vadd.f32 %v4059_v49, %v5330_v7  ;;  %v3811_v29 = vadd.f32 %v3810_v36, %v3809_v55  ;;  %v2730_v57 = vpop.f32.mrb[129].mxu0  ;;  %v3812_v9 = vpop.f32.mrb[130].mxu1 }
 0x204   : > { %v2731_v23 = vadd.f32 %v2730_v57, %v5318_v12  ;;  %v4060_v51 = vpop.f32.mrb[130].mxu0  ;;  %v3813_v10 = vpop.f32.mrb[131].mxu1 }
 0x205   : > { %v2473_v6 = vadd.f32 %v3811_v29, %v5222_v31  ;;  %v2742_v60 = vadd.f32 %v4060_v51, %v5333_v48  ;;  %v3814_v54 = vadd.f32 %v3813_v10, %v3812_v9  ;;  %v2733_v26 = vpop.f32.mrb[131].mxu0 }
 0x206   : > { %v2734_v4 = vadd.f32 %v2733_v26, %v5321_v18 }
 0x207   : > { %v3410_v7 = vpack.c.bf16 %v2742_v60, %v2739_v40  ;;  %v2476_v12 = vadd.f32 %v3814_v54, %v5225_v27  ;;  %v5421_v19 = vadd.f32 %v5311_v44, %v2473_v6 }
 0x208   : > { %v3405_v31 = vpack.c.bf16 %v2734_v4, %v2731_v23 }
 0x209   : > { %3482 = vst [vmem:[%s5416_s5 + $0x8] sm:$0xff] %v3410_v7   ;;  %v3815_v48 = vpop.f32.mrb[132].mxu1  ;;  %v5425_v45 = vadd.f32 %v5314_v30, %v2476_v12 }
 0x20a   : > { %3406 = vst [vmem:[%s5416_s5] sm:$0xff] %v3405_v31   ;;  %v4063_v34 = vpop.f32.mrb[132].mxu0  ;;  %v3816_v33 = vpop.f32.mrb[133].mxu1 }
 0x20b   : > { %v2755_v55 = vadd.f32 %v4063_v34, %v5354_v3  ;;  %v3817_v49 = vadd.f32 %v3816_v33, %v3815_v48  ;;  %v2746_v18 = vpop.f32.mrb[133].mxu0  ;;  %v3818_v36 = vpop.f32.mrb[134].mxu1 }
 0x20c   : > { %v2747_v27 = vadd.f32 %v2746_v18, %v5342_v15  ;;  %v4064_v44 = vpop.f32.mrb[134].mxu0  ;;  %v3819_v40 = vpop.f32.mrb[135].mxu1 }
 0x20d   : > { %v2481_v29 = vadd.f32 %v3817_v49, %v5234_v28  ;;  %v2758_v57 = vadd.f32 %v4064_v44, %v5357_v46  ;;  %v3820_v30 = vadd.f32 %v3819_v40, %v3818_v36  ;;  %v2749_v9 = vpop.f32.mrb[135].mxu0 }
 0x20e   : > { %v2750_v23 = vadd.f32 %v2749_v9, %v5345_v43 }
 0x20f   : > { %v3420_v51 = vpack.c.bf16 %v2758_v57, %v2755_v55  ;;  %v2484_v3 = vadd.f32 %v3820_v30, %v5237_v2  ;;  %v2642_v10 = vadd.f32 %v5323_v37, %v2481_v29 }
 0x210   : > { %v3415_v6 = vpack.c.bf16 %v2750_v23, %v2747_v27 }
 0x211   : > { %3484 = vst [vmem:[%s5416_s5 + $0x18] sm:$0xff] %v3420_v51   ;;  %v3821_v60 = vpop.f32.mrb[136].mxu1  ;;  %v2645_v15 = vadd.f32 %v5326_v17, %v2484_v3 }
 0x212   : > { %3483 = vst [vmem:[%s5416_s5 + $0x10] sm:$0xff] %v3415_v6   ;;  %v4067_v54 = vpop.f32.mrb[136].mxu0  ;;  %v3822_v26 = vpop.f32.mrb[137].mxu1 }
 0x213   : > { %v2771_v28 = vadd.f32 %v4067_v54, %v5378_v13  ;;  %v3823_v46 = vadd.f32 %v3822_v26, %v3821_v60  ;;  %v2762_v4 = vpop.f32.mrb[137].mxu0  ;;  %v3824_v7 = vpop.f32.mrb[138].mxu1 }
 0x214   : > { %v2763_v43 = vadd.f32 %v2762_v4, %v5366_v59  ;;  %v4068_v2 = vpop.f32.mrb[138].mxu0  ;;  %v3825_v12 = vpop.f32.mrb[139].mxu1 }
 0x215   : > { %v2489_v37 = vadd.f32 %v3823_v46, %v5246_v11  ;;  %v2774_v31 = vadd.f32 %v4068_v2, %v5381_v41  ;;  %v3826_v48 = vadd.f32 %v3825_v12, %v3824_v7  ;;  %v2765_v17 = vpop.f32.mrb[139].mxu0 }
 0x216   : > { %v2766_v34 = vadd.f32 %v2765_v17, %v5369_v0 }
 0x217   : > { %v3430_v33 = vpack.c.bf16 %v2774_v31, %v2771_v28  ;;  %v2492_v13 = vadd.f32 %v3826_v48, %v5249_v53  ;;  %v2650_v55 = vadd.f32 %v5335_v38, %v2489_v37 }
 0x218   : > { %v3425_v49 = vpack.c.bf16 %v2766_v34, %v2763_v43 }
 0x219   : > { %3486 = vst [vmem:[%s5416_s5 + $0x28] sm:$0xff] %v3430_v33   ;;  %v3827_v18 = vpop.f32.mrb[140].mxu1  ;;  %v2653_v59 = vadd.f32 %v5338_v16, %v2492_v13 }
 0x21a   : > { %3485 = vst [vmem:[%s5416_s5 + $0x20] sm:$0xff] %v3425_v49   ;;  %v4071_v36 = vpop.f32.mrb[140].mxu0  ;;  %v3828_v27 = vpop.f32.mrb[141].mxu1 }
 0x21b   : > { %v2787_v11 = vadd.f32 %v4071_v36, %v5402_v14  ;;  %v3829_v41 = vadd.f32 %v3828_v27, %v3827_v18  ;;  %v2778_v44 = vpop.f32.mrb[141].mxu0  ;;  %v3830_v40 = vpop.f32.mrb[142].mxu1 }
 0x21c   : > { %v2779_v0 = vadd.f32 %v2778_v44, %v5390_v22  ;;  %v4072_v53 = vpop.f32.mrb[142].mxu0  ;;  %v3831_v29 = vpop.f32.mrb[143].mxu1 }
 0x21d   : > { %v2497_v38 = vadd.f32 %v3829_v41, %v5258_v25  ;;  %v2790_v57 = vadd.f32 %v4072_v53, %v5405_v5  ;;  %v3832_v30 = vadd.f32 %v3831_v29, %v3830_v40  ;;  %v2781_v16 = vpop.f32.mrb[143].mxu0 }
 0x21e   : > { %v2782_v9 = vadd.f32 %v2781_v16, %v5393_v58 }
 0x21f   : > { %v3440_v23 = vpack.c.bf16 %v2790_v57, %v2787_v11  ;;  %v2500_v14 = vadd.f32 %v3832_v30, %v5261_v1  ;;  %v2658_v51 = vadd.f32 %v5347_v63, %v2497_v38 }
 0x220   : > { %v3435_v3 = vpack.c.bf16 %v2782_v9, %v2779_v0 }
 0x221   : > { %3488 = vst [vmem:[%s5416_s5 + $0x38] sm:$0xff] %v3440_v23   ;;  %v3833_v6 = vpop.f32.mrb[144].mxu1  ;;  %v2661_v22 = vadd.f32 %v5350_v47, %v2500_v14 }
 0x222   : > { %3487 = vst [vmem:[%s5416_s5 + $0x30] sm:$0xff] %v3435_v3   ;;  %v4075_v60 = vpop.f32.mrb[144].mxu0  ;;  %v3834_v54 = vpop.f32.mrb[145].mxu1 }
 0x223   : > { %v2803_v25 = vadd.f32 %v4075_v60, %v2642_v10  ;;  %v3835_v5 = vadd.f32 %v3834_v54, %v3833_v6  ;;  %v2794_v26 = vpop.f32.mrb[145].mxu0  ;;  %v3836_v28 = vpop.f32.mrb[146].mxu1 }
 0x224   : > { %v2795_v58 = vadd.f32 %v2794_v26, %v5421_v19  ;;  %v4076_v46 = vpop.f32.mrb[146].mxu0  ;;  %v3837_v1 = vpop.f32.mrb[147].mxu1 }
 0x225   : > { %v2505_v63 = vadd.f32 %v3835_v5, %v5270_v39  ;;  %v2806_v4 = vadd.f32 %v4076_v46, %v2645_v15  ;;  %v3838_v7 = vadd.f32 %v3837_v1, %v3836_v28  ;;  %v2797_v43 = vpop.f32.mrb[147].mxu0 }
 0x226   : > { %v2798_v47 = vadd.f32 %v2797_v43, %v5425_v45 }
 0x227   : > { %v3450_v2 = vpack.c.bf16 %v2806_v4, %v2803_v25  ;;  %v2508_v12 = vadd.f32 %v3838_v7, %v5273_v24  ;;  %v2666_v10 = vadd.f32 %v5359_v62, %v2505_v63 }
 0x228   : > { %v3445_v37 = vpack.c.bf16 %v2798_v47, %v2795_v58 }
 0x229   : > { %3490 = vst [vmem:[%s5416_s5 + $0x48] sm:$0xff] %v3450_v2   ;;  %v3839_v31 = vpop.f32.mrb[148].mxu1  ;;  %v2669_v48 = vadd.f32 %v5362_v56, %v2508_v12  ;;  %v5503_v12 = vld [vmem:[#allocation2_spill] sm:$0xff] }
 0x22a   : > { %3489 = vst [vmem:[%s5416_s5 + $0x40] sm:$0xff] %v3445_v37   ;;  %v4079_v19 = vpop.f32.mrb[148].mxu0  ;;  %v3840_v17 = vpop.f32.mrb[149].mxu1 }
 0x22b   : > { %v2819_v34 = vadd.f32 %v4079_v19, %v2658_v51  ;;  %v3841_v39 = vadd.f32 %v3840_v17, %v3839_v31  ;;  %v2810_v15 = vpop.f32.mrb[149].mxu0  ;;  %v3842_v33 = vpop.f32.mrb[150].mxu1 }
 0x22c   : > { %v2811_v45 = vadd.f32 %v2810_v15, %v2650_v55  ;;  %v4080_v13 = vpop.f32.mrb[150].mxu0  ;;  %v3843_v49 = vpop.f32.mrb[151].mxu1 }
 0x22d   : > { %v2513_v24 = vadd.f32 %v3841_v39, %v5282_v35  ;;  %v2822_v62 = vadd.f32 %v4080_v13, %v2661_v22  ;;  %v3844_v18 = vadd.f32 %v3843_v49, %v3842_v33  ;;  %v2813_v36 = vpop.f32.mrb[151].mxu0 }
 0x22e   : > { %v2814_v27 = vadd.f32 %v2813_v36, %v2653_v59 }
 0x22f   : > { %v3460_v11 = vpack.c.bf16 %v2822_v62, %v2819_v34  ;;  %v2516_v56 = vadd.f32 %v3844_v18, %v5285_v50  ;;  %v2674_v41 = vadd.f32 %v5371_v21, %v2513_v24  ;;  %v5501_v50 = vld [vmem:[#allocation5_spill] sm:$0xff] }
 0x230   : > { %v3455_v44 = vpack.c.bf16 %v2814_v27, %v2811_v45 }
 0x231   : > { %3492 = vst [vmem:[%s5416_s5 + $0x58] sm:$0xff] %v3460_v11   ;;  %v3845_v40 = vpop.f32.mrb[152].mxu1  ;;  %v2677_v0 = vadd.f32 %v5374_v20, %v2516_v56  ;;  %v5502_v20 = vld [vmem:[#allocation6_spill] sm:$0xff] }
 0x232   : > { %3491 = vst [vmem:[%s5416_s5 + $0x50] sm:$0xff] %v3455_v44   ;;  %v4083_v55 = vpop.f32.mrb[152].mxu0  ;;  %v3846_v53 = vpop.f32.mrb[153].mxu1 }
 0x233   : > { %v2835_v29 = vadd.f32 %v4083_v55, %v2674_v41  ;;  %v3847_v35 = vadd.f32 %v3846_v53, %v3845_v40  ;;  %v2826_v38 = vpop.f32.mrb[153].mxu0  ;;  %v3848_v57 = vpop.f32.mrb[154].mxu1 }
 0x234   : > { %v2827_v59 = vadd.f32 %v2826_v38, %v2666_v10  ;;  %v4084_v30 = vpop.f32.mrb[154].mxu0  ;;  %v3849_v16 = vpop.f32.mrb[155].mxu1 }
 0x235   : > { %v2521_v9 = vadd.f32 %v3847_v35, %v5501_v50  ;;  %v2838_v21 = vadd.f32 %v4084_v30, %v2677_v0  ;;  %v3850_v23 = vadd.f32 %v3849_v16, %v3848_v57  ;;  %v2829_v14 = vpop.f32.mrb[155].mxu0 }
 0x236   : > { %v2830_v51 = vadd.f32 %v2829_v14, %v2669_v48 }
 0x237   : > { %v3470_v3 = vpack.c.bf16 %v2838_v21, %v2835_v29  ;;  %v2524_v6 = vadd.f32 %v3850_v23, %v5502_v20  ;;  %v2682_v22 = vadd.f32 %v5383_v8, %v2521_v9 }
 0x238   : > { %v3465_v60 = vpack.c.bf16 %v2830_v51, %v2827_v59 }
 0x239   : > { %3494 = vst [vmem:[%s5416_s5 + $0x68] sm:$0xff] %v3470_v3   ;;  %v3851_v54 = vpop.f32.mrb[156].mxu1  ;;  %v2685_v25 = vadd.f32 %v5386_v61, %v2524_v6 }
 0x23a   : > { %3493 = vst [vmem:[%s5416_s5 + $0x60] sm:$0xff] %v3465_v60   ;;  %v4087_v5 = vpop.f32.mrb[156].mxu0  ;;  %v3852_v26 = vpop.f32.mrb[157].mxu1 }
 0x23b   : > { %v3853_v28 = vadd.f32 %v3852_v26, %v3851_v54  ;;  %v2842_v58 = vpop.f32.mrb[157].mxu0  ;;  %v3854_v46 = vpop.f32.mrb[158].mxu1 }
 0x23c   : > { %v2843_v1 = vadd.f32 %v2842_v58, %v2682_v22  ;;  %v4088_v63 = vpop.f32.mrb[158].mxu0  ;;  %v3855_v4 = vpop.f32.mrb[159].mxu1 }
 0x23d   : > { %v2529_v7 = vadd.f32 %v3853_v28, %v5306_v52  ;;  %v3856_v43 = vadd.f32 %v3855_v4, %v3854_v46  ;;  %v2845_v8 = vpop.f32.mrb[159].mxu0 }
 0x23e   : > { %v2846_v47 = vadd.f32 %v2845_v8, %v2685_v25 }
 0x23f   : > { %v2690_v2 = vadd.f32 %v5395_v32, %v2529_v7  ;;  %v2532_v61 = vadd.f32 %v3856_v43, %v5503_v12 }
 0x240   : > { %v3475_v10 = vpack.c.bf16 %v2846_v47, %v2843_v1 }
 0x241   : > { %v2851_v37 = vadd.f32 %v4087_v5, %v2690_v2  ;;  %v2693_v31 = vadd.f32 %v5398_v42, %v2532_v61 }
 0x242   : > { %3495 = vst [vmem:[%s5416_s5 + $0x70] sm:$0xff] %v3475_v10  }
 0x243   : > { %v2854_v48 = vadd.f32 %v4088_v63, %v2693_v31 }
 0x245   : > { %v3480_v19 = vpack.c.bf16 %v2854_v48, %v2851_v37 }
 0x247   : > { %3496 = vst [vmem:[%s5416_s5 + $0x78] sm:$0xff] %v3480_v19  }
 0x248 PF: > { %s14_s15 = sadd.s32 1, %s4568_s15  }
 0x249   : > { %p11_p4 = scmp.ge.s32.totalorder %s14_s15, 4  }
 0x24b   :  { %13 = sbr.rel (!%p11_p4) target bundleno = 1 (0x1), region = 69 }

// kernel: _lambda_.28
= control target key start
LH: loop header
LB: loop body
LE: loop exit
PB: predicated region body
PF: predicated region fallthrough
CT: control target
= control target key end

     0   :  { %s2002_s15 = smov 0   ;;  %s2288_s0 = inlined_call_operand.vmem [shape: bf16[128,1152], index: 0, kind: input, shape index: {}]   ;;  %s2289_s1 = inlined_call_operand.vmem [shape: bf16[1152,128], index: 1, kind: input, shape index: {}]   ;;  %s2290_s2 = inlined_call_operand.vmem [shape: f32[1,128], index: 2, kind: input, shape index: {}]   ;;  %s2291_s3 = inlined_call_operand.vmem [shape: f32[1,128], index: 3, kind: input, shape index: {}]   ;;  %s2292_s4 = inlined_call_operand.vmem [shape: bf16[128,128], index: 4, kind: output, shape index: {}]  }
   0x1 LB: > { %s1464_s16 = sadd.s32 4294967295, %s1975_s15   ;;  %p1468_p0 = scmp.ge.s32.totalorder %s1975_s15, 1  ;;  %s1975_s15 = sphi %s2002_s15, %s14_s15  }
   0x2   : > { %p164_p1 = scmp.lt.s32.totalorder %s1975_s15, 3 }
   0x4   : > { %p165_p2 = pnand %p1468_p0, %p164_p1 }
   0x5   : > { %v1845_v0 = vld [vmem:[%s2289_s1 + $0x40] sm:$0xff] (!%p165_p2)   ;;  %v1849_v4 = vld [vmem:[%s2289_s1 + $0x48] sm:$0xff] (!%p165_p2)   ;;  %v1853_v8 = vld [vmem:[%s2289_s1 + $0x50] sm:$0xff] (!%p165_p2)   ;;  %s1469_s23 = sshll.u32 (!%p165_p2), %s1464_s16, 3 }
   0x6   : > { %168 = sbr.rel (%p165_p2) target bundleno = 331 (0x14b), region = 36  ;;  %v1846_v1 = vld [vmem:[%s2289_s1 + $0xc0] sm:$0xff] (!%p165_p2)   ;;  %1624 = vmatprep.subr.bf16.mxu0 (!%p165_p2), %v1845_v0  ;;  %v1850_v5 = vld [vmem:[%s2289_s1 + $0xc8] sm:$0xff] (!%p165_p2)   ;;  %v1854_v9 = vld [vmem:[%s2289_s1 + $0xd0] sm:$0xff] (!%p165_p2)   ;;  %p192_p3 = scmp.lt.s32.totalorder (!%p165_p2), %s1469_s23, 15 }
   0x7   : > { %v1847_v2 = vld [vmem:[%s2289_s1] sm:$0xff] (!%p165_p2)   ;;  %1664 = vmatprep.subr.bf16.mxu1 (!%p165_p2), %v1846_v1  ;;  %v1851_v6 = vld [vmem:[%s2289_s1 + $0x8] sm:$0xff] (!%p165_p2)   ;;  %v1855_v10 = vld [vmem:[%s2289_s1 + $0x10] sm:$0xff] (!%p165_p2)  }
   0x8   : > { %v1848_v3 = vld [vmem:[%s2289_s1 + $0x80] sm:$0xff] (!%p165_p2)   ;;  %1625 = vmatpush3.bf16.msra.mxu0 (!%p165_p2), %v1847_v2  ;;  %v1852_v7 = vld [vmem:[%s2289_s1 + $0x88] sm:$0xff] (!%p165_p2)   ;;  %v1856_v11 = vld [vmem:[%s2289_s1 + $0x90] sm:$0xff] (!%p165_p2)  }
   0x9   : > { %1665 = vmatpush3.bf16.msra.mxu1 (!%p165_p2), %v1848_v3  ;;  %1626 = vmatprep.subr.bf16.mxu0 (!%p165_p2), %v1849_v4  ;;  %v1857_v12 = vld [vmem:[%s2289_s1 + $0x58] sm:$0xff] (!%p165_p2)   ;;  %v1861_v16 = vld [vmem:[%s2289_s1 + $0x60] sm:$0xff] (!%p165_p2)   ;;  %v1865_v20 = vld [vmem:[%s2289_s1 + $0x68] sm:$0xff] (!%p165_p2)  }
   0xa   : > { %1666 = vmatprep.subr.bf16.mxu1 (!%p165_p2), %v1850_v5  ;;  %v1858_v13 = vld [vmem:[%s2289_s1 + $0xd8] sm:$0xff] (!%p165_p2)   ;;  %v1862_v17 = vld [vmem:[%s2289_s1 + $0xe0] sm:$0xff] (!%p165_p2)   ;;  %v1866_v21 = vld [vmem:[%s2289_s1 + $0xe8] sm:$0xff] (!%p165_p2)  }
   0xb   : > { %v1859_v14 = vld [vmem:[%s2289_s1 + $0x18] sm:$0xff] (!%p165_p2)   ;;  %v1863_v18 = vld [vmem:[%s2289_s1 + $0x20] sm:$0xff] (!%p165_p2)   ;;  %v1867_v22 = vld [vmem:[%s2289_s1 + $0x28] sm:$0xff] (!%p165_p2)  }
   0xc   : > { %1627 = vmatpush3.bf16.msra.mxu0 (!%p165_p2), %v1851_v6  ;;  %v1860_v15 = vld [vmem:[%s2289_s1 + $0x98] sm:$0xff] (!%p165_p2)   ;;  %v1864_v19 = vld [vmem:[%s2289_s1 + $0xa0] sm:$0xff] (!%p165_p2)   ;;  %v1868_v23 = vld [vmem:[%s2289_s1 + $0xa8] sm:$0xff] (!%p165_p2)  }
   0xd   : > { %1667 = vmatpush3.bf16.msra.mxu1 %v1852_v7  ;;  %1628 = vmatprep.subr.bf16.mxu0 %v1853_v8  ;;  %s2294_s23 = smov (!%p192_p3, %s1469_s23), 15  ;;  %v1869_v24 = vld [vmem:[%s2289_s1 + $0x70] sm:$0xff]   ;;  %v1873_v28 = vld [vmem:[%s2289_s1 + $0x78] sm:$0xff]   ;;  %v1883_v36 = vld [vmem:[%s2289_s1 + $0x140] sm:$0xff]  }
   0xe   : > { %1668 = vmatprep.subr.bf16.mxu1 %v1854_v9  ;;  %v1870_v25 = vld [vmem:[%s2289_s1 + $0xf0] sm:$0xff]   ;;  %s1836_s21 = smul.u32 36, %s2294_s23  ;;  %v1874_v29 = vld [vmem:[%s2289_s1 + $0xf8] sm:$0xff]   ;;  %v1884_v37 = vld [vmem:[%s2289_s1 + $0x1c0] sm:$0xff]   ;;  %s1472_s28 = sshll.u32 %s2294_s23, 2 }
   0xf   : > { %v1871_v26 = vld [vmem:[%s2289_s1 + $0x30] sm:$0xff]   ;;  %v1875_v30 = vld [vmem:[%s2289_s1 + $0x38] sm:$0xff]   ;;  %v1885_v38 = vld [vmem:[%s2289_s1 + $0x100] sm:$0xff]   ;;  %s202_s5 = scalar_lea.vmem %s2292_s4, %s1472_s28 }
  0x10   : > { %1629 = vmatpush3.bf16.msra.mxu0 %v1855_v10  ;;  %v1872_v27 = vld [vmem:[%s2289_s1 + $0xb0] sm:$0xff]   ;;  %s2108_s6 = scalar_lea.vmem %s2288_s0, %s1836_s21  ;;  %v1876_v31 = vld [vmem:[%s2289_s1 + $0xb8] sm:$0xff]   ;;  %v1886_v39 = vld [vmem:[%s2289_s1 + $0x180] sm:$0xff]  }
  0x11   : > { %1669 = vmatpush3.bf16.msra.mxu1 %v1856_v11  ;;  %1630 = vmatprep.subr.bf16.mxu0 %v1857_v12  ;;  %v1877_v32 = vld [vmem:[%s2108_s6] ss:$36 sps:$4 sm:$0xff]   ;;  %v1880_v34 = vld [vmem:[%s2108_s6 + $0x8] ss:$36 sps:$4 sm:$0xff]   ;;  %v1893_v45 = vld [vmem:[%s2108_s6 + $0x54] ss:$36 sps:$4 sm:$0xff]  }
  0x12   : > { %1670 = vmatprep.subr.bf16.mxu1 %v1858_v13  ;;  %v1879_v33 = vld [vmem:[%s2108_s6 + $0x4] ss:$36 sps:$4 sm:$0xff]   ;;  %v1882_v35 = vld [vmem:[%s2108_s6 + $0xc] ss:$36 sps:$4 sm:$0xff]   ;;  %v1901_v52 = vld [vmem:[%s2289_s1 + $0x158] sm:$0xff]  }
  0x13   : > { %1037 = vmatprep.mubr.bf16.mxu0 %v1879_v33  ;;  %1102 = vmatprep.mubr.bf16.mxu1 %v1882_v35  ;;  %v1887_v40 = vld [vmem:[%s2289_s1 + $0x148] sm:$0xff]   ;;  %v1896_v47 = vld [vmem:[%s2108_s6 + $0x50] ss:$36 sps:$4 sm:$0xff]   ;;  %v1902_v53 = vld [vmem:[%s2289_s1 + $0x1d8] sm:$0xff]  }
  0x14   : > { %1631 = vmatpush3.bf16.msra.mxu0 %v1859_v14  ;;  %v1888_v41 = vld [vmem:[%s2289_s1 + $0x1c8] sm:$0xff]   ;;  %v1897_v48 = vld [vmem:[%s2289_s1 + $0x150] sm:$0xff]   ;;  %v1903_v54 = vld [vmem:[%s2289_s1 + $0x118] sm:$0xff]  }
  0x15   : > { %1671 = vmatpush3.bf16.msra.mxu1 %v1860_v15  ;;  %1632 = vmatprep.subr.bf16.mxu0 %v1861_v16  ;;  %v1889_v42 = vld [vmem:[%s2289_s1 + $0x108] sm:$0xff]   ;;  %v1898_v49 = vld [vmem:[%s2289_s1 + $0x1d0] sm:$0xff]   ;;  %v1904_v55 = vld [vmem:[%s2289_s1 + $0x198] sm:$0xff]  }
  0x16   : > { %1672 = vmatprep.subr.bf16.mxu1 %v1862_v17  ;;  %v1890_v43 = vld [vmem:[%s2289_s1 + $0x188] sm:$0xff]   ;;  %v1899_v50 = vld [vmem:[%s2289_s1 + $0x110] sm:$0xff]   ;;  %v1907_v57 = vld [vmem:[%s2108_s6 + $0x9c] ss:$36 sps:$4 sm:$0xff]  }
  0x17   : > { %v1891_v44 = vld [vmem:[%s2108_s6 + $0x4c] ss:$36 sps:$4 sm:$0xff]   ;;  %v1905_v56 = vld [vmem:[%s2108_s6 + $0x94] ss:$36 sps:$4 sm:$0xff]   ;;  %v1911_v60 = vld [vmem:[%s2289_s1 + $0x160] sm:$0xff]  }
  0x18   : > { %1633 = vmatpush3.bf16.msra.mxu0 %v1863_v18  ;;  %v1895_v46 = vld [vmem:[%s2108_s6 + $0x48] ss:$36 sps:$4 sm:$0xff]   ;;  %v1900_v51 = vld [vmem:[%s2289_s1 + $0x190] sm:$0xff]   ;;  %v1910_v59 = vld [vmem:[%s2108_s6 + $0x98] ss:$36 sps:$4 sm:$0xff]  }
  0x19   : > { %1673 = vmatpush3.bf16.msra.mxu1 %v1864_v19  ;;  %1634 = vmatprep.subr.bf16.mxu0 %v1865_v20  ;;  %v1909_v58 = vld [vmem:[%s2108_s6 + $0x90] ss:$36 sps:$4 sm:$0xff]   ;;  %v1912_v61 = vld [vmem:[%s2289_s1 + $0x1e0] sm:$0xff]   ;;  %v1915_v0 = vld [vmem:[%s2289_s1 + $0x168] sm:$0xff]  }
  0x1a   : > { %1674 = vmatprep.subr.bf16.mxu1 %v1866_v21  ;;  %v1913_v62 = vld [vmem:[%s2289_s1 + $0x120] sm:$0xff]   ;;  %v1916_v1 = vld [vmem:[%s2289_s1 + $0x1e8] sm:$0xff]   ;;  %v1923_v6 = vld [vmem:[%s2108_s6 + $0xd8] ss:$36 sps:$4 sm:$0xff]  }
  0x1b   : > { %v1914_v63 = vld [vmem:[%s2289_s1 + $0x1a0] sm:$0xff]   ;;  %v1917_v2 = vld [vmem:[%s2289_s1 + $0x128] sm:$0xff]   ;;  %v1925_v8 = vld [vmem:[%s2289_s1 + $0x170] sm:$0xff]  }
  0x1c   : > { %1635 = vmatpush3.bf16.msra.mxu0 %v1867_v22  ;;  %v1918_v3 = vld [vmem:[%s2289_s1 + $0x1a8] sm:$0xff]   ;;  %v1919_v4 = vld [vmem:[%s2108_s6 + $0xdc] ss:$36 sps:$4 sm:$0xff]   ;;  %v1926_v9 = vld [vmem:[%s2289_s1 + $0x1f0] sm:$0xff]  }
  0x1d   : > { %1675 = vmatpush3.bf16.msra.mxu1 %v1868_v23  ;;  %1636 = vmatprep.subr.bf16.mxu0 %v1869_v24  ;;  %v1921_v5 = vld [vmem:[%s2108_s6 + $0xe4] ss:$36 sps:$4 sm:$0xff]   ;;  %v1927_v10 = vld [vmem:[%s2289_s1 + $0x130] sm:$0xff]   ;;  %v1929_v12 = vld [vmem:[%s2289_s1 + $0x178] sm:$0xff]  }
  0x1e   : > { %1676 = vmatprep.subr.bf16.mxu1 %v1870_v25  ;;  %v1924_v7 = vld [vmem:[%s2108_s6 + $0xe0] ss:$36 sps:$4 sm:$0xff]   ;;  %v1928_v11 = vld [vmem:[%s2289_s1 + $0x1b0] sm:$0xff]   ;;  %v1930_v13 = vld [vmem:[%s2289_s1 + $0x1f8] sm:$0xff]  }
  0x1f   : > { %v1931_v14 = vld [vmem:[%s2289_s1 + $0x138] sm:$0xff]   ;;  %v1933_v16 = vld [vmem:[%s2108_s6 + $0x10] ss:$36 sps:$4 sm:$0xff]   ;;  %v1939_v20 = vld [vmem:[%s2289_s1 + $0x200] sm:$0xff]  }
  0x20   : > { %1637 = vmatpush3.bf16.msra.mxu0 %v1871_v26  ;;  %v1932_v15 = vld [vmem:[%s2289_s1 + $0x1b8] sm:$0xff]   ;;  %v1940_v21 = vld [vmem:[%s2289_s1 + $0x208] sm:$0xff]   ;;  %v1946_v25 = vld [vmem:[%s2108_s6 + $0x60] ss:$36 sps:$4 sm:$0xff]  }
  0x21   : > { %1677 = vmatpush3.bf16.msra.mxu1 %v1872_v27  ;;  %1638 = vmatprep.subr.bf16.mxu0 %v1873_v28  ;;  %v1935_v17 = vld [vmem:[%s2108_s6 + $0x14] ss:$36 sps:$4 sm:$0xff]   ;;  %v1938_v19 = vld [vmem:[%s2108_s6 + $0x1c] ss:$36 sps:$4 sm:$0xff]   ;;  %v1943_v23 = vld [vmem:[%s2108_s6 + $0x64] ss:$36 sps:$4 sm:$0xff]  }
  0x22   : > { %1678 = vmatprep.subr.bf16.mxu1 %v1874_v29  ;;  %v1936_v18 = vld [vmem:[%s2108_s6 + $0x18] ss:$36 sps:$4 sm:$0xff]   ;;  %v1947_v26 = vld [vmem:[%s2289_s1 + $0x210] sm:$0xff]   ;;  %v1949_v27 = vld [vmem:[%s2108_s6 + $0xa4] ss:$36 sps:$4 sm:$0xff]  }
  0x23   : > { %v1941_v22 = vld [vmem:[%s2108_s6 + $0x5c] ss:$36 sps:$4 sm:$0xff]   ;;  %v1951_v28 = vld [vmem:[%s2108_s6 + $0xac] ss:$36 sps:$4 sm:$0xff]  }
  0x24   : > { %1639 = vmatpush3.bf16.msra.mxu0 %v1875_v30  ;;  %v1945_v24 = vld [vmem:[%s2108_s6 + $0x58] ss:$36 sps:$4 sm:$0xff]   ;;  %v1953_v30 = vld [vmem:[%s2108_s6 + $0xa0] ss:$36 sps:$4 sm:$0xff]   ;;  %v1957_v33 = vld [vmem:[%s2108_s6 + $0xec] ss:$36 sps:$4 sm:$0xff]  }
  0x25   : > { %1679 = vmatpush3.bf16.msra.mxu1 %v1876_v31  ;;  %1704 = vmatprep.subr.bf16.mxu0 %v1883_v36  ;;  %v1948_v29 = vld [vmem:[%s2289_s1 + $0x218] sm:$0xff]   ;;  %v1954_v31 = vld [vmem:[%s2108_s6 + $0xa8] ss:$36 sps:$4 sm:$0xff]  }
  0x26   : > { %1744 = vmatprep.subr.bf16.mxu1 %v1884_v37  ;;  %v1956_v35 = vld [vmem:[%s2289_s1 + $0x228] sm:$0xff]   ;;  %v1963_v37 = vld [vmem:[%s2289_s1 + $0x230] sm:$0xff]  }
  0x27   : > { %1038 = vmatmul.mubr.bf16.vlgmr.msra.gmra.mrb[0].mxu0 %v1877_v32  ;;  %v1955_v32 = vld [vmem:[%s2289_s1 + $0x220] sm:$0xff]   ;;  %v1961_v36 = vld [vmem:[%s2108_s6 + $0xe8] ss:$36 sps:$4 sm:$0xff]  }
  0x28   : > { %1103 = vmatmul.mubr.bf16.vlgmr.msra.gmra.mrb[0].mxu1 %v1880_v34  ;;  %1705 = vmatpush3.bf16.msra.mxu0 %v1885_v38  ;;  %v1959_v34 = vld [vmem:[%s2108_s6 + $0xf4] ss:$36 sps:$4 sm:$0xff]  }
  0x29   : > { %1745 = vmatpush3.bf16.msra.mxu1 %v1886_v39  ;;  %1706 = vmatprep.subr.bf16.mxu0 %v1887_v40  ;;  %v1962_v38 = vld [vmem:[%s2108_s6 + $0xf0] ss:$36 sps:$4 sm:$0xff]   ;;  %v1965_v39 = vld [vmem:[%s2108_s6 + $0x20] ss:$36 sps:$4 sm:$0xff]  }
  0x2a   : > { %1746 = vmatprep.subr.bf16.mxu1 %v1888_v41  ;;  %1045 = vmatprep.mubr.bf16.mxu0 %v1891_v44  ;;  %v1966_v40 = vld [vmem:[%s2108_s6 + $0xb0] ss:$36 sps:$4 sm:$0xff]   ;;  %v1964_v41 = vld [vmem:[%s2289_s1 + $0x238] sm:$0xff]  }
  0x2b   : > { %1110 = vmatprep.mubr.bf16.mxu1 %v1893_v45 }
  0x2c   : > { %1707 = vmatpush3.bf16.msra.mxu0 %v1889_v42  ;;  %v1967_v42 = vld [vmem:[%s2108_s6 + $0x68] ss:$36 sps:$4 sm:$0xff]  }
  0x2d   : > { %1747 = vmatpush3.bf16.msra.mxu1 %v1890_v43  ;;  %1708 = vmatprep.subr.bf16.mxu0 %v1897_v48  ;;  %v1968_v43 = vld [vmem:[%s2108_s6 + $0xf8] ss:$36 sps:$4 sm:$0xff]  }
  0x2e   : > { %1748 = vmatprep.subr.bf16.mxu1 %v1898_v49 }
  0x2f   : > { %1046 = vmatmul.mubr.bf16.gmra.mrb[4].mxu0 %v1895_v46 }
  0x30   : > { %1111 = vmatmul.mubr.bf16.gmra.mrb[4].mxu1 %v1896_v47  ;;  %1709 = vmatpush3.bf16.msra.mxu0 %v1899_v50 }
  0x31   : > { %1749 = vmatpush3.bf16.msra.mxu1 %v1900_v51  ;;  %1710 = vmatprep.subr.bf16.mxu0 %v1901_v52 }
  0x32   : > { %1750 = vmatprep.subr.bf16.mxu1 %v1902_v53  ;;  %1053 = vmatprep.mubr.bf16.mxu0 %v1905_v56 }
  0x33   : > { %1118 = vmatprep.mubr.bf16.mxu1 %v1907_v57 }
  0x34   : > { %1711 = vmatpush3.bf16.msra.mxu0 %v1903_v54 }
  0x35   : > { %1751 = vmatpush3.bf16.msra.mxu1 %v1904_v55  ;;  %1712 = vmatprep.subr.bf16.mxu0 %v1911_v60 }
  0x36   : > { %1752 = vmatprep.subr.bf16.mxu1 %v1912_v61 }
  0x37   : > { %1054 = vmatmul.mubr.bf16.gmra.mrb[8].mxu0 %v1909_v58 }
  0x38   : > { %1119 = vmatmul.mubr.bf16.gmra.mrb[8].mxu1 %v1910_v59  ;;  %1713 = vmatpush3.bf16.msra.mxu0 %v1913_v62 }
  0x39   : > { %1753 = vmatpush3.bf16.msra.mxu1 %v1914_v63  ;;  %1714 = vmatprep.subr.bf16.mxu0 %v1915_v0 }
  0x3a   : > { %1754 = vmatprep.subr.bf16.mxu1 %v1916_v1  ;;  %1061 = vmatprep.mubr.bf16.mxu0 %v1919_v4 }
  0x3b   : > { %1126 = vmatprep.mubr.bf16.mxu1 %v1921_v5 }
  0x3c   : > { %1715 = vmatpush3.bf16.msra.mxu0 %v1917_v2 }
  0x3d   : > { %1755 = vmatpush3.bf16.msra.mxu1 %v1918_v3  ;;  %1716 = vmatprep.subr.bf16.mxu0 %v1925_v8 }
  0x3e   : > { %1756 = vmatprep.subr.bf16.mxu1 %v1926_v9 }
  0x3f   : > { %1062 = vmatmul.mubr.bf16.gmra.mrb[12].mxu0 %v1923_v6 }
  0x40   : > { %1127 = vmatmul.mubr.bf16.gmra.mrb[12].mxu1 %v1924_v7  ;;  %1717 = vmatpush3.bf16.msra.mxu0 %v1927_v10 }
  0x41   : > { %1757 = vmatpush3.bf16.msra.mxu1 %v1928_v11  ;;  %1718 = vmatprep.subr.bf16.mxu0 %v1929_v12 }
  0x42   : > { %1758 = vmatprep.subr.bf16.mxu1 %v1930_v13  ;;  %1167 = vmatprep.mubr.bf16.mxu0 %v1935_v17 }
  0x43   : > { %1232 = vmatprep.mubr.bf16.mxu1 %v1938_v19 }
  0x44   : > { %1719 = vmatpush3.bf16.msra.mxu0 %v1931_v14 }
  0x45   : > { %1759 = vmatpush3.bf16.msra.mxu1 %v1932_v15  ;;  %1796 = vmatprep.subr.bf16.mxu0 %v1939_v20 }
  0x46   : > { %1820 = vmatprep.subr.bf16.mxu1 %v1939_v20 }
  0x47   : > { %1168 = vmatmul.mubr.bf16.vlgmr.msra.gmra.mrb[16].mxu0 %v1933_v16 }
  0x48   : > { %1233 = vmatmul.mubr.bf16.vlgmr.msra.gmra.mrb[16].mxu1 %v1936_v18  ;;  %1797 = vmatpush3.bf16.msra.mxu0 %v1939_v20 }
  0x49   : > { %1828 = vmatpush3.bf16.msra.mxu1 %v1939_v20  ;;  %1798 = vmatprep.subr.bf16.mxu0 %v1940_v21 }
  0x4a   : > { %1821 = vmatprep.subr.bf16.mxu1 %v1940_v21  ;;  %1175 = vmatprep.mubr.bf16.mxu0 %v1941_v22 }
  0x4b   : > { %1240 = vmatprep.mubr.bf16.mxu1 %v1943_v23 }
  0x4c   : > { %1799 = vmatpush3.bf16.msra.mxu0 %v1940_v21 }
  0x4d   : > { %1829 = vmatpush3.bf16.msra.mxu1 %v1940_v21  ;;  %1800 = vmatprep.subr.bf16.mxu0 %v1947_v26 }
  0x4e   : > { %1822 = vmatprep.subr.bf16.mxu1 %v1947_v26 }
  0x4f   : > { %1176 = vmatmul.mubr.bf16.gmra.mrb[20].mxu0 %v1945_v24 }
  0x50   : > { %1241 = vmatmul.mubr.bf16.gmra.mrb[20].mxu1 %v1946_v25  ;;  %1183 = vmatprep.mubr.bf16.mxu0 %v1949_v27 }
  0x51   : > { %1801 = vmatpush3.bf16.msra.mxu0 %v1947_v26  ;;  %1248 = vmatprep.mubr.bf16.mxu1 %v1951_v28 }
  0x52   : > { %1830 = vmatpush3.bf16.msra.mxu1 %v1947_v26  ;;  %1802 = vmatprep.subr.bf16.mxu0 %v1948_v29 }
  0x53   : > { %1823 = vmatprep.subr.bf16.mxu1 %v1948_v29 }
  0x55   : > { %1803 = vmatpush3.bf16.msra.mxu0 %v1948_v29 }
  0x56   : > { %1831 = vmatpush3.bf16.msra.mxu1 %v1948_v29  ;;  %1804 = vmatprep.subr.bf16.mxu0 %v1955_v32 }
  0x57   : > { %1184 = vmatmul.mubr.bf16.gmra.mrb[24].mxu0 %v1953_v30  ;;  %1824 = vmatprep.subr.bf16.mxu1 %v1955_v32 }
  0x58   : > { %1249 = vmatmul.mubr.bf16.gmra.mrb[24].mxu1 %v1954_v31  ;;  %1191 = vmatprep.mubr.bf16.mxu0 %v1957_v33 }
  0x59   : > { %1805 = vmatpush3.bf16.msra.mxu0 %v1955_v32  ;;  %1256 = vmatprep.mubr.bf16.mxu1 %v1959_v34 }
  0x5a   : > { %1832 = vmatpush3.bf16.msra.mxu1 %v1955_v32  ;;  %1806 = vmatprep.subr.bf16.mxu0 %v1956_v35 }
  0x5b   : > { %1825 = vmatprep.subr.bf16.mxu1 %v1956_v35 }
  0x5d   : > { %1807 = vmatpush3.bf16.msra.mxu0 %v1956_v35 }
  0x5e   : > { %1833 = vmatpush3.bf16.msra.mxu1 %v1956_v35  ;;  %1808 = vmatprep.subr.bf16.mxu0 %v1963_v37 }
  0x5f   : > { %1192 = vmatmul.mubr.bf16.gmra.mrb[28].mxu0 %v1961_v36  ;;  %1826 = vmatprep.subr.bf16.mxu1 %v1963_v37 }
  0x60   : > { %1257 = vmatmul.mubr.bf16.gmra.mrb[28].mxu1 %v1962_v38  ;;  %1812 = vmatprep.mubr.bf16.mxu0 %v1965_v39 }
  0x61   : > { %1809 = vmatpush3.bf16.msra.mxu0 %v1963_v37  ;;  %1816 = vmatprep.mubr.bf16.mxu1 %v1966_v40 }
  0x62   : > { %1834 = vmatpush3.bf16.msra.mxu1 %v1963_v37  ;;  %1810 = vmatprep.subr.bf16.mxu0 %v1964_v41 }
  0x63   : > { %1827 = vmatprep.subr.bf16.mxu1 %v1964_v41 }
  0x65   : > { %1811 = vmatpush3.bf16.msra.mxu0 %v1964_v41 }
  0x66   : > { %1835 = vmatpush3.bf16.msra.mxu1 %v1964_v41 }
  0x68   : > { %1813 = vmatmul.mubr.bf16.vlgmr.msra.gmra.mrb[32].mxu0 %v1967_v42 }
  0x69   : > { %1817 = vmatmul.mubr.bf16.vlgmr.msra.gmra.mrb[32].mxu1 %v1968_v43 }
  0xfa   : > { %v1640_v44 = vpop.f32.mrb[0].mxu0 }
  0xfb   : > { %v1680_v45 = vpop.f32.mrb[0].mxu1  ;;  %v1641_v46 = vpop.f32.mrb[1].mxu0 }
  0xfc   : > { %v1642_v47 = vadd.f32 %v1641_v46, %v1640_v44  ;;  %v1681_v48 = vpop.f32.mrb[1].mxu1  ;;  %v1643_v49 = vpop.f32.mrb[2].mxu0 }
  0xfd   : > { %v1682_v50 = vadd.f32 %v1681_v48, %v1680_v45  ;;  %v1683_v51 = vpop.f32.mrb[2].mxu1  ;;  %v1644_v52 = vpop.f32.mrb[3].mxu0 }
  0xfe   : > { %v1645_v53 = vadd.f32 %v1644_v52, %v1643_v49  ;;  %v1684_v54 = vpop.f32.mrb[3].mxu1 }
  0xff   : > { %v1105_v55 = vadd.f32 %v1682_v50, %v1642_v47  ;;  %v1685_v56 = vadd.f32 %v1684_v54, %v1683_v51 }
 0x101   : > { %v1108_v57 = vadd.f32 %v1685_v56, %v1645_v53 }
 0x102   : > { %v1646_v58 = vpop.f32.mrb[4].mxu0 }
 0x103   : > { %v1686_v59 = vpop.f32.mrb[4].mxu1  ;;  %v1647_v60 = vpop.f32.mrb[5].mxu0 }
 0x104   : > { %v1648_v61 = vadd.f32 %v1647_v60, %v1646_v58  ;;  %v1687_v62 = vpop.f32.mrb[5].mxu1  ;;  %v1649_v63 = vpop.f32.mrb[6].mxu0 }
 0x105   : > { %v1688_v0 = vadd.f32 %v1687_v62, %v1686_v59  ;;  %v1689_v1 = vpop.f32.mrb[6].mxu1  ;;  %v1650_v2 = vpop.f32.mrb[7].mxu0 }
 0x106   : > { %v1651_v3 = vadd.f32 %v1650_v2, %v1649_v63  ;;  %v1690_v4 = vpop.f32.mrb[7].mxu1 }
 0x107   : > { %v1113_v5 = vadd.f32 %v1688_v0, %v1648_v61  ;;  %v1691_v6 = vadd.f32 %v1690_v4, %v1689_v1 }
 0x109   : > { %v1116_v7 = vadd.f32 %v1691_v6, %v1651_v3 }
 0x10a   : > { %v1652_v8 = vpop.f32.mrb[8].mxu0 }
 0x10b   : > { %v1692_v9 = vpop.f32.mrb[8].mxu1  ;;  %v1653_v10 = vpop.f32.mrb[9].mxu0 }
 0x10c   : > { %v1654_v11 = vadd.f32 %v1653_v10, %v1652_v8  ;;  %v1693_v12 = vpop.f32.mrb[9].mxu1  ;;  %v1655_v13 = vpop.f32.mrb[10].mxu0 }
 0x10d   : > { %v1694_v14 = vadd.f32 %v1693_v12, %v1692_v9  ;;  %v1695_v15 = vpop.f32.mrb[10].mxu1  ;;  %v1656_v16 = vpop.f32.mrb[11].mxu0 }
 0x10e   : > { %v1657_v17 = vadd.f32 %v1656_v16, %v1655_v13  ;;  %v1696_v18 = vpop.f32.mrb[11].mxu1 }
 0x10f   : > { %v1121_v19 = vadd.f32 %v1694_v14, %v1654_v11  ;;  %v1697_v20 = vadd.f32 %v1696_v18, %v1695_v15 }
 0x111   : > { %v1124_v21 = vadd.f32 %v1697_v20, %v1657_v17 }
 0x112   : > { %v1658_v22 = vpop.f32.mrb[12].mxu0 }
 0x113   : > { %v1698_v23 = vpop.f32.mrb[12].mxu1  ;;  %v1659_v24 = vpop.f32.mrb[13].mxu0 }
 0x114   : > { %v1699_v25 = vpop.f32.mrb[13].mxu1  ;;  %v1660_v26 = vadd.f32 %v1659_v24, %v1658_v22  ;;  %v1661_v28 = vpop.f32.mrb[14].mxu0 }
 0x115   : > { %v1700_v27 = vadd.f32 %v1699_v25, %v1698_v23  ;;  %v1701_v29 = vpop.f32.mrb[14].mxu1  ;;  %v1662_v30 = vpop.f32.mrb[15].mxu0 }
 0x116   : > { %v1702_v31 = vpop.f32.mrb[15].mxu1  ;;  %v1663_v33 = vadd.f32 %v1662_v30, %v1661_v28 }
 0x117   : > { %v1129_v32 = vadd.f32 %v1700_v27, %v1660_v26  ;;  %v1703_v34 = vadd.f32 %v1702_v31, %v1701_v29 }
 0x119   : > { %v1132_v35 = vadd.f32 %v1703_v34, %v1663_v33 }
 0x11a   : > { %v1720_v36 = vpop.f32.mrb[16].mxu0 }
 0x11b   : > { %v1721_v37 = vpop.f32.mrb[17].mxu0  ;;  %v1760_v38 = vpop.f32.mrb[16].mxu1 }
 0x11c   : > { %v1722_v39 = vadd.f32 %v1721_v37, %v1720_v36  ;;  %v1723_v40 = vpop.f32.mrb[18].mxu0  ;;  %v1761_v41 = vpop.f32.mrb[17].mxu1 }
 0x11d   : > { %v1724_v42 = vpop.f32.mrb[19].mxu0  ;;  %v1762_v44 = vadd.f32 %v1761_v41, %v1760_v38  ;;  %v1763_v45 = vpop.f32.mrb[18].mxu1 }
 0x11e   : > { %v1170_v43 = vadd.f32 %v1722_v39, %v1105_v55  ;;  %v1725_v46 = vadd.f32 %v1724_v42, %v1723_v40  ;;  %v1764_v47 = vpop.f32.mrb[19].mxu1  ;;  %v1581_v39 = vld [vmem:[%s2290_s2] ss:$0 sm:$0xff] }
 0x11f   : > { %v1765_v49 = vadd.f32 %v1764_v47, %v1763_v45 }
 0x120   : > { %v1173_v48 = vadd.f32 %v1725_v46, %v1108_v57  ;;  %v1235_v50 = vadd.f32 %v1762_v44, %v1170_v43 }
 0x122   : > { %v1726_v51 = vpop.f32.mrb[20].mxu0  ;;  %v2272_v52 = vadd.f32 %v1765_v49, %v1173_v48 }
 0x123   : > { %v1727_v53 = vpop.f32.mrb[21].mxu0  ;;  %v1766_v54 = vpop.f32.mrb[20].mxu1 }
 0x124   : > { %v1728_v56 = vadd.f32 %v1727_v53, %v1726_v51  ;;  %v1729_v58 = vpop.f32.mrb[22].mxu0  ;;  %v1767_v59 = vpop.f32.mrb[21].mxu1 }
 0x125   : > { %v1730_v60 = vpop.f32.mrb[23].mxu0  ;;  %v1768_v62 = vadd.f32 %v1767_v59, %v1766_v54  ;;  %v1769_v63 = vpop.f32.mrb[22].mxu1 }
 0x126   : > { %v1178_v61 = vadd.f32 %v1728_v56, %v1113_v5  ;;  %v1731_v55 = vadd.f32 %v1730_v60, %v1729_v58  ;;  %v1770_v0 = vpop.f32.mrb[23].mxu1 }
 0x127   : > { %v1771_v2 = vadd.f32 %v1770_v0, %v1769_v63 }
 0x128   : > { %v1181_v1 = vadd.f32 %v1731_v55, %v1116_v7  ;;  %v1243_v3 = vadd.f32 %v1768_v62, %v1178_v61 }
 0x12a   : > { %v1732_v57 = vpop.f32.mrb[24].mxu0  ;;  %v1246_v4 = vadd.f32 %v1771_v2, %v1181_v1 }
 0x12b   : > { %v1733_v6 = vpop.f32.mrb[25].mxu0  ;;  %v1772_v8 = vpop.f32.mrb[24].mxu1 }
 0x12c   : > { %v1734_v9 = vadd.f32 %v1733_v6, %v1732_v57  ;;  %v1735_v10 = vpop.f32.mrb[26].mxu0  ;;  %v1773_v11 = vpop.f32.mrb[25].mxu1 }
 0x12d   : > { %v1736_v12 = vpop.f32.mrb[27].mxu0  ;;  %v1774_v14 = vadd.f32 %v1773_v11, %v1772_v8  ;;  %v1775_v15 = vpop.f32.mrb[26].mxu1 }
 0x12e   : > { %v1186_v13 = vadd.f32 %v1734_v9, %v1121_v19  ;;  %v1737_v16 = vadd.f32 %v1736_v12, %v1735_v10  ;;  %v1776_v5 = vpop.f32.mrb[27].mxu1 }
 0x12f   : > { %v1777_v18 = vadd.f32 %v1776_v5, %v1775_v15 }
 0x130   : > { %v1189_v17 = vadd.f32 %v1737_v16, %v1124_v21  ;;  %v1251_v20 = vadd.f32 %v1774_v14, %v1186_v13 }
 0x132   : > { %v1738_v22 = vpop.f32.mrb[28].mxu0  ;;  %v1254_v7 = vadd.f32 %v1777_v18, %v1189_v17 }
 0x133   : > { %v1739_v23 = vpop.f32.mrb[29].mxu0  ;;  %v1778_v24 = vpop.f32.mrb[28].mxu1 }
 0x134   : > { %v1740_v25 = vadd.f32 %v1739_v23, %v1738_v22  ;;  %v1741_v26 = vpop.f32.mrb[30].mxu0  ;;  %v1779_v27 = vpop.f32.mrb[29].mxu1 }
 0x135   : > { %v1742_v28 = vpop.f32.mrb[31].mxu0  ;;  %v1780_v30 = vadd.f32 %v1779_v27, %v1778_v24  ;;  %v1781_v31 = vpop.f32.mrb[30].mxu1 }
 0x136   : > { %v1194_v29 = vadd.f32 %v1740_v25, %v1129_v32  ;;  %v1743_v33 = vadd.f32 %v1742_v28, %v1741_v26  ;;  %v1782_v19 = vpop.f32.mrb[31].mxu1  ;;  %v1582_v32 = vld [vmem:[%s2291_s3] ss:$0 sm:$0xff] }
 0x137   : > { %v1783_v36 = vadd.f32 %v1782_v19, %v1781_v31 }
 0x138   : > { %v1197_v34 = vadd.f32 %v1743_v33, %v1132_v35  ;;  %v1259_v37 = vadd.f32 %v1780_v30, %v1194_v29 }
 0x13a   : > { %v1262_v38 = vadd.f32 %v1783_v36, %v1197_v34 }
 0x13b   : > { %v1814_v21 = vpop.f32.mrb[32].mxu0 }
 0x13c   : > { %v1308_v40 = vadd.f32 %v1814_v21, %v1243_v3  ;;  %v1818_v41 = vpop.f32.mrb[32].mxu1  ;;  %v1299_v42 = vpop.f32.mrb[33].mxu0 }
 0x13d   : > { %v1324_v43 = vadd.f32 %v1818_v41, %v1259_v37  ;;  %v1300_v44 = vadd.f32 %v1299_v42, %v1235_v50  ;;  %v1315_v45 = vpop.f32.mrb[33].mxu1  ;;  %v1815_v46 = vpop.f32.mrb[34].mxu0 }
 0x13e   : > { %v1339_v35 = vmul.f32 %v1581_v39, %v1308_v40  ;;  %v1316_v47 = vadd.f32 %v1315_v45, %v1251_v20  ;;  %v1311_v48 = vadd.f32 %v1815_v46, %v1246_v4  ;;  %v1819_v49 = vpop.f32.mrb[34].mxu1  ;;  %v1302_v51 = vpop.f32.mrb[35].mxu0 }
 0x13f   : > { %v1343_v53 = vmul.f32 %v1581_v39, %v1324_v43  ;;  %v1337_v54 = vmul.f32 %v1581_v39, %v1300_v44  ;;  %v1327_v56 = vadd.f32 %v1819_v49, %v1262_v38  ;;  %v1303_v58 = vadd.f32 %v1302_v51, %v2272_v52  ;;  %v1318_v59 = vpop.f32.mrb[35].mxu1 }
 0x140   : > { %v1354_v60 = vadd.f32 %v1582_v32, %v1339_v35  ;;  %v1341_v61 = vmul.f32 %v1581_v39, %v1316_v47  ;;  %v1340_v62 = vmul.f32 %v1581_v39, %v1311_v48  ;;  %v1319_v63 = vadd.f32 %v1318_v59, %v1254_v7 }
 0x141   : > { %v1358_v55 = vadd.f32 %v1582_v32, %v1343_v53  ;;  %v1352_v50 = vadd.f32 %v1582_v32, %v1337_v54  ;;  %v1344_v0 = vmul.f32 %v1581_v39, %v1327_v56  ;;  %v1338_v1 = vmul.f32 %v1581_v39, %v1303_v58 }
 0x142   : > { %v1356_v2 = vadd.f32 %v1582_v32, %v1341_v61  ;;  %v1355_v3 = vadd.f32 %v1582_v32, %v1340_v62  ;;  %v1342_v57 = vmul.f32 %v1581_v39, %v1319_v63  ;;  %v1362_v8 = vmax.f32 %v1354_v60, 0.0 }
 0x143   : > { %v1359_v4 = vadd.f32 %v1582_v32, %v1344_v0  ;;  %v1353_v6 = vadd.f32 %v1582_v32, %v1338_v1  ;;  %v1366_v11 = vmax.f32 %v1358_v55, 0.0  ;;  %v1360_v52 = vmax.f32 %v1352_v50, 0.0 }
 0x144   : > { %v1363_v9 = vmax.f32 %v1355_v3, 0.0  ;;  %v1357_v10 = vadd.f32 %v1582_v32, %v1342_v57  ;;  %v1364_v14 = vmax.f32 %v1356_v2, 0.0 }
 0x145   : > { %v1367_v12 = vmax.f32 %v1359_v4, 0.0  ;;  %v1361_v13 = vmax.f32 %v1353_v6, 0.0 }
 0x146   : > { %v1609_v15 = vpack.c.bf16 %v1363_v9, %v1362_v8  ;;  %v1365_v16 = vmax.f32 %v1357_v10, 0.0 }
 0x147   : > { %v1619_v5 = vpack.c.bf16 %v1367_v12, %v1366_v11  ;;  %v1604_v17 = vpack.c.bf16 %v1361_v13, %v1360_v52 }
 0x148   : > { %1621 = vst [vmem:[%s202_s5 + $0x8] sm:$0xff] %v1609_v15   ;;  %v1614_v18 = vpack.c.bf16 %v1365_v16, %v1364_v14 }
 0x149   : > { %1623 = vst [vmem:[%s202_s5 + $0x18] sm:$0xff] %v1619_v5   ;;  %1605 = vst [vmem:[%s202_s5] sm:$0xff] %v1604_v17  }
 0x14a   : > { %1622 = vst [vmem:[%s202_s5 + $0x10] sm:$0xff] %v1614_v18  }
 0x14b PF: > { %s14_s15 = sadd.s32 1, %s1975_s15  }
 0x14c   : > { %p11_p4 = scmp.ge.s32.totalorder %s14_s15, 4  }
 0x14e   :  { %13 = sbr.rel (!%p11_p4) target bundleno = 1 (0x1), region = 66 }

// kernel: _lambda_.30
= control target key start
LH: loop header
LB: loop body
LE: loop exit
PB: predicated region body
PF: predicated region fallthrough
CT: control target
= control target key end

     0   :  { %s431_s12 = smov 0   ;;  %s461_s0 = inlined_call_operand.vmem [shape: bf16[128,128], index: 0, kind: input, shape index: {}]   ;;  %s462_s1 = inlined_call_operand.vmem [shape: f32[1,128], index: 1, kind: input, shape index: {}]   ;;  %s463_s2 = inlined_call_operand.vmem [shape: f32[1,128], index: 2, kind: input, shape index: {}]   ;;  %s464_s3 = inlined_call_operand.vmem [shape: bf16[128,128], index: 3, kind: output, shape index: {}]  }
   0x1 LB: > { %s324_s13 = sadd.s32 4294967295, %s409_s12   ;;  %p328_p0 = scmp.ge.s32.totalorder %s409_s12, 1  ;;  %s409_s12 = sphi %s431_s12, %s13_s12  }
   0x2   : > { %p138_p1 = scmp.lt.s32.totalorder %s409_s12, 3 }
   0x4   : > { %p139_p2 = pnand %p328_p0, %p138_p1 }
   0x5   : > { %s329_s14 = sshll.u32 (!%p139_p2), %s324_s13, 3  ;;  %v333_v0 = vld [vmem:[%s462_s1] ss:$0 sm:$0xff] (!%p139_p2) }
   0x6   : > { %142 = sbr.rel (%p139_p2) target bundleno = 29 (0x1d), region = 32  ;;  %p163_p3 = scmp.lt.s32.totalorder (!%p139_p2), %s329_s14, 15  ;;  %v334_v9 = vld [vmem:[%s463_s2] ss:$0 sm:$0xff] (!%p139_p2) }
   0xd   : > { %s466_s14 = smov (!%p163_p3, %s329_s14), 15 }
   0xe   : > { %s330_s15 = sshll.u32 %s466_s14, 2 }
   0xf   : > { %s166_s18 = scalar_lea.vmem %s461_s0, %s330_s15  ;;  %s172_s25 = scalar_lea.vmem %s464_s3, %s330_s15 }
  0x10   : > { %v354_v1 = vld [vmem:[%s166_s18] sm:$0xff]   ;;  %v389_v2 = vld [vmem:[%s166_s18 + $0x8] sm:$0xff]   ;;  %v390_v3 = vld [vmem:[%s166_s18 + $0x10] sm:$0xff]  }
  0x11   : > { %v355_v4 = vunpack.c.l.bf16 %v354_v1  ;;  %v356_v5 = vunpack.c.h.bf16 %v354_v1  ;;  %v359_v6 = vunpack.c.l.bf16 %v389_v2  ;;  %v360_v7 = vunpack.c.h.bf16 %v389_v2  ;;  %v391_v8 = vld [vmem:[%s166_s18 + $0x18] sm:$0xff]  }
  0x12   : > { %v363_v10 = vunpack.c.l.bf16 %v390_v3  ;;  %v364_v11 = vunpack.c.h.bf16 %v390_v3  ;;  %v367_v12 = vunpack.c.l.bf16 %v391_v8  ;;  %v368_v13 = vunpack.c.h.bf16 %v391_v8 }
  0x13   : > { %v197_v14 = vmul.f32 %v355_v4, %v333_v0  ;;  %v198_v15 = vmul.f32 %v356_v5, %v333_v0  ;;  %v199_v16 = vmul.f32 %v359_v6, %v333_v0  ;;  %v200_v17 = vmul.f32 %v360_v7, %v333_v0 }
  0x14   : > { %v201_v18 = vmul.f32 %v363_v10, %v333_v0  ;;  %v202_v19 = vmul.f32 %v364_v11, %v333_v0  ;;  %v203_v20 = vmul.f32 %v367_v12, %v333_v0  ;;  %v204_v21 = vmul.f32 %v368_v13, %v333_v0 }
  0x15   : > { %v212_v22 = vadd.f32 %v334_v9, %v197_v14  ;;  %v213_v23 = vadd.f32 %v334_v9, %v198_v15  ;;  %v214_v24 = vadd.f32 %v334_v9, %v199_v16  ;;  %v215_v25 = vadd.f32 %v334_v9, %v200_v17 }
  0x16   : > { %v216_v26 = vadd.f32 %v334_v9, %v201_v18  ;;  %v217_v27 = vadd.f32 %v334_v9, %v202_v19  ;;  %v218_v28 = vadd.f32 %v334_v9, %v203_v20  ;;  %v219_v29 = vadd.f32 %v334_v9, %v204_v21 }
  0x17   : > { %v220_v30 = vmax.f32 %v212_v22, 0.0  ;;  %v221_v31 = vmax.f32 %v213_v23, 0.0  ;;  %v222_v32 = vmax.f32 %v214_v24, 0.0  ;;  %v223_v33 = vmax.f32 %v215_v25, 0.0 }
  0x18   : > { %v224_v34 = vmax.f32 %v216_v26, 0.0  ;;  %v225_v35 = vmax.f32 %v217_v27, 0.0  ;;  %v226_v36 = vmax.f32 %v218_v28, 0.0  ;;  %v227_v37 = vmax.f32 %v219_v29, 0.0 }
  0x19   : > { %v372_v38 = vpack.c.bf16 %v221_v31, %v220_v30  ;;  %v377_v39 = vpack.c.bf16 %v223_v33, %v222_v32 }
  0x1a   : > { %v382_v40 = vpack.c.bf16 %v225_v35, %v224_v34  ;;  %v387_v41 = vpack.c.bf16 %v227_v37, %v226_v36 }
  0x1b   : > { %373 = vst [vmem:[%s172_s25] sm:$0xff] %v372_v38   ;;  %392 = vst [vmem:[%s172_s25 + $0x8] sm:$0xff] %v377_v39  }
  0x1c   : > { %393 = vst [vmem:[%s172_s25 + $0x10] sm:$0xff] %v382_v40   ;;  %394 = vst [vmem:[%s172_s25 + $0x18] sm:$0xff] %v387_v41  }
  0x1d PF: > { %s13_s12 = sadd.s32 1, %s409_s12  }
  0x1e   : > { %p10_p4 = scmp.ge.s32.totalorder %s13_s12, 4  }
  0x20   :  { %12 = sbr.rel (!%p10_p4) target bundleno = 1 (0x1), region = 62 }

// kernel: _lambda_.29
= control target key start
LH: loop header
LB: loop body
LE: loop exit
PB: predicated region body
PF: predicated region fallthrough
CT: control target
= control target key end

     0   :  { %s2243_s15 = smov 0   ;;  %s2582_s0 = inlined_call_operand.vmem [shape: bf16[128,1152], index: 0, kind: input, shape index: {}]   ;;  %s2583_s1 = inlined_call_operand.vmem [shape: bf16[1152,128], index: 1, kind: input, shape index: {}]   ;;  %s2584_s2 = inlined_call_operand.vmem [shape: bf16[128,128], index: 2, kind: input, shape index: {}]   ;;  %s2585_s3 = inlined_call_operand.vmem [shape: bf16[128,128], index: 3, kind: input, shape index: {}]   ;;  %s2586_s4 = inlined_call_operand.vmem [shape: bf16[128,128], index: 4, kind: output, shape index: {}]  }
   0x1 LB: > { %s1621_s16 = sadd.s32 4294967295, %s2216_s15   ;;  %p1625_p0 = scmp.ge.s32.totalorder %s2216_s15, 1  ;;  %s2216_s15 = sphi %s2243_s15, %s14_s15  }
   0x2   : > { %p175_p1 = scmp.lt.s32.totalorder %s2216_s15, 3 }
   0x4   : > { %p176_p2 = pnand %p1625_p0, %p175_p1 }
   0x5   : > { %v2074_v0 = vld [vmem:[%s2585_s3] sm:$0xff] (!%p176_p2)   ;;  %v2075_v1 = vld [vmem:[%s2585_s3 + $0x8] sm:$0xff] (!%p176_p2)   ;;  %v2078_v4 = vld [vmem:[%s2585_s3 + $0x10] sm:$0xff] (!%p176_p2)   ;;  %s1626_s27 = sshll.u32 (!%p176_p2), %s1621_s16, 3 }
   0x6   : > { %179 = sbr.rel (%p176_p2) target bundleno = 352 (0x160), region = 36  ;;  %1977 = vmatprep.subr.bf16.mxu1 (!%p176_p2), %v2074_v0  ;;  %v2076_v2 = vld [vmem:[%s2583_s1 + $0xc0] sm:$0xff] (!%p176_p2)   ;;  %v2079_v5 = vld [vmem:[%s2583_s1 + $0xc8] sm:$0xff] (!%p176_p2)   ;;  %v2081_v7 = vld [vmem:[%s2585_s3 + $0x18] sm:$0xff] (!%p176_p2)   ;;  %p208_p3 = scmp.lt.s32.totalorder (!%p176_p2), %s1626_s27, 15 }
   0x7   : > { %1978 = vmatpush3.bf16.msra.mxu1 (!%p176_p2), %v2074_v0  ;;  %v2077_v3 = vld [vmem:[%s2583_s1 + $0x80] sm:$0xff] (!%p176_p2)   ;;  %1845 = vmatprep.subr.bf16.mxu0 (!%p176_p2), %v2076_v2  ;;  %v2080_v6 = vld [vmem:[%s2583_s1 + $0x88] sm:$0xff] (!%p176_p2)   ;;  %v2082_v8 = vld [vmem:[%s2583_s1 + $0xd0] sm:$0xff] (!%p176_p2)  }
   0x8   : > { %1979 = vmatprep.subr.bf16.mxu1 (!%p176_p2), %v2075_v1  ;;  %1846 = vmatpush3.bf16.msra.mxu0 (!%p176_p2), %v2077_v3  ;;  %v2083_v9 = vld [vmem:[%s2583_s1 + $0x90] sm:$0xff] (!%p176_p2)   ;;  %v2085_v10 = vld [vmem:[%s2583_s1 + $0xd8] sm:$0xff] (!%p176_p2)   ;;  %v2084_v11 = vld [vmem:[%s2585_s3 + $0x20] sm:$0xff] (!%p176_p2)  }
   0x9   : > { %1847 = vmatprep.subr.bf16.mxu0 (!%p176_p2), %v2079_v5  ;;  %v2086_v12 = vld [vmem:[%s2583_s1 + $0x98] sm:$0xff] (!%p176_p2)   ;;  %v2088_v13 = vld [vmem:[%s2583_s1 + $0xe0] sm:$0xff] (!%p176_p2)   ;;  %v2087_v14 = vld [vmem:[%s2585_s3 + $0x28] sm:$0xff] (!%p176_p2)  }
   0xa   : > { %v2089_v15 = vld [vmem:[%s2583_s1 + $0xa0] sm:$0xff] (!%p176_p2)   ;;  %v2091_v16 = vld [vmem:[%s2583_s1 + $0xe8] sm:$0xff] (!%p176_p2)   ;;  %v2090_v17 = vld [vmem:[%s2585_s3 + $0x30] sm:$0xff] (!%p176_p2)  }
   0xb   : > { %1980 = vmatpush3.bf16.msra.mxu1 (!%p176_p2), %v2075_v1  ;;  %v2092_v18 = vld [vmem:[%s2583_s1 + $0xa8] sm:$0xff] (!%p176_p2)   ;;  %v2094_v20 = vld [vmem:[%s2583_s1 + $0xf0] sm:$0xff] (!%p176_p2)   ;;  %v2093_v21 = vld [vmem:[%s2585_s3 + $0x38] sm:$0xff] (!%p176_p2)  }
   0xc   : > { %1981 = vmatprep.subr.bf16.mxu1 (!%p176_p2), %v2078_v4  ;;  %1848 = vmatpush3.bf16.msra.mxu0 (!%p176_p2), %v2080_v6  ;;  %v2096_v22 = vld [vmem:[%s2583_s1 + $0xb0] sm:$0xff] (!%p176_p2)   ;;  %v2100_v23 = vld [vmem:[%s2583_s1 + $0xf8] sm:$0xff] (!%p176_p2)   ;;  %v2098_v25 = vld [vmem:[%s2583_s1 + $0x40] sm:$0xff] (!%p176_p2)  }
   0xd   : > { %1849 = vmatprep.subr.bf16.mxu0 %v2082_v8  ;;  %s2588_s27 = smov (!%p208_p3, %s1626_s27), 15  ;;  %v2099_v26 = vld [vmem:[%s2583_s1] sm:$0xff]   ;;  %v2101_v27 = vld [vmem:[%s2583_s1 + $0xb8] sm:$0xff]   ;;  %v2102_v28 = vld [vmem:[%s2583_s1 + $0x48] sm:$0xff]  }
   0xe   : > { %s1629_s21 = sshll.u32 %s2588_s27, 2  ;;  %s2065_s12 = smul.u32 36, %s2588_s27  ;;  %v2107_v31 = vld [vmem:[%s2583_s1 + $0x1c0] sm:$0xff]   ;;  %v2103_v33 = vld [vmem:[%s2583_s1 + $0x8] sm:$0xff]   ;;  %v2109_v34 = vld [vmem:[%s2583_s1 + $0x50] sm:$0xff]  }
   0xf   : > { %1982 = vmatpush3.bf16.msra.mxu1 %v2078_v4  ;;  %s2310_s5 = scalar_lea.vmem %s2584_s2, %s1629_s21  ;;  %v2108_v32 = vld [vmem:[%s2583_s1 + $0x180] sm:$0xff]   ;;  %v2111_v35 = vld [vmem:[%s2583_s1 + $0x1c8] sm:$0xff]   ;;  %v2110_v37 = vld [vmem:[%s2583_s1 + $0x10] sm:$0xff]   ;;  %s2568_s6 = scalar_lea.vmem %s2586_s4, %s1629_s21 }
  0x10   : > { %1983 = vmatprep.subr.bf16.mxu1 %v2081_v7  ;;  %1850 = vmatpush3.bf16.msra.mxu0 %v2083_v9  ;;  %v2095_v19 = vld [vmem:[%s2310_s5] sm:$0xff]   ;;  %s2335_s23 = scalar_lea.vmem %s2582_s0, %s2065_s12  ;;  %v2097_v24 = vld [vmem:[%s2310_s5 + $0x8] sm:$0xff]   ;;  %v2113_v38 = vld [vmem:[%s2583_s1 + $0x58] sm:$0xff]  }
  0x11   : > { %1851 = vmatprep.subr.bf16.mxu0 %v2085_v10  ;;  %1993 = vmatprep.mubr.bf16.mxu1 %v2095_v19  ;;  %v2104_v29 = vld [vmem:[%s2335_s23 + $0x8] ss:$36 sps:$4 sm:$0xff]   ;;  %v2115_v39 = vld [vmem:[%s2335_s23 + $0x54] ss:$36 sps:$4 sm:$0xff]   ;;  %v2120_v44 = vld [vmem:[%s2583_s1 + $0x60] sm:$0xff]  }
  0x12   : > { %v2106_v30 = vld [vmem:[%s2335_s23 + $0xc] ss:$36 sps:$4 sm:$0xff]   ;;  %v2114_v43 = vld [vmem:[%s2583_s1 + $0x18] sm:$0xff]   ;;  %v2121_v45 = vld [vmem:[%s2583_s1 + $0x20] sm:$0xff]  }
  0x13   : > { %1984 = vmatpush3.bf16.msra.mxu1 %v2081_v7  ;;  %1285 = vmatprep.mubr.bf16.mxu0 %v2106_v30  ;;  %v2112_v36 = vld [vmem:[%s2583_s1 + $0x188] sm:$0xff]   ;;  %v2117_v40 = vld [vmem:[%s2335_s23 + $0x50] ss:$36 sps:$4 sm:$0xff]   ;;  %v2122_v46 = vld [vmem:[%s2583_s1 + $0x1d8] sm:$0xff]  }
  0x14   : > { %1985 = vmatprep.subr.bf16.mxu1 %v2084_v11  ;;  %1852 = vmatpush3.bf16.msra.mxu0 %v2086_v12  ;;  %v2118_v41 = vld [vmem:[%s2583_s1 + $0x1d0] sm:$0xff]   ;;  %v2123_v47 = vld [vmem:[%s2583_s1 + $0x198] sm:$0xff]   ;;  %v2124_v48 = vld [vmem:[%s2583_s1 + $0x68] sm:$0xff]  }
  0x15   : > { %1853 = vmatprep.subr.bf16.mxu0 %v2088_v13  ;;  %v2119_v42 = vld [vmem:[%s2583_s1 + $0x190] sm:$0xff]   ;;  %v2126_v50 = vld [vmem:[%s2583_s1 + $0x28] sm:$0xff]   ;;  %v2127_v51 = vld [vmem:[%s2335_s23 + $0x9c] ss:$36 sps:$4 sm:$0xff]  }
  0x16   : > { %v2125_v49 = vld [vmem:[%s2310_s5 + $0x10] sm:$0xff]   ;;  %v2129_v52 = vld [vmem:[%s2310_s5 + $0x18] sm:$0xff]   ;;  %v2131_v54 = vld [vmem:[%s2583_s1 + $0x1e0] sm:$0xff]  }
  0x17   : > { %1986 = vmatpush3.bf16.msra.mxu1 %v2084_v11  ;;  %v2130_v53 = vld [vmem:[%s2335_s23 + $0x98] ss:$36 sps:$4 sm:$0xff]   ;;  %v2132_v55 = vld [vmem:[%s2583_s1 + $0x1a0] sm:$0xff]   ;;  %v2133_v56 = vld [vmem:[%s2583_s1 + $0x70] sm:$0xff]  }
  0x18   : > { %1987 = vmatprep.subr.bf16.mxu1 %v2087_v14  ;;  %1854 = vmatpush3.bf16.msra.mxu0 %v2089_v15  ;;  %v2134_v57 = vld [vmem:[%s2583_s1 + $0x30] sm:$0xff]   ;;  %v2135_v58 = vld [vmem:[%s2583_s1 + $0x1e8] sm:$0xff]   ;;  %v2137_v60 = vld [vmem:[%s2583_s1 + $0x78] sm:$0xff]  }
  0x19   : > { %1855 = vmatprep.subr.bf16.mxu0 %v2091_v16  ;;  %v2136_v59 = vld [vmem:[%s2583_s1 + $0x1a8] sm:$0xff]   ;;  %v2138_v61 = vld [vmem:[%s2583_s1 + $0x38] sm:$0xff]   ;;  %v2141_v63 = vld [vmem:[%s2335_s23 + $0xe0] ss:$36 sps:$4 sm:$0xff]  }
  0x1a   : > { %v2139_v62 = vld [vmem:[%s2335_s23 + $0xe4] ss:$36 sps:$4 sm:$0xff]   ;;  %v2142_v0 = vld [vmem:[%s2583_s1 + $0x1f0] sm:$0xff]   ;;  %v2149_v6 = vld [vmem:[%s2583_s1 + $0x1f8] sm:$0xff]  }
  0x1b   : > { %1988 = vmatpush3.bf16.msra.mxu1 %v2087_v14  ;;  %v2143_v1 = vld [vmem:[%s2335_s23] ss:$36 sps:$4 sm:$0xff]   ;;  %v2146_v3 = vld [vmem:[%s2583_s1 + $0x1b0] sm:$0xff]   ;;  %v2150_v7 = vld [vmem:[%s2583_s1 + $0x1b8] sm:$0xff]  }
  0x1c   : > { %1989 = vmatprep.subr.bf16.mxu1 %v2090_v17  ;;  %1856 = vmatpush3.bf16.msra.mxu0 %v2092_v18  ;;  %v2145_v2 = vld [vmem:[%s2335_s23 + $0x4] ss:$36 sps:$4 sm:$0xff]   ;;  %v2153_v10 = vld [vmem:[%s2335_s23 + $0x18] ss:$36 sps:$4 sm:$0xff]   ;;  %v2157_v13 = vld [vmem:[%s2335_s23 + $0x4c] ss:$36 sps:$4 sm:$0xff]  }
  0x1d   : > { %1857 = vmatprep.subr.bf16.mxu0 %v2094_v20  ;;  %v2147_v4 = vld [vmem:[%s2583_s1 + $0x140] sm:$0xff]   ;;  %v2151_v8 = vld [vmem:[%s2583_s1 + $0x148] sm:$0xff]   ;;  %v2160_v15 = vld [vmem:[%s2583_s1 + $0x150] sm:$0xff]  }
  0x1e   : > { %v2148_v5 = vld [vmem:[%s2583_s1 + $0x100] sm:$0xff]   ;;  %v2152_v9 = vld [vmem:[%s2583_s1 + $0x108] sm:$0xff]   ;;  %v2161_v16 = vld [vmem:[%s2583_s1 + $0x110] sm:$0xff]  }
  0x1f   : > { %1990 = vmatpush3.bf16.msra.mxu1 %v2090_v17  ;;  %v2155_v11 = vld [vmem:[%s2335_s23 + $0x1c] ss:$36 sps:$4 sm:$0xff]   ;;  %v2159_v14 = vld [vmem:[%s2335_s23 + $0x48] ss:$36 sps:$4 sm:$0xff]  }
  0x20   : > { %1991 = vmatprep.subr.bf16.mxu1 %v2093_v21  ;;  %1858 = vmatpush3.bf16.msra.mxu0 %v2096_v22  ;;  %v2156_v12 = vld [vmem:[%s2583_s1 + $0x200] sm:$0xff]   ;;  %v2162_v17 = vld [vmem:[%s2583_s1 + $0x208] sm:$0xff]   ;;  %v2163_v18 = vld [vmem:[%s2583_s1 + $0x158] sm:$0xff]  }
  0x21   : > { %1859 = vmatprep.subr.bf16.mxu0 %v2100_v23  ;;  %v2164_v19 = vld [vmem:[%s2583_s1 + $0x118] sm:$0xff]   ;;  %v2165_v20 = vld [vmem:[%s2335_s23 + $0x64] ss:$36 sps:$4 sm:$0xff]   ;;  %v2168_v22 = vld [vmem:[%s2583_s1 + $0x210] sm:$0xff]  }
  0x22   : > { %v2169_v23 = vld [vmem:[%s2335_s23 + $0x94] ss:$36 sps:$4 sm:$0xff]   ;;  %v2177_v30 = vld [vmem:[%s2335_s23 + $0xac] ss:$36 sps:$4 sm:$0xff]  }
  0x23   : > { %1992 = vmatpush3.bf16.msra.mxu1 %v2093_v21  ;;  %v2167_v21 = vld [vmem:[%s2335_s23 + $0x60] ss:$36 sps:$4 sm:$0xff]  }
  0x24   : > { %1805 = vmatprep.subr.bf16.mxu1 %v2098_v25  ;;  %1860 = vmatpush3.bf16.msra.mxu0 %v2101_v27  ;;  %v2172_v25 = vld [vmem:[%s2583_s1 + $0x160] sm:$0xff]   ;;  %v2174_v27 = vld [vmem:[%s2583_s1 + $0x218] sm:$0xff]  }
  0x25   : > { %1925 = vmatprep.subr.bf16.mxu0 %v2107_v31  ;;  %v2179_v31 = vld [vmem:[%s2335_s23 + $0xa8] ss:$36 sps:$4 sm:$0xff]  }
  0x26   : > { %1994 = vmatmul.mubr.bf16.vlgmr.msra.gmra.mrb[0].mxu1 %v2097_v24  ;;  %v2171_v24 = vld [vmem:[%s2335_s23 + $0x90] ss:$36 sps:$4 sm:$0xff]  }
  0x27   : > { %1806 = vmatpush3.bf16.msra.mxu1 %v2099_v26  ;;  %1286 = vmatmul.mubr.bf16.vlgmr.msra.gmra.mrb[0].mxu0 %v2104_v29  ;;  %v2173_v26 = vld [vmem:[%s2583_s1 + $0x120] sm:$0xff]   ;;  %v2176_v29 = vld [vmem:[%s2583_s1 + $0x128] sm:$0xff]  }
  0x28   : > { %1807 = vmatprep.subr.bf16.mxu1 %v2102_v28  ;;  %1926 = vmatpush3.bf16.msra.mxu0 %v2108_v32  ;;  %v2175_v28 = vld [vmem:[%s2583_s1 + $0x168] sm:$0xff]   ;;  %v2180_v32 = vld [vmem:[%s2583_s1 + $0x220] sm:$0xff]  }
  0x29   : > { %1927 = vmatprep.subr.bf16.mxu0 %v2111_v35  ;;  %1293 = vmatprep.mubr.bf16.mxu0 %v2115_v39  ;;  %v2184_v35 = vld [vmem:[%s2583_s1 + $0x170] sm:$0xff]   ;;  %v2188_v39 = vld [vmem:[%s2583_s1 + $0x138] sm:$0xff]  }
  0x2a   : > { %1997 = vmatprep.mubr.bf16.mxu1 %v2125_v49  ;;  %v2205_v49 = vld [vmem:[%s2335_s23 + $0xb0] ss:$36 sps:$4 sm:$0xff]  }
  0x2b   : > { %1808 = vmatpush3.bf16.msra.mxu1 %v2103_v33  ;;  %v2181_v33 = vld [vmem:[%s2335_s23 + $0xdc] ss:$36 sps:$4 sm:$0xff]  }
  0x2c   : > { %1809 = vmatprep.subr.bf16.mxu1 %v2109_v34  ;;  %1928 = vmatpush3.bf16.msra.mxu0 %v2112_v36  ;;  %v2183_v34 = vld [vmem:[%s2335_s23 + $0xd8] ss:$36 sps:$4 sm:$0xff]   ;;  %v2185_v36 = vld [vmem:[%s2583_s1 + $0x130] sm:$0xff]  }
  0x2d   : > { %1929 = vmatprep.subr.bf16.mxu0 %v2118_v41  ;;  %v2191_v41 = vld [vmem:[%s2335_s23 + $0xf0] ss:$36 sps:$4 sm:$0xff]  }
  0x2e   : > { %1998 = vmatmul.mubr.bf16.gmra.mrb[4].mxu1 %v2129_v52  ;;  %v2206_v52 = vld [vmem:[%s2335_s23 + $0xf8] ss:$36 sps:$4 sm:$0xff]  }
  0x2f   : > { %1810 = vmatpush3.bf16.msra.mxu1 %v2110_v37  ;;  %1294 = vmatmul.mubr.bf16.gmra.mrb[4].mxu0 %v2117_v40  ;;  %v2186_v37 = vld [vmem:[%s2583_s1 + $0x228] sm:$0xff]   ;;  %v2189_v40 = vld [vmem:[%s2335_s23 + $0xf4] ss:$36 sps:$4 sm:$0xff]  }
  0x30   : > { %1811 = vmatprep.subr.bf16.mxu1 %v2113_v38  ;;  %1930 = vmatpush3.bf16.msra.mxu0 %v2119_v42  ;;  %v2187_v38 = vld [vmem:[%s2583_s1 + $0x178] sm:$0xff]   ;;  %v2192_v42 = vld [vmem:[%s2583_s1 + $0x230] sm:$0xff]  }
  0x31   : > { %1931 = vmatprep.subr.bf16.mxu0 %v2122_v46  ;;  %1301 = vmatprep.mubr.bf16.mxu0 %v2127_v51  ;;  %v2197_v46 = vld [vmem:[%s2335_s23 + $0x20] ss:$36 sps:$4 sm:$0xff]  }
  0x32   : > { %1220 = vmatprep.mubr.bf16.mxu1 %v2145_v2  ;;  %v2202_v51 = vld [vmem:[%s2335_s23 + $0xa4] ss:$36 sps:$4 sm:$0xff]  }
  0x33   : > { %1812 = vmatpush3.bf16.msra.mxu1 %v2114_v43  ;;  %v2193_v43 = vld [vmem:[%s2335_s23 + $0x10] ss:$36 sps:$4 sm:$0xff]  }
  0x34   : > { %1813 = vmatprep.subr.bf16.mxu1 %v2120_v44  ;;  %1932 = vmatpush3.bf16.msra.mxu0 %v2123_v47  ;;  %v2195_v44 = vld [vmem:[%s2335_s23 + $0x14] ss:$36 sps:$4 sm:$0xff]   ;;  %v2198_v47 = vld [vmem:[%s2335_s23 + $0x68] ss:$36 sps:$4 sm:$0xff]  }
  0x35   : > { %1933 = vmatprep.subr.bf16.mxu0 %v2131_v54  ;;  %v2207_v54 = vld [vmem:[%s2335_s23 + $0xec] ss:$36 sps:$4 sm:$0xff]  }
  0x37   : > { %1814 = vmatpush3.bf16.msra.mxu1 %v2121_v45  ;;  %1302 = vmatmul.mubr.bf16.gmra.mrb[8].mxu0 %v2130_v53  ;;  %v2196_v45 = vld [vmem:[%s2583_s1 + $0x238] sm:$0xff]   ;;  %v2204_v53 = vld [vmem:[%s2335_s23 + $0xa0] ss:$36 sps:$4 sm:$0xff]  }
  0x38   : > { %1815 = vmatprep.subr.bf16.mxu1 %v2124_v48  ;;  %1934 = vmatpush3.bf16.msra.mxu0 %v2132_v55  ;;  %v2199_v48 = vld [vmem:[%s2335_s23 + $0x5c] ss:$36 sps:$4 sm:$0xff]   ;;  %v2209_v55 = vld [vmem:[%s2335_s23 + $0xe8] ss:$36 sps:$4 sm:$0xff]  }
  0x39   : > { %1935 = vmatprep.subr.bf16.mxu0 %v2135_v58  ;;  %1309 = vmatprep.mubr.bf16.mxu0 %v2139_v62 }
  0x3b   : > { %1816 = vmatpush3.bf16.msra.mxu1 %v2126_v50  ;;  %v2201_v50 = vld [vmem:[%s2335_s23 + $0x58] ss:$36 sps:$4 sm:$0xff]  }
  0x3c   : > { %1817 = vmatprep.subr.bf16.mxu1 %v2133_v56  ;;  %1936 = vmatpush3.bf16.msra.mxu0 %v2136_v59 }
  0x3d   : > { %1937 = vmatprep.subr.bf16.mxu0 %v2142_v0 }
  0x3f   : > { %1818 = vmatpush3.bf16.msra.mxu1 %v2134_v57  ;;  %1310 = vmatmul.mubr.bf16.gmra.mrb[12].mxu0 %v2141_v63 }
  0x40   : > { %1819 = vmatprep.subr.bf16.mxu1 %v2137_v60  ;;  %1938 = vmatpush3.bf16.msra.mxu0 %v2146_v3 }
  0x41   : > { %1939 = vmatprep.subr.bf16.mxu0 %v2149_v6  ;;  %1415 = vmatprep.mubr.bf16.mxu0 %v2155_v11 }
  0x43   : > { %1820 = vmatpush3.bf16.msra.mxu1 %v2138_v61 }
  0x44   : > { %1885 = vmatprep.subr.bf16.mxu1 %v2147_v4  ;;  %1940 = vmatpush3.bf16.msra.mxu0 %v2150_v7 }
  0x45   : > { %2001 = vmatprep.subr.bf16.mxu0 %v2156_v12 }
  0x46   : > { %1221 = vmatmul.mubr.bf16.vlgmr.msra.gmra.mrb[8].mxu1 %v2143_v1 }
  0x47   : > { %1886 = vmatpush3.bf16.msra.mxu1 %v2148_v5  ;;  %1416 = vmatmul.mubr.bf16.vlgmr.msra.gmra.mrb[16].mxu0 %v2153_v10 }
  0x48   : > { %1887 = vmatprep.subr.bf16.mxu1 %v2151_v8  ;;  %1228 = vmatprep.mubr.bf16.mxu1 %v2157_v13 }
  0x49   : > { %2002 = vmatpush3.bf16.msra.mxu0 %v2156_v12  ;;  %1423 = vmatprep.mubr.bf16.mxu0 %v2165_v20 }
  0x4a   : > { %2003 = vmatprep.subr.bf16.mxu0 %v2162_v17 }
  0x4b   : > { %1888 = vmatpush3.bf16.msra.mxu1 %v2152_v9 }
  0x4c   : > { %1889 = vmatprep.subr.bf16.mxu1 %v2160_v15 }
  0x4d   : > { %2004 = vmatpush3.bf16.msra.mxu0 %v2162_v17 }
  0x4e   : > { %1229 = vmatmul.mubr.bf16.gmra.mrb[12].mxu1 %v2159_v14  ;;  %2005 = vmatprep.subr.bf16.mxu0 %v2168_v22 }
  0x4f   : > { %1890 = vmatpush3.bf16.msra.mxu1 %v2161_v16  ;;  %1424 = vmatmul.mubr.bf16.gmra.mrb[20].mxu0 %v2167_v21 }
  0x50   : > { %1891 = vmatprep.subr.bf16.mxu1 %v2163_v18  ;;  %1236 = vmatprep.mubr.bf16.mxu1 %v2169_v23 }
  0x51   : > { %2006 = vmatpush3.bf16.msra.mxu0 %v2168_v22  ;;  %1431 = vmatprep.mubr.bf16.mxu0 %v2177_v30 }
  0x52   : > { %2007 = vmatprep.subr.bf16.mxu0 %v2174_v27 }
  0x53   : > { %1892 = vmatpush3.bf16.msra.mxu1 %v2164_v19 }
  0x54   : > { %1893 = vmatprep.subr.bf16.mxu1 %v2172_v25 }
  0x55   : > { %2008 = vmatpush3.bf16.msra.mxu0 %v2174_v27 }
  0x56   : > { %1237 = vmatmul.mubr.bf16.gmra.mrb[16].mxu1 %v2171_v24  ;;  %2009 = vmatprep.subr.bf16.mxu0 %v2180_v32 }
  0x57   : > { %1894 = vmatpush3.bf16.msra.mxu1 %v2173_v26  ;;  %1432 = vmatmul.mubr.bf16.gmra.mrb[24].mxu0 %v2179_v31 }
  0x58   : > { %1895 = vmatprep.subr.bf16.mxu1 %v2175_v28  ;;  %1244 = vmatprep.mubr.bf16.mxu1 %v2181_v33 }
  0x59   : > { %2010 = vmatpush3.bf16.msra.mxu0 %v2180_v32  ;;  %1439 = vmatprep.mubr.bf16.mxu0 %v2189_v40 }
  0x5a   : > { %2011 = vmatprep.subr.bf16.mxu0 %v2186_v37 }
  0x5b   : > { %1896 = vmatpush3.bf16.msra.mxu1 %v2176_v29 }
  0x5c   : > { %1897 = vmatprep.subr.bf16.mxu1 %v2184_v35 }
  0x5d   : > { %2012 = vmatpush3.bf16.msra.mxu0 %v2186_v37 }
  0x5e   : > { %1245 = vmatmul.mubr.bf16.gmra.mrb[20].mxu1 %v2183_v34  ;;  %2013 = vmatprep.subr.bf16.mxu0 %v2192_v42 }
  0x5f   : > { %1898 = vmatpush3.bf16.msra.mxu1 %v2185_v36  ;;  %1440 = vmatmul.mubr.bf16.gmra.mrb[28].mxu0 %v2191_v41 }
  0x60   : > { %1899 = vmatprep.subr.bf16.mxu1 %v2187_v38  ;;  %1350 = vmatprep.mubr.bf16.mxu1 %v2195_v44 }
  0x61   : > { %2014 = vmatpush3.bf16.msra.mxu0 %v2192_v42  ;;  %2017 = vmatprep.mubr.bf16.mxu0 %v2197_v46 }
  0x62   : > { %2015 = vmatprep.subr.bf16.mxu0 %v2196_v45 }
  0x63   : > { %1900 = vmatpush3.bf16.msra.mxu1 %v2188_v39 }
  0x65   : > { %2016 = vmatpush3.bf16.msra.mxu0 %v2196_v45 }
  0x66   : > { %1351 = vmatmul.mubr.bf16.vlgmr.msra.gmra.mrb[24].mxu1 %v2193_v43 }
  0x67   : > { %1358 = vmatprep.mubr.bf16.mxu1 %v2199_v48 }
  0x68   : > { %2018 = vmatmul.mubr.bf16.vlgmr.msra.gmra.mrb[32].mxu0 %v2198_v47 }
  0x69   : > { %2021 = vmatprep.mubr.bf16.mxu0 %v2205_v49 }
  0x6e   : > { %1359 = vmatmul.mubr.bf16.gmra.mrb[28].mxu1 %v2201_v50 }
  0x6f   : > { %1366 = vmatprep.mubr.bf16.mxu1 %v2202_v51 }
  0x70   : > { %2022 = vmatmul.mubr.bf16.gmra.mrb[36].mxu0 %v2206_v52 }
  0x76   : > { %1367 = vmatmul.mubr.bf16.gmra.mrb[32].mxu1 %v2204_v53 }
  0x77   : > { %1374 = vmatprep.mubr.bf16.mxu1 %v2207_v54 }
  0x7e   : > { %1375 = vmatmul.mubr.bf16.gmra.mrb[36].mxu1 %v2209_v55 }
  0xf9   : > { %v1995_v56 = vpop.f32.mrb[0].mxu1 }
  0xfa   : > { %v541_v57 = vpop.f32.mrb[1].mxu1  ;;  %v1861_v59 = vpop.f32.mrb[0].mxu0 }
  0xfb   : > { %v1996_v58 = vpop.f32.mrb[2].mxu1  ;;  %v1862_v61 = vpop.f32.mrb[1].mxu0 }
  0xfc   : > { %v544_v60 = vpop.f32.mrb[3].mxu1  ;;  %v1863_v62 = vadd.f32 %v1862_v61, %v1861_v59  ;;  %v1864_v63 = vpop.f32.mrb[2].mxu0 }
  0xfd   : > { %v1865_v0 = vpop.f32.mrb[3].mxu0 }
  0xfe   : > { %v1866_v1 = vadd.f32 %v1865_v0, %v1864_v63 }
 0x101   : > { %v2547_v8 = vpop.f32.mrb[4].mxu1 }
 0x102   : > { %v1867_v2 = vpop.f32.mrb[4].mxu0  ;;  %v557_v10 = vpop.f32.mrb[5].mxu1 }
 0x103   : > { %v1868_v3 = vpop.f32.mrb[5].mxu0  ;;  %v2549_v12 = vpop.f32.mrb[6].mxu1 }
 0x104   : > { %v1869_v4 = vadd.f32 %v1868_v3, %v1867_v2  ;;  %v1870_v5 = vpop.f32.mrb[6].mxu0  ;;  %v560_v15 = vpop.f32.mrb[7].mxu1 }
 0x105   : > { %v1871_v6 = vpop.f32.mrb[7].mxu0 }
 0x106   : > { %v1872_v7 = vadd.f32 %v1871_v6, %v1870_v5 }
 0x10a   : > { %v1873_v9 = vpop.f32.mrb[8].mxu0 }
 0x10b   : > { %v1874_v11 = vpop.f32.mrb[9].mxu0 }
 0x10c   : > { %v1875_v13 = vadd.f32 %v1874_v11, %v1873_v9  ;;  %v1876_v14 = vpop.f32.mrb[10].mxu0 }
 0x10d   : > { %v1877_v16 = vpop.f32.mrb[11].mxu0 }
 0x10e   : > { %v1878_v17 = vadd.f32 %v1877_v16, %v1876_v14 }
 0x112   : > { %v1879_v18 = vpop.f32.mrb[12].mxu0 }
 0x113   : > { %v1880_v19 = vpop.f32.mrb[13].mxu0 }
 0x114   : > { %v1881_v20 = vadd.f32 %v1880_v19, %v1879_v18  ;;  %v1882_v21 = vpop.f32.mrb[14].mxu0 }
 0x115   : > { %v1883_v23 = vpop.f32.mrb[15].mxu0 }
 0x116   : > { %v1884_v25 = vadd.f32 %v1883_v23, %v1882_v21 }
 0x119   : > { %v1821_v22 = vpop.f32.mrb[8].mxu1 }
 0x11a   : > { %v1822_v24 = vpop.f32.mrb[9].mxu1  ;;  %v1941_v33 = vpop.f32.mrb[16].mxu0 }
 0x11b   : > { %v1823_v26 = vadd.f32 %v1822_v24, %v1821_v22  ;;  %v1824_v27 = vpop.f32.mrb[10].mxu1  ;;  %v1942_v35 = vpop.f32.mrb[17].mxu0 }
 0x11c   : > { %v1825_v28 = vpop.f32.mrb[11].mxu1  ;;  %v1943_v37 = vadd.f32 %v1942_v35, %v1941_v33  ;;  %v1944_v38 = vpop.f32.mrb[18].mxu0 }
 0x11d   : > { %v1223_v29 = vadd.f32 %v1823_v26, %v541_v57  ;;  %v1826_v30 = vadd.f32 %v1825_v28, %v1824_v27  ;;  %v1945_v40 = vpop.f32.mrb[19].mxu0 }
 0x11e   : > { %v1946_v43 = vadd.f32 %v1945_v40, %v1944_v38 }
 0x11f   : > { %v1226_v31 = vadd.f32 %v1826_v30, %v544_v60  ;;  %v1288_v32 = vadd.f32 %v1863_v62, %v1223_v29 }
 0x121   : > { %v1291_v34 = vadd.f32 %v1866_v1, %v1226_v31  ;;  %v1827_v36 = vpop.f32.mrb[12].mxu1 }
 0x122   : > { %v1828_v39 = vpop.f32.mrb[13].mxu1  ;;  %v1947_v49 = vpop.f32.mrb[20].mxu0 }
 0x123   : > { %v1829_v41 = vadd.f32 %v1828_v39, %v1827_v36  ;;  %v1830_v42 = vpop.f32.mrb[14].mxu1  ;;  %v1948_v50 = vpop.f32.mrb[21].mxu0 }
 0x124   : > { %v1831_v44 = vpop.f32.mrb[15].mxu1  ;;  %v1949_v53 = vadd.f32 %v1948_v50, %v1947_v49  ;;  %v1950_v54 = vpop.f32.mrb[22].mxu0 }
 0x125   : > { %v1231_v45 = vadd.f32 %v1995_v56, %v1829_v41  ;;  %v1832_v46 = vadd.f32 %v1831_v44, %v1830_v42  ;;  %v1951_v57 = vpop.f32.mrb[23].mxu0 }
 0x126   : > { %v1952_v61 = vadd.f32 %v1951_v57, %v1950_v54 }
 0x127   : > { %v1234_v47 = vadd.f32 %v1996_v58, %v1832_v46  ;;  %v1296_v48 = vadd.f32 %v1869_v4, %v1231_v45 }
 0x129   : > { %v2551_v51 = vadd.f32 %v1872_v7, %v1234_v47  ;;  %v1833_v52 = vpop.f32.mrb[16].mxu1 }
 0x12a   : > { %v1834_v55 = vpop.f32.mrb[17].mxu1  ;;  %v1953_v56 = vpop.f32.mrb[24].mxu0 }
 0x12b   : > { %v1835_v59 = vadd.f32 %v1834_v55, %v1833_v52  ;;  %v1836_v60 = vpop.f32.mrb[18].mxu1  ;;  %v1954_v58 = vpop.f32.mrb[25].mxu0 }
 0x12c   : > { %v1837_v62 = vpop.f32.mrb[19].mxu1  ;;  %v2555_v3 = vadd.f32 %v1954_v58, %v1953_v56  ;;  %v1956_v4 = vpop.f32.mrb[26].mxu0 }
 0x12d   : > { %v1239_v63 = vadd.f32 %v1835_v59, %v557_v10  ;;  %v1838_v0 = vadd.f32 %v1837_v62, %v1836_v60  ;;  %v1957_v7 = vpop.f32.mrb[27].mxu0 }
 0x12e   : > { %v2559_v11 = vadd.f32 %v1957_v7, %v1956_v4 }
 0x12f   : > { %v1242_v1 = vadd.f32 %v1838_v0, %v560_v15  ;;  %v2553_v2 = vadd.f32 %v1875_v13, %v1239_v63 }
 0x131   : > { %v2557_v5 = vadd.f32 %v1878_v17, %v1242_v1  ;;  %v1839_v6 = vpop.f32.mrb[20].mxu1 }
 0x132   : > { %v1840_v9 = vpop.f32.mrb[21].mxu1  ;;  %v1959_v19 = vpop.f32.mrb[28].mxu0 }
 0x133   : > { %v1841_v14 = vadd.f32 %v1840_v9, %v1839_v6  ;;  %v1842_v16 = vpop.f32.mrb[22].mxu1  ;;  %v1960_v22 = vpop.f32.mrb[29].mxu0 }
 0x134   : > { %v1843_v18 = vpop.f32.mrb[23].mxu1  ;;  %v1961_v23 = vadd.f32 %v1960_v22, %v1959_v19  ;;  %v1962_v24 = vpop.f32.mrb[30].mxu0 }
 0x135   : > { %v1247_v10 = vadd.f32 %v2547_v8, %v1841_v14  ;;  %v1844_v15 = vadd.f32 %v1843_v18, %v1842_v16  ;;  %v1963_v27 = vpop.f32.mrb[31].mxu0 }
 0x136   : > { %v1964_v29 = vadd.f32 %v1963_v27, %v1962_v24 }
 0x137   : > { %v1250_v13 = vadd.f32 %v2549_v12, %v1844_v15  ;;  %v1312_v21 = vadd.f32 %v1881_v20, %v1247_v10 }
 0x139   : > { %v1315_v17 = vadd.f32 %v1884_v25, %v1250_v13  ;;  %v1901_v26 = vpop.f32.mrb[24].mxu1 }
 0x13a   : > { %v1902_v28 = vpop.f32.mrb[25].mxu1 }
 0x13b   : > { %v1903_v30 = vadd.f32 %v1902_v28, %v1901_v26  ;;  %v1904_v31 = vpop.f32.mrb[26].mxu1  ;;  %v2019_v8 = vpop.f32.mrb[32].mxu0 }
 0x13c   : > { %v1905_v33 = vpop.f32.mrb[27].mxu1  ;;  %v1482_v12 = vpop.f32.mrb[33].mxu0 }
 0x13d   : > { %v1353_v35 = vadd.f32 %v1903_v30, %v1288_v32  ;;  %v1906_v36 = vadd.f32 %v1905_v33, %v1904_v31  ;;  %v2020_v40 = vpop.f32.mrb[34].mxu0 }
 0x13e   : > { %v1485_v44 = vpop.f32.mrb[35].mxu0 }
 0x13f   : > { %v1356_v38 = vadd.f32 %v1906_v36, %v1291_v34  ;;  %v1418_v39 = vadd.f32 %v1943_v37, %v1353_v35 }
 0x141   : > { %v1483_v20 = vadd.f32 %v1482_v12, %v1418_v39  ;;  %v1907_v41 = vpop.f32.mrb[28].mxu1  ;;  %v1421_v42 = vadd.f32 %v1946_v43, %v1356_v38 }
 0x142   : > { %v1908_v25 = vpop.f32.mrb[29].mxu1 }
 0x143   : > { %v1909_v45 = vadd.f32 %v1908_v25, %v1907_v41  ;;  %v1486_v46 = vadd.f32 %v1485_v44, %v1421_v42  ;;  %v1910_v47 = vpop.f32.mrb[30].mxu1  ;;  %v2023_v50 = vpop.f32.mrb[36].mxu0 }
 0x144   : > { %v1911_v32 = vpop.f32.mrb[31].mxu1  ;;  %v1498_v54 = vpop.f32.mrb[37].mxu0 }
 0x145   : > { %v1361_v34 = vadd.f32 %v1909_v45, %v1296_v48  ;;  %v1773_v37 = vpack.c.bf16 %v1486_v46, %v1483_v20  ;;  %v1912_v49 = vadd.f32 %v1911_v32, %v1910_v47  ;;  %v2024_v55 = vpop.f32.mrb[38].mxu0 }
 0x146   : > { %v1501_v62 = vpop.f32.mrb[39].mxu0 }
 0x147   : > { %v1426_v52 = vadd.f32 %v1949_v53, %v1361_v34  ;;  %1774 = vst [vmem:[%s2568_s6] sm:$0xff] %v1773_v37   ;;  %v1364_v43 = vadd.f32 %v1912_v49, %v2551_v51 }
 0x149   : > { %v1491_v57 = vadd.f32 %v2019_v8, %v1426_v52  ;;  %v1429_v59 = vadd.f32 %v1952_v61, %v1364_v43  ;;  %v1913_v60 = vpop.f32.mrb[32].mxu1 }
 0x14a   : > { %v1914_v63 = vpop.f32.mrb[33].mxu1 }
 0x14b   : > { %v1494_v0 = vadd.f32 %v2020_v40, %v1429_v59  ;;  %v1915_v1 = vadd.f32 %v1914_v63, %v1913_v60  ;;  %v1916_v56 = vpop.f32.mrb[34].mxu1 }
 0x14c   : > { %v1917_v58 = vpop.f32.mrb[35].mxu1 }
 0x14d   : > { %v1778_v48 = vpack.c.bf16 %v1494_v0, %v1491_v57  ;;  %v1369_v4 = vadd.f32 %v1915_v1, %v2553_v2  ;;  %v1918_v6 = vadd.f32 %v1917_v58, %v1916_v56 }
 0x14f   : > { %1790 = vst [vmem:[%s2568_s6 + $0x8] sm:$0xff] %v1778_v48   ;;  %v1372_v53 = vadd.f32 %v1918_v6, %v2557_v5  ;;  %v1434_v51 = vadd.f32 %v2555_v3, %v1369_v4 }
 0x151   : > { %v1499_v7 = vadd.f32 %v1498_v54, %v1434_v51  ;;  %v1919_v9 = vpop.f32.mrb[36].mxu1  ;;  %v1437_v61 = vadd.f32 %v2559_v11, %v1372_v53 }
 0x152   : > { %v1920_v14 = vpop.f32.mrb[37].mxu1 }
 0x153   : > { %v1921_v16 = vadd.f32 %v1920_v14, %v1919_v9  ;;  %v1502_v18 = vadd.f32 %v1501_v62, %v1437_v61  ;;  %v1922_v10 = vpop.f32.mrb[38].mxu1 }
 0x154   : > { %v1923_v15 = vpop.f32.mrb[39].mxu1 }
 0x155   : > { %v1377_v13 = vadd.f32 %v1921_v16, %v1312_v21  ;;  %v1783_v19 = vpack.c.bf16 %v1502_v18, %v1499_v7  ;;  %v1924_v2 = vadd.f32 %v1923_v15, %v1922_v10 }
 0x157   : > { %v1442_v22 = vadd.f32 %v1961_v23, %v1377_v13  ;;  %1791 = vst [vmem:[%s2568_s6 + $0x10] sm:$0xff] %v1783_v19   ;;  %v1380_v24 = vadd.f32 %v1924_v2, %v1315_v17 }
 0x159   : > { %v1507_v26 = vadd.f32 %v2023_v50, %v1442_v22  ;;  %v1445_v5 = vadd.f32 %v1964_v29, %v1380_v24 }
 0x15b   : > { %v1510_v27 = vadd.f32 %v2024_v55, %v1445_v5 }
 0x15d   : > { %v1788_v3 = vpack.c.bf16 %v1510_v27, %v1507_v26 }
 0x15f   : > { %1792 = vst [vmem:[%s2568_s6 + $0x18] sm:$0xff] %v1788_v3  }
 0x160 PF: > { %s14_s15 = sadd.s32 1, %s2216_s15  }
 0x161   : > { %p11_p4 = scmp.ge.s32.totalorder %s14_s15, 4  }
 0x163   :  { %13 = sbr.rel (!%p11_p4) target bundleno = 1 (0x1), region = 69 }

// kernel: _lambda_.32
= control target key start
LH: loop header
LB: loop body
LE: loop exit
PB: predicated region body
PF: predicated region fallthrough
CT: control target
= control target key end

     0   :  { %s2001_s12 = smov 0   ;;  %s2306_s0 = inlined_call_operand.vmem [shape: bf16[128,1152], index: 0, kind: input, shape index: {}]   ;;  %s2307_s1 = inlined_call_operand.vmem [shape: bf16[1152,128], index: 1, kind: input, shape index: {}]   ;;  %s2308_s2 = inlined_call_operand.vmem [shape: bf16[128,128], index: 2, kind: input, shape index: {}]   ;;  %s2309_s3 = inlined_call_operand.vmem [shape: bf16[128,128], index: 3, kind: output, shape index: {}]  }
   0x1 LB: > { %s1449_s13 = sadd.s32 4294967295, %s1979_s12   ;;  %p1453_p0 = scmp.ge.s32.totalorder %s1979_s12, 1  ;;  %s1979_s12 = sphi %s2001_s12, %s13_s12  }
   0x2   : > { %p150_p1 = scmp.lt.s32.totalorder %s1979_s12, 3 }
   0x4   : > { %p151_p2 = pnand %p1453_p0, %p150_p1 }
   0x5   : > { %v1849_v0 = vld [vmem:[%s2307_s1 + $0x40] sm:$0xff] (!%p151_p2)   ;;  %v1853_v4 = vld [vmem:[%s2307_s1 + $0x48] sm:$0xff] (!%p151_p2)   ;;  %v1857_v8 = vld [vmem:[%s2307_s1 + $0x50] sm:$0xff] (!%p151_p2)   ;;  %s1454_s19 = sshll.u32 (!%p151_p2), %s1449_s13, 3 }
   0x6   : > { %154 = sbr.rel (%p151_p2) target bundleno = 325 (0x145), region = 32  ;;  %v1850_v1 = vld [vmem:[%s2307_s1 + $0xc0] sm:$0xff] (!%p151_p2)   ;;  %1628 = vmatprep.subr.bf16.mxu0 (!%p151_p2), %v1849_v0  ;;  %v1854_v5 = vld [vmem:[%s2307_s1 + $0xc8] sm:$0xff] (!%p151_p2)   ;;  %v1858_v9 = vld [vmem:[%s2307_s1 + $0xd0] sm:$0xff] (!%p151_p2)   ;;  %p181_p3 = scmp.lt.s32.totalorder (!%p151_p2), %s1454_s19, 15 }
   0x7   : > { %v1851_v2 = vld [vmem:[%s2307_s1] sm:$0xff] (!%p151_p2)   ;;  %1668 = vmatprep.subr.bf16.mxu1 (!%p151_p2), %v1850_v1  ;;  %v1855_v6 = vld [vmem:[%s2307_s1 + $0x8] sm:$0xff] (!%p151_p2)   ;;  %v1859_v10 = vld [vmem:[%s2307_s1 + $0x10] sm:$0xff] (!%p151_p2)  }
   0x8   : > { %v1852_v3 = vld [vmem:[%s2307_s1 + $0x80] sm:$0xff] (!%p151_p2)   ;;  %1629 = vmatpush3.bf16.msra.mxu0 (!%p151_p2), %v1851_v2  ;;  %v1856_v7 = vld [vmem:[%s2307_s1 + $0x88] sm:$0xff] (!%p151_p2)   ;;  %v1860_v11 = vld [vmem:[%s2307_s1 + $0x90] sm:$0xff] (!%p151_p2)  }
   0x9   : > { %1669 = vmatpush3.bf16.msra.mxu1 (!%p151_p2), %v1852_v3  ;;  %1630 = vmatprep.subr.bf16.mxu0 (!%p151_p2), %v1853_v4  ;;  %v1861_v12 = vld [vmem:[%s2307_s1 + $0x58] sm:$0xff] (!%p151_p2)   ;;  %v1865_v16 = vld [vmem:[%s2307_s1 + $0x60] sm:$0xff] (!%p151_p2)   ;;  %v1869_v20 = vld [vmem:[%s2307_s1 + $0x68] sm:$0xff] (!%p151_p2)  }
   0xa   : > { %1670 = vmatprep.subr.bf16.mxu1 (!%p151_p2), %v1854_v5  ;;  %v1862_v13 = vld [vmem:[%s2307_s1 + $0xd8] sm:$0xff] (!%p151_p2)   ;;  %v1866_v17 = vld [vmem:[%s2307_s1 + $0xe0] sm:$0xff] (!%p151_p2)   ;;  %v1870_v21 = vld [vmem:[%s2307_s1 + $0xe8] sm:$0xff] (!%p151_p2)  }
   0xb   : > { %v1863_v14 = vld [vmem:[%s2307_s1 + $0x18] sm:$0xff] (!%p151_p2)   ;;  %v1867_v18 = vld [vmem:[%s2307_s1 + $0x20] sm:$0xff] (!%p151_p2)   ;;  %v1871_v22 = vld [vmem:[%s2307_s1 + $0x28] sm:$0xff] (!%p151_p2)  }
   0xc   : > { %1631 = vmatpush3.bf16.msra.mxu0 (!%p151_p2), %v1855_v6  ;;  %v1864_v15 = vld [vmem:[%s2307_s1 + $0x98] sm:$0xff] (!%p151_p2)   ;;  %v1868_v19 = vld [vmem:[%s2307_s1 + $0xa0] sm:$0xff] (!%p151_p2)   ;;  %v1872_v23 = vld [vmem:[%s2307_s1 + $0xa8] sm:$0xff] (!%p151_p2)  }
   0xd   : > { %1671 = vmatpush3.bf16.msra.mxu1 %v1856_v7  ;;  %1632 = vmatprep.subr.bf16.mxu0 %v1857_v8  ;;  %s2311_s19 = smov (!%p181_p3, %s1454_s19), 15  ;;  %v1873_v24 = vld [vmem:[%s2307_s1 + $0x70] sm:$0xff]   ;;  %v1877_v28 = vld [vmem:[%s2307_s1 + $0x78] sm:$0xff]   ;;  %v1887_v36 = vld [vmem:[%s2307_s1 + $0x140] sm:$0xff]  }
   0xe   : > { %1672 = vmatprep.subr.bf16.mxu1 %v1858_v9  ;;  %v1874_v25 = vld [vmem:[%s2307_s1 + $0xf0] sm:$0xff]   ;;  %s1840_s16 = smul.u32 36, %s2311_s19  ;;  %v1878_v29 = vld [vmem:[%s2307_s1 + $0xf8] sm:$0xff]   ;;  %v1888_v37 = vld [vmem:[%s2307_s1 + $0x1c0] sm:$0xff]   ;;  %s1457_s15 = sshll.u32 %s2311_s19, 2 }
   0xf   : > { %v1875_v26 = vld [vmem:[%s2307_s1 + $0x30] sm:$0xff]   ;;  %v1879_v30 = vld [vmem:[%s2307_s1 + $0x38] sm:$0xff]   ;;  %v1889_v38 = vld [vmem:[%s2307_s1 + $0x100] sm:$0xff]   ;;  %s2277_s18 = scalar_lea.vmem %s2308_s2, %s1457_s15  ;;  %s197_s21 = scalar_lea.vmem %s2309_s3, %s1457_s15 }
  0x10   : > { %1633 = vmatpush3.bf16.msra.mxu0 %v1859_v10  ;;  %v1876_v27 = vld [vmem:[%s2307_s1 + $0xb0] sm:$0xff]   ;;  %s2107_s13 = scalar_lea.vmem %s2306_s0, %s1840_s16  ;;  %v1880_v31 = vld [vmem:[%s2307_s1 + $0xb8] sm:$0xff]   ;;  %v1890_v39 = vld [vmem:[%s2307_s1 + $0x180] sm:$0xff]  }
  0x11   : > { %1673 = vmatpush3.bf16.msra.mxu1 %v1860_v11  ;;  %1634 = vmatprep.subr.bf16.mxu0 %v1861_v12  ;;  %v1881_v32 = vld [vmem:[%s2107_s13] ss:$36 sps:$4 sm:$0xff]   ;;  %v1884_v34 = vld [vmem:[%s2107_s13 + $0x8] ss:$36 sps:$4 sm:$0xff]   ;;  %v1897_v45 = vld [vmem:[%s2107_s13 + $0x54] ss:$36 sps:$4 sm:$0xff]  }
  0x12   : > { %1674 = vmatprep.subr.bf16.mxu1 %v1862_v13  ;;  %v1883_v33 = vld [vmem:[%s2107_s13 + $0x4] ss:$36 sps:$4 sm:$0xff]   ;;  %v1886_v35 = vld [vmem:[%s2107_s13 + $0xc] ss:$36 sps:$4 sm:$0xff]   ;;  %v1905_v52 = vld [vmem:[%s2307_s1 + $0x158] sm:$0xff]  }
  0x13   : > { %1048 = vmatprep.mubr.bf16.mxu0 %v1883_v33  ;;  %1113 = vmatprep.mubr.bf16.mxu1 %v1886_v35  ;;  %v1891_v40 = vld [vmem:[%s2307_s1 + $0x148] sm:$0xff]   ;;  %v1900_v47 = vld [vmem:[%s2107_s13 + $0x50] ss:$36 sps:$4 sm:$0xff]   ;;  %v1906_v53 = vld [vmem:[%s2307_s1 + $0x1d8] sm:$0xff]  }
  0x14   : > { %1635 = vmatpush3.bf16.msra.mxu0 %v1863_v14  ;;  %v1892_v41 = vld [vmem:[%s2307_s1 + $0x1c8] sm:$0xff]   ;;  %v1901_v48 = vld [vmem:[%s2307_s1 + $0x150] sm:$0xff]   ;;  %v1907_v54 = vld [vmem:[%s2307_s1 + $0x118] sm:$0xff]  }
  0x15   : > { %1675 = vmatpush3.bf16.msra.mxu1 %v1864_v15  ;;  %1636 = vmatprep.subr.bf16.mxu0 %v1865_v16  ;;  %v1893_v42 = vld [vmem:[%s2307_s1 + $0x108] sm:$0xff]   ;;  %v1902_v49 = vld [vmem:[%s2307_s1 + $0x1d0] sm:$0xff]   ;;  %v1908_v55 = vld [vmem:[%s2307_s1 + $0x198] sm:$0xff]  }
  0x16   : > { %1676 = vmatprep.subr.bf16.mxu1 %v1866_v17  ;;  %v1894_v43 = vld [vmem:[%s2307_s1 + $0x188] sm:$0xff]   ;;  %v1903_v50 = vld [vmem:[%s2307_s1 + $0x110] sm:$0xff]   ;;  %v1911_v57 = vld [vmem:[%s2107_s13 + $0x9c] ss:$36 sps:$4 sm:$0xff]  }
  0x17   : > { %v1895_v44 = vld [vmem:[%s2107_s13 + $0x4c] ss:$36 sps:$4 sm:$0xff]   ;;  %v1909_v56 = vld [vmem:[%s2107_s13 + $0x94] ss:$36 sps:$4 sm:$0xff]   ;;  %v1915_v60 = vld [vmem:[%s2307_s1 + $0x160] sm:$0xff]  }
  0x18   : > { %1637 = vmatpush3.bf16.msra.mxu0 %v1867_v18  ;;  %v1899_v46 = vld [vmem:[%s2107_s13 + $0x48] ss:$36 sps:$4 sm:$0xff]   ;;  %v1904_v51 = vld [vmem:[%s2307_s1 + $0x190] sm:$0xff]   ;;  %v1914_v59 = vld [vmem:[%s2107_s13 + $0x98] ss:$36 sps:$4 sm:$0xff]  }
  0x19   : > { %1677 = vmatpush3.bf16.msra.mxu1 %v1868_v19  ;;  %1638 = vmatprep.subr.bf16.mxu0 %v1869_v20  ;;  %v1913_v58 = vld [vmem:[%s2107_s13 + $0x90] ss:$36 sps:$4 sm:$0xff]   ;;  %v1916_v61 = vld [vmem:[%s2307_s1 + $0x1e0] sm:$0xff]   ;;  %v1919_v0 = vld [vmem:[%s2307_s1 + $0x168] sm:$0xff]  }
  0x1a   : > { %1678 = vmatprep.subr.bf16.mxu1 %v1870_v21  ;;  %v1917_v62 = vld [vmem:[%s2307_s1 + $0x120] sm:$0xff]   ;;  %v1920_v1 = vld [vmem:[%s2307_s1 + $0x1e8] sm:$0xff]   ;;  %v1927_v6 = vld [vmem:[%s2107_s13 + $0xd8] ss:$36 sps:$4 sm:$0xff]  }
  0x1b   : > { %v1918_v63 = vld [vmem:[%s2307_s1 + $0x1a0] sm:$0xff]   ;;  %v1921_v2 = vld [vmem:[%s2307_s1 + $0x128] sm:$0xff]   ;;  %v1929_v8 = vld [vmem:[%s2307_s1 + $0x170] sm:$0xff]  }
  0x1c   : > { %1639 = vmatpush3.bf16.msra.mxu0 %v1871_v22  ;;  %v1922_v3 = vld [vmem:[%s2307_s1 + $0x1a8] sm:$0xff]   ;;  %v1923_v4 = vld [vmem:[%s2107_s13 + $0xdc] ss:$36 sps:$4 sm:$0xff]   ;;  %v1930_v9 = vld [vmem:[%s2307_s1 + $0x1f0] sm:$0xff]  }
  0x1d   : > { %1679 = vmatpush3.bf16.msra.mxu1 %v1872_v23  ;;  %1640 = vmatprep.subr.bf16.mxu0 %v1873_v24  ;;  %v1925_v5 = vld [vmem:[%s2107_s13 + $0xe4] ss:$36 sps:$4 sm:$0xff]   ;;  %v1931_v10 = vld [vmem:[%s2307_s1 + $0x130] sm:$0xff]   ;;  %v1933_v12 = vld [vmem:[%s2307_s1 + $0x178] sm:$0xff]  }
  0x1e   : > { %1680 = vmatprep.subr.bf16.mxu1 %v1874_v25  ;;  %v1928_v7 = vld [vmem:[%s2107_s13 + $0xe0] ss:$36 sps:$4 sm:$0xff]   ;;  %v1932_v11 = vld [vmem:[%s2307_s1 + $0x1b0] sm:$0xff]   ;;  %v1934_v13 = vld [vmem:[%s2307_s1 + $0x1f8] sm:$0xff]  }
  0x1f   : > { %v1935_v14 = vld [vmem:[%s2307_s1 + $0x138] sm:$0xff]   ;;  %v1937_v16 = vld [vmem:[%s2107_s13 + $0x10] ss:$36 sps:$4 sm:$0xff]   ;;  %v1943_v20 = vld [vmem:[%s2307_s1 + $0x200] sm:$0xff]  }
  0x20   : > { %1641 = vmatpush3.bf16.msra.mxu0 %v1875_v26  ;;  %v1936_v15 = vld [vmem:[%s2307_s1 + $0x1b8] sm:$0xff]   ;;  %v1944_v21 = vld [vmem:[%s2307_s1 + $0x208] sm:$0xff]   ;;  %v1950_v25 = vld [vmem:[%s2107_s13 + $0x60] ss:$36 sps:$4 sm:$0xff]  }
  0x21   : > { %1681 = vmatpush3.bf16.msra.mxu1 %v1876_v27  ;;  %1642 = vmatprep.subr.bf16.mxu0 %v1877_v28  ;;  %v1939_v17 = vld [vmem:[%s2107_s13 + $0x14] ss:$36 sps:$4 sm:$0xff]   ;;  %v1942_v19 = vld [vmem:[%s2107_s13 + $0x1c] ss:$36 sps:$4 sm:$0xff]   ;;  %v1947_v23 = vld [vmem:[%s2107_s13 + $0x64] ss:$36 sps:$4 sm:$0xff]  }
  0x22   : > { %1682 = vmatprep.subr.bf16.mxu1 %v1878_v29  ;;  %v1940_v18 = vld [vmem:[%s2107_s13 + $0x18] ss:$36 sps:$4 sm:$0xff]   ;;  %v1951_v26 = vld [vmem:[%s2307_s1 + $0x210] sm:$0xff]   ;;  %v1953_v27 = vld [vmem:[%s2107_s13 + $0xa4] ss:$36 sps:$4 sm:$0xff]  }
  0x23   : > { %v1945_v22 = vld [vmem:[%s2107_s13 + $0x5c] ss:$36 sps:$4 sm:$0xff]   ;;  %v1955_v28 = vld [vmem:[%s2107_s13 + $0xac] ss:$36 sps:$4 sm:$0xff]  }
  0x24   : > { %1643 = vmatpush3.bf16.msra.mxu0 %v1879_v30  ;;  %v1949_v24 = vld [vmem:[%s2107_s13 + $0x58] ss:$36 sps:$4 sm:$0xff]   ;;  %v1957_v30 = vld [vmem:[%s2107_s13 + $0xa0] ss:$36 sps:$4 sm:$0xff]   ;;  %v1961_v33 = vld [vmem:[%s2107_s13 + $0xec] ss:$36 sps:$4 sm:$0xff]  }
  0x25   : > { %1683 = vmatpush3.bf16.msra.mxu1 %v1880_v31  ;;  %1708 = vmatprep.subr.bf16.mxu0 %v1887_v36  ;;  %v1952_v29 = vld [vmem:[%s2307_s1 + $0x218] sm:$0xff]   ;;  %v1958_v31 = vld [vmem:[%s2107_s13 + $0xa8] ss:$36 sps:$4 sm:$0xff]  }
  0x26   : > { %1748 = vmatprep.subr.bf16.mxu1 %v1888_v37  ;;  %v1960_v35 = vld [vmem:[%s2307_s1 + $0x228] sm:$0xff]   ;;  %v1967_v37 = vld [vmem:[%s2307_s1 + $0x230] sm:$0xff]  }
  0x27   : > { %1049 = vmatmul.mubr.bf16.vlgmr.msra.gmra.mrb[0].mxu0 %v1881_v32  ;;  %v1959_v32 = vld [vmem:[%s2307_s1 + $0x220] sm:$0xff]   ;;  %v1965_v36 = vld [vmem:[%s2107_s13 + $0xe8] ss:$36 sps:$4 sm:$0xff]  }
  0x28   : > { %1114 = vmatmul.mubr.bf16.vlgmr.msra.gmra.mrb[0].mxu1 %v1884_v34  ;;  %1709 = vmatpush3.bf16.msra.mxu0 %v1889_v38  ;;  %v1963_v34 = vld [vmem:[%s2107_s13 + $0xf4] ss:$36 sps:$4 sm:$0xff]  }
  0x29   : > { %1749 = vmatpush3.bf16.msra.mxu1 %v1890_v39  ;;  %1710 = vmatprep.subr.bf16.mxu0 %v1891_v40  ;;  %v1966_v38 = vld [vmem:[%s2107_s13 + $0xf0] ss:$36 sps:$4 sm:$0xff]   ;;  %v1969_v39 = vld [vmem:[%s2107_s13 + $0x20] ss:$36 sps:$4 sm:$0xff]  }
  0x2a   : > { %1750 = vmatprep.subr.bf16.mxu1 %v1892_v41  ;;  %1056 = vmatprep.mubr.bf16.mxu0 %v1895_v44  ;;  %v1970_v40 = vld [vmem:[%s2107_s13 + $0xb0] ss:$36 sps:$4 sm:$0xff]   ;;  %v1968_v41 = vld [vmem:[%s2307_s1 + $0x238] sm:$0xff]   ;;  %v1587_v44 = vld [vmem:[%s2277_s18] sm:$0xff]  }
  0x2b   : > { %1121 = vmatprep.mubr.bf16.mxu1 %v1897_v45 }
  0x2c   : > { %1711 = vmatpush3.bf16.msra.mxu0 %v1893_v42  ;;  %v1971_v42 = vld [vmem:[%s2107_s13 + $0x68] ss:$36 sps:$4 sm:$0xff]  }
  0x2d   : > { %1751 = vmatpush3.bf16.msra.mxu1 %v1894_v43  ;;  %1712 = vmatprep.subr.bf16.mxu0 %v1901_v48  ;;  %v1972_v43 = vld [vmem:[%s2107_s13 + $0xf8] ss:$36 sps:$4 sm:$0xff]  }
  0x2e   : > { %1752 = vmatprep.subr.bf16.mxu1 %v1902_v49 }
  0x2f   : > { %1057 = vmatmul.mubr.bf16.gmra.mrb[4].mxu0 %v1899_v46  ;;  %v1588_v46 = vunpack.c.l.bf16 %v1587_v44 }
  0x30   : > { %1122 = vmatmul.mubr.bf16.gmra.mrb[4].mxu1 %v1900_v47  ;;  %1713 = vmatpush3.bf16.msra.mxu0 %v1903_v50 }
  0x31   : > { %1753 = vmatpush3.bf16.msra.mxu1 %v1904_v51  ;;  %1714 = vmatprep.subr.bf16.mxu0 %v1905_v52  ;;  %v1589_v52 = vunpack.c.h.bf16 %v1587_v44 }
  0x32   : > { %1754 = vmatprep.subr.bf16.mxu1 %v1906_v53  ;;  %1064 = vmatprep.mubr.bf16.mxu0 %v1909_v56 }
  0x33   : > { %1129 = vmatprep.mubr.bf16.mxu1 %v1911_v57 }
  0x34   : > { %1715 = vmatpush3.bf16.msra.mxu0 %v1907_v54 }
  0x35   : > { %1755 = vmatpush3.bf16.msra.mxu1 %v1908_v55  ;;  %1716 = vmatprep.subr.bf16.mxu0 %v1915_v60 }
  0x36   : > { %1756 = vmatprep.subr.bf16.mxu1 %v1916_v61 }
  0x37   : > { %1065 = vmatmul.mubr.bf16.gmra.mrb[8].mxu0 %v1913_v58 }
  0x38   : > { %1130 = vmatmul.mubr.bf16.gmra.mrb[8].mxu1 %v1914_v59  ;;  %1717 = vmatpush3.bf16.msra.mxu0 %v1917_v62  ;;  %v1622_v62 = vld [vmem:[%s2277_s18 + $0x8] sm:$0xff]  }
  0x39   : > { %1757 = vmatpush3.bf16.msra.mxu1 %v1918_v63  ;;  %1718 = vmatprep.subr.bf16.mxu0 %v1919_v0 }
  0x3a   : > { %1758 = vmatprep.subr.bf16.mxu1 %v1920_v1  ;;  %1072 = vmatprep.mubr.bf16.mxu0 %v1923_v4  ;;  %v1592_v1 = vunpack.c.l.bf16 %v1622_v62 }
  0x3b   : > { %1137 = vmatprep.mubr.bf16.mxu1 %v1925_v5 }
  0x3c   : > { %1719 = vmatpush3.bf16.msra.mxu0 %v1921_v2 }
  0x3d   : > { %1759 = vmatpush3.bf16.msra.mxu1 %v1922_v3  ;;  %1720 = vmatprep.subr.bf16.mxu0 %v1929_v8 }
  0x3e   : > { %1760 = vmatprep.subr.bf16.mxu1 %v1930_v9 }
  0x3f   : > { %1073 = vmatmul.mubr.bf16.gmra.mrb[12].mxu0 %v1927_v6 }
  0x40   : > { %1138 = vmatmul.mubr.bf16.gmra.mrb[12].mxu1 %v1928_v7  ;;  %1721 = vmatpush3.bf16.msra.mxu0 %v1931_v10  ;;  %v1593_v7 = vunpack.c.h.bf16 %v1622_v62 }
  0x41   : > { %1761 = vmatpush3.bf16.msra.mxu1 %v1932_v11  ;;  %1722 = vmatprep.subr.bf16.mxu0 %v1933_v12 }
  0x42   : > { %1762 = vmatprep.subr.bf16.mxu1 %v1934_v13  ;;  %1178 = vmatprep.mubr.bf16.mxu0 %v1939_v17 }
  0x43   : > { %1243 = vmatprep.mubr.bf16.mxu1 %v1942_v19 }
  0x44   : > { %1723 = vmatpush3.bf16.msra.mxu0 %v1935_v14 }
  0x45   : > { %1763 = vmatpush3.bf16.msra.mxu1 %v1936_v15  ;;  %1800 = vmatprep.subr.bf16.mxu0 %v1943_v20 }
  0x46   : > { %1824 = vmatprep.subr.bf16.mxu1 %v1943_v20 }
  0x47   : > { %1179 = vmatmul.mubr.bf16.vlgmr.msra.gmra.mrb[16].mxu0 %v1937_v16 }
  0x48   : > { %1244 = vmatmul.mubr.bf16.vlgmr.msra.gmra.mrb[16].mxu1 %v1940_v18  ;;  %1801 = vmatpush3.bf16.msra.mxu0 %v1943_v20  ;;  %v1623_v18 = vld [vmem:[%s2277_s18 + $0x10] sm:$0xff]  }
  0x49   : > { %1832 = vmatpush3.bf16.msra.mxu1 %v1943_v20  ;;  %1802 = vmatprep.subr.bf16.mxu0 %v1944_v21  ;;  %v1596_v20 = vunpack.c.l.bf16 %v1623_v18 }
  0x4a   : > { %1825 = vmatprep.subr.bf16.mxu1 %v1944_v21  ;;  %1186 = vmatprep.mubr.bf16.mxu0 %v1945_v22 }
  0x4b   : > { %1251 = vmatprep.mubr.bf16.mxu1 %v1947_v23 }
  0x4c   : > { %1803 = vmatpush3.bf16.msra.mxu0 %v1944_v21 }
  0x4d   : > { %1833 = vmatpush3.bf16.msra.mxu1 %v1944_v21  ;;  %1804 = vmatprep.subr.bf16.mxu0 %v1951_v26 }
  0x4e   : > { %1826 = vmatprep.subr.bf16.mxu1 %v1951_v26 }
  0x4f   : > { %1187 = vmatmul.mubr.bf16.gmra.mrb[20].mxu0 %v1949_v24 }
  0x50   : > { %1252 = vmatmul.mubr.bf16.gmra.mrb[20].mxu1 %v1950_v25  ;;  %1194 = vmatprep.mubr.bf16.mxu0 %v1953_v27 }
  0x51   : > { %1805 = vmatpush3.bf16.msra.mxu0 %v1951_v26  ;;  %1259 = vmatprep.mubr.bf16.mxu1 %v1955_v28 }
  0x52   : > { %1834 = vmatpush3.bf16.msra.mxu1 %v1951_v26  ;;  %1806 = vmatprep.subr.bf16.mxu0 %v1952_v29  ;;  %v1597_v26 = vunpack.c.h.bf16 %v1623_v18 }
  0x53   : > { %1827 = vmatprep.subr.bf16.mxu1 %v1952_v29 }
  0x55   : > { %1807 = vmatpush3.bf16.msra.mxu0 %v1952_v29 }
  0x56   : > { %1835 = vmatpush3.bf16.msra.mxu1 %v1952_v29  ;;  %1808 = vmatprep.subr.bf16.mxu0 %v1959_v32 }
  0x57   : > { %1195 = vmatmul.mubr.bf16.gmra.mrb[24].mxu0 %v1957_v30  ;;  %1828 = vmatprep.subr.bf16.mxu1 %v1959_v32 }
  0x58   : > { %1260 = vmatmul.mubr.bf16.gmra.mrb[24].mxu1 %v1958_v31  ;;  %1202 = vmatprep.mubr.bf16.mxu0 %v1961_v33 }
  0x59   : > { %1809 = vmatpush3.bf16.msra.mxu0 %v1959_v32  ;;  %1267 = vmatprep.mubr.bf16.mxu1 %v1963_v34 }
  0x5a   : > { %1836 = vmatpush3.bf16.msra.mxu1 %v1959_v32  ;;  %1810 = vmatprep.subr.bf16.mxu0 %v1960_v35 }
  0x5b   : > { %1829 = vmatprep.subr.bf16.mxu1 %v1960_v35 }
  0x5d   : > { %1811 = vmatpush3.bf16.msra.mxu0 %v1960_v35 }
  0x5e   : > { %1837 = vmatpush3.bf16.msra.mxu1 %v1960_v35  ;;  %1812 = vmatprep.subr.bf16.mxu0 %v1967_v37 }
  0x5f   : > { %1203 = vmatmul.mubr.bf16.gmra.mrb[28].mxu0 %v1965_v36  ;;  %1830 = vmatprep.subr.bf16.mxu1 %v1967_v37 }
  0x60   : > { %1268 = vmatmul.mubr.bf16.gmra.mrb[28].mxu1 %v1966_v38  ;;  %1816 = vmatprep.mubr.bf16.mxu0 %v1969_v39 }
  0x61   : > { %1813 = vmatpush3.bf16.msra.mxu0 %v1967_v37  ;;  %1820 = vmatprep.mubr.bf16.mxu1 %v1970_v40 }
  0x62   : > { %1838 = vmatpush3.bf16.msra.mxu1 %v1967_v37  ;;  %1814 = vmatprep.subr.bf16.mxu0 %v1968_v41  ;;  %v1624_v37 = vld [vmem:[%s2277_s18 + $0x18] sm:$0xff]  }
  0x63   : > { %1831 = vmatprep.subr.bf16.mxu1 %v1968_v41  ;;  %v1600_v40 = vunpack.c.l.bf16 %v1624_v37 }
  0x65   : > { %1815 = vmatpush3.bf16.msra.mxu0 %v1968_v41 }
  0x66   : > { %1839 = vmatpush3.bf16.msra.mxu1 %v1968_v41 }
  0x68   : > { %1817 = vmatmul.mubr.bf16.vlgmr.msra.gmra.mrb[32].mxu0 %v1971_v42 }
  0x69   : > { %1821 = vmatmul.mubr.bf16.vlgmr.msra.gmra.mrb[32].mxu1 %v1972_v43 }
  0xfa   : > { %v1644_v45 = vpop.f32.mrb[0].mxu0 }
  0xfb   : > { %v1684_v47 = vpop.f32.mrb[0].mxu1  ;;  %v1645_v48 = vpop.f32.mrb[1].mxu0 }
  0xfc   : > { %v1646_v49 = vadd.f32 %v1645_v48, %v1644_v45  ;;  %v1685_v50 = vpop.f32.mrb[1].mxu1  ;;  %v1647_v51 = vpop.f32.mrb[2].mxu0 }
  0xfd   : > { %v1686_v53 = vadd.f32 %v1685_v50, %v1684_v47  ;;  %v1687_v54 = vpop.f32.mrb[2].mxu1  ;;  %v1648_v55 = vpop.f32.mrb[3].mxu0  ;;  %v1601_v47 = vunpack.c.h.bf16 %v1624_v37 }
  0xfe   : > { %v1051_v56 = vadd.f32 %v1646_v49, %v1588_v46  ;;  %v1649_v57 = vadd.f32 %v1648_v55, %v1647_v51  ;;  %v1688_v58 = vpop.f32.mrb[3].mxu1 }
  0xff   : > { %v1689_v59 = vadd.f32 %v1688_v58, %v1687_v54 }
 0x100   : > { %v2280_v60 = vadd.f32 %v1686_v53, %v1051_v56  ;;  %v1054_v61 = vadd.f32 %v1649_v57, %v1589_v52 }
 0x102   : > { %v2283_v63 = vadd.f32 %v1689_v59, %v1054_v61  ;;  %v1650_v0 = vpop.f32.mrb[4].mxu0 }
 0x103   : > { %v1690_v2 = vpop.f32.mrb[4].mxu1  ;;  %v1651_v3 = vpop.f32.mrb[5].mxu0 }
 0x104   : > { %v1652_v4 = vadd.f32 %v1651_v3, %v1650_v0  ;;  %v1691_v5 = vpop.f32.mrb[5].mxu1  ;;  %v1653_v6 = vpop.f32.mrb[6].mxu0 }
 0x105   : > { %v1692_v8 = vadd.f32 %v1691_v5, %v1690_v2  ;;  %v1693_v9 = vpop.f32.mrb[6].mxu1  ;;  %v1654_v10 = vpop.f32.mrb[7].mxu0 }
 0x106   : > { %v1059_v11 = vadd.f32 %v1652_v4, %v1592_v1  ;;  %v1655_v12 = vadd.f32 %v1654_v10, %v1653_v6  ;;  %v1694_v13 = vpop.f32.mrb[7].mxu1 }
 0x107   : > { %v1695_v14 = vadd.f32 %v1694_v13, %v1693_v9 }
 0x108   : > { %v2285_v15 = vadd.f32 %v1692_v8, %v1059_v11  ;;  %v1062_v16 = vadd.f32 %v1655_v12, %v1593_v7 }
 0x10a   : > { %v2287_v17 = vadd.f32 %v1695_v14, %v1062_v16  ;;  %v1656_v19 = vpop.f32.mrb[8].mxu0 }
 0x10b   : > { %v1696_v21 = vpop.f32.mrb[8].mxu1  ;;  %v1657_v22 = vpop.f32.mrb[9].mxu0 }
 0x10c   : > { %v1658_v23 = vadd.f32 %v1657_v22, %v1656_v19  ;;  %v1697_v24 = vpop.f32.mrb[9].mxu1  ;;  %v1659_v25 = vpop.f32.mrb[10].mxu0 }
 0x10d   : > { %v1698_v27 = vadd.f32 %v1697_v24, %v1696_v21  ;;  %v1699_v28 = vpop.f32.mrb[10].mxu1  ;;  %v1660_v29 = vpop.f32.mrb[11].mxu0 }
 0x10e   : > { %v1067_v30 = vadd.f32 %v1658_v23, %v1596_v20  ;;  %v1661_v31 = vadd.f32 %v1660_v29, %v1659_v25  ;;  %v1700_v32 = vpop.f32.mrb[11].mxu1 }
 0x10f   : > { %v1701_v33 = vadd.f32 %v1700_v32, %v1699_v28 }
 0x110   : > { %v1132_v34 = vadd.f32 %v1698_v27, %v1067_v30  ;;  %v1070_v35 = vadd.f32 %v1661_v31, %v1597_v26 }
 0x112   : > { %v2290_v36 = vadd.f32 %v1701_v33, %v1070_v35  ;;  %v1662_v38 = vpop.f32.mrb[12].mxu0 }
 0x113   : > { %v1702_v39 = vpop.f32.mrb[12].mxu1  ;;  %v1663_v41 = vpop.f32.mrb[13].mxu0 }
 0x114   : > { %v1703_v42 = vpop.f32.mrb[13].mxu1  ;;  %v1664_v43 = vadd.f32 %v1663_v41, %v1662_v38  ;;  %v1665_v45 = vpop.f32.mrb[14].mxu0 }
 0x115   : > { %v1704_v44 = vadd.f32 %v1703_v42, %v1702_v39  ;;  %v1705_v46 = vpop.f32.mrb[14].mxu1  ;;  %v1666_v48 = vpop.f32.mrb[15].mxu0 }
 0x116   : > { %v1706_v49 = vpop.f32.mrb[15].mxu1  ;;  %v1075_v50 = vadd.f32 %v1664_v43, %v1600_v40  ;;  %v1667_v51 = vadd.f32 %v1666_v48, %v1665_v45 }
 0x117   : > { %v1707_v52 = vadd.f32 %v1706_v49, %v1705_v46 }
 0x118   : > { %v1140_v53 = vadd.f32 %v1704_v44, %v1075_v50  ;;  %v1078_v54 = vadd.f32 %v1667_v51, %v1601_v47 }
 0x11a   : > { %v1143_v55 = vadd.f32 %v1707_v52, %v1078_v54  ;;  %v1724_v56 = vpop.f32.mrb[16].mxu0 }
 0x11b   : > { %v1725_v57 = vpop.f32.mrb[17].mxu0  ;;  %v1764_v58 = vpop.f32.mrb[16].mxu1 }
 0x11c   : > { %v1726_v59 = vadd.f32 %v1725_v57, %v1724_v56  ;;  %v1727_v61 = vpop.f32.mrb[18].mxu0  ;;  %v1765_v62 = vpop.f32.mrb[17].mxu1 }
 0x11d   : > { %v1728_v0 = vpop.f32.mrb[19].mxu0  ;;  %v1766_v2 = vadd.f32 %v1765_v62, %v1764_v58  ;;  %v1767_v3 = vpop.f32.mrb[18].mxu1 }
 0x11e   : > { %v1181_v1 = vadd.f32 %v1726_v59, %v2280_v60  ;;  %v1729_v4 = vadd.f32 %v1728_v0, %v1727_v61  ;;  %v1768_v5 = vpop.f32.mrb[19].mxu1 }
 0x11f   : > { %v1769_v7 = vadd.f32 %v1768_v5, %v1767_v3 }
 0x120   : > { %v1184_v6 = vadd.f32 %v1729_v4, %v2283_v63  ;;  %v1246_v8 = vadd.f32 %v1766_v2, %v1181_v1 }
 0x122   : > { %v1730_v9 = vpop.f32.mrb[20].mxu0  ;;  %v1249_v10 = vadd.f32 %v1769_v7, %v1184_v6 }
 0x123   : > { %v1731_v11 = vpop.f32.mrb[21].mxu0  ;;  %v1770_v12 = vpop.f32.mrb[20].mxu1 }
 0x124   : > { %v1732_v13 = vadd.f32 %v1731_v11, %v1730_v9  ;;  %v1733_v14 = vpop.f32.mrb[22].mxu0  ;;  %v1771_v16 = vpop.f32.mrb[21].mxu1 }
 0x125   : > { %v1734_v18 = vpop.f32.mrb[23].mxu0  ;;  %v1772_v20 = vadd.f32 %v1771_v16, %v1770_v12  ;;  %v1773_v60 = vpop.f32.mrb[22].mxu1 }
 0x126   : > { %v1189_v19 = vadd.f32 %v1732_v13, %v2285_v15  ;;  %v1735_v21 = vadd.f32 %v1734_v18, %v1733_v14  ;;  %v1774_v22 = vpop.f32.mrb[23].mxu1 }
 0x127   : > { %v1775_v24 = vadd.f32 %v1774_v22, %v1773_v60 }
 0x128   : > { %v1192_v23 = vadd.f32 %v1735_v21, %v2287_v17  ;;  %v1254_v63 = vadd.f32 %v1772_v20, %v1189_v19 }
 0x12a   : > { %v1736_v25 = vpop.f32.mrb[24].mxu0  ;;  %v1257_v26 = vadd.f32 %v1775_v24, %v1192_v23 }
 0x12b   : > { %v1737_v27 = vpop.f32.mrb[25].mxu0  ;;  %v1776_v28 = vpop.f32.mrb[24].mxu1 }
 0x12c   : > { %v1738_v29 = vadd.f32 %v1737_v27, %v1736_v25  ;;  %v1739_v30 = vpop.f32.mrb[26].mxu0  ;;  %v1777_v31 = vpop.f32.mrb[25].mxu1 }
 0x12d   : > { %v1740_v32 = vpop.f32.mrb[27].mxu0  ;;  %v1778_v35 = vadd.f32 %v1777_v31, %v1776_v28  ;;  %v1779_v37 = vpop.f32.mrb[26].mxu1 }
 0x12e   : > { %v1197_v33 = vadd.f32 %v1738_v29, %v1132_v34  ;;  %v1741_v15 = vadd.f32 %v1740_v32, %v1739_v30  ;;  %v1780_v38 = vpop.f32.mrb[27].mxu1 }
 0x12f   : > { %v1781_v40 = vadd.f32 %v1780_v38, %v1779_v37 }
 0x130   : > { %v1200_v39 = vadd.f32 %v1741_v15, %v2290_v36  ;;  %v1262_v41 = vadd.f32 %v1778_v35, %v1197_v33 }
 0x132   : > { %v1742_v17 = vpop.f32.mrb[28].mxu0  ;;  %v1265_v42 = vadd.f32 %v1781_v40, %v1200_v39 }
 0x133   : > { %v1743_v43 = vpop.f32.mrb[29].mxu0  ;;  %v1782_v44 = vpop.f32.mrb[28].mxu1 }
 0x134   : > { %v1744_v45 = vadd.f32 %v1743_v43, %v1742_v17  ;;  %v1745_v46 = vpop.f32.mrb[30].mxu0  ;;  %v1783_v47 = vpop.f32.mrb[29].mxu1 }
 0x135   : > { %v1746_v48 = vpop.f32.mrb[31].mxu0  ;;  %v1784_v50 = vadd.f32 %v1783_v47, %v1782_v44  ;;  %v1785_v51 = vpop.f32.mrb[30].mxu1 }
 0x136   : > { %v1205_v49 = vadd.f32 %v1744_v45, %v1140_v53  ;;  %v1747_v34 = vadd.f32 %v1746_v48, %v1745_v46  ;;  %v1786_v52 = vpop.f32.mrb[31].mxu1 }
 0x137   : > { %v1787_v56 = vadd.f32 %v1786_v52, %v1785_v51 }
 0x138   : > { %v1208_v54 = vadd.f32 %v1747_v34, %v1143_v55  ;;  %v1270_v57 = vadd.f32 %v1784_v50, %v1205_v49 }
 0x13a   : > { %v1273_v36 = vadd.f32 %v1787_v56, %v1208_v54 }
 0x13b   : > { %v1818_v58 = vpop.f32.mrb[32].mxu0 }
 0x13c   : > { %v1319_v59 = vadd.f32 %v1818_v58, %v1254_v63  ;;  %v1822_v61 = vpop.f32.mrb[32].mxu1  ;;  %v1310_v62 = vpop.f32.mrb[33].mxu0 }
 0x13d   : > { %v1335_v0 = vadd.f32 %v1822_v61, %v1270_v57  ;;  %v1311_v1 = vadd.f32 %v1310_v62, %v1246_v8  ;;  %v1326_v2 = vpop.f32.mrb[33].mxu1  ;;  %v1819_v3 = vpop.f32.mrb[34].mxu0 }
 0x13e   : > { %v1327_v4 = vadd.f32 %v1326_v2, %v1262_v41  ;;  %v1322_v5 = vadd.f32 %v1819_v3, %v1257_v26  ;;  %v1823_v53 = vpop.f32.mrb[34].mxu1  ;;  %v1313_v6 = vpop.f32.mrb[35].mxu0 }
 0x13f   : > { %v1338_v55 = vadd.f32 %v1823_v53, %v1273_v36  ;;  %v1314_v7 = vadd.f32 %v1313_v6, %v1249_v10  ;;  %v1329_v9 = vpop.f32.mrb[35].mxu1 }
 0x140   : > { %v1610_v11 = vpack.c.bf16 %v1322_v5, %v1319_v59  ;;  %v1330_v12 = vadd.f32 %v1329_v9, %v1265_v42 }
 0x141   : > { %v1620_v13 = vpack.c.bf16 %v1338_v55, %v1335_v0  ;;  %v1605_v14 = vpack.c.bf16 %v1314_v7, %v1311_v1 }
 0x142   : > { %1625 = vst [vmem:[%s197_s21 + $0x8] sm:$0xff] %v1610_v11   ;;  %v1615_v8 = vpack.c.bf16 %v1330_v12, %v1327_v4 }
 0x143   : > { %1627 = vst [vmem:[%s197_s21 + $0x18] sm:$0xff] %v1620_v13   ;;  %1606 = vst [vmem:[%s197_s21] sm:$0xff] %v1605_v14  }
 0x144   : > { %1626 = vst [vmem:[%s197_s21 + $0x10] sm:$0xff] %v1615_v8  }
 0x145 PF: > { %s13_s12 = sadd.s32 1, %s1979_s12  }
 0x146   : > { %p10_p4 = scmp.ge.s32.totalorder %s13_s12, 4  }
 0x148   :  { %12 = sbr.rel (!%p10_p4) target bundleno = 1 (0x1), region = 65 }

// kernel: _lambda_.34
= control target key start
LH: loop header
LB: loop body
LE: loop exit
PB: predicated region body
PF: predicated region fallthrough
CT: control target
= control target key end

     0   :  { %s1479_s15 = smov 0   ;;  %s1735_s0 = inlined_call_operand.vmem [shape: bf16[32,1152], index: 0, kind: input, shape index: {}]   ;;  %s1736_s1 = inlined_call_operand.vmem [shape: bf16[1152,128], index: 1, kind: input, shape index: {}]   ;;  %s1737_s2 = inlined_call_operand.vmem [shape: f32[1,128], index: 2, kind: input, shape index: {}]   ;;  %s1738_s3 = inlined_call_operand.vmem [shape: f32[1,128], index: 3, kind: input, shape index: {}]   ;;  %s1739_s4 = inlined_call_operand.vmem [shape: bf16[32,128], index: 4, kind: output, shape index: {}]  }
   0x1 LB: > { %s1128_s16 = sadd.s32 4294967295, %s1450_s15   ;;  %p1132_p0 = scmp.ge.s32.totalorder %s1450_s15, 1  ;;  %s1450_s15 = sphi %s1479_s15, %s14_s15  }
   0x2   : > { %p164_p1 = scmp.lt.s32.totalorder %s1450_s15, 3 }
   0x4   : > { %p165_p2 = pnand %p1132_p0, %p164_p1 }
   0x5   : > { %v1359_v0 = vld [vmem:[%s1736_s1 + $0x40] sm:$0xff] (!%p165_p2)   ;;  %v1363_v4 = vld [vmem:[%s1736_s1 + $0x48] sm:$0xff] (!%p165_p2)   ;;  %v1367_v8 = vld [vmem:[%s1736_s1 + $0x50] sm:$0xff] (!%p165_p2)   ;;  %s1133_s23 = sshll.u32 (!%p165_p2), %s1128_s16, 1  ;;  %vm1453_vm0 = vmmov (!%p165_p2), 0  }
   0x6   : > { %168 = sbr.rel (%p165_p2) target bundleno = 328 (0x148), region = 36  ;;  %v1360_v1 = vld [vmem:[%s1736_s1 + $0xc0] sm:$0xff] (!%p165_p2)   ;;  %1231 = vmatprep.subr.bf16.mxu0 (!%p165_p2), %v1359_v0  ;;  %v1364_v5 = vld [vmem:[%s1736_s1 + $0xc8] sm:$0xff] (!%p165_p2)   ;;  %v1368_v9 = vld [vmem:[%s1736_s1 + $0xd0] sm:$0xff] (!%p165_p2)   ;;  %p192_p3 = scmp.lt.s32.totalorder (!%p165_p2), %s1133_s23, 3 }
   0x7   : > { %v1361_v2 = vld [vmem:[%s1736_s1] sm:$0xff] (!%p165_p2)   ;;  %1253 = vmatprep.subr.bf16.mxu1 (!%p165_p2), %v1360_v1  ;;  %v1365_v6 = vld [vmem:[%s1736_s1 + $0x8] sm:$0xff] (!%p165_p2)   ;;  %v1369_v10 = vld [vmem:[%s1736_s1 + $0x10] sm:$0xff] (!%p165_p2)  }
   0x8   : > { %v1362_v3 = vld [vmem:[%s1736_s1 + $0x80] sm:$0xff] (!%p165_p2)   ;;  %1232 = vmatpush3.bf16.msra.mxu0 (!%p165_p2), %v1361_v2  ;;  %v1366_v7 = vld [vmem:[%s1736_s1 + $0x88] sm:$0xff] (!%p165_p2)   ;;  %v1370_v11 = vld [vmem:[%s1736_s1 + $0x90] sm:$0xff] (!%p165_p2)  }
   0x9   : > { %1254 = vmatpush3.bf16.msra.mxu1 (!%p165_p2), %v1362_v3  ;;  %1233 = vmatprep.subr.bf16.mxu0 (!%p165_p2), %v1363_v4  ;;  %v1371_v12 = vld [vmem:[%s1736_s1 + $0x58] sm:$0xff] (!%p165_p2)   ;;  %v1375_v16 = vld [vmem:[%s1736_s1 + $0x60] sm:$0xff] (!%p165_p2)   ;;  %v1379_v20 = vld [vmem:[%s1736_s1 + $0x68] sm:$0xff] (!%p165_p2)  }
   0xa   : > { %1255 = vmatprep.subr.bf16.mxu1 (!%p165_p2), %v1364_v5  ;;  %v1372_v13 = vld [vmem:[%s1736_s1 + $0xd8] sm:$0xff] (!%p165_p2)   ;;  %v1376_v17 = vld [vmem:[%s1736_s1 + $0xe0] sm:$0xff] (!%p165_p2)   ;;  %v1380_v21 = vld [vmem:[%s1736_s1 + $0xe8] sm:$0xff] (!%p165_p2)  }
   0xb   : > { %v1373_v14 = vld [vmem:[%s1736_s1 + $0x18] sm:$0xff] (!%p165_p2)   ;;  %v1377_v18 = vld [vmem:[%s1736_s1 + $0x20] sm:$0xff] (!%p165_p2)   ;;  %v1381_v22 = vld [vmem:[%s1736_s1 + $0x28] sm:$0xff] (!%p165_p2)  }
   0xc   : > { %1234 = vmatpush3.bf16.msra.mxu0 (!%p165_p2), %v1365_v6  ;;  %v1374_v15 = vld [vmem:[%s1736_s1 + $0x98] sm:$0xff] (!%p165_p2)   ;;  %v1378_v19 = vld [vmem:[%s1736_s1 + $0xa0] sm:$0xff] (!%p165_p2)   ;;  %v1382_v23 = vld [vmem:[%s1736_s1 + $0xa8] sm:$0xff] (!%p165_p2)   ;;  %v1452_v6 = vmov (!%p165_p2), 0.0  }
   0xd   : > { %1256 = vmatpush3.bf16.msra.mxu1 %v1366_v7  ;;  %1235 = vmatprep.subr.bf16.mxu0 %v1367_v8  ;;  %s1741_s23 = smov (!%p192_p3, %s1133_s23), 3  ;;  %v1383_v24 = vld [vmem:[%s1736_s1 + $0x70] sm:$0xff]   ;;  %v1387_v28 = vld [vmem:[%s1736_s1 + $0x78] sm:$0xff]   ;;  %v1397_v36 = vld [vmem:[%s1736_s1 + $0x140] sm:$0xff]  }
   0xe   : > { %1257 = vmatprep.subr.bf16.mxu1 %v1368_v9  ;;  %v1384_v25 = vld [vmem:[%s1736_s1 + $0xf0] sm:$0xff]   ;;  %s1348_s21 = smul.u32 36, %s1741_s23  ;;  %v1388_v29 = vld [vmem:[%s1736_s1 + $0xf8] sm:$0xff]   ;;  %v1398_v37 = vld [vmem:[%s1736_s1 + $0x100] sm:$0xff]   ;;  %s1136_s28 = sshll.u32 %s1741_s23, 2 }
   0xf   : > { %v1385_v26 = vld [vmem:[%s1736_s1 + $0x30] sm:$0xff]   ;;  %v1389_v30 = vld [vmem:[%s1736_s1 + $0x38] sm:$0xff]   ;;  %v1399_v38 = vld [vmem:[%s1736_s1 + $0x1c0] sm:$0xff]   ;;  %s202_s5 = scalar_lea.vmem %s1739_s4, %s1136_s28 }
  0x10   : > { %1236 = vmatpush3.bf16.msra.mxu0 %v1369_v10  ;;  %v1386_v27 = vld [vmem:[%s1736_s1 + $0xb0] sm:$0xff]   ;;  %s1585_s6 = scalar_lea.vmem %s1735_s0, %s1348_s21  ;;  %v1390_v31 = vld [vmem:[%s1736_s1 + $0xb8] sm:$0xff]   ;;  %v1400_v39 = vld [vmem:[%s1736_s1 + $0x180] sm:$0xff]  }
  0x11   : > { %1258 = vmatpush3.bf16.msra.mxu1 %v1370_v11  ;;  %1237 = vmatprep.subr.bf16.mxu0 %v1371_v12  ;;  %v1391_v32 = vld [vmem:[%s1585_s6] ss:$36 sps:$4 sm:$0xff]   ;;  %v1394_v34 = vld [vmem:[%s1585_s6 + $0x8] ss:$36 sps:$4 sm:$0xff]   ;;  %v1405_v44 = vld [vmem:[%s1736_s1 + $0x150] sm:$0xff]  }
  0x12   : > { %1259 = vmatprep.subr.bf16.mxu1 %v1372_v13  ;;  %v1393_v33 = vld [vmem:[%s1585_s6 + $0x4] ss:$36 sps:$4 sm:$0xff]   ;;  %v1396_v35 = vld [vmem:[%s1585_s6 + $0xc] ss:$36 sps:$4 sm:$0xff]   ;;  %v1409_v48 = vld [vmem:[%s1736_s1 + $0x158] sm:$0xff]  }
  0x13   : > { %869 = vmatprep.mubr.bf16.mxu0 %v1393_v33  ;;  %910 = vmatprep.mubr.bf16.mxu1 %v1396_v35  ;;  %v1401_v40 = vld [vmem:[%s1736_s1 + $0x148] sm:$0xff]   ;;  %v1406_v45 = vld [vmem:[%s1736_s1 + $0x110] sm:$0xff]   ;;  %v1410_v49 = vld [vmem:[%s1736_s1 + $0x118] sm:$0xff]  }
  0x14   : > { %1238 = vmatpush3.bf16.msra.mxu0 %v1373_v14  ;;  %v1402_v41 = vld [vmem:[%s1736_s1 + $0x108] sm:$0xff]   ;;  %v1407_v46 = vld [vmem:[%s1736_s1 + $0x1d0] sm:$0xff]   ;;  %v1411_v50 = vld [vmem:[%s1736_s1 + $0x1d8] sm:$0xff]  }
  0x15   : > { %1260 = vmatpush3.bf16.msra.mxu1 %v1374_v15  ;;  %1239 = vmatprep.subr.bf16.mxu0 %v1375_v16  ;;  %v1403_v42 = vld [vmem:[%s1736_s1 + $0x1c8] sm:$0xff]   ;;  %v1408_v47 = vld [vmem:[%s1736_s1 + $0x190] sm:$0xff]   ;;  %v1412_v51 = vld [vmem:[%s1736_s1 + $0x198] sm:$0xff]  }
  0x16   : > { %1261 = vmatprep.subr.bf16.mxu1 %v1376_v17  ;;  %v1404_v43 = vld [vmem:[%s1736_s1 + $0x188] sm:$0xff]   ;;  %v1413_v52 = vld [vmem:[%s1736_s1 + $0x160] sm:$0xff]   ;;  %v1421_v60 = vld [vmem:[%s1736_s1 + $0x170] sm:$0xff]  }
  0x17   : > { %v1414_v53 = vld [vmem:[%s1736_s1 + $0x120] sm:$0xff]   ;;  %v1417_v56 = vld [vmem:[%s1736_s1 + $0x168] sm:$0xff]   ;;  %v1422_v61 = vld [vmem:[%s1736_s1 + $0x130] sm:$0xff]  }
  0x18   : > { %1240 = vmatpush3.bf16.msra.mxu0 %v1377_v18  ;;  %v1415_v54 = vld [vmem:[%s1736_s1 + $0x1e0] sm:$0xff]   ;;  %v1418_v57 = vld [vmem:[%s1736_s1 + $0x128] sm:$0xff]   ;;  %v1423_v62 = vld [vmem:[%s1736_s1 + $0x1f0] sm:$0xff]  }
  0x19   : > { %1262 = vmatpush3.bf16.msra.mxu1 %v1378_v19  ;;  %1241 = vmatprep.subr.bf16.mxu0 %v1379_v20  ;;  %v1416_v55 = vld [vmem:[%s1736_s1 + $0x1a0] sm:$0xff]   ;;  %v1419_v58 = vld [vmem:[%s1736_s1 + $0x1e8] sm:$0xff]   ;;  %v1424_v63 = vld [vmem:[%s1736_s1 + $0x1b0] sm:$0xff]  }
  0x1a   : > { %1263 = vmatprep.subr.bf16.mxu1 %v1380_v21  ;;  %v1420_v59 = vld [vmem:[%s1736_s1 + $0x1a8] sm:$0xff]   ;;  %v1425_v0 = vld [vmem:[%s1736_s1 + $0x178] sm:$0xff]   ;;  %v1428_v3 = vld [vmem:[%s1585_s6 + $0x10] ss:$36 sps:$4 sm:$0xff]  }
  0x1b   : > { %v1426_v1 = vld [vmem:[%s1736_s1 + $0x138] sm:$0xff]   ;;  %v1435_v9 = vld [vmem:[%s1736_s1 + $0x200] sm:$0xff]   ;;  %v1436_v10 = vld [vmem:[%s1736_s1 + $0x208] sm:$0xff]  }
  0x1c   : > { %1242 = vmatpush3.bf16.msra.mxu0 %v1381_v22  ;;  %v1427_v2 = vld [vmem:[%s1736_s1 + $0x1f8] sm:$0xff]   ;;  %v1437_v11 = vld [vmem:[%s1736_s1 + $0x210] sm:$0xff]   ;;  %v1439_v13 = vld [vmem:[%s1736_s1 + $0x220] sm:$0xff]  }
  0x1d   : > { %1264 = vmatpush3.bf16.msra.mxu1 %v1382_v23  ;;  %1243 = vmatprep.subr.bf16.mxu0 %v1383_v24  ;;  %v1430_v4 = vld [vmem:[%s1585_s6 + $0x14] ss:$36 sps:$4 sm:$0xff]   ;;  %v1434_v8 = vld [vmem:[%s1585_s6 + $0x1c] ss:$36 sps:$4 sm:$0xff]   ;;  %v1440_v14 = vld [vmem:[%s1736_s1 + $0x228] sm:$0xff]  }
  0x1e   : > { %1265 = vmatprep.subr.bf16.mxu1 %v1384_v25  ;;  %v1431_v5 = vld [vmem:[%s1736_s1 + $0x1b8] sm:$0xff]   ;;  %v1441_v15 = vld [vmem:[%s1736_s1 + $0x230] sm:$0xff]   ;;  %v1443_v17 = vld [vmem:[%s1585_s6 + $0x20] ss:$36 sps:$4 sm:$0xff]  }
  0x1f   : > { %v1432_v7 = vld [vmem:[%s1585_s6 + $0x18] ss:$36 sps:$4 sm:$0xff]  }
  0x20   : > { %1244 = vmatpush3.bf16.msra.mxu0 %v1385_v26  ;;  %v1438_v12 = vld [vmem:[%s1736_s1 + $0x218] sm:$0xff]  }
  0x21   : > { %1266 = vmatpush3.bf16.msra.mxu1 %v1386_v27  ;;  %1245 = vmatprep.subr.bf16.mxu0 %v1387_v28  ;;  %v1442_v16 = vld [vmem:[%s1736_s1 + $0x238] sm:$0xff]  }
  0x22   : > { %1267 = vmatprep.subr.bf16.mxu1 %v1388_v29 }
  0x24   : > { %1246 = vmatpush3.bf16.msra.mxu0 %v1389_v30 }
  0x25   : > { %1268 = vmatpush3.bf16.msra.mxu1 %v1390_v31  ;;  %1275 = vmatprep.subr.bf16.mxu0 %v1397_v36 }
  0x26   : > { %1297 = vmatprep.subr.bf16.mxu1 %v1399_v38 }
  0x27   : > { %870 = vmatmul.mubr.bf16.vlgmr.msra.gmra.mrb[0].mxu0 %v1391_v32 }
  0x28   : > { %911 = vmatmul.mubr.bf16.vlgmr.msra.gmra.mrb[0].mxu1 %v1394_v34  ;;  %1276 = vmatpush3.bf16.msra.mxu0 %v1398_v37 }
  0x29   : > { %1298 = vmatpush3.bf16.msra.mxu1 %v1400_v39  ;;  %1277 = vmatprep.subr.bf16.mxu0 %v1401_v40 }
  0x2a   : > { %1299 = vmatprep.subr.bf16.mxu1 %v1403_v42  ;;  %951 = vmatprep.mubr.bf16.mxu0 %v1430_v4 }
  0x2b   : > { %992 = vmatprep.mubr.bf16.mxu1 %v1434_v8 }
  0x2c   : > { %1278 = vmatpush3.bf16.msra.mxu0 %v1402_v41 }
  0x2d   : > { %1300 = vmatpush3.bf16.msra.mxu1 %v1404_v43  ;;  %1279 = vmatprep.subr.bf16.mxu0 %v1405_v44 }
  0x2e   : > { %1301 = vmatprep.subr.bf16.mxu1 %v1407_v46 }
  0x30   : > { %1280 = vmatpush3.bf16.msra.mxu0 %v1406_v45 }
  0x31   : > { %1302 = vmatpush3.bf16.msra.mxu1 %v1408_v47  ;;  %1281 = vmatprep.subr.bf16.mxu0 %v1409_v48 }
  0x32   : > { %1303 = vmatprep.subr.bf16.mxu1 %v1411_v50 }
  0x34   : > { %1282 = vmatpush3.bf16.msra.mxu0 %v1410_v49  ;;  %v1218_v49 = vld [vmem:[%s1737_s2] ss:$0 sm:$0xff] }
  0x35   : > { %1304 = vmatpush3.bf16.msra.mxu1 %v1412_v51  ;;  %1283 = vmatprep.subr.bf16.mxu0 %v1413_v52  ;;  %v1219_v52 = vld [vmem:[%s1738_s3] ss:$0 sm:$0xff] }
  0x36   : > { %1305 = vmatprep.subr.bf16.mxu1 %v1415_v54 }
  0x38   : > { %1284 = vmatpush3.bf16.msra.mxu0 %v1414_v53 }
  0x39   : > { %1306 = vmatpush3.bf16.msra.mxu1 %v1416_v55  ;;  %1285 = vmatprep.subr.bf16.mxu0 %v1417_v56 }
  0x3a   : > { %1307 = vmatprep.subr.bf16.mxu1 %v1419_v58 }
  0x3c   : > { %1286 = vmatpush3.bf16.msra.mxu0 %v1418_v57 }
  0x3d   : > { %1308 = vmatpush3.bf16.msra.mxu1 %v1420_v59  ;;  %1287 = vmatprep.subr.bf16.mxu0 %v1421_v60 }
  0x3e   : > { %1309 = vmatprep.subr.bf16.mxu1 %v1423_v62 }
  0x40   : > { %1288 = vmatpush3.bf16.msra.mxu0 %v1422_v61 }
  0x41   : > { %1310 = vmatpush3.bf16.msra.mxu1 %v1424_v63  ;;  %1289 = vmatprep.subr.bf16.mxu0 %v1425_v0 }
  0x42   : > { %1311 = vmatprep.subr.bf16.mxu1 %v1427_v2 }
  0x44   : > { %1290 = vmatpush3.bf16.msra.mxu0 %v1426_v1 }
  0x45   : > { %1328 = vmatprep.subr.bf16.mxu0 %v1452_v6  ;;  %1312 = vmatpush3.bf16.msra.mxu1 %v1431_v5 }
  0x47   : > { %952 = vmatmul.mubr.bf16.vlgmr.msra.gmra.mrb[4].mxu0 %v1428_v3 }
  0x48   : > { %1344 = vmatprep.mubr.msk.bf16.mxu0 %vm1453_vm0, %v1452_v6  ;;  %1329 = vmatpush3.bf16.msra.mxu0 %v1435_v9 }
  0x49   : > { %993 = vmatmul.mubr.bf16.vlgmr.msra.gmra.mrb[4].mxu1 %v1432_v7  ;;  %1330 = vmatprep.subr.bf16.mxu0 %v1452_v6 }
  0x4c   : > { %1331 = vmatpush3.bf16.msra.mxu0 %v1436_v10 }
  0x4d   : > { %1332 = vmatprep.subr.bf16.mxu0 %v1452_v6 }
  0x50   : > { %1333 = vmatpush3.bf16.msra.mxu0 %v1437_v11 }
  0x51   : > { %1334 = vmatprep.subr.bf16.mxu0 %v1452_v6 }
  0x54   : > { %1335 = vmatpush3.bf16.msra.mxu0 %v1438_v12 }
  0x55   : > { %1336 = vmatprep.subr.bf16.mxu0 %v1452_v6 }
  0x58   : > { %1337 = vmatpush3.bf16.msra.mxu0 %v1439_v13 }
  0x59   : > { %1338 = vmatprep.subr.bf16.mxu0 %v1452_v6 }
  0x5c   : > { %1339 = vmatpush3.bf16.msra.mxu0 %v1440_v14 }
  0x5d   : > { %1340 = vmatprep.subr.bf16.mxu0 %v1452_v6 }
  0x60   : > { %1341 = vmatpush3.bf16.msra.mxu0 %v1441_v15 }
  0x61   : > { %1342 = vmatprep.subr.bf16.mxu0 %v1452_v6 }
  0x64   : > { %1343 = vmatpush3.bf16.msra.mxu0 %v1442_v16 }
  0x67   : > { %1345 = vmatmul.mubr.bf16.vlgmr.msra.gmra.mrb[8].mxu0 %v1443_v17 }
  0xfa   : > { %v1247_v18 = vpop.f32.mrb[0].mxu0 }
  0xfb   : > { %v1269_v19 = vpop.f32.mrb[0].mxu1  ;;  %v1248_v20 = vpop.f32.mrb[1].mxu0 }
  0xfc   : > { %v1249_v21 = vadd.f32 %v1248_v20, %v1247_v18  ;;  %v1270_v22 = vpop.f32.mrb[1].mxu1  ;;  %v1250_v23 = vpop.f32.mrb[2].mxu0 }
  0xfd   : > { %v1271_v24 = vadd.f32 %v1270_v22, %v1269_v19  ;;  %v1272_v25 = vpop.f32.mrb[2].mxu1  ;;  %v1251_v26 = vpop.f32.mrb[3].mxu0 }
  0xfe   : > { %v1252_v27 = vadd.f32 %v1251_v26, %v1250_v23  ;;  %v1273_v28 = vpop.f32.mrb[3].mxu1 }
  0xff   : > { %v913_v29 = vadd.f32 %v1271_v24, %v1249_v21  ;;  %v1274_v30 = vadd.f32 %v1273_v28, %v1272_v25 }
 0x101   : > { %v916_v31 = vadd.f32 %v1274_v30, %v1252_v27 }
 0x11a   : > { %v1291_v32 = vpop.f32.mrb[4].mxu0 }
 0x11b   : > { %v1292_v33 = vpop.f32.mrb[5].mxu0 }
 0x11c   : > { %v1293_v34 = vadd.f32 %v1292_v33, %v1291_v32  ;;  %v1294_v35 = vpop.f32.mrb[6].mxu0  ;;  %v1313_v36 = vpop.f32.mrb[4].mxu1 }
 0x11d   : > { %v1295_v37 = vpop.f32.mrb[7].mxu0  ;;  %v1314_v40 = vpop.f32.mrb[5].mxu1 }
 0x11e   : > { %v954_v38 = vadd.f32 %v1293_v34, %v913_v29  ;;  %v1296_v39 = vadd.f32 %v1295_v37, %v1294_v35  ;;  %v1315_v41 = vadd.f32 %v1314_v40, %v1313_v36  ;;  %v1316_v42 = vpop.f32.mrb[6].mxu1 }
 0x11f   : > { %v1317_v44 = vpop.f32.mrb[7].mxu1 }
 0x120   : > { %v957_v43 = vadd.f32 %v1296_v39, %v916_v31  ;;  %v1318_v45 = vadd.f32 %v1317_v44, %v1316_v42  ;;  %v995_v46 = vadd.f32 %v1315_v41, %v954_v38 }
 0x122   : > { %v998_v47 = vadd.f32 %v1318_v45, %v957_v43 }
 0x13a   : > { %v1035_v48 = vpop.f32.mrb[8].mxu0 }
 0x13b   : > { %v1036_v50 = vadd.f32 %v1035_v48, %v995_v46  ;;  %v1346_v51 = vpop.f32.mrb[9].mxu0 }
 0x13c   : > { %v1038_v53 = vpop.f32.mrb[10].mxu0 }
 0x13d   : > { %v1049_v54 = vmul.f32 %v1218_v49, %v1036_v50  ;;  %v1039_v55 = vadd.f32 %v1038_v53, %v998_v47  ;;  %v1347_v56 = vpop.f32.mrb[11].mxu0 }
 0x13f   : > { %v1058_v57 = vadd.f32 %v1219_v52, %v1049_v54  ;;  %v1050_v58 = vmul.f32 %v1218_v49, %v1039_v55 }
 0x141   : > { %v1059_v59 = vadd.f32 %v1219_v52, %v1050_v58  ;;  %v1060_v60 = vmax.f32 %v1058_v57, 0.0 }
 0x143   : > { %v1061_v61 = vmax.f32 %v1059_v59, 0.0 }
 0x145   : > { %v1229_v62 = vpack.c.bf16 %v1061_v61, %v1060_v60 }
 0x147   : > { %1230 = vst [vmem:[%s202_s5] sm:$0xff] %v1229_v62  }
 0x148 PF: > { %s14_s15 = sadd.s32 1, %s1450_s15  }
 0x149   : > { %p11_p4 = scmp.ge.s32.totalorder %s14_s15, 4  }
 0x14b   :  { %13 = sbr.rel (!%p11_p4) target bundleno = 1 (0x1), region = 66 }

// kernel: _lambda_.36
= control target key start
LH: loop header
LB: loop body
LE: loop exit
PB: predicated region body
PF: predicated region fallthrough
CT: control target
= control target key end

     0   :  { %s326_s12 = smov 0   ;;  %s343_s0 = inlined_call_operand.vmem [shape: bf16[32,128], index: 0, kind: input, shape index: {}]   ;;  %s344_s1 = inlined_call_operand.vmem [shape: f32[1,128], index: 1, kind: input, shape index: {}]   ;;  %s345_s2 = inlined_call_operand.vmem [shape: f32[1,128], index: 2, kind: input, shape index: {}]   ;;  %s346_s3 = inlined_call_operand.vmem [shape: bf16[32,128], index: 3, kind: output, shape index: {}]  }
   0x1 LB: > { %s264_s13 = sadd.s32 4294967295, %s304_s12   ;;  %p268_p0 = scmp.ge.s32.totalorder %s304_s12, 1  ;;  %s304_s12 = sphi %s326_s12, %s13_s12  }
   0x2   : > { %p138_p1 = scmp.lt.s32.totalorder %s304_s12, 3 }
   0x4   : > { %p139_p2 = pnand %p268_p0, %p138_p1 }
   0x5   : > { %s269_s14 = sshll.u32 (!%p139_p2), %s264_s13, 1  ;;  %v273_v1 = vld [vmem:[%s344_s1] ss:$0 sm:$0xff] (!%p139_p2) }
   0x6   : > { %142 = sbr.rel (%p139_p2) target bundleno = 28 (0x1c), region = 32  ;;  %p163_p3 = scmp.lt.s32.totalorder (!%p139_p2), %s269_s14, 3  ;;  %v274_v4 = vld [vmem:[%s345_s2] ss:$0 sm:$0xff] (!%p139_p2) }
   0xd   : > { %s348_s14 = smov (!%p163_p3, %s269_s14), 3 }
   0xe   : > { %s270_s15 = sshll.u32 %s348_s14, 2 }
   0xf   : > { %s166_s18 = scalar_lea.vmem %s343_s0, %s270_s15  ;;  %s172_s25 = scalar_lea.vmem %s346_s3, %s270_s15 }
  0x10   : > { %v282_v0 = vld [vmem:[%s166_s18] sm:$0xff]  }
  0x11   : > { %v283_v2 = vunpack.c.l.bf16 %v282_v0  ;;  %v284_v3 = vunpack.c.h.bf16 %v282_v0 }
  0x13   : > { %v185_v5 = vmul.f32 %v283_v2, %v273_v1  ;;  %v186_v6 = vmul.f32 %v284_v3, %v273_v1 }
  0x15   : > { %v194_v7 = vadd.f32 %v274_v4, %v185_v5  ;;  %v195_v8 = vadd.f32 %v274_v4, %v186_v6 }
  0x17   : > { %v196_v9 = vmax.f32 %v194_v7, 0.0  ;;  %v197_v10 = vmax.f32 %v195_v8, 0.0 }
  0x19   : > { %v288_v11 = vpack.c.bf16 %v197_v10, %v196_v9 }
  0x1b   : > { %289 = vst [vmem:[%s172_s25] sm:$0xff] %v288_v11  }
  0x1c PF: > { %s13_s12 = sadd.s32 1, %s304_s12  }
  0x1d   : > { %p10_p4 = scmp.ge.s32.totalorder %s13_s12, 4  }
  0x1f   :  { %12 = sbr.rel (!%p10_p4) target bundleno = 1 (0x1), region = 62 }

// kernel: _lambda_.38
= control target key start
LH: loop header
LB: loop body
LE: loop exit
PB: predicated region body
PF: predicated region fallthrough
CT: control target
= control target key end

     0   :  { %s1469_s12 = smov 0   ;;  %s1726_s0 = inlined_call_operand.vmem [shape: bf16[32,1152], index: 0, kind: input, shape index: {}]   ;;  %s1727_s1 = inlined_call_operand.vmem [shape: bf16[1152,128], index: 1, kind: input, shape index: {}]   ;;  %s1728_s2 = inlined_call_operand.vmem [shape: bf16[32,128], index: 2, kind: input, shape index: {}]   ;;  %s1729_s3 = inlined_call_operand.vmem [shape: bf16[32,128], index: 3, kind: output, shape index: {}]  }
   0x1 LB: > { %s1119_s13 = sadd.s32 4294967295, %s1445_s12   ;;  %p1123_p0 = scmp.ge.s32.totalorder %s1445_s12, 1  ;;  %s1445_s12 = sphi %s1469_s12, %s13_s12  }
   0x2   : > { %p150_p1 = scmp.lt.s32.totalorder %s1445_s12, 3 }
   0x4   : > { %p151_p2 = pnand %p1123_p0, %p150_p1 }
   0x5   : > { %v1354_v0 = vld [vmem:[%s1727_s1 + $0x40] sm:$0xff] (!%p151_p2)   ;;  %v1358_v4 = vld [vmem:[%s1727_s1 + $0x48] sm:$0xff] (!%p151_p2)   ;;  %v1362_v8 = vld [vmem:[%s1727_s1 + $0x50] sm:$0xff] (!%p151_p2)   ;;  %s1124_s17 = sshll.u32 (!%p151_p2), %s1119_s13, 1  ;;  %vm1448_vm0 = vmmov (!%p151_p2), 0  }
   0x6   : > { %154 = sbr.rel (%p151_p2) target bundleno = 321 (0x141), region = 32  ;;  %v1355_v1 = vld [vmem:[%s1727_s1] sm:$0xff] (!%p151_p2)   ;;  %1226 = vmatprep.subr.bf16.mxu0 (!%p151_p2), %v1354_v0  ;;  %v1359_v5 = vld [vmem:[%s1727_s1 + $0x8] sm:$0xff] (!%p151_p2)   ;;  %v1363_v9 = vld [vmem:[%s1727_s1 + $0x10] sm:$0xff] (!%p151_p2)   ;;  %p181_p3 = scmp.lt.s32.totalorder (!%p151_p2), %s1124_s17, 3 }
   0x7   : > { %v1356_v2 = vld [vmem:[%s1727_s1 + $0xc0] sm:$0xff] (!%p151_p2)   ;;  %1227 = vmatpush3.bf16.msra.mxu0 (!%p151_p2), %v1355_v1  ;;  %v1360_v6 = vld [vmem:[%s1727_s1 + $0xc8] sm:$0xff] (!%p151_p2)   ;;  %v1364_v10 = vld [vmem:[%s1727_s1 + $0xd0] sm:$0xff] (!%p151_p2)  }
   0x8   : > { %v1357_v3 = vld [vmem:[%s1727_s1 + $0x80] sm:$0xff] (!%p151_p2)   ;;  %1248 = vmatprep.subr.bf16.mxu1 (!%p151_p2), %v1356_v2  ;;  %1228 = vmatprep.subr.bf16.mxu0 (!%p151_p2), %v1358_v4  ;;  %v1361_v7 = vld [vmem:[%s1727_s1 + $0x88] sm:$0xff] (!%p151_p2)   ;;  %v1365_v11 = vld [vmem:[%s1727_s1 + $0x90] sm:$0xff] (!%p151_p2)  }
   0x9   : > { %1249 = vmatpush3.bf16.msra.mxu1 (!%p151_p2), %v1357_v3  ;;  %v1366_v12 = vld [vmem:[%s1727_s1 + $0x58] sm:$0xff] (!%p151_p2)   ;;  %v1370_v16 = vld [vmem:[%s1727_s1 + $0x60] sm:$0xff] (!%p151_p2)   ;;  %v1374_v20 = vld [vmem:[%s1727_s1 + $0x68] sm:$0xff] (!%p151_p2)  }
   0xa   : > { %1250 = vmatprep.subr.bf16.mxu1 (!%p151_p2), %v1360_v6  ;;  %v1367_v13 = vld [vmem:[%s1727_s1 + $0x18] sm:$0xff] (!%p151_p2)   ;;  %v1371_v17 = vld [vmem:[%s1727_s1 + $0x20] sm:$0xff] (!%p151_p2)   ;;  %v1375_v21 = vld [vmem:[%s1727_s1 + $0x28] sm:$0xff] (!%p151_p2)   ;;  %v1447_v6 = vmov (!%p151_p2), 0.0  }
   0xb   : > { %1229 = vmatpush3.bf16.msra.mxu0 (!%p151_p2), %v1359_v5  ;;  %v1368_v14 = vld [vmem:[%s1727_s1 + $0xd8] sm:$0xff] (!%p151_p2)   ;;  %v1372_v18 = vld [vmem:[%s1727_s1 + $0xe0] sm:$0xff] (!%p151_p2)   ;;  %v1376_v22 = vld [vmem:[%s1727_s1 + $0xe8] sm:$0xff] (!%p151_p2)  }
   0xc   : > { %1230 = vmatprep.subr.bf16.mxu0 (!%p151_p2), %v1362_v8  ;;  %v1369_v15 = vld [vmem:[%s1727_s1 + $0x98] sm:$0xff] (!%p151_p2)   ;;  %v1373_v19 = vld [vmem:[%s1727_s1 + $0xa0] sm:$0xff] (!%p151_p2)   ;;  %v1377_v23 = vld [vmem:[%s1727_s1 + $0xa8] sm:$0xff] (!%p151_p2)  }
   0xd   : > { %1251 = vmatpush3.bf16.msra.mxu1 %v1361_v7  ;;  %s1731_s17 = smov (!%p181_p3, %s1124_s17), 3  ;;  %v1378_v24 = vld [vmem:[%s1727_s1 + $0x70] sm:$0xff]   ;;  %v1382_v28 = vld [vmem:[%s1727_s1 + $0x78] sm:$0xff]   ;;  %v1389_v34 = vld [vmem:[%s1727_s1 + $0x140] sm:$0xff]  }
   0xe   : > { %1252 = vmatprep.subr.bf16.mxu1 %v1364_v10  ;;  %s1343_s14 = smul.u32 36, %s1731_s17  ;;  %v1379_v25 = vld [vmem:[%s1727_s1 + $0x30] sm:$0xff]   ;;  %v1383_v29 = vld [vmem:[%s1727_s1 + $0x38] sm:$0xff]   ;;  %v1393_v37 = vld [vmem:[%s1727_s1 + $0x100] sm:$0xff]   ;;  %s1127_s15 = sshll.u32 %s1731_s17, 2 }
   0xf   : > { %1231 = vmatpush3.bf16.msra.mxu0 %v1363_v9  ;;  %v1380_v26 = vld [vmem:[%s1727_s1 + $0xf0] sm:$0xff]   ;;  %v1384_v30 = vld [vmem:[%s1727_s1 + $0xf8] sm:$0xff]   ;;  %v1394_v38 = vld [vmem:[%s1727_s1 + $0x1c0] sm:$0xff]   ;;  %s191_s19 = scalar_lea.vmem %s1728_s2, %s1127_s15  ;;  %s197_s21 = scalar_lea.vmem %s1729_s3, %s1127_s15 }
  0x10   : > { %1232 = vmatprep.subr.bf16.mxu0 %v1366_v12  ;;  %v1381_v27 = vld [vmem:[%s1727_s1 + $0xb0] sm:$0xff]   ;;  %s1572_s13 = scalar_lea.vmem %s1726_s0, %s1343_s14  ;;  %v1388_v33 = vld [vmem:[%s1727_s1 + $0xb8] sm:$0xff]   ;;  %v1395_v39 = vld [vmem:[%s1727_s1 + $0x180] sm:$0xff]  }
  0x11   : > { %1253 = vmatpush3.bf16.msra.mxu1 %v1365_v11  ;;  %v1385_v31 = vld [vmem:[%s1572_s13] ss:$36 sps:$4 sm:$0xff]   ;;  %v1390_v35 = vld [vmem:[%s1572_s13 + $0x8] ss:$36 sps:$4 sm:$0xff]   ;;  %v1400_v44 = vld [vmem:[%s1727_s1 + $0x150] sm:$0xff]  }
  0x12   : > { %1254 = vmatprep.subr.bf16.mxu1 %v1368_v14  ;;  %v1387_v32 = vld [vmem:[%s1572_s13 + $0x4] ss:$36 sps:$4 sm:$0xff]   ;;  %v1392_v36 = vld [vmem:[%s1572_s13 + $0xc] ss:$36 sps:$4 sm:$0xff]   ;;  %v1404_v48 = vld [vmem:[%s1727_s1 + $0x158] sm:$0xff]  }
  0x13   : > { %1233 = vmatpush3.bf16.msra.mxu0 %v1367_v13  ;;  %868 = vmatprep.mubr.bf16.mxu0 %v1387_v32  ;;  %v1396_v40 = vld [vmem:[%s1727_s1 + $0x148] sm:$0xff]   ;;  %v1401_v45 = vld [vmem:[%s1727_s1 + $0x110] sm:$0xff]   ;;  %v1405_v49 = vld [vmem:[%s1727_s1 + $0x118] sm:$0xff]  }
  0x14   : > { %1234 = vmatprep.subr.bf16.mxu0 %v1370_v16  ;;  %909 = vmatprep.mubr.bf16.mxu1 %v1392_v36  ;;  %v1397_v41 = vld [vmem:[%s1727_s1 + $0x108] sm:$0xff]   ;;  %v1402_v46 = vld [vmem:[%s1727_s1 + $0x1d0] sm:$0xff]   ;;  %v1406_v50 = vld [vmem:[%s1727_s1 + $0x1d8] sm:$0xff]  }
  0x15   : > { %1255 = vmatpush3.bf16.msra.mxu1 %v1369_v15  ;;  %v1398_v42 = vld [vmem:[%s1727_s1 + $0x1c8] sm:$0xff]   ;;  %v1403_v47 = vld [vmem:[%s1727_s1 + $0x190] sm:$0xff]   ;;  %v1407_v51 = vld [vmem:[%s1727_s1 + $0x198] sm:$0xff]  }
  0x16   : > { %1256 = vmatprep.subr.bf16.mxu1 %v1372_v18  ;;  %v1399_v43 = vld [vmem:[%s1727_s1 + $0x188] sm:$0xff]   ;;  %v1408_v52 = vld [vmem:[%s1727_s1 + $0x160] sm:$0xff]   ;;  %v1416_v60 = vld [vmem:[%s1727_s1 + $0x170] sm:$0xff]  }
  0x17   : > { %1235 = vmatpush3.bf16.msra.mxu0 %v1371_v17  ;;  %v1409_v53 = vld [vmem:[%s1727_s1 + $0x120] sm:$0xff]   ;;  %v1412_v56 = vld [vmem:[%s1727_s1 + $0x168] sm:$0xff]   ;;  %v1417_v61 = vld [vmem:[%s1727_s1 + $0x130] sm:$0xff]  }
  0x18   : > { %1236 = vmatprep.subr.bf16.mxu0 %v1374_v20  ;;  %v1410_v54 = vld [vmem:[%s1727_s1 + $0x1e0] sm:$0xff]   ;;  %v1413_v57 = vld [vmem:[%s1727_s1 + $0x128] sm:$0xff]   ;;  %v1418_v62 = vld [vmem:[%s1727_s1 + $0x1f0] sm:$0xff]  }
  0x19   : > { %1257 = vmatpush3.bf16.msra.mxu1 %v1373_v19  ;;  %v1411_v55 = vld [vmem:[%s1727_s1 + $0x1a0] sm:$0xff]   ;;  %v1414_v58 = vld [vmem:[%s1727_s1 + $0x1e8] sm:$0xff]   ;;  %v1419_v63 = vld [vmem:[%s1727_s1 + $0x1b0] sm:$0xff]  }
  0x1a   : > { %1258 = vmatprep.subr.bf16.mxu1 %v1376_v22  ;;  %v1415_v59 = vld [vmem:[%s1727_s1 + $0x1a8] sm:$0xff]   ;;  %v1420_v0 = vld [vmem:[%s1727_s1 + $0x178] sm:$0xff]   ;;  %v1423_v3 = vld [vmem:[%s1572_s13 + $0x10] ss:$36 sps:$4 sm:$0xff]  }
  0x1b   : > { %1237 = vmatpush3.bf16.msra.mxu0 %v1375_v21  ;;  %v1421_v1 = vld [vmem:[%s1727_s1 + $0x138] sm:$0xff]   ;;  %v1430_v9 = vld [vmem:[%s1727_s1 + $0x200] sm:$0xff]   ;;  %v1431_v10 = vld [vmem:[%s1727_s1 + $0x208] sm:$0xff]  }
  0x1c   : > { %1238 = vmatprep.subr.bf16.mxu0 %v1378_v24  ;;  %v1422_v2 = vld [vmem:[%s1727_s1 + $0x1f8] sm:$0xff]   ;;  %v1432_v11 = vld [vmem:[%s1727_s1 + $0x210] sm:$0xff]   ;;  %v1434_v13 = vld [vmem:[%s1727_s1 + $0x220] sm:$0xff]  }
  0x1d   : > { %1259 = vmatpush3.bf16.msra.mxu1 %v1377_v23  ;;  %v1425_v4 = vld [vmem:[%s1572_s13 + $0x14] ss:$36 sps:$4 sm:$0xff]   ;;  %v1429_v8 = vld [vmem:[%s1572_s13 + $0x1c] ss:$36 sps:$4 sm:$0xff]   ;;  %v1435_v14 = vld [vmem:[%s1727_s1 + $0x228] sm:$0xff]  }
  0x1e   : > { %1260 = vmatprep.subr.bf16.mxu1 %v1380_v26  ;;  %v1426_v5 = vld [vmem:[%s1727_s1 + $0x1b8] sm:$0xff]   ;;  %v1436_v15 = vld [vmem:[%s1727_s1 + $0x230] sm:$0xff]   ;;  %v1438_v17 = vld [vmem:[%s1572_s13 + $0x20] ss:$36 sps:$4 sm:$0xff]  }
  0x1f   : > { %1239 = vmatpush3.bf16.msra.mxu0 %v1379_v25  ;;  %v1427_v7 = vld [vmem:[%s1572_s13 + $0x18] ss:$36 sps:$4 sm:$0xff]   ;;  %v1218_v18 = vld [vmem:[%s191_s19] sm:$0xff]  }
  0x20   : > { %1240 = vmatprep.subr.bf16.mxu0 %v1382_v28  ;;  %v1433_v12 = vld [vmem:[%s1727_s1 + $0x218] sm:$0xff]   ;;  %v1219_v20 = vunpack.c.l.bf16 %v1218_v18  ;;  %v1220_v24 = vunpack.c.h.bf16 %v1218_v18 }
  0x21   : > { %1261 = vmatpush3.bf16.msra.mxu1 %v1381_v27  ;;  %v1437_v16 = vld [vmem:[%s1727_s1 + $0x238] sm:$0xff]  }
  0x22   : > { %1262 = vmatprep.subr.bf16.mxu1 %v1384_v30 }
  0x23   : > { %1241 = vmatpush3.bf16.msra.mxu0 %v1383_v29 }
  0x24   : > { %1270 = vmatprep.subr.bf16.mxu0 %v1389_v34 }
  0x25   : > { %1263 = vmatpush3.bf16.msra.mxu1 %v1388_v33 }
  0x26   : > { %869 = vmatmul.mubr.bf16.vlgmr.msra.gmra.mrb[0].mxu0 %v1385_v31  ;;  %1292 = vmatprep.subr.bf16.mxu1 %v1394_v38 }
  0x27   : > { %1271 = vmatpush3.bf16.msra.mxu0 %v1393_v37  ;;  %950 = vmatprep.mubr.bf16.mxu0 %v1425_v4 }
  0x28   : > { %910 = vmatmul.mubr.bf16.vlgmr.msra.gmra.mrb[0].mxu1 %v1390_v35  ;;  %1272 = vmatprep.subr.bf16.mxu0 %v1396_v40 }
  0x29   : > { %1293 = vmatpush3.bf16.msra.mxu1 %v1395_v39  ;;  %991 = vmatprep.mubr.bf16.mxu1 %v1429_v8 }
  0x2a   : > { %1294 = vmatprep.subr.bf16.mxu1 %v1398_v42 }
  0x2b   : > { %1273 = vmatpush3.bf16.msra.mxu0 %v1397_v41 }
  0x2c   : > { %1274 = vmatprep.subr.bf16.mxu0 %v1400_v44 }
  0x2d   : > { %1295 = vmatpush3.bf16.msra.mxu1 %v1399_v43 }
  0x2e   : > { %1296 = vmatprep.subr.bf16.mxu1 %v1402_v46 }
  0x2f   : > { %1275 = vmatpush3.bf16.msra.mxu0 %v1401_v45 }
  0x30   : > { %1276 = vmatprep.subr.bf16.mxu0 %v1404_v48 }
  0x31   : > { %1297 = vmatpush3.bf16.msra.mxu1 %v1403_v47 }
  0x32   : > { %1298 = vmatprep.subr.bf16.mxu1 %v1406_v50 }
  0x33   : > { %1277 = vmatpush3.bf16.msra.mxu0 %v1405_v49 }
  0x34   : > { %1278 = vmatprep.subr.bf16.mxu0 %v1408_v52 }
  0x35   : > { %1299 = vmatpush3.bf16.msra.mxu1 %v1407_v51 }
  0x36   : > { %1300 = vmatprep.subr.bf16.mxu1 %v1410_v54 }
  0x37   : > { %1279 = vmatpush3.bf16.msra.mxu0 %v1409_v53 }
  0x38   : > { %1280 = vmatprep.subr.bf16.mxu0 %v1412_v56 }
  0x39   : > { %1301 = vmatpush3.bf16.msra.mxu1 %v1411_v55 }
  0x3a   : > { %1302 = vmatprep.subr.bf16.mxu1 %v1414_v58 }
  0x3b   : > { %1281 = vmatpush3.bf16.msra.mxu0 %v1413_v57 }
  0x3c   : > { %1282 = vmatprep.subr.bf16.mxu0 %v1416_v60 }
  0x3d   : > { %1303 = vmatpush3.bf16.msra.mxu1 %v1415_v59 }
  0x3e   : > { %1304 = vmatprep.subr.bf16.mxu1 %v1418_v62 }
  0x3f   : > { %1283 = vmatpush3.bf16.msra.mxu0 %v1417_v61 }
  0x40   : > { %1284 = vmatprep.subr.bf16.mxu0 %v1420_v0 }
  0x41   : > { %1305 = vmatpush3.bf16.msra.mxu1 %v1419_v63 }
  0x42   : > { %1306 = vmatprep.subr.bf16.mxu1 %v1422_v2 }
  0x43   : > { %1285 = vmatpush3.bf16.msra.mxu0 %v1421_v1 }
  0x44   : > { %1323 = vmatprep.subr.bf16.mxu0 %v1447_v6 }
  0x45   : > { %1307 = vmatpush3.bf16.msra.mxu1 %v1426_v5 }
  0x46   : > { %951 = vmatmul.mubr.bf16.vlgmr.msra.gmra.mrb[4].mxu0 %v1423_v3 }
  0x47   : > { %1339 = vmatprep.mubr.msk.bf16.mxu0 %vm1448_vm0, %v1447_v6  ;;  %1324 = vmatpush3.bf16.msra.mxu0 %v1430_v9 }
  0x48   : > { %992 = vmatmul.mubr.bf16.vlgmr.msra.gmra.mrb[4].mxu1 %v1427_v7  ;;  %1325 = vmatprep.subr.bf16.mxu0 %v1447_v6 }
  0x4b   : > { %1326 = vmatpush3.bf16.msra.mxu0 %v1431_v10 }
  0x4c   : > { %1327 = vmatprep.subr.bf16.mxu0 %v1447_v6 }
  0x4f   : > { %1328 = vmatpush3.bf16.msra.mxu0 %v1432_v11 }
  0x50   : > { %1329 = vmatprep.subr.bf16.mxu0 %v1447_v6 }
  0x53   : > { %1330 = vmatpush3.bf16.msra.mxu0 %v1433_v12 }
  0x54   : > { %1331 = vmatprep.subr.bf16.mxu0 %v1447_v6 }
  0x57   : > { %1332 = vmatpush3.bf16.msra.mxu0 %v1434_v13 }
  0x58   : > { %1333 = vmatprep.subr.bf16.mxu0 %v1447_v6 }
  0x5b   : > { %1334 = vmatpush3.bf16.msra.mxu0 %v1435_v14 }
  0x5c   : > { %1335 = vmatprep.subr.bf16.mxu0 %v1447_v6 }
  0x5f   : > { %1336 = vmatpush3.bf16.msra.mxu0 %v1436_v15 }
  0x60   : > { %1337 = vmatprep.subr.bf16.mxu0 %v1447_v6 }
  0x63   : > { %1338 = vmatpush3.bf16.msra.mxu0 %v1437_v16 }
  0x66   : > { %1340 = vmatmul.mubr.bf16.vlgmr.msra.gmra.mrb[8].mxu0 %v1438_v17 }
  0xf9   : > { %v1242_v19 = vpop.f32.mrb[0].mxu0 }
  0xfa   : > { %v1243_v21 = vpop.f32.mrb[1].mxu0 }
  0xfb   : > { %v1244_v22 = vadd.f32 %v1243_v21, %v1242_v19  ;;  %v1245_v23 = vpop.f32.mrb[2].mxu0  ;;  %v1264_v25 = vpop.f32.mrb[0].mxu1 }
  0xfc   : > { %v1246_v26 = vpop.f32.mrb[3].mxu0  ;;  %v1265_v29 = vpop.f32.mrb[1].mxu1 }
  0xfd   : > { %v871_v27 = vadd.f32 %v1244_v22, %v1219_v20  ;;  %v1247_v28 = vadd.f32 %v1246_v26, %v1245_v23  ;;  %v1266_v30 = vadd.f32 %v1265_v29, %v1264_v25  ;;  %v1267_v31 = vpop.f32.mrb[2].mxu1 }
  0xfe   : > { %v1268_v33 = vpop.f32.mrb[3].mxu1 }
  0xff   : > { %v874_v32 = vadd.f32 %v1247_v28, %v1220_v24  ;;  %v912_v34 = vadd.f32 %v1266_v30, %v871_v27  ;;  %v1269_v35 = vadd.f32 %v1268_v33, %v1267_v31 }
 0x101   : > { %v915_v36 = vadd.f32 %v1269_v35, %v874_v32 }
 0x119   : > { %v1286_v37 = vpop.f32.mrb[4].mxu0 }
 0x11a   : > { %v1287_v38 = vpop.f32.mrb[5].mxu0 }
 0x11b   : > { %v1288_v39 = vadd.f32 %v1287_v38, %v1286_v37  ;;  %v1289_v40 = vpop.f32.mrb[6].mxu0  ;;  %v1308_v41 = vpop.f32.mrb[4].mxu1 }
 0x11c   : > { %v1290_v42 = vpop.f32.mrb[7].mxu0  ;;  %v1309_v45 = vpop.f32.mrb[5].mxu1 }
 0x11d   : > { %v953_v43 = vadd.f32 %v1288_v39, %v912_v34  ;;  %v1291_v44 = vadd.f32 %v1290_v42, %v1289_v40  ;;  %v1310_v46 = vadd.f32 %v1309_v45, %v1308_v41  ;;  %v1311_v47 = vpop.f32.mrb[6].mxu1 }
 0x11e   : > { %v1312_v49 = vpop.f32.mrb[7].mxu1 }
 0x11f   : > { %v956_v48 = vadd.f32 %v1291_v44, %v915_v36  ;;  %v1313_v50 = vadd.f32 %v1312_v49, %v1311_v47  ;;  %v994_v51 = vadd.f32 %v1310_v46, %v953_v43 }
 0x121   : > { %v997_v52 = vadd.f32 %v1313_v50, %v956_v48 }
 0x139   : > { %v1034_v53 = vpop.f32.mrb[8].mxu0 }
 0x13a   : > { %v1035_v54 = vadd.f32 %v1034_v53, %v994_v51  ;;  %v1341_v55 = vpop.f32.mrb[9].mxu0 }
 0x13b   : > { %v1037_v56 = vpop.f32.mrb[10].mxu0 }
 0x13c   : > { %v1038_v57 = vadd.f32 %v1037_v56, %v997_v52  ;;  %v1342_v58 = vpop.f32.mrb[11].mxu0 }
 0x13e   : > { %v1224_v59 = vpack.c.bf16 %v1038_v57, %v1035_v54 }
 0x140   : > { %1225 = vst [vmem:[%s197_s21] sm:$0xff] %v1224_v59  }
 0x141 PF: > { %s13_s12 = sadd.s32 1, %s1445_s12  }
 0x142   : > { %p10_p4 = scmp.ge.s32.totalorder %s13_s12, 4  }
 0x144   :  { %12 = sbr.rel (!%p10_p4) target bundleno = 1 (0x1), region = 65 }

// kernel: _lambda_.39
= control target key start
LH: loop header
LB: loop body
LE: loop exit
PB: predicated region body
PF: predicated region fallthrough
CT: control target
= control target key end

     0   :  { %12 = vsyncpa [#allocation3], 0  ;;  %v340_v1 = vmov 0.0   ;;  %vm341_vm0 = vmmov 0   ;;  %s442_s0 = inlined_call_operand.vmem [shape: bf16[2,16,128], index: 0, kind: input, shape index: {}]   ;;  %s443_s1 = inlined_call_operand.vmem [shape: f32[1,1,128], index: 1, kind: input, shape index: {}]   ;;  %s444_s2 = inlined_call_operand.vmem [shape: f32[1,1,128], index: 2, kind: input, shape index: {}]   ;;  %s445_s3 = inlined_call_operand.vmem [shape: bf16[128,128], index: 3, kind: input, shape index: {}]   ;;  %s446_s4 = inlined_call_operand.vmem [shape: f32[1,128], index: 4, kind: input, shape index: {}]   ;;  %s447_s5 = inlined_call_operand.hbm [shape: f32[2,128], index: 5, kind: output, shape index: {0}]   ;;  %s448_s6 = inlined_call_operand.hbm [shape: f32[2,128], index: 6, kind: output, shape index: {1}]  }
   0x1   :  { %v284_v0 = vld [vmem:[%s445_s3] sm:$0xff]   ;;  %260 = vmatprep.subr.bf16.mxu0 %v340_v1  ;;  %v285_v2 = vld [vmem:[%s445_s3 + $0x8] sm:$0xff]   ;;  %276 = vmatprep.mubr.msk.bf16.mxu0 %vm341_vm0, %v340_v1  ;;  %v286_v3 = vld [vmem:[%s445_s3 + $0x10] sm:$0xff]  }
   0x2   :  { %261 = vmatpush3.bf16.msra.mxu0 %v284_v0  ;;  %v243_v4 = vld [vmem:[%s442_s0] sm:$0xff]   ;;  %v250_v5 = vld [vmem:[%s442_s0 + $0x8] sm:$0xff]  }
   0x3   :  { %262 = vmatprep.subr.bf16.mxu0 %v340_v1  ;;  %v231_v6 = vld [vmem:[%s443_s1] ss:$0 sm:$0xff]  ;;  %v244_v7 = vunpack.c.l.bf16 %v243_v4  ;;  %v245_v8 = vunpack.c.h.bf16 %v243_v4  ;;  %v248_v9 = vunpack.c.l.bf16 %v250_v5  ;;  %v249_v10 = vunpack.c.h.bf16 %v250_v5 }
   0x6   :  { %263 = vmatpush3.bf16.msra.mxu0 %v285_v2 }
   0x7   :  { %264 = vmatprep.subr.bf16.mxu0 %v340_v1 }
   0x8   :  { %13 = vsyncpa [#allocation5], 0  ;;  %v287_v11 = vld [vmem:[%s445_s3 + $0x18] sm:$0xff]   ;;  %v232_v12 = vld [vmem:[%s444_s2] ss:$0 sm:$0xff]  ;;  %v40_v13 = vmul.f32 %v244_v7, %v231_v6  ;;  %v41_v14 = vmul.f32 %v245_v8, %v231_v6  ;;  %v42_v15 = vmul.f32 %v248_v9, %v231_v6  ;;  %v43_v16 = vmul.f32 %v249_v10, %v231_v6  ;;  %s342_s18 = smov [#allocation2]  }
   0x9   :  { %v288_v21 = vld [vmem:[%s445_s3 + $0x20] sm:$0xff]   ;;  %v289_v28 = vld [vmem:[%s445_s3 + $0x28] sm:$0xff]   ;;  %v290_v33 = vld [vmem:[%s445_s3 + $0x30] sm:$0xff]   ;;  %vm78_vm1 = vcmask 1041409   ;;  %s209_s19 = sshll.u32 %s342_s18, 4  ;;  %s210_s19 = int_to_ptr.vmem [resolvable:$true] %s209_s19 }
   0xa   :  { %265 = vmatpush3.bf16.msra.mxu0 %v286_v3  ;;  %v51_v17 = vadd.f32 %v232_v12, %v40_v13  ;;  %v52_v18 = vadd.f32 %v232_v12, %v41_v14  ;;  %v53_v19 = vadd.f32 %v232_v12, %v42_v15  ;;  %v54_v20 = vadd.f32 %v232_v12, %v43_v16  ;;  %v291_v38 = vld [vmem:[%s445_s3 + $0x38] sm:$0xff]   ;;  %s292_s3 = scalar_lea.vmem %s210_s19, 32  ;;  %p297_p1 = scmp.lt.s32.totalorder %s210_s19, %s210_s19 }
   0xb   :  { %266 = vmatprep.subr.bf16.mxu0 %v340_v1  ;;  %p293_p0 = scmp.ne.s32.totalorder %s210_s19, %s292_s3  ;;  %p298_p2 = scmp.lt.s32.totalorder %s292_s3, %s292_s3 }
   0xc   :  { %v55_v22 = vmax.f32 %v51_v17, 0.0  ;;  %v56_v23 = vmax.f32 %v52_v18, 0.0  ;;  %v57_v24 = vmax.f32 %v53_v19, 0.0  ;;  %v58_v25 = vmax.f32 %v54_v20, 0.0 }
   0xd   :  { %p299_p3 = por %p298_p2, %p297_p1 }
   0xe   :  { %267 = vmatpush3.bf16.msra.mxu0 %v287_v11  ;;  %v59_v26 = vadd.f32 %v56_v23, %v55_v22  ;;  %v66_v27 = vadd.f32 %v58_v25, %v57_v24 }
   0xf   :  { %268 = vmatprep.subr.bf16.mxu0 %v340_v1  ;;  %p300_p4 = pnand %p299_p3, %p293_p0 }
  0x10   :  { %v60_v29 = vrot.slane %v59_v26, 4  ;;  %v67_v30 = vrot.slane %v66_v27, 4 }
  0x12   :  { %269 = vmatpush3.bf16.msra.mxu0 %v288_v21  ;;  %v61_v31 = vadd.f32 %v60_v29, %v59_v26  ;;  %v68_v32 = vadd.f32 %v67_v30, %v66_v27 }
  0x13   :  { %270 = vmatprep.subr.bf16.mxu0 %v340_v1 }
  0x14   :  { %v62_v34 = vrot.slane %v61_v31, 2  ;;  %v69_v35 = vrot.slane %v68_v32, 2 }
  0x16   :  { %271 = vmatpush3.bf16.msra.mxu0 %v289_v28  ;;  %v63_v36 = vadd.f32 %v62_v34, %v61_v31  ;;  %v70_v37 = vadd.f32 %v69_v35, %v68_v32 }
  0x17   :  { %272 = vmatprep.subr.bf16.mxu0 %v340_v1 }
  0x18   :  { %v64_v39 = vrot.slane %v63_v36, 1  ;;  %v71_v40 = vrot.slane %v70_v37, 1 }
  0x1a   :  { %273 = vmatpush3.bf16.msra.mxu0 %v290_v33  ;;  %v65_v41 = vadd.f32 %v64_v39, %v63_v36  ;;  %v72_v42 = vadd.f32 %v71_v40, %v70_v37 }
  0x1b   :  { %274 = vmatprep.subr.bf16.mxu0 %v340_v1 }
  0x1c   :  { %v74_v43 = vmul.f32 0.0625, %v65_v41  ;;  %v75_v44 = vmul.f32 0.0625, %v72_v42 }
  0x1e   :  { %275 = vmatpush3.bf16.msra.mxu0 %v291_v38  ;;  %v82_v45 = vpack.c.bf16 %v74_v43, %v74_v43  ;;  %v83_v46 = vpack.c.bf16 %v75_v44, %v75_v44  ;;  %v79_v51 = vsel %vm78_vm1, %v75_v44, %v74_v43 }
  0x1f   :  { %81 = vst [vmem:[#allocation2] sm:$0x3] %v79_v51 }
  0x20   :  { %v109_v47 = vunpack.c.l.b16 %v82_v45  ;;  %v110_v48 = vunpack.c.l.b16 %v83_v46 }
  0x22   :  { %v111_v49 = vsel %vm78_vm1, %v110_v48, %v109_v47 }
  0x23   :  { %v112_v50 = vpack.c.b16 %v111_v49, %v111_v49 }
  0x25   :  { %277 = vmatmul.mubr.bf16.vlgmr.msra.gmra.mrb[0].mxu0 %v112_v50 }
  0x26   :  { %303 = shalt.err (!%p300_p4)
}
  0x27   :  { %s304_s22 = scalar_lea.hbm %s447_s5, 32 }
  0x28   :  { %p305_p5 = scmp.ne.s32.totalorder %s447_s5, %s304_s22  ;;  %p308_p6 = scmp.lt.u32.totalorder %s304_s22, %s447_s5 }
  0x2a   :  { %p310_p7 = pnand %p308_p6, %p305_p5 }
  0x2c   :  { %313 = shalt.err (!%p310_p7)
}
  0x2d   :  { %212 = dma.vmem_to_hbm [thread:$0]  %s210_s19, 32, %s447_s5, [#allocation3]   ;;  %v233_v52 = vld [vmem:[%s446_s4] ss:$0 sm:$0xff] }
  0x2e   :  { %s343_s7 = smov [#allocation4]  }
  0x2f   :  { %s219_s8 = sshll.u32 %s343_s7, 4  ;;  %s220_s8 = int_to_ptr.vmem [resolvable:$true] %s219_s8 }
  0x30   :  { %s314_s9 = scalar_lea.vmem %s220_s8, 32  ;;  %p319_p9 = scmp.lt.s32.totalorder %s220_s8, %s220_s8 }
  0x31   :  { %p315_p8 = scmp.ne.s32.totalorder %s220_s8, %s314_s9  ;;  %p320_p10 = scmp.lt.s32.totalorder %s314_s9, %s314_s9 }
  0x33   :  { %p321_p11 = por %p320_p10, %p319_p9 }
  0x35   :  { %p322_p12 = pnand %p321_p11, %p315_p8 }
  0xf8   :  { %v196_v53 = vpop.f32.mrb[0].mxu0 }
  0xf9   :  { %v197_v54 = vadd.f32 %v233_v52, %v196_v53  ;;  %v278_v55 = vpop.f32.mrb[1].mxu0 }
  0xfa   :  { %v199_v56 = vpop.f32.mrb[2].mxu0 }
  0xfb   :  { %202 = vst [vmem:[#allocation4] sm:$0x3] %v197_v54  ;;  %v279_v57 = vpop.f32.mrb[3].mxu0 }
  0xfc   :  { %325 = shalt.err (!%p322_p12)
}
  0xfd   :  { %s326_s4 = scalar_lea.hbm %s448_s6, 32 }
  0xfe   :  { %p327_p13 = scmp.ne.s32.totalorder %s448_s6, %s326_s4  ;;  %p330_p0 = scmp.lt.u32.totalorder %s326_s4, %s448_s6 }
 0x100   :  { %p332_p1 = pnand %p330_p0, %p327_p13 }
 0x102   :  { %335 = shalt.err (!%p332_p1)
}
 0x103   :  { %222 = dma.vmem_to_hbm [thread:$0]  %s220_s8, 32, %s448_s6, [#allocation5]  }
 0x104   :  { %336 = dma.done.wait [#allocation3], 32  }
 0x105   :  { %337 = vsyncadd [#allocation3], 4294967264 }
 0x106   :  { %338 = dma.done.wait [#allocation5], 32  }
 0x107   :  { %339 = vsyncadd [#allocation5], 4294967264 }
 0x108   :  { %229 = vsyncpa [#allocation3], 1 }
 0x109   :  { %230 = vsyncpa [#allocation5], 1 }

// kernel: _lambda_.35
= control target key start
LH: loop header
LB: loop body
LE: loop exit
PB: predicated region body
PF: predicated region fallthrough
CT: control target
= control target key end

     0   :  { %s1663_s15 = smov 0   ;;  %s1962_s0 = inlined_call_operand.vmem [shape: bf16[32,1152], index: 0, kind: input, shape index: {}]   ;;  %s1963_s1 = inlined_call_operand.vmem [shape: bf16[1152,128], index: 1, kind: input, shape index: {}]   ;;  %s1964_s2 = inlined_call_operand.vmem [shape: bf16[32,128], index: 2, kind: input, shape index: {}]   ;;  %s1965_s3 = inlined_call_operand.vmem [shape: bf16[128,128], index: 3, kind: input, shape index: {}]   ;;  %s1966_s4 = inlined_call_operand.vmem [shape: bf16[32,128], index: 4, kind: output, shape index: {}]  }
   0x1 LB: > { %s1255_s16 = sadd.s32 4294967295, %s1634_s15   ;;  %p1259_p0 = scmp.ge.s32.totalorder %s1634_s15, 1  ;;  %s1634_s15 = sphi %s1663_s15, %s14_s15  }
   0x2   : > { %p175_p1 = scmp.lt.s32.totalorder %s1634_s15, 3 }
   0x4   : > { %p176_p2 = pnand %p1259_p0, %p175_p1 }
   0x5   : > { %v1534_v0 = vld [vmem:[%s1965_s3] sm:$0xff] (!%p176_p2)   ;;  %v1636_v1 = vmov (!%p176_p2), 0.0   ;;  %v1536_v3 = vld [vmem:[%s1965_s3 + $0x8] sm:$0xff] (!%p176_p2)   ;;  %vm1637_vm0 = vmmov (!%p176_p2), 0   ;;  %v1539_v6 = vld [vmem:[%s1965_s3 + $0x10] sm:$0xff] (!%p176_p2)   ;;  %s1260_s7 = sshll.u32 (!%p176_p2), %s1255_s16, 1 }
   0x6   : > { %179 = sbr.rel (%p176_p2) target bundleno = 328 (0x148), region = 36  ;;  %1473 = vmatprep.subr.bf16.mxu1 (!%p176_p2), %v1636_v1  ;;  %v1535_v2 = vld [vmem:[%s1963_s1 + $0xc0] sm:$0xff] (!%p176_p2)   ;;  %1489 = vmatprep.mubr.msk.bf16.mxu1 (!%p176_p2), %vm1637_vm0, %v1636_v1  ;;  %v1538_v5 = vld [vmem:[%s1963_s1 + $0xc8] sm:$0xff] (!%p176_p2)   ;;  %v1541_v8 = vld [vmem:[%s1963_s1 + $0xd0] sm:$0xff] (!%p176_p2)   ;;  %p208_p3 = scmp.lt.s32.totalorder (!%p176_p2), %s1260_s7, 3 }
   0x7   : > { %1474 = vmatpush3.bf16.msra.mxu1 (!%p176_p2), %v1534_v0  ;;  %1398 = vmatprep.subr.bf16.mxu0 (!%p176_p2), %v1535_v2  ;;  %v1537_v4 = vld [vmem:[%s1963_s1 + $0x80] sm:$0xff] (!%p176_p2)   ;;  %v1540_v7 = vld [vmem:[%s1963_s1 + $0x88] sm:$0xff] (!%p176_p2)   ;;  %v1542_v9 = vld [vmem:[%s1965_s3 + $0x18] sm:$0xff] (!%p176_p2)  }
   0x8   : > { %1475 = vmatprep.subr.bf16.mxu1 (!%p176_p2), %v1636_v1  ;;  %1399 = vmatpush3.bf16.msra.mxu0 (!%p176_p2), %v1537_v4  ;;  %v1543_v10 = vld [vmem:[%s1963_s1 + $0x90] sm:$0xff] (!%p176_p2)   ;;  %v1544_v11 = vld [vmem:[%s1963_s1 + $0xd8] sm:$0xff] (!%p176_p2)   ;;  %v1545_v12 = vld [vmem:[%s1965_s3 + $0x20] sm:$0xff] (!%p176_p2)  }
   0x9   : > { %1400 = vmatprep.subr.bf16.mxu0 (!%p176_p2), %v1538_v5  ;;  %v1546_v13 = vld [vmem:[%s1963_s1 + $0x98] sm:$0xff] (!%p176_p2)   ;;  %v1547_v14 = vld [vmem:[%s1963_s1 + $0xe0] sm:$0xff] (!%p176_p2)   ;;  %v1548_v15 = vld [vmem:[%s1965_s3 + $0x28] sm:$0xff] (!%p176_p2)  }
   0xa   : > { %v1549_v16 = vld [vmem:[%s1963_s1 + $0xa0] sm:$0xff] (!%p176_p2)   ;;  %v1550_v17 = vld [vmem:[%s1963_s1 + $0xe8] sm:$0xff] (!%p176_p2)   ;;  %v1551_v18 = vld [vmem:[%s1965_s3 + $0x30] sm:$0xff] (!%p176_p2)  }
   0xb   : > { %1476 = vmatpush3.bf16.msra.mxu1 (!%p176_p2), %v1536_v3  ;;  %v1552_v19 = vld [vmem:[%s1963_s1 + $0xa8] sm:$0xff] (!%p176_p2)   ;;  %v1553_v20 = vld [vmem:[%s1963_s1 + $0xf0] sm:$0xff] (!%p176_p2)   ;;  %v1554_v21 = vld [vmem:[%s1965_s3 + $0x38] sm:$0xff] (!%p176_p2)  }
   0xc   : > { %1477 = vmatprep.subr.bf16.mxu1 (!%p176_p2), %v1636_v1  ;;  %1401 = vmatpush3.bf16.msra.mxu0 (!%p176_p2), %v1540_v7  ;;  %v1555_v22 = vld [vmem:[%s1963_s1 + $0xb0] sm:$0xff] (!%p176_p2)   ;;  %v1558_v23 = vld [vmem:[%s1963_s1 + $0xf8] sm:$0xff] (!%p176_p2)   ;;  %v1557_v25 = vld [vmem:[%s1963_s1 + $0x40] sm:$0xff] (!%p176_p2)  }
   0xd   : > { %1402 = vmatprep.subr.bf16.mxu0 %v1541_v8  ;;  %s1968_s7 = smov (!%p208_p3, %s1260_s7), 3  ;;  %v1559_v26 = vld [vmem:[%s1963_s1] sm:$0xff]   ;;  %v1560_v27 = vld [vmem:[%s1963_s1 + $0xb8] sm:$0xff]   ;;  %v1561_v28 = vld [vmem:[%s1963_s1 + $0x48] sm:$0xff]  }
   0xe   : > { %s1263_s27 = sshll.u32 %s1968_s7, 2  ;;  %s1523_s12 = smul.u32 36, %s1968_s7  ;;  %v1565_v30 = vld [vmem:[%s1963_s1 + $0x1c0] sm:$0xff]   ;;  %v1566_v32 = vld [vmem:[%s1963_s1 + $0x8] sm:$0xff]   ;;  %v1568_v35 = vld [vmem:[%s1963_s1 + $0x50] sm:$0xff]  }
   0xf   : > { %1478 = vmatpush3.bf16.msra.mxu1 %v1539_v6  ;;  %s218_s9 = scalar_lea.vmem %s1964_s2, %s1263_s27  ;;  %v1567_v33 = vld [vmem:[%s1963_s1 + $0x180] sm:$0xff]   ;;  %v1569_v34 = vld [vmem:[%s1963_s1 + $0x1c8] sm:$0xff]   ;;  %v1570_v36 = vld [vmem:[%s1963_s1 + $0x10] sm:$0xff]   ;;  %s224_s29 = scalar_lea.vmem %s1966_s4, %s1263_s27 }
  0x10   : > { %1479 = vmatprep.subr.bf16.mxu1 %v1636_v1  ;;  %1403 = vmatpush3.bf16.msra.mxu0 %v1543_v10  ;;  %s1758_s20 = scalar_lea.vmem %s1962_s0, %s1523_s12  ;;  %v1556_v24 = vld [vmem:[%s218_s9] sm:$0xff]   ;;  %v1571_v37 = vld [vmem:[%s1963_s1 + $0x188] sm:$0xff]   ;;  %v1573_v38 = vld [vmem:[%s1963_s1 + $0x1d0] sm:$0xff]  }
  0x11   : > { %1404 = vmatprep.subr.bf16.mxu0 %v1544_v11  ;;  %v1564_v29 = vld [vmem:[%s1758_s20 + $0xc] ss:$36 sps:$4 sm:$0xff]   ;;  %v1572_v39 = vld [vmem:[%s1963_s1 + $0x58] sm:$0xff]   ;;  %v1576_v43 = vld [vmem:[%s1963_s1 + $0x60] sm:$0xff]  }
  0x12   : > { %v1562_v31 = vld [vmem:[%s1758_s20 + $0x8] ss:$36 sps:$4 sm:$0xff]   ;;  %1045 = vmatprep.mubr.bf16.mxu0 %v1564_v29  ;;  %v1574_v40 = vld [vmem:[%s1963_s1 + $0x18] sm:$0xff]   ;;  %v1575_v41 = vld [vmem:[%s1963_s1 + $0x190] sm:$0xff]  }
  0x13   : > { %1480 = vmatpush3.bf16.msra.mxu1 %v1542_v9  ;;  %v1577_v42 = vld [vmem:[%s1963_s1 + $0x1d8] sm:$0xff]   ;;  %v1578_v44 = vld [vmem:[%s1963_s1 + $0x20] sm:$0xff]   ;;  %v1580_v47 = vld [vmem:[%s1963_s1 + $0x68] sm:$0xff]  }
  0x14   : > { %1481 = vmatprep.subr.bf16.mxu1 %v1636_v1  ;;  %1405 = vmatpush3.bf16.msra.mxu0 %v1546_v13  ;;  %v1579_v45 = vld [vmem:[%s1963_s1 + $0x198] sm:$0xff]   ;;  %v1581_v46 = vld [vmem:[%s1963_s1 + $0x1e0] sm:$0xff]   ;;  %v1582_v48 = vld [vmem:[%s1963_s1 + $0x28] sm:$0xff]  }
  0x15   : > { %1406 = vmatprep.subr.bf16.mxu0 %v1547_v14  ;;  %v1583_v49 = vld [vmem:[%s1963_s1 + $0x1a0] sm:$0xff]   ;;  %v1585_v50 = vld [vmem:[%s1963_s1 + $0x1e8] sm:$0xff]   ;;  %v1584_v51 = vld [vmem:[%s1963_s1 + $0x70] sm:$0xff]  }
  0x16   : > { %v1586_v52 = vld [vmem:[%s1963_s1 + $0x30] sm:$0xff]   ;;  %v1587_v53 = vld [vmem:[%s1963_s1 + $0x1a8] sm:$0xff]   ;;  %v1588_v55 = vld [vmem:[%s1963_s1 + $0x78] sm:$0xff]  }
  0x17   : > { %1482 = vmatpush3.bf16.msra.mxu1 %v1545_v12  ;;  %v1589_v54 = vld [vmem:[%s1963_s1 + $0x1f0] sm:$0xff]   ;;  %v1590_v56 = vld [vmem:[%s1963_s1 + $0x38] sm:$0xff]   ;;  %v1594_v58 = vld [vmem:[%s1758_s20 + $0x4] ss:$36 sps:$4 sm:$0xff]  }
  0x18   : > { %1483 = vmatprep.subr.bf16.mxu1 %v1636_v1  ;;  %1407 = vmatpush3.bf16.msra.mxu0 %v1549_v16  ;;  %v1591_v57 = vld [vmem:[%s1963_s1 + $0x1b0] sm:$0xff]   ;;  %v1595_v59 = vld [vmem:[%s1963_s1 + $0x140] sm:$0xff]   ;;  %v1596_v60 = vld [vmem:[%s1963_s1 + $0x1f8] sm:$0xff]  }
  0x19   : > { %1408 = vmatprep.subr.bf16.mxu0 %v1550_v17  ;;  %v1592_v61 = vld [vmem:[%s1758_s20] ss:$36 sps:$4 sm:$0xff]   ;;  %v1598_v62 = vld [vmem:[%s1963_s1 + $0x1b8] sm:$0xff]   ;;  %v1599_v0 = vld [vmem:[%s1963_s1 + $0x148] sm:$0xff]  }
  0x1a   : > { %v1597_v63 = vld [vmem:[%s1963_s1 + $0x100] sm:$0xff]   ;;  %v1600_v3 = vld [vmem:[%s1758_s20 + $0x18] ss:$36 sps:$4 sm:$0xff]   ;;  %v1603_v5 = vld [vmem:[%s1963_s1 + $0x108] sm:$0xff]  }
  0x1b   : > { %1484 = vmatpush3.bf16.msra.mxu1 %v1548_v15  ;;  %v1602_v2 = vld [vmem:[%s1758_s20 + $0x1c] ss:$36 sps:$4 sm:$0xff]   ;;  %v1605_v6 = vld [vmem:[%s1963_s1 + $0x150] sm:$0xff]   ;;  %v1607_v7 = vld [vmem:[%s1963_s1 + $0x208] sm:$0xff]  }
  0x1c   : > { %1485 = vmatprep.subr.bf16.mxu1 %v1636_v1  ;;  %1409 = vmatpush3.bf16.msra.mxu0 %v1552_v19  ;;  %v1604_v4 = vld [vmem:[%s1963_s1 + $0x200] sm:$0xff]   ;;  %v1606_v8 = vld [vmem:[%s1963_s1 + $0x110] sm:$0xff]   ;;  %v1608_v9 = vld [vmem:[%s1963_s1 + $0x158] sm:$0xff]  }
  0x1d   : > { %1410 = vmatprep.subr.bf16.mxu0 %v1553_v20  ;;  %v1610_v10 = vld [vmem:[%s1963_s1 + $0x210] sm:$0xff]   ;;  %v1609_v11 = vld [vmem:[%s1963_s1 + $0x118] sm:$0xff]   ;;  %v1611_v12 = vld [vmem:[%s1963_s1 + $0x160] sm:$0xff]  }
  0x1e   : > { %v1613_v13 = vld [vmem:[%s1963_s1 + $0x218] sm:$0xff]   ;;  %v1612_v14 = vld [vmem:[%s1963_s1 + $0x120] sm:$0xff]   ;;  %v1614_v15 = vld [vmem:[%s1963_s1 + $0x168] sm:$0xff]  }
  0x1f   : > { %1486 = vmatpush3.bf16.msra.mxu1 %v1551_v18  ;;  %v1616_v16 = vld [vmem:[%s1963_s1 + $0x220] sm:$0xff]   ;;  %v1615_v17 = vld [vmem:[%s1963_s1 + $0x128] sm:$0xff]   ;;  %v1617_v18 = vld [vmem:[%s1963_s1 + $0x170] sm:$0xff]  }
  0x20   : > { %1487 = vmatprep.subr.bf16.mxu1 %v1636_v1  ;;  %1411 = vmatpush3.bf16.msra.mxu0 %v1555_v22  ;;  %v1619_v19 = vld [vmem:[%s1963_s1 + $0x228] sm:$0xff]   ;;  %v1625_v20 = vld [vmem:[%s1758_s20 + $0x14] ss:$36 sps:$4 sm:$0xff]  }
  0x21   : > { %1412 = vmatprep.subr.bf16.mxu0 %v1558_v23  ;;  %v1620_v22 = vld [vmem:[%s1963_s1 + $0x178] sm:$0xff]   ;;  %v1622_v23 = vld [vmem:[%s1963_s1 + $0x230] sm:$0xff]  }
  0x23   : > { %1488 = vmatpush3.bf16.msra.mxu1 %v1554_v21  ;;  %v1618_v21 = vld [vmem:[%s1963_s1 + $0x130] sm:$0xff]  }
  0x24   : > { %1376 = vmatprep.subr.bf16.mxu1 %v1557_v25  ;;  %1413 = vmatpush3.bf16.msra.mxu0 %v1560_v27  ;;  %v1623_v25 = vld [vmem:[%s1758_s20 + $0x10] ss:$36 sps:$4 sm:$0xff]   ;;  %v1627_v27 = vld [vmem:[%s1758_s20 + $0x20] ss:$36 sps:$4 sm:$0xff]  }
  0x25   : > { %1442 = vmatprep.subr.bf16.mxu0 %v1565_v30 }
  0x26   : > { %1490 = vmatmul.mubr.bf16.vlgmr.msra.gmra.mrb[0].mxu1 %v1556_v24  ;;  %v1621_v24 = vld [vmem:[%s1963_s1 + $0x138] sm:$0xff]  }
  0x27   : > { %1377 = vmatpush3.bf16.msra.mxu1 %v1559_v26  ;;  %1046 = vmatmul.mubr.bf16.vlgmr.msra.gmra.mrb[0].mxu0 %v1562_v31  ;;  %v1626_v26 = vld [vmem:[%s1963_s1 + $0x238] sm:$0xff]  }
  0x28   : > { %1378 = vmatprep.subr.bf16.mxu1 %v1561_v28  ;;  %1443 = vmatpush3.bf16.msra.mxu0 %v1567_v33 }
  0x29   : > { %1444 = vmatprep.subr.bf16.mxu0 %v1569_v34  ;;  %1004 = vmatprep.mubr.bf16.mxu1 %v1594_v58 }
  0x2a   : > { %1127 = vmatprep.mubr.bf16.mxu0 %v1602_v2 }
  0x2b   : > { %1379 = vmatpush3.bf16.msra.mxu1 %v1566_v32 }
  0x2c   : > { %1380 = vmatprep.subr.bf16.mxu1 %v1568_v35  ;;  %1445 = vmatpush3.bf16.msra.mxu0 %v1571_v37 }
  0x2d   : > { %1446 = vmatprep.subr.bf16.mxu0 %v1573_v38 }
  0x2f   : > { %1381 = vmatpush3.bf16.msra.mxu1 %v1570_v36 }
  0x30   : > { %1382 = vmatprep.subr.bf16.mxu1 %v1572_v39  ;;  %1447 = vmatpush3.bf16.msra.mxu0 %v1575_v41 }
  0x31   : > { %1448 = vmatprep.subr.bf16.mxu0 %v1577_v42 }
  0x33   : > { %1383 = vmatpush3.bf16.msra.mxu1 %v1574_v40 }
  0x34   : > { %1384 = vmatprep.subr.bf16.mxu1 %v1576_v43  ;;  %1449 = vmatpush3.bf16.msra.mxu0 %v1579_v45 }
  0x35   : > { %1450 = vmatprep.subr.bf16.mxu0 %v1581_v46 }
  0x37   : > { %1385 = vmatpush3.bf16.msra.mxu1 %v1578_v44 }
  0x38   : > { %1386 = vmatprep.subr.bf16.mxu1 %v1580_v47  ;;  %1451 = vmatpush3.bf16.msra.mxu0 %v1583_v49 }
  0x39   : > { %1452 = vmatprep.subr.bf16.mxu0 %v1585_v50 }
  0x3b   : > { %1387 = vmatpush3.bf16.msra.mxu1 %v1582_v48 }
  0x3c   : > { %1388 = vmatprep.subr.bf16.mxu1 %v1584_v51  ;;  %1453 = vmatpush3.bf16.msra.mxu0 %v1587_v53 }
  0x3d   : > { %1454 = vmatprep.subr.bf16.mxu0 %v1589_v54 }
  0x3f   : > { %1389 = vmatpush3.bf16.msra.mxu1 %v1586_v52 }
  0x40   : > { %1390 = vmatprep.subr.bf16.mxu1 %v1588_v55  ;;  %1455 = vmatpush3.bf16.msra.mxu0 %v1591_v57 }
  0x41   : > { %1456 = vmatprep.subr.bf16.mxu0 %v1596_v60 }
  0x43   : > { %1391 = vmatpush3.bf16.msra.mxu1 %v1590_v56 }
  0x44   : > { %1420 = vmatprep.subr.bf16.mxu1 %v1595_v59  ;;  %1457 = vmatpush3.bf16.msra.mxu0 %v1598_v62 }
  0x45   : > { %1493 = vmatprep.subr.bf16.mxu0 %v1636_v1 }
  0x46   : > { %1005 = vmatmul.mubr.bf16.vlgmr.msra.gmra.mrb[4].mxu1 %v1592_v61 }
  0x47   : > { %1421 = vmatpush3.bf16.msra.mxu1 %v1597_v63  ;;  %1128 = vmatmul.mubr.bf16.vlgmr.msra.gmra.mrb[4].mxu0 %v1600_v3 }
  0x48   : > { %1422 = vmatprep.subr.bf16.mxu1 %v1599_v0  ;;  %1494 = vmatpush3.bf16.msra.mxu0 %v1604_v4 }
  0x49   : > { %1509 = vmatprep.mubr.msk.bf16.mxu0 %vm1637_vm0, %v1636_v1  ;;  %1495 = vmatprep.subr.bf16.mxu0 %v1636_v1 }
  0x4a   : > { %1086 = vmatprep.mubr.bf16.mxu1 %v1625_v20 }
  0x4b   : > { %1423 = vmatpush3.bf16.msra.mxu1 %v1603_v5 }
  0x4c   : > { %1424 = vmatprep.subr.bf16.mxu1 %v1605_v6  ;;  %1496 = vmatpush3.bf16.msra.mxu0 %v1607_v7 }
  0x4d   : > { %1497 = vmatprep.subr.bf16.mxu0 %v1636_v1 }
  0x4f   : > { %1425 = vmatpush3.bf16.msra.mxu1 %v1606_v8 }
  0x50   : > { %1426 = vmatprep.subr.bf16.mxu1 %v1608_v9  ;;  %1498 = vmatpush3.bf16.msra.mxu0 %v1610_v10 }
  0x51   : > { %1499 = vmatprep.subr.bf16.mxu0 %v1636_v1 }
  0x53   : > { %1427 = vmatpush3.bf16.msra.mxu1 %v1609_v11 }
  0x54   : > { %1428 = vmatprep.subr.bf16.mxu1 %v1611_v12  ;;  %1500 = vmatpush3.bf16.msra.mxu0 %v1613_v13 }
  0x55   : > { %1501 = vmatprep.subr.bf16.mxu0 %v1636_v1 }
  0x57   : > { %1429 = vmatpush3.bf16.msra.mxu1 %v1612_v14 }
  0x58   : > { %1430 = vmatprep.subr.bf16.mxu1 %v1614_v15  ;;  %1502 = vmatpush3.bf16.msra.mxu0 %v1616_v16 }
  0x59   : > { %1503 = vmatprep.subr.bf16.mxu0 %v1636_v1 }
  0x5b   : > { %1431 = vmatpush3.bf16.msra.mxu1 %v1615_v17 }
  0x5c   : > { %1432 = vmatprep.subr.bf16.mxu1 %v1617_v18  ;;  %1504 = vmatpush3.bf16.msra.mxu0 %v1619_v19 }
  0x5d   : > { %1505 = vmatprep.subr.bf16.mxu0 %v1636_v1 }
  0x5f   : > { %1433 = vmatpush3.bf16.msra.mxu1 %v1618_v21 }
  0x60   : > { %1434 = vmatprep.subr.bf16.mxu1 %v1620_v22  ;;  %1506 = vmatpush3.bf16.msra.mxu0 %v1622_v23 }
  0x61   : > { %1507 = vmatprep.subr.bf16.mxu0 %v1636_v1 }
  0x63   : > { %1435 = vmatpush3.bf16.msra.mxu1 %v1621_v24 }
  0x64   : > { %1508 = vmatpush3.bf16.msra.mxu0 %v1626_v26 }
  0x66   : > { %1087 = vmatmul.mubr.bf16.vlgmr.msra.gmra.mrb[8].mxu1 %v1623_v25 }
  0x67   : > { %1510 = vmatmul.mubr.bf16.vlgmr.msra.gmra.mrb[8].mxu0 %v1627_v27 }
  0xf9   : > { %v487_v28 = vpop.f32.mrb[0].mxu1 }
  0xfa   : > { %v1491_v29 = vpop.f32.mrb[1].mxu1  ;;  %v1414_v32 = vpop.f32.mrb[0].mxu0 }
  0xfb   : > { %v490_v30 = vpop.f32.mrb[2].mxu1  ;;  %v1415_v33 = vpop.f32.mrb[1].mxu0 }
  0xfc   : > { %v1492_v31 = vpop.f32.mrb[3].mxu1  ;;  %v1416_v34 = vadd.f32 %v1415_v33, %v1414_v32  ;;  %v1417_v35 = vpop.f32.mrb[2].mxu0 }
  0xfd   : > { %v1418_v36 = vpop.f32.mrb[3].mxu0 }
  0xfe   : > { %v1419_v37 = vadd.f32 %v1418_v36, %v1417_v35 }
 0x119   : > { %v1392_v38 = vpop.f32.mrb[4].mxu1 }
 0x11a   : > { %v1393_v39 = vpop.f32.mrb[5].mxu1  ;;  %v1458_v1 = vpop.f32.mrb[4].mxu0 }
 0x11b   : > { %v1394_v40 = vadd.f32 %v1393_v39, %v1392_v38  ;;  %v1395_v41 = vpop.f32.mrb[6].mxu1  ;;  %v1459_v45 = vpop.f32.mrb[5].mxu0 }
 0x11c   : > { %v1396_v42 = vpop.f32.mrb[7].mxu1  ;;  %v1460_v46 = vadd.f32 %v1459_v45, %v1458_v1  ;;  %v1461_v47 = vpop.f32.mrb[6].mxu0 }
 0x11d   : > { %v1007_v43 = vadd.f32 %v1394_v40, %v487_v28  ;;  %v1397_v44 = vadd.f32 %v1396_v42, %v1395_v41  ;;  %v1462_v49 = vpop.f32.mrb[7].mxu0 }
 0x11e   : > { %v1463_v51 = vadd.f32 %v1462_v49, %v1461_v47 }
 0x11f   : > { %v1010_v48 = vadd.f32 %v1397_v44, %v490_v30  ;;  %v1048_v50 = vadd.f32 %v1416_v34, %v1007_v43 }
 0x121   : > { %v1051_v52 = vadd.f32 %v1419_v37, %v1010_v48 }
 0x139   : > { %v1436_v53 = vpop.f32.mrb[8].mxu1 }
 0x13a   : > { %v1437_v54 = vpop.f32.mrb[9].mxu1  ;;  %v1170_v58 = vpop.f32.mrb[8].mxu0 }
 0x13b   : > { %v1438_v55 = vadd.f32 %v1437_v54, %v1436_v53  ;;  %v1439_v56 = vpop.f32.mrb[10].mxu1  ;;  %v1511_v61 = vpop.f32.mrb[9].mxu0 }
 0x13c   : > { %v1440_v57 = vpop.f32.mrb[11].mxu1  ;;  %v1173_v62 = vpop.f32.mrb[10].mxu0 }
 0x13d   : > { %v1089_v59 = vadd.f32 %v1438_v55, %v1048_v50  ;;  %v1441_v60 = vadd.f32 %v1440_v57, %v1439_v56  ;;  %v1512_v2 = vpop.f32.mrb[11].mxu0 }
 0x13f   : > { %v1092_v63 = vadd.f32 %v1441_v60, %v1051_v52  ;;  %v1130_v0 = vadd.f32 %v1460_v46, %v1089_v59 }
 0x141   : > { %v1171_v3 = vadd.f32 %v1170_v58, %v1130_v0  ;;  %v1133_v4 = vadd.f32 %v1463_v51, %v1092_v63 }
 0x143   : > { %v1174_v5 = vadd.f32 %v1173_v62, %v1133_v4 }
 0x145   : > { %v1365_v6 = vpack.c.bf16 %v1174_v5, %v1171_v3 }
 0x147   : > { %1366 = vst [vmem:[%s224_s29] sm:$0xff] %v1365_v6  }
 0x148 PF: > { %s14_s15 = sadd.s32 1, %s1634_s15  }
 0x149   : > { %p11_p4 = scmp.ge.s32.totalorder %s14_s15, 4  }
 0x14b   :  { %13 = sbr.rel (!%p11_p4) target bundleno = 1 (0x1), region = 69 }

</bundles_post_ra>
